<compile_context>
chip_gen: v7x
topology: tpu7x:2x2x1
jax: 0.10.0
libtpu: 0.0.40
codegen_flags: <defaults>
</compile_context>

<pallas_src>
import numpy as np
import jax
import jax.numpy as jnp
from jax.experimental import pallas as pl
from jax.experimental.pallas import tpu as pltpu

# ---- config (DimeNet InteractionLayer, small synthetic sizes) ----
EMB = 32
NUM_RADIAL = 8
NUM_SPHERICAL = 4
NUM_BILINEAR = 8
NUM_BEFORE_SKIP = 1
NUM_AFTER_SKIP = 2
NPACK = 2 * NUM_BEFORE_SKIP + 1 + 2 * NUM_AFTER_SKIP   # packed square weights: 7

B = 2      # independent graphs -> parallel grid axis (2 TCs on v7x)
E = 128    # edges per graph   (M dim of edge matmuls >= 128)
T = 256    # triplets per graph

F32 = jnp.float32
BF16 = jnp.bfloat16


def _swish(x):
    return x * jax.nn.sigmoid(x)


def _mm(a, b):
    # bf16 MXU operands, f32 accumulation; elementwise math stays f32.
    return jnp.dot(a.astype(BF16), b.astype(BF16), preferred_element_type=F32)


def interaction_kernel(
    m_ref, rbf_ref, sbf_ref, idkj_ref, idji_ref,
    w_rbf_ref, w_sbf_ref, w_jikj_ref, b_jikj_ref,
    w_bilin_ref, w_sq_ref, b_sq_ref,
    m_out_ref,
):
    act = _swish
    n_edges = m_ref.shape[0]
    n_trip = idkj_ref.shape[0]

    m = m_ref[...]                                                   # [E, EMB] f32

    # ---- edge_transfer: fused ji|kj projection (one matmul, one swish pass) ----
    rbf_e = _mm(rbf_ref[...], w_rbf_ref[...])                        # [E, EMB]
    x = act(_mm(m, w_jikj_ref[...]) + b_jikj_ref[...])               # [E, 2*EMB]
    x_ji = x[:, :EMB]
    x_kj = x[:, EMB:] * rbf_e                                        # [E, EMB]

    # ---- gather x_kj at triplet-source edges (one-hot built in-kernel from int ids) ----
    ids_kj = idkj_ref[...]                                           # [T, 1] int32
    e_iota = jax.lax.broadcasted_iota(jnp.int32, (n_trip, n_edges), 1)
    gsrc = (ids_kj == e_iota).astype(F32)                            # [T, E]
    x_kj_src = _mm(gsrc, x_kj)                                       # [T, EMB]

    # ---- bilinear contraction: single fused K = NUM_BILINEAR*EMB matmul ----
    sbf_t = _mm(sbf_ref[...], w_sbf_ref[...])                        # [T, NB]
    # outer product y[w, j*EMB + l] = sbf_t[w, j] * x_kj_src[w, l], built with
    # lane-broadcast multiplies + lane concat (no reshape / relayout).
    y = jnp.concatenate(
        [sbf_t[:, j:j + 1] * x_kj_src for j in range(NUM_BILINEAR)], axis=1)  # [T, NB*EMB]
    msg = _mm(y, w_bilin_ref[...])                                   # [T, EMB]

    # ---- scatter-add messages to destination edges ----
    ids_ji = idji_ref[...]                                           # [1, T] int32
    e_iota2 = jax.lax.broadcasted_iota(jnp.int32, (n_edges, n_trip), 0)
    sdst = (e_iota2 == ids_ji).astype(F32)                           # [E, T]
    m_update = _mm(sdst, msg) + x_ji                                 # [E, EMB]

    # ---- residual stacks with packed square weights / biases ----
    def res_block(v, k):
        h = act(_mm(v, w_sq_ref[k]) + b_sq_ref[k])
        h = act(_mm(h, w_sq_ref[k + 1]) + b_sq_ref[k + 1])
        return v + h

    for k in range(NUM_BEFORE_SKIP):
        m_update = res_block(m_update, 2 * k)

    idx_fin = 2 * NUM_BEFORE_SKIP
    m_update = act(_mm(m_update, w_sq_ref[idx_fin]) + b_sq_ref[idx_fin])
    m_new = m + m_update

    base = idx_fin + 1
    for k in range(NUM_AFTER_SKIP):
        m_new = res_block(m_new, base + 2 * k)

    m_out_ref[...] = m_new


def interaction_layer(m, rbf, sbf, id_kj, id_ji, params):
    """Wrapper: packs parameters, passes int32 indices, calls the kernel on a batch grid."""
    b_, n_edges, _ = m.shape
    n_trip = id_kj.shape[1]
    nrs = NUM_RADIAL * NUM_SPHERICAL

    # ---- pack parameters (fewer DMA streams, fused projections, flat bilinear) ----
    w_jikj = jnp.concatenate([params["w_ji"], params["w_kj"]], axis=1)        # [EMB, 2*EMB]
    b_jikj = jnp.concatenate([params["b_ji"], params["b_kj"]], axis=1)        # [1, 2*EMB]
    # W[i, j, l] -> flat[j*EMB + l, i]
    w_bilin_flat = jnp.transpose(params["w_bilin"], (1, 2, 0)).reshape(
        NUM_BILINEAR * EMB, EMB)

    sq_w, sq_b = [], []
    for k in range(NUM_BEFORE_SKIP):
        sq_w += [params["wb1"][k], params["wb2"][k]]
        sq_b += [params["bb1"][k], params["bb2"][k]]
    sq_w.append(params["w_fin"]); sq_b.append(params["b_fin"])
    for k in range(NUM_AFTER_SKIP):
        sq_w += [params["wa1"][k], params["wa2"][k]]
        sq_b += [params["ba1"][k], params["ba2"][k]]
    w_sq = jnp.stack(sq_w)                                                    # [NPACK, EMB, EMB]
    b_sq = jnp.stack(sq_b)                                                    # [NPACK, 1, EMB]

    idkj = id_kj.astype(jnp.int32)[:, :, None]                                # [B, T, 1]
    idji = id_ji.astype(jnp.int32)[:, None, :]                                # [B, 1, T]

    bmap = lambda b: (b, 0, 0)
    wmap2 = lambda b: (0, 0)
    wmap3 = lambda b: (0, 0, 0)

    return pl.pallas_call(
        interaction_kernel,
        out_shape=jax.ShapeDtypeStruct((b_, n_edges, EMB), F32),
        grid=(b_,),
        in_specs=[
            pl.BlockSpec((None, n_edges, EMB), bmap),            # m
            pl.BlockSpec((None, n_edges, NUM_RADIAL), bmap),     # rbf
            pl.BlockSpec((None, n_trip, nrs), bmap),             # sbf
            pl.BlockSpec((None, n_trip, 1), bmap),               # id_kj
            pl.BlockSpec((None, 1, n_trip), bmap),               # id_ji
            pl.BlockSpec((NUM_RADIAL, EMB), wmap2),              # w_rbf
            pl.BlockSpec((nrs, NUM_BILINEAR), wmap2),            # w_sbf
            pl.BlockSpec((EMB, 2 * EMB), wmap2),                 # w_ji|w_kj fused
            pl.BlockSpec((1, 2 * EMB), wmap2),                   # b_ji|b_kj fused
            pl.BlockSpec((NUM_BILINEAR * EMB, EMB), wmap2),      # w_bilin flat
            pl.BlockSpec((NPACK, EMB, EMB), wmap3),              # packed square weights
            pl.BlockSpec((NPACK, 1, EMB), wmap3),                # packed biases
        ],
        out_specs=pl.BlockSpec((None, n_edges, EMB), bmap),
        input_output_aliases={0: 0},                              # m fully read before write
        compiler_params=pltpu.CompilerParams(
            dimension_semantics=("parallel",)),
    )(m, rbf, sbf, idkj, idji,
      params["w_rbf"], params["w_sbf"], w_jikj, b_jikj,
      w_bilin_flat, w_sq, b_sq)


# ---- deterministic parameter init (shapes per module __init__; synthetic) ----
def _glorot(key, shape):
    fan_in, fan_out = shape[-2], shape[-1]
    std = np.sqrt(2.0 / (fan_in + fan_out))
    return (jax.random.normal(key, shape) * std).astype(F32)


def make_params(key):
    ks = jax.random.split(key, 16)
    w_bilin = (jax.random.normal(ks[0], (EMB, NUM_BILINEAR, EMB)) * (2.0 / EMB)).astype(F32)
    return {
        "w_rbf": _glorot(ks[1], (NUM_RADIAL, EMB)),
        "w_sbf": _glorot(ks[2], (NUM_RADIAL * NUM_SPHERICAL, NUM_BILINEAR)),
        "w_ji": _glorot(ks[3], (EMB, EMB)),
        "b_ji": (jax.random.normal(ks[4], (1, EMB)) * 0.05).astype(F32),
        "w_kj": _glorot(ks[5], (EMB, EMB)),
        "b_kj": (jax.random.normal(ks[6], (1, EMB)) * 0.05).astype(F32),
        "w_bilin": w_bilin,                                        # [i, j, l]
        "wb1": _glorot(ks[7], (NUM_BEFORE_SKIP, EMB, EMB)),
        "bb1": jnp.zeros((NUM_BEFORE_SKIP, 1, EMB), F32),
        "wb2": _glorot(ks[8], (NUM_BEFORE_SKIP, EMB, EMB)),
        "bb2": jnp.zeros((NUM_BEFORE_SKIP, 1, EMB), F32),
        "w_fin": _glorot(ks[9], (EMB, EMB)),
        "b_fin": (jax.random.normal(ks[10], (1, EMB)) * 0.05).astype(F32),
        "wa1": _glorot(ks[11], (NUM_AFTER_SKIP, EMB, EMB)),
        "ba1": jnp.zeros((NUM_AFTER_SKIP, 1, EMB), F32),
        "wa2": _glorot(ks[12], (NUM_AFTER_SKIP, EMB, EMB)),
        "ba2": jnp.zeros((NUM_AFTER_SKIP, 1, EMB), F32),
    }


# ---- pure-JAX reference (mirrors the PyTorch/DGL forward semantics), f32 ----
def _interaction_ref_single(m, rbf, sbf, id_kj, id_ji, params):
    act = _swish
    rbf_e = rbf @ params["w_rbf"]
    x_ji = act(m @ params["w_ji"] + params["b_ji"])
    x_kj = act(m @ params["w_kj"] + params["b_kj"]) * rbf_e
    sbf_t = sbf @ params["w_sbf"]
    x_kj_src = x_kj[id_kj]
    msg = jnp.einsum("wj,wl,ijl->wi", sbf_t, x_kj_src, params["w_bilin"])
    m_update = jnp.zeros_like(m).at[id_ji].add(msg)
    m_update = m_update + x_ji
    for k in range(NUM_BEFORE_SKIP):
        h = act(m_update @ params["wb1"][k] + params["bb1"][k])
        h = act(h @ params["wb2"][k] + params["bb2"][k])
        m_update = m_update + h
    m_update = act(m_update @ params["w_fin"] + params["b_fin"])
    m_new = m + m_update
    for k in range(NUM_AFTER_SKIP):
        h = act(m_new @ params["wa1"][k] + params["ba1"][k])
        h = act(h @ params["wa2"][k] + params["ba2"][k])
        m_new = m_new + h
    return m_new


def interaction_reference(m, rbf, sbf, id_kj, id_ji, params):
    return jnp.stack([
        _interaction_ref_single(m[b], rbf[b], sbf[b], id_kj[b], id_ji[b], params)
        for b in range(m.shape[0])
    ])


if __name__ == "__main__":
    key = jax.random.PRNGKey(0)
    k_param, k_m, k_rbf, k_sbf, k_src, k_dst = jax.random.split(key, 6)

    params = make_params(k_param)

    m = jax.random.normal(k_m, (B, E, EMB), dtype=F32)
    rbf = jax.random.normal(k_rbf, (B, E, NUM_RADIAL), dtype=F32)
    sbf = jax.random.normal(k_sbf, (B, T, NUM_RADIAL * NUM_SPHERICAL), dtype=F32)
    id_kj = jax.random.randint(k_src, (B, T), 0, E)    # triplet source edge
    id_ji = jax.random.randint(k_dst, (B, T), 0, E)    # triplet destination edge

    # reference first (kernel output aliases m's buffer inside the call)
    ref = jax.block_until_ready(interaction_reference(m, rbf, sbf, id_kj, id_ji, params))

    out = jax.jit(interaction_layer)(m, rbf, sbf, id_kj, id_ji, params)
    out = jax.block_until_ready(out)

    # bf16 MXU operands (f32 accumulation) -> slightly looser tolerance than pure f32.
    np.testing.assert_allclose(np.asarray(out), np.asarray(ref), rtol=5e-2, atol=5e-2)

    print("KERNEL_OK")
</pallas_src>

<mosaic_0001>
module attributes {stable_mosaic.version = 11 : i64} {
  func.func @interaction_kernel(%arg0: i32, %arg1: memref<1x128x32xf32, #tpu.memory_space<vmem>>, %arg2: memref<1x128x8xf32, #tpu.memory_space<vmem>>, %arg3: memref<1x256x32xf32, #tpu.memory_space<vmem>>, %arg4: memref<1x256x1xi32, #tpu.memory_space<vmem>>, %arg5: memref<1x1x256xi32, #tpu.memory_space<vmem>>, %arg6: memref<8x32xf32, #tpu.memory_space<vmem>>, %arg7: memref<32x8xf32, #tpu.memory_space<vmem>>, %arg8: memref<32x64xf32, #tpu.memory_space<vmem>>, %arg9: memref<1x64xf32, #tpu.memory_space<vmem>>, %arg10: memref<256x32xf32, #tpu.memory_space<vmem>>, %arg11: memref<7x32x32xf32, #tpu.memory_space<vmem>>, %arg12: memref<7x1x32xf32, #tpu.memory_space<vmem>>, %arg13: memref<1x128x32xf32, #tpu.memory_space<vmem>>) attributes {dimension_semantics = [#tpu.dimension_semantics<parallel>], iteration_bounds = array<i64: 2>, scalar_prefetch = 0 : i64, scratch_operands = 0 : i64, tpu.core_type = #tpu.core_type<tc>, window_params = [{transform_indices = @transform_0, window_bounds = array<i64: 1, 128, 32>}, {transform_indices = @transform_1, window_bounds = array<i64: 1, 128, 8>}, {transform_indices = @transform_2, window_bounds = array<i64: 1, 256, 32>}, {transform_indices = @transform_3, window_bounds = array<i64: 1, 256, 1>}, {transform_indices = @transform_4, window_bounds = array<i64: 1, 1, 256>}, {pipeline_mode = #tpu.pipeline_mode<synchronous>, transform_indices = @transform_5, window_bounds = array<i64: 8, 32>}, {pipeline_mode = #tpu.pipeline_mode<synchronous>, transform_indices = @transform_6, window_bounds = array<i64: 32, 8>}, {pipeline_mode = #tpu.pipeline_mode<synchronous>, transform_indices = @transform_7, window_bounds = array<i64: 32, 64>}, {pipeline_mode = #tpu.pipeline_mode<synchronous>, transform_indices = @transform_8, window_bounds = array<i64: 1, 64>}, {pipeline_mode = #tpu.pipeline_mode<synchronous>, transform_indices = @transform_9, window_bounds = array<i64: 256, 32>}, {pipeline_mode = #tpu.pipeline_mode<synchronous>, transform_indices = @transform_10, window_bounds = array<i64: 7, 32, 32>}, {pipeline_mode = #tpu.pipeline_mode<synchronous>, transform_indices = @transform_11, window_bounds = array<i64: 7, 1, 32>}, {transform_indices = @transform_12, window_bounds = array<i64: 1, 128, 32>}]} {
    %c0 = arith.constant 0 : index
    %c0_0 = arith.constant 0 : index
    %c0_1 = arith.constant 0 : index
    %0 = vector.load %arg1[%c0, %c0_0, %c0_1] : memref<1x128x32xf32, #tpu.memory_space<vmem>>, vector<1x128x32xf32>
    %1 = vector.shape_cast %0 : vector<1x128x32xf32> to vector<128x32xf32>
    %c0_2 = arith.constant 0 : index
    %c0_3 = arith.constant 0 : index
    %c0_4 = arith.constant 0 : index
    %2 = vector.load %arg2[%c0_2, %c0_3, %c0_4] : memref<1x128x8xf32, #tpu.memory_space<vmem>>, vector<1x128x8xf32>
    %3 = vector.shape_cast %2 : vector<1x128x8xf32> to vector<128x8xf32>
    %c0_5 = arith.constant 0 : index
    %c0_6 = arith.constant 0 : index
    %4 = vector.load %arg6[%c0_5, %c0_6] : memref<8x32xf32, #tpu.memory_space<vmem>>, vector<8x32xf32>
    %5 = arith.truncf %3 : vector<128x8xf32> to vector<128x8xbf16>
    %6 = arith.truncf %4 : vector<8x32xf32> to vector<8x32xbf16>
    %cst = arith.constant dense<0.000000e+00> : vector<128x32xf32>
    %7 = tpu.matmul %5, %6, %cst {dimension_numbers = #tpu.dot_dimension_numbers<[1], [0], [0], [1], [0, 0, 1, 1], [], []>} : vector<128x8xbf16>, vector<8x32xbf16>, vector<128x32xf32> -> vector<128x32xf32>
    %c0_7 = arith.constant 0 : index
    %c0_8 = arith.constant 0 : index
    %8 = vector.load %arg8[%c0_7, %c0_8] : memref<32x64xf32, #tpu.memory_space<vmem>>, vector<32x64xf32>
    %9 = arith.truncf %1 : vector<128x32xf32> to vector<128x32xbf16>
    %10 = arith.truncf %8 : vector<32x64xf32> to vector<32x64xbf16>
    %cst_9 = arith.constant dense<0.000000e+00> : vector<128x64xf32>
    %11 = tpu.matmul %9, %10, %cst_9 {dimension_numbers = #tpu.dot_dimension_numbers<[1], [0], [0], [1], [0, 0, 1, 1], [], []>} : vector<128x32xbf16>, vector<32x64xbf16>, vector<128x64xf32> -> vector<128x64xf32>
    %c0_10 = arith.constant 0 : index
    %c0_11 = arith.constant 0 : index
    %12 = vector.load %arg9[%c0_10, %c0_11] : memref<1x64xf32, #tpu.memory_space<vmem>>, vector<1x64xf32>
    %13 = vector.broadcast %12 : vector<1x64xf32> to vector<128x64xf32>
    %14 = arith.addf %11, %13 : vector<128x64xf32>
    %15 = arith.negf %14 : vector<128x64xf32>
    %16 = math.exp %15 : vector<128x64xf32>
    %cst_12 = arith.constant 1.000000e+00 : f32
    %17 = vector.broadcast %cst_12 : f32 to vector<128x64xf32>
    %18 = arith.addf %17, %16 : vector<128x64xf32>
    %19 = arith.divf %17, %18 : vector<128x64xf32>
    %20 = arith.mulf %14, %19 : vector<128x64xf32>
    %21 = vector.extract_strided_slice %20 {offsets = [0, 0], sizes = [128, 32], strides = [1, 1]} : vector<128x64xf32> to vector<128x32xf32>
    %22 = vector.extract_strided_slice %20 {offsets = [0, 32], sizes = [128, 32], strides = [1, 1]} : vector<128x64xf32> to vector<128x32xf32>
    %23 = arith.mulf %22, %7 : vector<128x32xf32>
    %c0_13 = arith.constant 0 : index
    %c0_14 = arith.constant 0 : index
    %c0_15 = arith.constant 0 : index
    %24 = vector.load %arg4[%c0_13, %c0_14, %c0_15] : memref<1x256x1xi32, #tpu.memory_space<vmem>>, vector<1x256x1xi32>
    %25 = vector.shape_cast %24 : vector<1x256x1xi32> to vector<256x1xi32>
    %26 = tpu.iota {dimensions = array<i32: 1>} : vector<256x128xi32>
    %27 = vector.broadcast %25 : vector<256x1xi32> to vector<256x128xi32>
    %28 = arith.cmpi eq, %27, %26 : vector<256x128xi32>
    %29 = arith.extui %28 : vector<256x128xi1> to vector<256x128xi32>
    %30 = arith.sitofp %29 : vector<256x128xi32> to vector<256x128xf32>
    %31 = arith.truncf %30 : vector<256x128xf32> to vector<256x128xbf16>
    %32 = arith.truncf %23 : vector<128x32xf32> to vector<128x32xbf16>
    %cst_16 = arith.constant dense<0.000000e+00> : vector<256x32xf32>
    %33 = tpu.matmul %31, %32, %cst_16 {dimension_numbers = #tpu.dot_dimension_numbers<[1], [0], [0], [1], [0, 0, 1, 1], [], []>} : vector<256x128xbf16>, vector<128x32xbf16>, vector<256x32xf32> -> vector<256x32xf32>
    %c0_17 = arith.constant 0 : index
    %c0_18 = arith.constant 0 : index
    %c0_19 = arith.constant 0 : index
    %34 = vector.load %arg3[%c0_17, %c0_18, %c0_19] : memref<1x256x32xf32, #tpu.memory_space<vmem>>, vector<1x256x32xf32>
    %35 = vector.shape_cast %34 : vector<1x256x32xf32> to vector<256x32xf32>
    %c0_20 = arith.constant 0 : index
    %c0_21 = arith.constant 0 : index
    %36 = vector.load %arg7[%c0_20, %c0_21] : memref<32x8xf32, #tpu.memory_space<vmem>>, vector<32x8xf32>
    %37 = arith.truncf %35 : vector<256x32xf32> to vector<256x32xbf16>
    %38 = arith.truncf %36 : vector<32x8xf32> to vector<32x8xbf16>
    %cst_22 = arith.constant dense<0.000000e+00> : vector<256x8xf32>
    %39 = tpu.matmul %37, %38, %cst_22 {dimension_numbers = #tpu.dot_dimension_numbers<[1], [0], [0], [1], [0, 0, 1, 1], [], []>} : vector<256x32xbf16>, vector<32x8xbf16>, vector<256x8xf32> -> vector<256x8xf32>
    %40 = vector.extract_strided_slice %39 {offsets = [0, 0], sizes = [256, 1], strides = [1, 1]} : vector<256x8xf32> to vector<256x1xf32>
    %41 = vector.broadcast %40 : vector<256x1xf32> to vector<256x32xf32>
    %42 = arith.mulf %41, %33 : vector<256x32xf32>
    %43 = vector.extract_strided_slice %39 {offsets = [0, 1], sizes = [256, 1], strides = [1, 1]} : vector<256x8xf32> to vector<256x1xf32>
    %44 = vector.broadcast %43 : vector<256x1xf32> to vector<256x32xf32>
    %45 = arith.mulf %44, %33 : vector<256x32xf32>
    %46 = vector.extract_strided_slice %39 {offsets = [0, 2], sizes = [256, 1], strides = [1, 1]} : vector<256x8xf32> to vector<256x1xf32>
    %47 = vector.broadcast %46 : vector<256x1xf32> to vector<256x32xf32>
    %48 = arith.mulf %47, %33 : vector<256x32xf32>
    %49 = vector.extract_strided_slice %39 {offsets = [0, 3], sizes = [256, 1], strides = [1, 1]} : vector<256x8xf32> to vector<256x1xf32>
    %50 = vector.broadcast %49 : vector<256x1xf32> to vector<256x32xf32>
    %51 = arith.mulf %50, %33 : vector<256x32xf32>
    %52 = vector.extract_strided_slice %39 {offsets = [0, 4], sizes = [256, 1], strides = [1, 1]} : vector<256x8xf32> to vector<256x1xf32>
    %53 = vector.broadcast %52 : vector<256x1xf32> to vector<256x32xf32>
    %54 = arith.mulf %53, %33 : vector<256x32xf32>
    %55 = vector.extract_strided_slice %39 {offsets = [0, 5], sizes = [256, 1], strides = [1, 1]} : vector<256x8xf32> to vector<256x1xf32>
    %56 = vector.broadcast %55 : vector<256x1xf32> to vector<256x32xf32>
    %57 = arith.mulf %56, %33 : vector<256x32xf32>
    %58 = vector.extract_strided_slice %39 {offsets = [0, 6], sizes = [256, 1], strides = [1, 1]} : vector<256x8xf32> to vector<256x1xf32>
    %59 = vector.broadcast %58 : vector<256x1xf32> to vector<256x32xf32>
    %60 = arith.mulf %59, %33 : vector<256x32xf32>
    %61 = vector.extract_strided_slice %39 {offsets = [0, 7], sizes = [256, 1], strides = [1, 1]} : vector<256x8xf32> to vector<256x1xf32>
    %62 = vector.broadcast %61 : vector<256x1xf32> to vector<256x32xf32>
    %63 = arith.mulf %62, %33 : vector<256x32xf32>
    %64 = tpu.concatenate %42, %45, %48, %51, %54, %57, %60, %63 in 1 : vector<256x32xf32>, vector<256x32xf32>, vector<256x32xf32>, vector<256x32xf32>, vector<256x32xf32>, vector<256x32xf32>, vector<256x32xf32>, vector<256x32xf32> -> vector<256x256xf32>
    %c0_23 = arith.constant 0 : index
    %c0_24 = arith.constant 0 : index
    %65 = vector.load %arg10[%c0_23, %c0_24] : memref<256x32xf32, #tpu.memory_space<vmem>>, vector<256x32xf32>
    %66 = arith.truncf %64 : vector<256x256xf32> to vector<256x256xbf16>
    %67 = arith.truncf %65 : vector<256x32xf32> to vector<256x32xbf16>
    %cst_25 = arith.constant dense<0.000000e+00> : vector<256x32xf32>
    %68 = tpu.matmul %66, %67, %cst_25 {dimension_numbers = #tpu.dot_dimension_numbers<[1], [0], [0], [1], [0, 0, 1, 1], [], []>} : vector<256x256xbf16>, vector<256x32xbf16>, vector<256x32xf32> -> vector<256x32xf32>
    %c0_26 = arith.constant 0 : index
    %c0_27 = arith.constant 0 : index
    %c0_28 = arith.constant 0 : index
    %69 = vector.load %arg5[%c0_26, %c0_27, %c0_28] : memref<1x1x256xi32, #tpu.memory_space<vmem>>, vector<1x1x256xi32>
    %70 = vector.shape_cast %69 : vector<1x1x256xi32> to vector<1x256xi32>
    %71 = tpu.iota {dimensions = array<i32: 0>} : vector<128x256xi32>
    %72 = vector.broadcast %70 : vector<1x256xi32> to vector<128x256xi32>
    %73 = arith.cmpi eq, %71, %72 : vector<128x256xi32>
    %74 = arith.extui %73 : vector<128x256xi1> to vector<128x256xi32>
    %75 = arith.sitofp %74 : vector<128x256xi32> to vector<128x256xf32>
    %76 = arith.truncf %75 : vector<128x256xf32> to vector<128x256xbf16>
    %77 = arith.truncf %68 : vector<256x32xf32> to vector<256x32xbf16>
    %cst_29 = arith.constant dense<0.000000e+00> : vector<128x32xf32>
    %78 = tpu.matmul %76, %77, %cst_29 {dimension_numbers = #tpu.dot_dimension_numbers<[1], [0], [0], [1], [0, 0, 1, 1], [], []>} : vector<128x256xbf16>, vector<256x32xbf16>, vector<128x32xf32> -> vector<128x32xf32>
    %79 = arith.addf %78, %21 : vector<128x32xf32>
    %c0_30 = arith.constant 0 : index
    %c0_31 = arith.constant 0 : index
    %c0_32 = arith.constant 0 : index
    %80 = vector.load %arg11[%c0_30, %c0_31, %c0_32] : memref<7x32x32xf32, #tpu.memory_space<vmem>>, vector<1x32x32xf32>
    %81 = vector.shape_cast %80 : vector<1x32x32xf32> to vector<32x32xf32>
    %82 = arith.truncf %79 : vector<128x32xf32> to vector<128x32xbf16>
    %83 = arith.truncf %81 : vector<32x32xf32> to vector<32x32xbf16>
    %cst_33 = arith.constant dense<0.000000e+00> : vector<128x32xf32>
    %84 = tpu.matmul %82, %83, %cst_33 {dimension_numbers = #tpu.dot_dimension_numbers<[1], [0], [0], [1], [0, 0, 1, 1], [], []>} : vector<128x32xbf16>, vector<32x32xbf16>, vector<128x32xf32> -> vector<128x32xf32>
    %c0_34 = arith.constant 0 : index
    %c0_35 = arith.constant 0 : index
    %c0_36 = arith.constant 0 : index
    %85 = vector.load %arg12[%c0_34, %c0_35, %c0_36] : memref<7x1x32xf32, #tpu.memory_space<vmem>>, vector<1x1x32xf32>
    %86 = vector.shape_cast %85 : vector<1x1x32xf32> to vector<1x32xf32>
    %87 = vector.broadcast %86 : vector<1x32xf32> to vector<128x32xf32>
    %88 = arith.addf %84, %87 : vector<128x32xf32>
    %89 = arith.negf %88 : vector<128x32xf32>
    %90 = math.exp %89 : vector<128x32xf32>
    %cst_37 = arith.constant 1.000000e+00 : f32
    %91 = vector.broadcast %cst_37 : f32 to vector<128x32xf32>
    %92 = arith.addf %91, %90 : vector<128x32xf32>
    %93 = arith.divf %91, %92 : vector<128x32xf32>
    %94 = arith.mulf %88, %93 : vector<128x32xf32>
    %c1 = arith.constant 1 : index
    %c0_38 = arith.constant 0 : index
    %c0_39 = arith.constant 0 : index
    %95 = vector.load %arg11[%c1, %c0_38, %c0_39] : memref<7x32x32xf32, #tpu.memory_space<vmem>>, vector<1x32x32xf32>
    %96 = vector.shape_cast %95 : vector<1x32x32xf32> to vector<32x32xf32>
    %97 = arith.truncf %94 : vector<128x32xf32> to vector<128x32xbf16>
    %98 = arith.truncf %96 : vector<32x32xf32> to vector<32x32xbf16>
    %cst_40 = arith.constant dense<0.000000e+00> : vector<128x32xf32>
    %99 = tpu.matmul %97, %98, %cst_40 {dimension_numbers = #tpu.dot_dimension_numbers<[1], [0], [0], [1], [0, 0, 1, 1], [], []>} : vector<128x32xbf16>, vector<32x32xbf16>, vector<128x32xf32> -> vector<128x32xf32>
    %c1_41 = arith.constant 1 : index
    %c0_42 = arith.constant 0 : index
    %c0_43 = arith.constant 0 : index
    %100 = vector.load %arg12[%c1_41, %c0_42, %c0_43] : memref<7x1x32xf32, #tpu.memory_space<vmem>>, vector<1x1x32xf32>
    %101 = vector.shape_cast %100 : vector<1x1x32xf32> to vector<1x32xf32>
    %102 = vector.broadcast %101 : vector<1x32xf32> to vector<128x32xf32>
    %103 = arith.addf %99, %102 : vector<128x32xf32>
    %104 = arith.negf %103 : vector<128x32xf32>
    %105 = math.exp %104 : vector<128x32xf32>
    %cst_44 = arith.constant 1.000000e+00 : f32
    %106 = vector.broadcast %cst_44 : f32 to vector<128x32xf32>
    %107 = arith.addf %106, %105 : vector<128x32xf32>
    %108 = arith.divf %106, %107 : vector<128x32xf32>
    %109 = arith.mulf %103, %108 : vector<128x32xf32>
    %110 = arith.addf %79, %109 : vector<128x32xf32>
    %c2 = arith.constant 2 : index
    %c0_45 = arith.constant 0 : index
    %c0_46 = arith.constant 0 : index
    %111 = vector.load %arg11[%c2, %c0_45, %c0_46] : memref<7x32x32xf32, #tpu.memory_space<vmem>>, vector<1x32x32xf32>
    %112 = vector.shape_cast %111 : vector<1x32x32xf32> to vector<32x32xf32>
    %113 = arith.truncf %110 : vector<128x32xf32> to vector<128x32xbf16>
    %114 = arith.truncf %112 : vector<32x32xf32> to vector<32x32xbf16>
    %cst_47 = arith.constant dense<0.000000e+00> : vector<128x32xf32>
    %115 = tpu.matmul %113, %114, %cst_47 {dimension_numbers = #tpu.dot_dimension_numbers<[1], [0], [0], [1], [0, 0, 1, 1], [], []>} : vector<128x32xbf16>, vector<32x32xbf16>, vector<128x32xf32> -> vector<128x32xf32>
    %c2_48 = arith.constant 2 : index
    %c0_49 = arith.constant 0 : index
    %c0_50 = arith.constant 0 : index
    %116 = vector.load %arg12[%c2_48, %c0_49, %c0_50] : memref<7x1x32xf32, #tpu.memory_space<vmem>>, vector<1x1x32xf32>
    %117 = vector.shape_cast %116 : vector<1x1x32xf32> to vector<1x32xf32>
    %118 = vector.broadcast %117 : vector<1x32xf32> to vector<128x32xf32>
    %119 = arith.addf %115, %118 : vector<128x32xf32>
    %120 = arith.negf %119 : vector<128x32xf32>
    %121 = math.exp %120 : vector<128x32xf32>
    %cst_51 = arith.constant 1.000000e+00 : f32
    %122 = vector.broadcast %cst_51 : f32 to vector<128x32xf32>
    %123 = arith.addf %122, %121 : vector<128x32xf32>
    %124 = arith.divf %122, %123 : vector<128x32xf32>
    %125 = arith.mulf %119, %124 : vector<128x32xf32>
    %126 = arith.addf %1, %125 : vector<128x32xf32>
    %c3 = arith.constant 3 : index
    %c0_52 = arith.constant 0 : index
    %c0_53 = arith.constant 0 : index
    %127 = vector.load %arg11[%c3, %c0_52, %c0_53] : memref<7x32x32xf32, #tpu.memory_space<vmem>>, vector<1x32x32xf32>
    %128 = vector.shape_cast %127 : vector<1x32x32xf32> to vector<32x32xf32>
    %129 = arith.truncf %126 : vector<128x32xf32> to vector<128x32xbf16>
    %130 = arith.truncf %128 : vector<32x32xf32> to vector<32x32xbf16>
    %cst_54 = arith.constant dense<0.000000e+00> : vector<128x32xf32>
    %131 = tpu.matmul %129, %130, %cst_54 {dimension_numbers = #tpu.dot_dimension_numbers<[1], [0], [0], [1], [0, 0, 1, 1], [], []>} : vector<128x32xbf16>, vector<32x32xbf16>, vector<128x32xf32> -> vector<128x32xf32>
    %c3_55 = arith.constant 3 : index
    %c0_56 = arith.constant 0 : index
    %c0_57 = arith.constant 0 : index
    %132 = vector.load %arg12[%c3_55, %c0_56, %c0_57] : memref<7x1x32xf32, #tpu.memory_space<vmem>>, vector<1x1x32xf32>
    %133 = vector.shape_cast %132 : vector<1x1x32xf32> to vector<1x32xf32>
    %134 = vector.broadcast %133 : vector<1x32xf32> to vector<128x32xf32>
    %135 = arith.addf %131, %134 : vector<128x32xf32>
    %136 = arith.negf %135 : vector<128x32xf32>
    %137 = math.exp %136 : vector<128x32xf32>
    %cst_58 = arith.constant 1.000000e+00 : f32
    %138 = vector.broadcast %cst_58 : f32 to vector<128x32xf32>
    %139 = arith.addf %138, %137 : vector<128x32xf32>
    %140 = arith.divf %138, %139 : vector<128x32xf32>
    %141 = arith.mulf %135, %140 : vector<128x32xf32>
    %c4 = arith.constant 4 : index
    %c0_59 = arith.constant 0 : index
    %c0_60 = arith.constant 0 : index
    %142 = vector.load %arg11[%c4, %c0_59, %c0_60] : memref<7x32x32xf32, #tpu.memory_space<vmem>>, vector<1x32x32xf32>
    %143 = vector.shape_cast %142 : vector<1x32x32xf32> to vector<32x32xf32>
    %144 = arith.truncf %141 : vector<128x32xf32> to vector<128x32xbf16>
    %145 = arith.truncf %143 : vector<32x32xf32> to vector<32x32xbf16>
    %cst_61 = arith.constant dense<0.000000e+00> : vector<128x32xf32>
    %146 = tpu.matmul %144, %145, %cst_61 {dimension_numbers = #tpu.dot_dimension_numbers<[1], [0], [0], [1], [0, 0, 1, 1], [], []>} : vector<128x32xbf16>, vector<32x32xbf16>, vector<128x32xf32> -> vector<128x32xf32>
    %c4_62 = arith.constant 4 : index
    %c0_63 = arith.constant 0 : index
    %c0_64 = arith.constant 0 : index
    %147 = vector.load %arg12[%c4_62, %c0_63, %c0_64] : memref<7x1x32xf32, #tpu.memory_space<vmem>>, vector<1x1x32xf32>
    %148 = vector.shape_cast %147 : vector<1x1x32xf32> to vector<1x32xf32>
    %149 = vector.broadcast %148 : vector<1x32xf32> to vector<128x32xf32>
    %150 = arith.addf %146, %149 : vector<128x32xf32>
    %151 = arith.negf %150 : vector<128x32xf32>
    %152 = math.exp %151 : vector<128x32xf32>
    %cst_65 = arith.constant 1.000000e+00 : f32
    %153 = vector.broadcast %cst_65 : f32 to vector<128x32xf32>
    %154 = arith.addf %153, %152 : vector<128x32xf32>
    %155 = arith.divf %153, %154 : vector<128x32xf32>
    %156 = arith.mulf %150, %155 : vector<128x32xf32>
    %157 = arith.addf %126, %156 : vector<128x32xf32>
    %c5 = arith.constant 5 : index
    %c0_66 = arith.constant 0 : index
    %c0_67 = arith.constant 0 : index
    %158 = vector.load %arg11[%c5, %c0_66, %c0_67] : memref<7x32x32xf32, #tpu.memory_space<vmem>>, vector<1x32x32xf32>
    %159 = vector.shape_cast %158 : vector<1x32x32xf32> to vector<32x32xf32>
    %160 = arith.truncf %157 : vector<128x32xf32> to vector<128x32xbf16>
    %161 = arith.truncf %159 : vector<32x32xf32> to vector<32x32xbf16>
    %cst_68 = arith.constant dense<0.000000e+00> : vector<128x32xf32>
    %162 = tpu.matmul %160, %161, %cst_68 {dimension_numbers = #tpu.dot_dimension_numbers<[1], [0], [0], [1], [0, 0, 1, 1], [], []>} : vector<128x32xbf16>, vector<32x32xbf16>, vector<128x32xf32> -> vector<128x32xf32>
    %c5_69 = arith.constant 5 : index
    %c0_70 = arith.constant 0 : index
    %c0_71 = arith.constant 0 : index
    %163 = vector.load %arg12[%c5_69, %c0_70, %c0_71] : memref<7x1x32xf32, #tpu.memory_space<vmem>>, vector<1x1x32xf32>
    %164 = vector.shape_cast %163 : vector<1x1x32xf32> to vector<1x32xf32>
    %165 = vector.broadcast %164 : vector<1x32xf32> to vector<128x32xf32>
    %166 = arith.addf %162, %165 : vector<128x32xf32>
    %167 = arith.negf %166 : vector<128x32xf32>
    %168 = math.exp %167 : vector<128x32xf32>
    %cst_72 = arith.constant 1.000000e+00 : f32
    %169 = vector.broadcast %cst_72 : f32 to vector<128x32xf32>
    %170 = arith.addf %169, %168 : vector<128x32xf32>
    %171 = arith.divf %169, %170 : vector<128x32xf32>
    %172 = arith.mulf %166, %171 : vector<128x32xf32>
    %c6 = arith.constant 6 : index
    %c0_73 = arith.constant 0 : index
    %c0_74 = arith.constant 0 : index
    %173 = vector.load %arg11[%c6, %c0_73, %c0_74] : memref<7x32x32xf32, #tpu.memory_space<vmem>>, vector<1x32x32xf32>
    %174 = vector.shape_cast %173 : vector<1x32x32xf32> to vector<32x32xf32>
    %175 = arith.truncf %172 : vector<128x32xf32> to vector<128x32xbf16>
    %176 = arith.truncf %174 : vector<32x32xf32> to vector<32x32xbf16>
    %cst_75 = arith.constant dense<0.000000e+00> : vector<128x32xf32>
    %177 = tpu.matmul %175, %176, %cst_75 {dimension_numbers = #tpu.dot_dimension_numbers<[1], [0], [0], [1], [0, 0, 1, 1], [], []>} : vector<128x32xbf16>, vector<32x32xbf16>, vector<128x32xf32> -> vector<128x32xf32>
    %c6_76 = arith.constant 6 : index
    %c0_77 = arith.constant 0 : index
    %c0_78 = arith.constant 0 : index
    %178 = vector.load %arg12[%c6_76, %c0_77, %c0_78] : memref<7x1x32xf32, #tpu.memory_space<vmem>>, vector<1x1x32xf32>
    %179 = vector.shape_cast %178 : vector<1x1x32xf32> to vector<1x32xf32>
    %180 = vector.broadcast %179 : vector<1x32xf32> to vector<128x32xf32>
    %181 = arith.addf %177, %180 : vector<128x32xf32>
    %182 = arith.negf %181 : vector<128x32xf32>
    %183 = math.exp %182 : vector<128x32xf32>
    %cst_79 = arith.constant 1.000000e+00 : f32
    %184 = vector.broadcast %cst_79 : f32 to vector<128x32xf32>
    %185 = arith.addf %184, %183 : vector<128x32xf32>
    %186 = arith.divf %184, %185 : vector<128x32xf32>
    %187 = arith.mulf %181, %186 : vector<128x32xf32>
    %188 = arith.addf %157, %187 : vector<128x32xf32>
    %c0_80 = arith.constant 0 : index
    %c0_81 = arith.constant 0 : index
    %c0_82 = arith.constant 0 : index
    %189 = vector.load %arg13[%c0_80, %c0_81, %c0_82] : memref<1x128x32xf32, #tpu.memory_space<vmem>>, vector<1x128x32xf32>
    %190 = vector.shape_cast %189 : vector<1x128x32xf32> to vector<128x32xf32>
    %191 = vector.shape_cast %188 : vector<128x32xf32> to vector<1x128x32xf32>
    tpu.vector_store %arg13[%c0_80, %c0_81, %c0_82], %191 {strides = array<i32>} : memref<1x128x32xf32, #tpu.memory_space<vmem>>, vector<1x128x32xf32>,
    return
  }
  func.func @transform_0(%arg0: i32) -> (i32, i32, i32) {
    %c0_i32 = arith.constant 0 : i32
    %c0_i32_0 = arith.constant 0 : i32
    %c0_i32_1 = arith.constant 0 : i32
    return %arg0, %c0_i32, %c0_i32_0 : i32, i32, i32
  }
  func.func @transform_1(%arg0: i32) -> (i32, i32, i32) {
    %c0_i32 = arith.constant 0 : i32
    %c0_i32_0 = arith.constant 0 : i32
    %c0_i32_1 = arith.constant 0 : i32
    return %arg0, %c0_i32, %c0_i32_0 : i32, i32, i32
  }
  func.func @transform_2(%arg0: i32) -> (i32, i32, i32) {
    %c0_i32 = arith.constant 0 : i32
    %c0_i32_0 = arith.constant 0 : i32
    %c0_i32_1 = arith.constant 0 : i32
    return %arg0, %c0_i32, %c0_i32_0 : i32, i32, i32
  }
  func.func @transform_3(%arg0: i32) -> (i32, i32, i32) {
    %c0_i32 = arith.constant 0 : i32
    %c0_i32_0 = arith.constant 0 : i32
    %c0_i32_1 = arith.constant 0 : i32
    return %arg0, %c0_i32, %c0_i32_0 : i32, i32, i32
  }
  func.func @transform_4(%arg0: i32) -> (i32, i32, i32) {
    %c0_i32 = arith.constant 0 : i32
    %c0_i32_0 = arith.constant 0 : i32
    %c0_i32_1 = arith.constant 0 : i32
    return %arg0, %c0_i32, %c0_i32_0 : i32, i32, i32
  }
  func.func @transform_5(%arg0: i32) -> (i32, i32) {
    %c0_i32 = arith.constant 0 : i32
    %c0_i32_0 = arith.constant 0 : i32
    %c0_i32_1 = arith.constant 0 : i32
    return %c0_i32, %c0_i32_0 : i32, i32
  }
  func.func @transform_6(%arg0: i32) -> (i32, i32) {
    %c0_i32 = arith.constant 0 : i32
    %c0_i32_0 = arith.constant 0 : i32
    %c0_i32_1 = arith.constant 0 : i32
    return %c0_i32, %c0_i32_0 : i32, i32
  }
  func.func @transform_7(%arg0: i32) -> (i32, i32) {
    %c0_i32 = arith.constant 0 : i32
    %c0_i32_0 = arith.constant 0 : i32
    %c0_i32_1 = arith.constant 0 : i32
    return %c0_i32, %c0_i32_0 : i32, i32
  }
  func.func @transform_8(%arg0: i32) -> (i32, i32) {
    %c0_i32 = arith.constant 0 : i32
    %c0_i32_0 = arith.constant 0 : i32
    %c0_i32_1 = arith.constant 0 : i32
    return %c0_i32, %c0_i32_0 : i32, i32
  }
  func.func @transform_9(%arg0: i32) -> (i32, i32) {
    %c0_i32 = arith.constant 0 : i32
    %c0_i32_0 = arith.constant 0 : i32
    %c0_i32_1 = arith.constant 0 : i32
    return %c0_i32, %c0_i32_0 : i32, i32
  }
  func.func @transform_10(%arg0: i32) -> (i32, i32, i32) {
    %c0_i32 = arith.constant 0 : i32
    %c0_i32_0 = arith.constant 0 : i32
    %c0_i32_1 = arith.constant 0 : i32
    %c0_i32_2 = arith.constant 0 : i32
    return %c0_i32, %c0_i32_0, %c0_i32_1 : i32, i32, i32
  }
  func.func @transform_11(%arg0: i32) -> (i32, i32, i32) {
    %c0_i32 = arith.constant 0 : i32
    %c0_i32_0 = arith.constant 0 : i32
    %c0_i32_1 = arith.constant 0 : i32
    %c0_i32_2 = arith.constant 0 : i32
    return %c0_i32, %c0_i32_0, %c0_i32_1 : i32, i32, i32
  }
  func.func @transform_12(%arg0: i32) -> (i32, i32, i32) {
    %c0_i32 = arith.constant 0 : i32
    %c0_i32_0 = arith.constant 0 : i32
    %c0_i32_1 = arith.constant 0 : i32
    return %arg0, %c0_i32, %c0_i32_0 : i32, i32, i32
  }
}

</mosaic_0001>

<bundles_post_ra>
// kernel: interaction_layer.1
= control target key start
LH: loop header
LB: loop body
LE: loop exit
PB: predicated region body
PF: predicated region fallthrough
CT: control target
= control target key end

     0   :  { %s8786_s21 = smov 0   ;;  %s12604_s0 = inlined_call_operand.vmem [shape: f32[2,128,32], index: 0, kind: input, shape index: {}, may-alias: {0,12}]   ;;  %s12605_s1 = inlined_call_operand.vmem [shape: f32[2,128,8], index: 1, kind: input, shape index: {}]   ;;  %s12606_s2 = inlined_call_operand.vmem [shape: f32[2,256,32], index: 2, kind: input, shape index: {}]   ;;  %s12607_s3 = inlined_call_operand.vmem [shape: s32[2,256,1], index: 3, kind: input, shape index: {}]   ;;  %s12608_s4 = inlined_call_operand.vmem [shape: s32[2,1,256], index: 4, kind: input, shape index: {}]   ;;  %s12609_s5 = inlined_call_operand.vmem [shape: f32[8,32], index: 5, kind: input, shape index: {}]   ;;  %s12610_s6 = inlined_call_operand.vmem [shape: f32[32,8], index: 6, kind: input, shape index: {}]   ;;  %s12611_s7 = inlined_call_operand.vmem [shape: f32[32,64], index: 7, kind: input, shape index: {}]   ;;  %s12612_s8 = inlined_call_operand.vmem [shape: f32[1,64], index: 8, kind: input, shape index: {}]   ;;  %s12613_s9 = inlined_call_operand.vmem [shape: f32[256,32], index: 9, kind: input, shape index: {}]   ;;  %s12614_s10 = inlined_call_operand.vmem [shape: f32[7,32,32], index: 10, kind: input, shape index: {}]   ;;  %s12615_s11 = inlined_call_operand.vmem [shape: f32[7,1,32], index: 11, kind: input, shape index: {}]   ;;  %s12616_s12 = inlined_call_operand.vmem [shape: f32[2,128,32], index: 12, kind: output, shape index: {}, may-alias: {0,12}]  }
   0x1 LB: > { %s6440_s22 = sadd.s32 4294967295, %s8707_s21   ;;  %p6444_p0 = scmp.ge.s32.totalorder %s8707_s21, 1  ;;  %s8707_s21 = sphi %s8786_s21, %s22_s21  }
   0x2   : > { %p401_p1 = scmp.lt.s32.totalorder %s8707_s21, 3 }
   0x4   : > { %p402_p2 = pnand %p6444_p0, %p401_p1 }
   0x6   : > { %405 = sbr.rel (%p402_p2) target bundleno = 4151 (0x1037), region = 68 }
   0xd   : > { %v524_v0 = vld [vmem:[%s12609_s5] sm:$0xff]  ;;  %vm559_vm0 = vcmask 1043456   ;;  %p462_p3 = scmp.lt.s32.totalorder %s6440_s22, 1  ;;  %v661_v2 = vld [vmem:[%s12611_s7 + $0x8] sm:$0xff]  ;;  %v662_v5 = vld [vmem:[%s12611_s7 + $0x10] sm:$0xff]  ;;  %v12618_v8 = vmov 0  }
   0xe   : > { %v660_v1 = vld [vmem:[%s12611_s7] sm:$0xff]  ;;  %v533_v3 = vpack.c.bf16 %v524_v0, %v524_v0  ;;  %v663_v6 = vld [vmem:[%s12611_s7 + $0x18] sm:$0xff]  ;;  %7452 = vset.pattern.permute.xlu1 %v12618_v8  ;;  %7451 = vset.pattern.permute.xlu0 %v12618_v8  ;;  %vm534_vm1 = vcmask 64512   ;;  %vm681_vm2 = vcmask 261120   ;;  %s8711_s28 = smov 32   ;;  %s8712_s13 = smov 96  }
   0xf   : > { %v672_v4 = vpack.c.bf16 %v661_v2, %v660_v1  ;;  %s13347_s22 = smov (!%p462_p3, %s6440_s22), 1  ;;  %v673_v7 = vpack.c.bf16 %v663_v6, %v662_v5  ;;  %s8720_s30 = smov 64  }
  0x10   : > { %7430 = vmatprep.subr.msk.bf16.mxu0 %vm559_vm0, %v533_v3  ;;  %v561_v9 = vsel %vm559_vm0, %v533_v3, 0  ;;  %s8814_s15 = sshll.u32 %s13347_s22, 7  ;;  %s6842_s24 = sshll.u32 %s13347_s22, 8 }
  0x11   : > { %7170 = vmatprep.subr.bf16.mxu1 %v672_v4  ;;  %7153 = vmatpush3.bf16.msra.mxu0 %v561_v9  ;;  %s8820_s18 = scalar_lea.vmem %s12605_s1, %s8814_s15  ;;  %s8832_s23 = scalar_lea.vmem %s12604_s0, %s8814_s15 }
  0x12   : > { %7171 = vmatpush3.bf16.msra.mxu1 %v672_v4  ;;  %v508_v10 = vld [vmem:[%s8820_s18] sm:$0xff]  ;;  %v509_v11 = vld [vmem:[%s8820_s18 + $0x8] sm:$0xff]  ;;  %v510_v12 = vld [vmem:[%s8820_s18 + $0x10] sm:$0xff]  ;;  %s8848_s27 = scalar_lea.vmem %s12607_s3, %s6842_s24  ;;  %s9167_s25 = scalar_lea.vmem %s12606_s2, %s6842_s24 }
  0x13   : > { %7172 = vmatprep.subr.bf16.mxu1 %v673_v7  ;;  %v525_v13 = vpack.c.bf16 %v509_v11, %v508_v10  ;;  %v511_v14 = vld [vmem:[%s8820_s18 + $0x18] sm:$0xff]  ;;  %v512_v15 = vld [vmem:[%s8820_s18 + $0x20] sm:$0xff]  ;;  %v513_v16 = vld [vmem:[%s8820_s18 + $0x28] sm:$0xff] }
  0x14   : > { %v526_v17 = vpack.c.bf16 %v511_v14, %v510_v12  ;;  %v527_v18 = vpack.c.bf16 %v513_v16, %v512_v15  ;;  %v514_v19 = vld [vmem:[%s8820_s18 + $0x30] sm:$0xff]  ;;  %v515_v20 = vld [vmem:[%s8820_s18 + $0x38] sm:$0xff]  ;;  %v516_v21 = vld [vmem:[%s8820_s18 + $0x40] sm:$0xff] }
  0x15   : > { %7154 = vmatprep.mubr.msk.bf16.mxu0 %vm534_vm1, %v525_v13  ;;  %v517_v22 = vld [vmem:[%s8820_s18 + $0x48] sm:$0xff]  ;;  %v492_v23 = vld [vmem:[%s8832_s23] sm:$0xff]  ;;  %v494_v25 = vld [vmem:[%s8832_s23 + $0x10] sm:$0xff]  ;;  %v528_v31 = vpack.c.bf16 %v515_v20, %v514_v19 }
  0x16   : > { %7173 = vmatpush3.bf16.msra.mxu1 %v673_v7  ;;  %7155 = vmatmul.mubr.msk.bf16.vlgmr.msra.gmra.mrb[0].mxu0 %vm534_vm1, %v526_v17  ;;  %v493_v24 = vld [vmem:[%s8832_s23 + $0x8] sm:$0xff]  ;;  %v495_v26 = vld [vmem:[%s8832_s23 + $0x18] sm:$0xff]  ;;  %v496_v29 = vld [vmem:[%s8832_s23 + $0x20] sm:$0xff]  ;;  %v529_v33 = vpack.c.bf16 %v517_v22, %v516_v21 }
  0x17   : > { %7158 = vmatprep.mubr.msk.bf16.mxu0 %vm534_vm1, %v527_v18  ;;  %v664_v27 = vpack.c.bf16 %v493_v24, %v492_v23  ;;  %v665_v28 = vpack.c.bf16 %v495_v26, %v494_v25  ;;  %v497_v30 = vld [vmem:[%s8832_s23 + $0x28] sm:$0xff]  ;;  %v1023_v35 = vld [vmem:[%s8848_s27 + $0xe0] sm:$0xff]  ;;  %v498_v36 = vld [vmem:[%s8832_s23 + $0x30] sm:$0xff] }
  0x18   : > { %v666_v32 = vpack.c.bf16 %v497_v30, %v496_v29  ;;  %v1024_v34 = vld [vmem:[%s8848_s27 + $0xe8] sm:$0xff]  ;;  %v499_v37 = vld [vmem:[%s8832_s23 + $0x38] sm:$0xff]  ;;  %1114 = vperm.xlu0 %7451, %v1023_v35   ;;  %v1025_v38 = vld [vmem:[%s8848_s27 + $0xf0] sm:$0xff] }
  0x19   : > { %7174 = vmatprep.mubr.msk.bf16.mxu1 %vm681_vm2, %v664_v27  ;;  %1117 = vperm.xlu1 %7452, %v1024_v34   ;;  %v500_v39 = vld [vmem:[%s8832_s23 + $0x40] sm:$0xff]  ;;  %v501_v40 = vld [vmem:[%s8832_s23 + $0x48] sm:$0xff]  ;;  %v1026_v41 = vld [vmem:[%s8848_s27 + $0xf8] sm:$0xff]  ;;  %v667_v46 = vpack.c.bf16 %v499_v37, %v498_v36  ;;  %v12617_v27 = vlaneseq }
  0x1a   : > { %7175 = vmatmul.mubr.msk.bf16.vlgmr.msra.gmra.mrb[0].mxu1 %vm681_vm2, %v665_v28  ;;  %v518_v42 = vld [vmem:[%s8820_s18 + $0x50] sm:$0xff]  ;;  %v519_v43 = vld [vmem:[%s8820_s18 + $0x58] sm:$0xff]  ;;  %v520_v44 = vld [vmem:[%s8820_s18 + $0x60] sm:$0xff]  ;;  %v668_v47 = vpack.c.bf16 %v501_v40, %v500_v39 }
  0x1b   : > { %7178 = vmatprep.mubr.msk.bf16.mxu1 %vm681_vm2, %v666_v32  ;;  %v521_v45 = vld [vmem:[%s8820_s18 + $0x68] sm:$0xff]  ;;  %v995_v48 = vld [vmem:[%s8848_s27] sm:$0xff]  ;;  %v530_v49 = vpack.c.bf16 %v519_v43, %v518_v42  ;;  %v502_v52 = vld [vmem:[%s8832_s23 + $0x50] sm:$0xff]  ;;  %v8917_v28 = vand.u32 127, %v12617_v27  ;;  %v12620_v32 = vmov 1.0|1.0  }
  0x1c   : > { %1123 = vperm.xlu0 %7451, %v1026_v41   ;;  %v996_v50 = vld [vmem:[%s8848_s27 + $0x8] sm:$0xff]  ;;  %v531_v51 = vpack.c.bf16 %v521_v45, %v520_v44  ;;  %v503_v53 = vld [vmem:[%s8832_s23 + $0x58] sm:$0xff]  ;;  %v997_v54 = vld [vmem:[%s8848_s27 + $0x10] sm:$0xff] }
  0x1d   : > { %1120 = vperm.xlu1 %7452, %v1025_v38   ;;  %v504_v55 = vld [vmem:[%s8832_s23 + $0x60] sm:$0xff]  ;;  %v505_v56 = vld [vmem:[%s8832_s23 + $0x68] sm:$0xff]  ;;  %v998_v57 = vld [vmem:[%s8848_s27 + $0x18] sm:$0xff]  ;;  %v669_v60 = vpack.c.bf16 %v503_v53, %v502_v52 }
  0x1e   : > { %7159 = vmatmul.mubr.msk.bf16.gmra.mrb[4].mxu0 %vm534_vm1, %v528_v31  ;;  %v522_v58 = vld [vmem:[%s8820_s18 + $0x70] sm:$0xff]  ;;  %v523_v59 = vld [vmem:[%s8820_s18 + $0x78] sm:$0xff]  ;;  %v670_v61 = vpack.c.bf16 %v505_v56, %v504_v55  ;;  %v999_v62 = vld [vmem:[%s8848_s27 + $0x20] sm:$0xff] }
  0x1f   : > { %7162 = vmatprep.mubr.msk.bf16.mxu0 %vm534_vm1, %v529_v33  ;;  %v532_v63 = vpack.c.bf16 %v523_v59, %v522_v58  ;;  %v1000_v0 = vld [vmem:[%s8848_s27 + $0x28] sm:$0xff]  ;;  %v506_v1 = vld [vmem:[%s8832_s23 + $0x70] sm:$0xff]  ;;  %v507_v2 = vld [vmem:[%s8832_s23 + $0x78] sm:$0xff] }
  0x20   : > { %1033 = vperm.xlu0 %7451, %v996_v50   ;;  %v1001_v3 = vld [vmem:[%s8848_s27 + $0x30] sm:$0xff]  ;;  %v1002_v4 = vld [vmem:[%s8848_s27 + $0x38] sm:$0xff]  ;;  %v671_v5 = vpack.c.bf16 %v507_v2, %v506_v1  ;;  %v1003_v6 = vld [vmem:[%s8848_s27 + $0x40] sm:$0xff] }
  0x21   : > { %1030 = vperm.xlu1 %7452, %v995_v48   ;;  %v1004_v7 = vld [vmem:[%s8848_s27 + $0x48] sm:$0xff]  ;;  %v1005_v9 = vld [vmem:[%s8848_s27 + $0x50] sm:$0xff]  ;;  %v1006_v10 = vld [vmem:[%s8848_s27 + $0x58] sm:$0xff] }
  0x22   : > { %7179 = vmatmul.mubr.msk.bf16.gmra.mrb[4].mxu1 %vm681_vm2, %v667_v46  ;;  %v1007_v11 = vld [vmem:[%s8848_s27 + $0x60] sm:$0xff]  ;;  %v1008_v12 = vld [vmem:[%s8848_s27 + $0x68] sm:$0xff]  ;;  %v1009_v13 = vld [vmem:[%s8848_s27 + $0x70] sm:$0xff] }
  0x23   : > { %7182 = vmatprep.mubr.msk.bf16.mxu1 %vm681_vm2, %v668_v47  ;;  %v1010_v14 = vld [vmem:[%s8848_s27 + $0x78] sm:$0xff]  ;;  %v1011_v15 = vld [vmem:[%s8848_s27 + $0x80] sm:$0xff]  ;;  %v1012_v16 = vld [vmem:[%s8848_s27 + $0x88] sm:$0xff] }
  0x24   : > { %1039 = vperm.xlu0 %7451, %v998_v57   ;;  %v1013_v17 = vld [vmem:[%s8848_s27 + $0x90] sm:$0xff]  ;;  %v1014_v18 = vld [vmem:[%s8848_s27 + $0x98] sm:$0xff]  ;;  %v1015_v19 = vld [vmem:[%s8848_s27 + $0xa0] sm:$0xff] }
  0x25   : > { %1036 = vperm.xlu1 %7452, %v997_v54   ;;  %v1016_v20 = vld [vmem:[%s8848_s27 + $0xa8] sm:$0xff]  ;;  %v1017_v21 = vld [vmem:[%s8848_s27 + $0xb0] sm:$0xff]  ;;  %v1018_v22 = vld [vmem:[%s8848_s27 + $0xb8] sm:$0xff] }
  0x26   : > { %7163 = vmatmul.mubr.msk.bf16.gmra.mrb[8].mxu0 %vm534_vm1, %v530_v49  ;;  %v1019_v23 = vld [vmem:[%s8848_s27 + $0xc0] sm:$0xff]  ;;  %v1020_v24 = vld [vmem:[%s8848_s27 + $0xc8] sm:$0xff]  ;;  %v1021_v25 = vld [vmem:[%s8848_s27 + $0xd0] sm:$0xff] }
  0x27   : > { %7166 = vmatprep.mubr.msk.bf16.mxu0 %vm534_vm1, %v531_v51  ;;  %v1022_v26 = vld [vmem:[%s8848_s27 + $0xd8] sm:$0xff]  ;;  %s12532_s27 = scalar_lea.vmem %s12616_s12, %s8814_s15 }
  0x28   : > { %1045 = vperm.xlu0 %7451, %v1000_v0  }
  0x29   : > { %1042 = vperm.xlu1 %7452, %v999_v62  }
  0x2a   : > { %7183 = vmatmul.mubr.msk.bf16.gmra.mrb[8].mxu1 %vm681_vm2, %v669_v60 }
  0x2b   : > { %7186 = vmatprep.mubr.msk.bf16.mxu1 %vm681_vm2, %v670_v61 }
  0x2c   : > { %1051 = vperm.xlu0 %7451, %v1002_v4  }
  0x2d   : > { %1048 = vperm.xlu1 %7452, %v1001_v3  }
  0x2e   : > { %7167 = vmatmul.mubr.msk.bf16.gmra.mrb[12].mxu0 %vm534_vm1, %v532_v63 }
  0x30   : > { %1057 = vperm.xlu0 %7451, %v1004_v7  }
  0x31   : > { %1054 = vperm.xlu1 %7452, %v1003_v6  }
  0x32   : > { %7187 = vmatmul.mubr.msk.bf16.gmra.mrb[12].mxu1 %vm681_vm2, %v671_v5 }
  0x34   : > { %1063 = vperm.xlu0 %7451, %v1006_v10  }
  0x35   : > { %1060 = vperm.xlu1 %7452, %v1005_v9  }
  0x38   : > { %1069 = vperm.xlu0 %7451, %v1008_v12  }
  0x39   : > { %1066 = vperm.xlu1 %7452, %v1007_v11  }
  0x3c   : > { %1075 = vperm.xlu0 %7451, %v1010_v14  }
  0x3d   : > { %1072 = vperm.xlu1 %7452, %v1009_v13  }
  0x40   : > { %1081 = vperm.xlu0 %7451, %v1012_v16  }
  0x41   : > { %1078 = vperm.xlu1 %7452, %v1011_v15  }
  0x44   : > { %1087 = vperm.xlu0 %7451, %v1014_v18  }
  0x45   : > { %1084 = vperm.xlu1 %7452, %v1013_v17   ;;  %v8984_v17 = vld [vmem:[%s12612_s8] ss:$0 sm:$0xff] }
  0x48   : > { %1093 = vperm.xlu0 %7451, %v1016_v20  }
  0x49   : > { %1090 = vperm.xlu1 %7452, %v1015_v19  }
  0x4c   : > { %1099 = vperm.xlu0 %7451, %v1018_v22  }
  0x4d   : > { %1096 = vperm.xlu1 %7452, %v1017_v21  }
  0x50   : > { %1105 = vperm.xlu0 %7451, %v1020_v24  }
  0x51   : > { %1102 = vperm.xlu1 %7452, %v1019_v23  }
  0x54   : > { %1111 = vperm.xlu0 %7451, %v1022_v26  }
  0x55   : > { %1108 = vperm.xlu1 %7452, %v1021_v25  }
  0x97   : > { %v1115_v30 = vpop.permute.xlu0 %1114 }
  0x98   : > { %v1118_v29 = vpop.permute.xlu1 %1117  ;;  %vm1153_vm4 = vcmp.eq.s32.totalorder %v1115_v30, %v8917_v28 }
  0x99   : > { %vm1154_vm3 = vcmp.eq.s32.totalorder %v1118_v29, %v8917_v28 }
  0x9a   : > { %vm6549_vm5 = vmpackc.low %vm1154_vm3, %vm1153_vm4 }
  0x9b   : > { %7234 = vmatprep.mubr.msk.bf16.mxu1 %vm6549_vm5, %v12620_v32  ;;  %v8924_v33 = vpop.permute.xlu0 %1123 }
  0x9c   : > { %v8921_v31 = vpop.permute.xlu1 %1120  ;;  %vm1156_vm10 = vcmp.eq.s32.totalorder %v8924_v33, %v8917_v28 }
  0x9d   : > { %vm1155_vm9 = vcmp.eq.s32.totalorder %v8921_v31, %v8917_v28 }
  0x9e   : > { %vm6551_vm15 = vmpackc.low %vm1156_vm10, %vm1155_vm9 }
  0x9f   : > { %v1034_v35 = vpop.permute.xlu0 %1033 }
  0xa0   : > { %v1031_v34 = vpop.permute.xlu1 %1030  ;;  %vm1126_vm7 = vcmp.eq.s32.totalorder %v1034_v35, %v8917_v28 }
  0xa1   : > { %vm1125_vm6 = vcmp.eq.s32.totalorder %v1031_v34, %v8917_v28 }
  0xa2   : > { %vm6521_vm8 = vmpackc.low %vm1126_vm7, %vm1125_vm6 }
  0xa3   : > { %7206 = vmatprep.mubr.msk.bf16.mxu0 %vm6521_vm8, %v12620_v32  ;;  %v8959_v5 = vpop.permute.xlu0 %1039 }
  0xa4   : > { %v8957_v4 = vpop.permute.xlu1 %1036  ;;  %vm1128_vm11 = vcmp.eq.s32.totalorder %v8959_v5, %v8917_v28  ;;  %v12855_v5 = vmov 1.0|1.0  }
  0xa5   : > { %vm1127_vm12 = vcmp.eq.s32.totalorder %v8957_v4, %v8917_v28  ;;  %v1440_v4 = vld [vmem:[%s9167_s25 + $0x10] sm:$0xff] }
  0xa6   : > { %vm6523_vm0 = vmpackc.low %vm1128_vm11, %vm1127_vm12 }
  0xa7   : > { %v8963_v7 = vpop.permute.xlu0 %1045 }
  0xa8   : > { %v8961_v6 = vpop.permute.xlu1 %1042  ;;  %vm1130_vm13 = vcmp.eq.s32.totalorder %v8963_v7, %v8917_v28  ;;  %v1441_v7 = vld [vmem:[%s9167_s25 + $0x18] sm:$0xff] }
  0xa9   : > { %vm1129_vm14 = vcmp.eq.s32.totalorder %v8961_v6, %v8917_v28  ;;  %v1442_v6 = vld [vmem:[%s9167_s25 + $0x20] sm:$0xff] }
  0xaa   : > { %vm6525_vm1 = vmpackc.low %vm1130_vm13, %vm1129_vm14 }
  0xab   : > { %v8967_v10 = vpop.permute.xlu0 %1051 }
  0xac   : > { %v8965_v9 = vpop.permute.xlu1 %1048  ;;  %vm1132_vm3 = vcmp.eq.s32.totalorder %v8967_v10, %v8917_v28  ;;  %v1445_v10 = vld [vmem:[%s9167_s25 + $0x38] sm:$0xff] }
  0xad   : > { %vm1131_vm4 = vcmp.eq.s32.totalorder %v8965_v9, %v8917_v28  ;;  %v1444_v9 = vld [vmem:[%s9167_s25 + $0x30] sm:$0xff] }
  0xae   : > { %vm6527_vm7 = vmpackc.low %vm1132_vm3, %vm1131_vm4 }
  0xaf   : > { %v8971_v12 = vpop.permute.xlu0 %1057 }
  0xb0   : > { %v8969_v11 = vpop.permute.xlu1 %1054  ;;  %vm1134_vm5 = vcmp.eq.s32.totalorder %v8971_v12, %v8917_v28  ;;  %v1446_v12 = vld [vmem:[%s9167_s25 + $0x40] sm:$0xff] }
  0xb1   : > { %vm1133_vm6 = vcmp.eq.s32.totalorder %v8969_v11, %v8917_v28  ;;  %v1477_v11 = vpack.c.bf16 %v1445_v10, %v1444_v9 }
  0xb2   : > { %vm6529_vm8 = vmpackc.low %vm1134_vm5, %vm1133_vm6 }
  0xb3   : > { %v8975_v14 = vpop.permute.xlu0 %1063 }
  0xb4   : > { %v8973_v13 = vpop.permute.xlu1 %1060  ;;  %vm1136_vm9 = vcmp.eq.s32.totalorder %v8975_v14, %v8917_v28  ;;  %v1448_v14 = vld [vmem:[%s9167_s25 + $0x50] sm:$0xff] }
  0xb5   : > { %vm1135_vm10 = vcmp.eq.s32.totalorder %v8973_v13, %v8917_v28  ;;  %v1449_v13 = vld [vmem:[%s9167_s25 + $0x58] sm:$0xff] }
  0xb6   : > { %vm6531_vm13 = vmpackc.low %vm1136_vm9, %vm1135_vm10 }
  0xb7   : > { %v8979_v16 = vpop.permute.xlu0 %1069 }
  0xb8   : > { %v8977_v15 = vpop.permute.xlu1 %1066  ;;  %vm1138_vm11 = vcmp.eq.s32.totalorder %v8979_v16, %v8917_v28  ;;  %v1451_v16 = vld [vmem:[%s9167_s25 + $0x68] sm:$0xff] }
  0xb9   : > { %vm1137_vm12 = vcmp.eq.s32.totalorder %v8977_v15, %v8917_v28  ;;  %v1479_v15 = vpack.c.bf16 %v1449_v13, %v1448_v14 }
  0xba   : > { %vm6533_vm14 = vmpackc.low %vm1138_vm11, %vm1137_vm12 }
  0xbb   : > { %v8994_v21 = vpop.permute.xlu0 %1075 }
  0xbc   : > { %v8989_v19 = vpop.permute.xlu1 %1072 }
  0xbf   : > { %v9006_v29 = vpop.permute.xlu0 %1081 }
  0xc0   : > { %v9004_v26 = vpop.permute.xlu1 %1078 }
  0xc1   : > { %vm1141_vm3 = vcmp.eq.s32.totalorder %v9004_v26, %v8917_v28 }
  0xe9   : > { %v7156_v36 = vpop.f32.mrb[0].mxu0 }
  0xea   : > { %935 = vrot.lane.b32.xlu1 %v7156_v36, %s8711_s28  ;;  %v597_v37 = vpop.f32.mrb[1].mxu0 }
  0xeb   : > { %931 = vrot.lane.b32.xlu0 %v597_v37, %s8711_s28  ;;  %v7157_v38 = vpop.f32.mrb[2].mxu0  ;;  %v9016_v37 = vpop.permute.xlu1 %1084 }
  0xec   : > { %v600_v39 = vpop.f32.mrb[3].mxu0 }
  0xed   : > { %v7176_v40 = vpop.f32.mrb[0].mxu1 }
  0xee   : > { %937 = vrot.lane.b32.xlu1 %v7157_v38, %s8711_s28  ;;  %v740_v41 = vpop.f32.mrb[1].mxu1  ;;  %v8987_v18 = vadd.f32 %v7176_v40, %v8984_v17  ;;  %v9022_v40 = vpop.permute.xlu0 %1087 }
  0xef   : > { %933 = vrot.lane.b32.xlu0 %v600_v39, %s8711_s28  ;;  %v7177_v43 = vpop.f32.mrb[2].mxu1  ;;  %v8992_v20 = vadd.f32 %v8984_v17, %v740_v41  ;;  %vm1144_vm6 = vcmp.eq.s32.totalorder %v9022_v40, %v8917_v28  ;;  %v1456_v40 = vld [vmem:[%s9167_s25 + $0x90] sm:$0xff] }
  0xf0   : > { %v743_v45 = vpop.f32.mrb[3].mxu1  ;;  %v6475_v22 = vmul.f32 -1.442695, %v8987_v18  ;;  %v8998_v23 = vadd.f32 %v7177_v43, %v8984_v17 }
  0xf1   : > { %v7160_v42 = vpop.f32.mrb[4].mxu0  ;;  %v6473_v24 = vmul.f32 -1.442695, %v8992_v20  ;;  %v9002_v25 = vadd.f32 %v8984_v17, %v743_v45 }
  0xf2   : > { %v613_v44 = vpop.f32.mrb[5].mxu0  ;;  %8173 = vpow2.f32 %v6475_v22  ;;  %v6476_v30 = vmul.f32 -1.442695, %v8998_v23 }
  0xf3   : > { %943 = vrot.lane.b32.xlu0 %v7160_v42, %s8711_s28  ;;  %v7161_v46 = vpop.f32.mrb[6].mxu0  ;;  %8175 = vpow2.f32 %v6473_v24  ;;  %v6474_v34 = vmul.f32 -1.442695, %v9002_v25 }
  0xf4   : > { %945 = vrot.lane.b32.xlu1 %v7161_v46, %s8711_s28  ;;  %v616_v47 = vpop.f32.mrb[7].mxu0  ;;  %8177 = vpow2.f32 %v6476_v30  ;;  %v9029_v46 = vpop.permute.xlu1 %1090 }
  0xf5   : > { %v7180_v48 = vpop.f32.mrb[4].mxu1  ;;  %8179 = vpow2.f32 %v6474_v34  ;;  %vm1145_vm9 = vcmp.eq.s32.totalorder %v9029_v46, %v8917_v28 }
  0xf6   : > { %v756_v49 = vpop.f32.mrb[5].mxu1  ;;  %v9011_v35 = vadd.f32 %v7180_v48, %v8984_v17  ;;  %v9034_v48 = vpop.permute.xlu0 %1093 }
  0xf7   : > { %939 = vrot.lane.b32.xlu0 %v613_v44, %s8711_s28  ;;  %v7181_v51 = vpop.f32.mrb[6].mxu1  ;;  %v9020_v39 = vadd.f32 %v8984_v17, %v756_v49 }
  0xf8   : > { %941 = vrot.lane.b32.xlu1 %v616_v47, %s8711_s28  ;;  %v759_v53 = vpop.f32.mrb[7].mxu1  ;;  %v9014_v36 = vadd.f32 %v7181_v51, %v8984_v17  ;;  %v6479_v38 = vmul.f32 -1.442695, %v9011_v35 }
  0xf9   : > { %v7164_v50 = vpop.f32.mrb[8].mxu0  ;;  %v9026_v42 = vadd.f32 %v8984_v17, %v759_v53  ;;  %v6477_v43 = vmul.f32 -1.442695, %v9020_v39 }
  0xfa   : > { %v629_v52 = vpop.f32.mrb[9].mxu0  ;;  %v6480_v41 = vmul.f32 -1.442695, %v9014_v36  ;;  %8181 = vpow2.f32 %v6479_v38 }
  0xfb   : > { %951 = vrot.lane.b32.xlu0 %v7164_v50, %s8711_s28  ;;  %v7165_v54 = vpop.f32.mrb[10].mxu0  ;;  %v6478_v49 = vmul.f32 -1.442695, %v9026_v42 }
  0xfc   : > { %953 = vrot.lane.b32.xlu1 %v7165_v54, %s8711_s28  ;;  %v632_v55 = vpop.f32.mrb[11].mxu0  ;;  %v8174_v44 = vpop.eup %8173  ;;  %8183 = vpow2.f32 %v6480_v41 }
  0xfd   : > { %v7184_v56 = vpop.f32.mrb[8].mxu1  ;;  %v8176_v45 = vpop.eup %8175  ;;  %v853_v51 = vadd.f32 1.0, %v8174_v44  ;;  %8185 = vpow2.f32 %v6477_v43 }
  0xfe   : > { %v8941_v57 = vpop.f32.mrb[9].mxu1  ;;  %v9032_v47 = vadd.f32 %v7184_v56, %v8984_v17  ;;  %v851_v53 = vadd.f32 1.0, %v8176_v45  ;;  %8187 = vpow2.f32 %v6478_v49 }
  0xff   : > { %947 = vrot.lane.b32.xlu0 %v629_v52, %s8711_s28  ;;  %v7185_v59 = vpop.f32.mrb[10].mxu1  ;;  %v8178_v52 = vpop.eup %8177  ;;  %8189 = vrcp.f32 %v853_v51 }
 0x100   : > { %949 = vrot.lane.b32.xlu1 %v632_v55, %s8711_s28  ;;  %v8943_v61 = vpop.f32.mrb[11].mxu1  ;;  %v9038_v50 = vadd.f32 %v7185_v59, %v8984_v17  ;;  %v8180_v54 = vpop.eup %8179  ;;  %v6483_v55 = vmul.f32 -1.442695, %v9032_v47  ;;  %8191 = vrcp.f32 %v851_v53 }
 0x101   : > { %v7168_v58 = vpop.f32.mrb[12].mxu0  ;;  %v9050_v59 = vpop.permute.xlu1 %1096  ;;  %v852_v22 = vadd.f32 1.0, %v8180_v54 }
 0x102   : > { %v645_v60 = vpop.f32.mrb[13].mxu0  ;;  %v6484_v56 = vmul.f32 -1.442695, %v9038_v50  ;;  %8193 = vpow2.f32 %v6483_v55 }
 0x103   : > { %959 = vrot.lane.b32.xlu0 %v7168_v58, %s8711_s28  ;;  %v7169_v62 = vpop.f32.mrb[14].mxu0  ;;  %v9043_v58 = vadd.f32 %v8984_v17, %v8941_v57 }
 0x104   : > { %961 = vrot.lane.b32.xlu1 %v7169_v62, %s8711_s28  ;;  %v648_v63 = vpop.f32.mrb[15].mxu0  ;;  %v854_v62 = vadd.f32 1.0, %v8178_v52  ;;  %v8182_v24 = vpop.eup %8181  ;;  %8195 = vpow2.f32 %v6484_v56 }
 0x105   : > { %v8948_v0 = vpop.f32.mrb[12].mxu1  ;;  %v6481_v57 = vmul.f32 -1.442695, %v9043_v58  ;;  %v857_v41 = vadd.f32 1.0, %v8182_v24  ;;  %v9064_v44 = vpop.permute.xlu1 %1102 }
 0x106   : > { %v8951_v1 = vpop.f32.mrb[13].mxu1  ;;  %v9057_v30 = vadd.f32 %v8948_v0, %v8984_v17  ;;  %8197 = vrcp.f32 %v854_v62  ;;  %v8184_v38 = vpop.eup %8183 }
 0x107   : > { %955 = vrot.lane.b32.xlu0 %v645_v60, %s8711_s28  ;;  %v8953_v2 = vpop.f32.mrb[14].mxu1  ;;  %v9048_v60 = vadd.f32 %v8984_v17, %v8943_v61  ;;  %8199 = vrcp.f32 %v852_v22  ;;  %v8186_v43 = vpop.eup %8185  ;;  %v9069_v0 = vadd.f32 %v8984_v17, %v8951_v1  ;;  %v858_v52 = vadd.f32 1.0, %v8184_v38 }
 0x108   : > { %957 = vrot.lane.b32.xlu1 %v648_v63, %s8711_s28  ;;  %v8955_v3 = vpop.f32.mrb[15].mxu1  ;;  %v9052_v63 = vpop.permute.xlu0 %1099  ;;  %v9062_v34 = vadd.f32 %v8953_v2, %v8984_v17  ;;  %8201 = vpow2.f32 %v6481_v57  ;;  %v6487_v45 = vmul.f32 -1.442695, %v9057_v30  ;;  %v855_v54 = vadd.f32 1.0, %v8186_v43 }
 0x109   : > { %v6482_v61 = vmul.f32 -1.442695, %v9048_v60  ;;  %v9076_v51 = vadd.f32 %v8984_v17, %v8955_v3  ;;  %v8188_v53 = vpop.eup %8187  ;;  %v6485_v56 = vmul.f32 -1.442695, %v9069_v0  ;;  %v9080_v24 = vpop.permute.xlu1 %1108  ;;  %vm1148_vm12 = vcmp.eq.s32.totalorder %v9052_v63, %v8917_v28 }
 0x10a   : > { %v6488_v2 = vmul.f32 -1.442695, %v9062_v34  ;;  %v8190_v55 = vpop.eup %8189  ;;  %12837 = vst [vmem:[#allocation2_spill] sm:$0xff] %v9080_v24  ;;  %v856_v57 = vadd.f32 1.0, %v8188_v53  ;;  %v12627_v63 = vmov 6  }
 0x10b   : > { %8203 = vpow2.f32 %v6482_v61  ;;  %v8192_v62 = vpop.eup %8191  ;;  %v6486_v1 = vmul.f32 -1.442695, %v9076_v51  ;;  %v9085_v24 = vmul.f32 %v8190_v55, %v8987_v18  ;;  %7455 = vset.pattern.permute.xlu0 %v12627_v63 }
 0x10c   : > { %v9071_v49 = vpop.permute.xlu0 %1105  ;;  %8205 = vrcp.f32 %v857_v41  ;;  %v8194_v22 = vpop.eup %8193 }
 0x10d   : > { %8207 = vpow2.f32 %v6487_v45  ;;  %v861_v41 = vadd.f32 1.0, %v8194_v22  ;;  %12839 = vst [vmem:[#allocation4_spill] sm:$0xff] %v9085_v24 }
 0x10e   : > { %8209 = vpow2.f32 %v6488_v2  ;;  %v8196_v61 = vpop.eup %8195 }
 0x10f   : > { %8211 = vrcp.f32 %v858_v52  ;;  %v862_v45 = vadd.f32 1.0, %v8196_v61 }
 0x110   : > { %v9082_v3 = vpop.permute.xlu0 %1111  ;;  %8213 = vrcp.f32 %v855_v54  ;;  %v8198_v17 = vpop.eup %8197 }
 0x111   : > { %12838 = vst [vmem:[#allocation3_spill] sm:$0xff] %v9082_v3  ;;  %8215 = vpow2.f32 %v6485_v56  ;;  %v8200_v38 = vpop.eup %8199  ;;  %v9088_v52 = vmul.f32 %v8198_v17, %v8998_v23  ;;  %v9091_v56 = vmul.f32 %v8192_v62, %v8992_v20 }
 0x112   : > { %8217 = vpow2.f32 %v6486_v1  ;;  %v8202_v43 = vpop.eup %8201  ;;  %v9094_v1 = vmul.f32 %v8200_v38, %v9002_v25 }
 0x113   : > { %8219 = vrcp.f32 %v856_v57  ;;  %12840 = vst [vmem:[#allocation5_spill] sm:$0xff] %v9088_v52  ;;  %v859_v53 = vadd.f32 1.0, %v8202_v43  ;;  %12841 = vst [vmem:[#allocation6_spill] sm:$0xff] %v9091_v56 }
 0x114   : > { %8221 = vrcp.f32 %v861_v41  ;;  %12842 = vst [vmem:[#allocation7_spill] sm:$0xff] %v9094_v1 }
 0x115   : > { %v8204_v27 = vpop.eup %8203  ;;  %8223 = vrcp.f32 %v862_v45 }
 0x116   : > { %v8206_v32 = vpop.eup %8205  ;;  %v860_v22 = vadd.f32 1.0, %v8204_v27  ;;  %8225 = vrcp.f32 %v859_v53 }
 0x117   : > { %v8208_v54 = vpop.eup %8207  ;;  %v9101_v38 = vmul.f32 %v8206_v32, %v9011_v35 }
 0x118   : > { %v8210_v61 = vpop.eup %8209  ;;  %v865_v20 = vadd.f32 1.0, %v8208_v54  ;;  %8227 = vrcp.f32 %v860_v22 }
 0x119   : > { %v8212_v23 = vpop.eup %8211  ;;  %12843 = vst [vmem:[#allocation8_spill] sm:$0xff] %v9101_v38  ;;  %v866_v27 = vadd.f32 1.0, %v8210_v61 }
 0x11a   : > { %v8214_v43 = vpop.eup %8213  ;;  %8229 = vrcp.f32 %v865_v20 }
 0x11b   : > { %v8216_v25 = vpop.eup %8215  ;;  %8231 = vrcp.f32 %v866_v27 }
 0x11c   : > { %v863_v32 = vadd.f32 1.0, %v8216_v25 }
 0x11e   : > { %8233 = vrcp.f32 %v863_v32 }
 0x15c   : > { %v936_v2 = vpop.permute.xlu1 %935 }
 0x15d   : > { %v932_v8 = vpop.permute.xlu0 %931  ;;  %v981_v3 = vmul.f32 %v936_v2, %v9085_v24  ;;  %v8218_v2 = vpop.eup %8217 }
 0x15e   : > { %v979_v17 = vmul.f32 %v932_v8, %v9091_v56  ;;  %v8220_v8 = vpop.eup %8219 }
 0x15f   : > { %v8222_v22 = vpop.eup %8221  ;;  %v9114_v61 = vmul.f32 %v8220_v8, %v9026_v42 }
 0x160   : > { %v938_v57 = vpop.permute.xlu1 %937 }
 0x161   : > { %v982_v18 = vmul.f32 %v938_v57, %v9088_v52  ;;  %v934_v55 = vpop.permute.xlu0 %933  ;;  %v9104_v57 = vmul.f32 %v8212_v23, %v9014_v36  ;;  %v864_v36 = vadd.f32 1.0, %v8218_v2  ;;  %12846 = vst [vmem:[#allocation11_spill] sm:$0xff] %v9114_v61  ;;  %v8224_v23 = vpop.eup %8223 }
 0x162   : > { %v980_v41 = vmul.f32 %v934_v55, %v9094_v1  ;;  %v9123_v20 = vmul.f32 %v8224_v23, %v9038_v50 }
 0x163   : > { %v1238_v62 = vpack.c.bf16 %v982_v18, %v981_v3  ;;  %12844 = vst [vmem:[#allocation9_spill] sm:$0xff] %v9104_v57  ;;  %v9111_v3 = vmul.f32 %v8214_v43, %v9020_v39  ;;  %v9120_v39 = vmul.f32 %v8222_v22, %v9032_v47  ;;  %8235 = vrcp.f32 %v864_v36  ;;  %v8226_v43 = vpop.eup %8225 }
 0x164   : > { %v1237_v45 = vpack.c.bf16 %v980_v41, %v979_v17  ;;  %12848 = vst [vmem:[#allocation13_spill] sm:$0xff] %v9123_v20  ;;  %v8228_v25 = vpop.eup %8227  ;;  %v9129_v8 = vmul.f32 %v8226_v43, %v9043_v58 }
 0x165   : > { %v944_v52 = vpop.permute.xlu0 %943  ;;  %1255 = vrot.lane.b32.xlu1 %v1238_v62, %s8712_s13  ;;  %12845 = vst [vmem:[#allocation10_spill] sm:$0xff] %v9111_v3  ;;  %12847 = vst [vmem:[#allocation12_spill] sm:$0xff] %v9120_v39  ;;  %v8230_v47 = vpop.eup %8229 }
 0x166   : > { %v985_v53 = vmul.f32 %v944_v52, %v9101_v38  ;;  %v946_v54 = vpop.permute.xlu1 %945  ;;  %1253 = vrot.lane.b32.xlu0 %v1237_v45, %s8712_s13  ;;  %12849 = vst [vmem:[#allocation14_spill] sm:$0xff] %v9129_v8  ;;  %v8232_v32 = vpop.eup %8231 }
 0x167   : > { %v986_v35 = vmul.f32 %v946_v54, %v9104_v57  ;;  %v9141_v58 = vmul.f32 %v8232_v32, %v9062_v34 }
 0x169   : > { %v1240_v18 = vpack.c.bf16 %v986_v35, %v985_v53  ;;  %v940_v55 = vpop.permute.xlu0 %939  ;;  %v9132_v53 = vmul.f32 %v8228_v25, %v9048_v60  ;;  %12852 = vst [vmem:[#allocation17_spill] sm:$0xff] %v9141_v58 }
 0x16a   : > { %v983_v52 = vmul.f32 %v940_v55, %v9111_v3  ;;  %v942_v17 = vpop.permute.xlu1 %941  ;;  %v8234_v55 = vpop.eup %8233 }
 0x16b   : > { %v984_v41 = vmul.f32 %v942_v17, %v9114_v61  ;;  %1259 = vrot.lane.b32.xlu1 %v1240_v18, %s8712_s13  ;;  %12850 = vst [vmem:[#allocation15_spill] sm:$0xff] %v9132_v53  ;;  %v9138_v18 = vmul.f32 %v8230_v47, %v9057_v30 }
 0x16d   : > { %v1239_v42 = vpack.c.bf16 %v984_v41, %v983_v52  ;;  %v952_v62 = vpop.permute.xlu0 %951  ;;  %12851 = vst [vmem:[#allocation16_spill] sm:$0xff] %v9138_v18  ;;  %v8236_v52 = vpop.eup %8235 }
 0x16e   : > { %v989_v27 = vmul.f32 %v952_v62, %v9120_v39  ;;  %v954_v45 = vpop.permute.xlu1 %953  ;;  %v9150_v30 = vmul.f32 %v8236_v52, %v9076_v51  ;;  %v1473_v52 = vld [vmem:[%s12610_s6 + $0x18] sm:$0xff]  ;;  %v12901_v39 = vmov 5  }
 0x16f   : > { %v990_v2 = vmul.f32 %v954_v45, %v9123_v20  ;;  %1257 = vrot.lane.b32.xlu0 %v1239_v42, %s8712_s13  ;;  %v9147_v42 = vmul.f32 %v8234_v55, %v9069_v0 }
 0x170   : > { %12854 = vst [vmem:[#allocation19_spill] sm:$0xff] %v9150_v30 }
 0x171   : > { %v1242_v54 = vpack.c.bf16 %v990_v2, %v989_v27  ;;  %v948_v50 = vpop.permute.xlu0 %947  ;;  %12853 = vst [vmem:[#allocation18_spill] sm:$0xff] %v9147_v42 }
 0x172   : > { %v987_v35 = vmul.f32 %v948_v50, %v9129_v8  ;;  %v950_v36 = vpop.permute.xlu1 %949  ;;  %v12902_v8 = vmov 2  }
 0x173   : > { %v988_v22 = vmul.f32 %v950_v36, %v9132_v53  ;;  %1263 = vrot.lane.b32.xlu1 %v1242_v54, %s8712_s13  ;;  %v1470_v36 = vld [vmem:[%s12610_s6] sm:$0xff] }
 0x175   : > { %v1241_v23 = vpack.c.bf16 %v988_v22, %v987_v35  ;;  %v960_v60 = vpop.permute.xlu0 %959  ;;  %v1471_v22 = vld [vmem:[%s12610_s6 + $0x8] sm:$0xff] }
 0x176   : > { %v993_v17 = vmul.f32 %v960_v60, %v9138_v18  ;;  %v962_v41 = vpop.permute.xlu1 %961  ;;  %v1472_v60 = vld [vmem:[%s12610_s6 + $0x10] sm:$0xff]  ;;  %v12898_v18 = vmov 1  }
 0x177   : > { %v994_v43 = vmul.f32 %v962_v41, %v9141_v58  ;;  %1261 = vrot.lane.b32.xlu0 %v1241_v23, %s8712_s13  ;;  %v1490_v23 = vpack.c.bf16 %v1471_v22, %v1470_v36  ;;  %v1439_v41 = vld [vmem:[%s9167_s25 + $0x8] sm:$0xff]  ;;  %v1491_v31 = vpack.c.bf16 %v1473_v52, %v1472_v60  ;;  %v12896_v58 = vmov 4  }
 0x178   : > { %v1463_v36 = vld [vmem:[%s9167_s25 + $0xc8] sm:$0xff] }
 0x179   : > { %v1244_v62 = vpack.c.bf16 %v994_v43, %v993_v17  ;;  %v956_v25 = vpop.permute.xlu0 %955  ;;  %v1438_v17 = vld [vmem:[%s9167_s25] sm:$0xff]  ;;  %v1443_v43 = vld [vmem:[%s9167_s25 + $0x28] sm:$0xff] }
 0x17a   : > { %v991_v34 = vmul.f32 %v956_v25, %v9147_v42  ;;  %v958_v27 = vpop.permute.xlu1 %957  ;;  %v1474_v33 = vpack.c.bf16 %v1439_v41, %v1438_v17  ;;  %v1476_v25 = vpack.c.bf16 %v1443_v43, %v1442_v6  ;;  %v1466_v41 = vld [vmem:[%s9167_s25 + $0xe0] sm:$0xff]  ;;  %v1468_v6 = vld [vmem:[%s9167_s25 + $0xf0] sm:$0xff]  ;;  %v1469_v43 = vld [vmem:[%s9167_s25 + $0xf8] sm:$0xff]  ;;  %v12900_v42 = vmov 7  }
 0x17b   : > { %v992_v45 = vmul.f32 %v958_v27, %v9150_v30  ;;  %1267 = vrot.lane.b32.xlu0 %v1244_v62, %s8712_s13  ;;  %v1475_v62 = vpack.c.bf16 %v1441_v7, %v1440_v4  ;;  %v1489_v9 = vpack.c.bf16 %v1469_v43, %v1468_v6  ;;  %v12899_v30 = vmov 3  }
 0x17d   : > { %v1243_v2 = vpack.c.bf16 %v992_v45, %v991_v34  ;;  %v1447_v34 = vld [vmem:[%s9167_s25 + $0x48] sm:$0xff]  ;;  %v1450_v45 = vld [vmem:[%s9167_s25 + $0x60] sm:$0xff] }
 0x17e   : > { %v1478_v27 = vpack.c.bf16 %v1447_v34, %v1446_v12 }
 0x17f   : > { %1265 = vrot.lane.b32.xlu1 %v1243_v2, %s8712_s13  ;;  %v1480_v2 = vpack.c.bf16 %v1451_v16, %v1450_v45 }
 0x1d7   : > { %v1256_v0 = vpop.permute.xlu1 %1255 }
 0x1d8   : > { %v1254_v47 = vpop.permute.xlu0 %1253 }
 0x1d9   : > { %7190 = vmatprep.subr.bf16.mxu0 %v1254_v47  ;;  %7414 = vmatprep.subr.bf16.mxu1 %v1254_v47 }
 0x1da   : > { %7191 = vmatpush3.bf16.msra.mxu0 %v1254_v47  ;;  %7422 = vmatpush3.bf16.msra.mxu1 %v1254_v47  ;;  %v1454_v47 = vld [vmem:[%s9167_s25 + $0x80] sm:$0xff] }
 0x1db   : > { %7192 = vmatprep.subr.bf16.mxu0 %v1256_v0  ;;  %7415 = vmatprep.subr.bf16.mxu1 %v1256_v0 }
 0x1dd   : > { %v1260_v54 = vpop.permute.xlu1 %1259 }
 0x1de   : > { %7193 = vmatpush3.bf16.msra.mxu0 %v1256_v0  ;;  %7423 = vmatpush3.bf16.msra.mxu1 %v1256_v0 }
 0x1e1   : > { %v1258_v51 = vpop.permute.xlu0 %1257 }
 0x1e2   : > { %7194 = vmatprep.subr.bf16.mxu0 %v1258_v51  ;;  %7416 = vmatprep.subr.bf16.mxu1 %v1258_v51 }
 0x1e3   : > { %7195 = vmatpush3.bf16.msra.mxu0 %v1258_v51  ;;  %7424 = vmatpush3.bf16.msra.mxu1 %v1258_v51  ;;  %v1459_v51 = vld [vmem:[%s9167_s25 + $0xa8] sm:$0xff] }
 0x1e4   : > { %7196 = vmatprep.subr.bf16.mxu0 %v1260_v54  ;;  %7417 = vmatprep.subr.bf16.mxu1 %v1260_v54 }
 0x1e5   : > { %v1264_v32 = vpop.permute.xlu1 %1263 }
 0x1e7   : > { %7197 = vmatpush3.bf16.msra.mxu0 %v1260_v54  ;;  %7425 = vmatpush3.bf16.msra.mxu1 %v1260_v54 }
 0x1e9   : > { %v1262_v50 = vpop.permute.xlu0 %1261 }
 0x1ea   : > { %7198 = vmatprep.subr.bf16.mxu0 %v1262_v50  ;;  %7418 = vmatprep.subr.bf16.mxu1 %v1262_v50 }
 0x1eb   : > { %7199 = vmatpush3.bf16.msra.mxu0 %v1262_v50  ;;  %7426 = vmatpush3.bf16.msra.mxu1 %v1262_v50  ;;  %v1460_v50 = vld [vmem:[%s9167_s25 + $0xb0] sm:$0xff] }
 0x1ec   : > { %7200 = vmatprep.subr.bf16.mxu0 %v1264_v32  ;;  %7419 = vmatprep.subr.bf16.mxu1 %v1264_v32 }
 0x1ed   : > { %v1268_v55 = vpop.permute.xlu0 %1267 }
 0x1ef   : > { %7201 = vmatpush3.bf16.msra.mxu0 %v1264_v32  ;;  %7427 = vmatpush3.bf16.msra.mxu1 %v1264_v32  ;;  %v1461_v32 = vld [vmem:[%s9167_s25 + $0xb8] sm:$0xff] }
 0x1f1   : > { %v1266_v35 = vpop.permute.xlu1 %1265 }
 0x1f2   : > { %7202 = vmatprep.subr.bf16.mxu0 %v1266_v35  ;;  %7420 = vmatprep.subr.bf16.mxu1 %v1266_v35 }
 0x1f3   : > { %7203 = vmatpush3.bf16.msra.mxu0 %v1266_v35  ;;  %7428 = vmatpush3.bf16.msra.mxu1 %v1266_v35  ;;  %v1462_v35 = vld [vmem:[%s9167_s25 + $0xc0] sm:$0xff] }
 0x1f4   : > { %7204 = vmatprep.subr.bf16.mxu0 %v1268_v55  ;;  %7421 = vmatprep.subr.bf16.mxu1 %v1268_v55  ;;  %v1486_v22 = vpack.c.bf16 %v1463_v36, %v1462_v35 }
 0x1f7   : > { %7205 = vmatpush3.bf16.msra.mxu0 %v1268_v55  ;;  %7429 = vmatpush3.bf16.msra.mxu1 %v1268_v55  ;;  %v1464_v55 = vld [vmem:[%s9167_s25 + $0xd0] sm:$0xff] }
 0x1f8   : > { %7238 = vmatprep.subr.bf16.mxu1 %v1490_v23 }
 0x1fa   : > { %7207 = vmatmul.mubr.msk.bf16.vlgmr.msra.gmra.mrb[16].mxu0 %vm6523_vm0, %v12855_v5  ;;  %7235 = vmatmul.mubr.msk.bf16.vlgmr.msra.gmra.mrb[16].mxu1 %vm6551_vm15, %v12855_v5  ;;  %vm1140_vm15 = vcmp.eq.s32.totalorder %v8994_v21, %v8917_v28  ;;  %vm1139_vm0 = vcmp.eq.s32.totalorder %v8989_v19, %v8917_v28  ;;  %v1452_v21 = vld [vmem:[%s9167_s25 + $0x70] sm:$0xff]  ;;  %v1453_v19 = vld [vmem:[%s9167_s25 + $0x78] sm:$0xff] }
 0x1fb   : > { %7210 = vmatprep.mubr.msk.bf16.mxu0 %vm6525_vm1, %v12855_v5  ;;  %7239 = vmatpush3.bf16.msra.mxu1 %v1490_v23  ;;  %vm1142_vm1 = vcmp.eq.s32.totalorder %v9006_v29, %v8917_v28  ;;  %vm6535_vm4 = vmpackc.low %vm1140_vm15, %vm1139_vm0  ;;  %v1455_v29 = vld [vmem:[%s9167_s25 + $0x88] sm:$0xff]  ;;  %v1481_v26 = vpack.c.bf16 %v1453_v19, %v1452_v21  ;;  %vm1149_vm15 = vcmp.eq.s32.totalorder %v9064_v44, %v8917_v28  ;;  %v12629_v44 = vmov 5   ;;  %v1465_v23 = vld [vmem:[%s9167_s25 + $0xd8] sm:$0xff] }
 0x1fc   : > { %7240 = vmatprep.subr.bf16.mxu1 %v1491_v31  ;;  %7242 = vmatprep.mubr.msk.bf16.mxu1 %vm681_vm2, %v1474_v33  ;;  %vm6537_vm5 = vmpackc.low %vm1142_vm1, %vm1141_vm3  ;;  %v1482_v0 = vpack.c.bf16 %v1455_v29, %v1454_v47  ;;  %v1487_v60 = vpack.c.bf16 %v1465_v23, %v1464_v55  ;;  %v12625_v21 = vmov 1   ;;  %v12631_v55 = vmov 4  }
 0x1fd   : > { %7453 = vset.pattern.permute.xlu1 %v12629_v44 }
 0x1ff   : > { %7241 = vmatpush3.bf16.msra.mxu1 %v1491_v31  ;;  %v1467_v31 = vld [vmem:[%s9167_s25 + $0xe8] sm:$0xff] }
 0x200   : > { %v1488_v7 = vpack.c.bf16 %v1467_v31, %v1466_v41 }
 0x202   : > { %7211 = vmatmul.mubr.msk.bf16.gmra.mrb[20].mxu0 %vm6527_vm7, %v12855_v5  ;;  %7243 = vmatmul.mubr.msk.bf16.vlgmr.msra.gmra.mrb[20].mxu1 %vm681_vm2, %v1475_v62  ;;  %vm1143_vm7 = vcmp.eq.s32.totalorder %v9016_v37, %v8917_v28  ;;  %v1457_v37 = vld [vmem:[%s9167_s25 + $0x98] sm:$0xff] }
 0x203   : > { %7214 = vmatprep.mubr.msk.bf16.mxu0 %vm6529_vm8, %v12855_v5  ;;  %7246 = vmatprep.mubr.msk.bf16.mxu1 %vm681_vm2, %v1476_v25  ;;  %vm1146_vm8 = vcmp.eq.s32.totalorder %v9034_v48, %v8917_v28  ;;  %vm6539_vm10 = vmpackc.low %vm1144_vm6, %vm1143_vm7  ;;  %v1483_v46 = vpack.c.bf16 %v1457_v37, %v1456_v40  ;;  %v12856_v48 = vld [vmem:[#allocation3_spill] sm:$0xff]  ;;  %v12634_v40 = vmov 2   ;;  %vm3813_vm6 = vcmask 523264  }
 0x204   : > { %vm6541_vm11 = vmpackc.low %vm1146_vm8, %vm1145_vm9  ;;  %vm1152_vm3 = vcmp.eq.s32.totalorder %v12856_v48, %v8917_v28  ;;  %vm3846_vm7 = vcmask 785408  }
 0x20a   : > { %7215 = vmatmul.mubr.msk.bf16.gmra.mrb[24].mxu0 %vm6531_vm13, %v12855_v5  ;;  %7247 = vmatmul.mubr.msk.bf16.gmra.mrb[24].mxu1 %vm681_vm2, %v1477_v11  ;;  %vm1147_vm13 = vcmp.eq.s32.totalorder %v9050_v59, %v8917_v28  ;;  %v12857_v59 = vld [vmem:[#allocation2_spill] sm:$0xff] }
 0x20b   : > { %7218 = vmatprep.mubr.msk.bf16.mxu0 %vm6533_vm14, %v12855_v5  ;;  %7250 = vmatprep.mubr.msk.bf16.mxu1 %vm681_vm2, %v1478_v27  ;;  %vm1150_vm14 = vcmp.eq.s32.totalorder %v9071_v49, %v8917_v28  ;;  %vm6543_vm0 = vmpackc.low %vm1148_vm12, %vm1147_vm13  ;;  %v1458_v49 = vld [vmem:[%s9167_s25 + $0xa0] sm:$0xff] }
 0x20c   : > { %vm6545_vm1 = vmpackc.low %vm1150_vm14, %vm1149_vm15  ;;  %v1484_v54 = vpack.c.bf16 %v1459_v51, %v1458_v49  ;;  %v12636_v49 = vmov 7  }
 0x212   : > { %7219 = vmatmul.mubr.msk.bf16.gmra.mrb[28].mxu0 %vm6535_vm4, %v12855_v5  ;;  %7251 = vmatmul.mubr.msk.bf16.gmra.mrb[28].mxu1 %vm681_vm2, %v1479_v15  ;;  %vm1151_vm4 = vcmp.eq.s32.totalorder %v12857_v59, %v8917_v28  ;;  %v1485_v28 = vpack.c.bf16 %v1461_v32, %v1460_v50 }
 0x213   : > { %7222 = vmatprep.mubr.msk.bf16.mxu0 %vm6537_vm5, %v12855_v5  ;;  %7254 = vmatprep.mubr.msk.bf16.mxu1 %vm681_vm2, %v1480_v2  ;;  %vm6547_vm5 = vmpackc.low %vm1152_vm3, %vm1151_vm4  ;;  %v12623_v2 = vmov 3  }
 0x21a   : > { %7223 = vmatmul.mubr.msk.bf16.gmra.mrb[32].mxu0 %vm6539_vm10, %v12855_v5  ;;  %7255 = vmatmul.mubr.msk.bf16.gmra.mrb[32].mxu1 %vm681_vm2, %v1481_v26 }
 0x21b   : > { %7226 = vmatprep.mubr.msk.bf16.mxu0 %vm6541_vm11, %v12855_v5  ;;  %7258 = vmatprep.mubr.msk.bf16.mxu1 %vm681_vm2, %v1482_v0  ;;  %v12873_v0 = vmov 0  }
 0x222   : > { %7227 = vmatmul.mubr.msk.bf16.gmra.mrb[36].mxu0 %vm6543_vm0, %v12855_v5  ;;  %7259 = vmatmul.mubr.msk.bf16.gmra.mrb[36].mxu1 %vm681_vm2, %v1483_v46 }
 0x223   : > { %7230 = vmatprep.mubr.msk.bf16.mxu0 %vm6545_vm1, %v12855_v5  ;;  %7262 = vmatprep.mubr.msk.bf16.mxu1 %vm681_vm2, %v1484_v54 }
 0x22a   : > { %7231 = vmatmul.mubr.msk.bf16.gmra.mrb[40].mxu0 %vm6547_vm5, %v12855_v5  ;;  %7263 = vmatmul.mubr.msk.bf16.gmra.mrb[40].mxu1 %vm681_vm2, %v1485_v28 }
 0x22b   : > { %7266 = vmatprep.mubr.msk.bf16.mxu1 %vm681_vm2, %v1486_v22 }
 0x232   : > { %7267 = vmatmul.mubr.msk.bf16.gmra.mrb[44].mxu1 %vm681_vm2, %v1487_v60 }
 0x233   : > { %7270 = vmatprep.mubr.msk.bf16.mxu1 %vm681_vm2, %v1488_v7 }
 0x23a   : > { %7271 = vmatmul.mubr.msk.bf16.gmra.mrb[48].mxu1 %vm681_vm2, %v1489_v9 }
 0x2cd   : > { %v9289_v52 = vpop.f32.mrb[16].mxu0  ;;  %v9291_v17 = vpop.f32.mrb[16].mxu1 }
 0x2ce   : > { %12858 = vst [vmem:[#allocation3_spill] sm:$0xff] %v9289_v52  ;;  %12859 = vst [vmem:[#allocation2_spill] sm:$0xff] %v9291_v17  ;;  %v9295_v33 = vpop.f32.mrb[17].mxu0  ;;  %v9297_v4 = vpop.f32.mrb[17].mxu1 }
 0x2cf   : > { %12860 = vst [vmem:[#allocation20_spill] sm:$0xff] %v9295_v33  ;;  %12861 = vst [vmem:[#allocation21_spill] sm:$0xff] %v9297_v4  ;;  %v9301_v62 = vpop.f32.mrb[18].mxu0  ;;  %v9303_v25 = vpop.f32.mrb[18].mxu1 }
 0x2d0   : > { %12862 = vst [vmem:[#allocation22_spill] sm:$0xff] %v9301_v62  ;;  %12863 = vst [vmem:[#allocation23_spill] sm:$0xff] %v9303_v25  ;;  %v9305_v10 = vpop.f32.mrb[19].mxu0  ;;  %v9307_v12 = vpop.f32.mrb[19].mxu1 }
 0x2d1   : > { %12864 = vst [vmem:[#allocation24_spill] sm:$0xff] %v9305_v10  ;;  %12865 = vst [vmem:[#allocation25_spill] sm:$0xff] %v9307_v12 }
 0x2d5   : > { %v9311_v34 = vpop.f32.mrb[20].mxu0  ;;  %v7244_v11 = vpop.f32.mrb[20].mxu1 }
 0x2d6   : > { %12866 = vst [vmem:[#allocation26_spill] sm:$0xff] %v9311_v34  ;;  %2702 = vperm.xlu0 %7455, %v7244_v11   ;;  %2542 = vperm.xlu1 %7453, %v7244_v11   ;;  %v9313_v27 = vpop.f32.mrb[21].mxu0  ;;  %v9315_v14 = vpop.f32.mrb[21].mxu1 }
 0x2d7   : > { %12867 = vst [vmem:[#allocation27_spill] sm:$0xff] %v9313_v27  ;;  %v9317_v13 = vpop.f32.mrb[22].mxu0  ;;  %v9319_v45 = vpop.f32.mrb[22].mxu1 }
 0x2d8   : > { %12868 = vst [vmem:[#allocation28_spill] sm:$0xff] %v9317_v13  ;;  %12869 = vst [vmem:[#allocation29_spill] sm:$0xff] %v9319_v45  ;;  %v9321_v16 = vpop.f32.mrb[23].mxu0  ;;  %v9323_v15 = vpop.f32.mrb[23].mxu1 }
 0x2d9   : > { %12870 = vst [vmem:[#allocation30_spill] sm:$0xff] %v9321_v16 }
 0x2da   : > { %7458 = vset.pattern.permute.xlu0 %v12623_v2  ;;  %7454 = vset.pattern.permute.xlu1 %v12625_v21 }
 0x2db   : > { %2222 = vperm.xlu0 %7458, %v7244_v11   ;;  %1902 = vperm.xlu1 %7454, %v7244_v11  }
 0x2dd   : > { %v9327_v19 = vpop.f32.mrb[24].mxu0  ;;  %v9329_v47 = vpop.f32.mrb[24].mxu1 }
 0x2de   : > { %12871 = vst [vmem:[#allocation31_spill] sm:$0xff] %v9327_v19  ;;  %v9331_v29 = vpop.f32.mrb[25].mxu0  ;;  %v9333_v26 = vpop.f32.mrb[25].mxu1 }
 0x2df   : > { %12872 = vst [vmem:[#allocation32_spill] sm:$0xff] %v9331_v29  ;;  %7460 = vset.pattern.permute.xlu0 %v12873_v0  ;;  %7456 = vset.pattern.permute.xlu1 %v12634_v40  ;;  %v9337_v37 = vpop.f32.mrb[26].mxu0  ;;  %v9339_v46 = vpop.f32.mrb[26].mxu1 }
 0x2e0   : > { %12874 = vst [vmem:[#allocation33_spill] sm:$0xff] %v9337_v37  ;;  %12875 = vst [vmem:[#allocation34_spill] sm:$0xff] %v9339_v46  ;;  %1713 = vperm.xlu0 %7460, %v7244_v11   ;;  %2062 = vperm.xlu1 %7456, %v7244_v11   ;;  %v9341_v48 = vpop.f32.mrb[27].mxu0  ;;  %v9343_v59 = vpop.f32.mrb[27].mxu1 }
 0x2e1   : > { %12876 = vst [vmem:[#allocation35_spill] sm:$0xff] %v9341_v48  ;;  %12877 = vst [vmem:[#allocation36_spill] sm:$0xff] %v9343_v59 }
 0x2e4   : > { %7463 = vset.pattern.permute.xlu0 %v12627_v63  ;;  %7457 = vset.pattern.permute.xlu1 %v12636_v49 }
 0x2e5   : > { %2862 = vperm.xlu1 %7457, %v7244_v11   ;;  %2694 = vperm.xlu0 %7463, %v9315_v14   ;;  %v9348_v51 = vpop.f32.mrb[28].mxu0  ;;  %v9350_v54 = vpop.f32.mrb[28].mxu1 }
 0x2e6   : > { %12878 = vst [vmem:[#allocation37_spill] sm:$0xff] %v9348_v51  ;;  %v9352_v50 = vpop.f32.mrb[29].mxu0  ;;  %v9354_v32 = vpop.f32.mrb[29].mxu1 }
 0x2e7   : > { %12879 = vst [vmem:[#allocation38_spill] sm:$0xff] %v9352_v50  ;;  %v9356_v28 = vpop.f32.mrb[30].mxu0  ;;  %v9358_v35 = vpop.f32.mrb[30].mxu1 }
 0x2e8   : > { %12880 = vst [vmem:[#allocation39_spill] sm:$0xff] %v9356_v28  ;;  %12881 = vst [vmem:[#allocation40_spill] sm:$0xff] %v9358_v35  ;;  %v9360_v36 = vpop.f32.mrb[31].mxu0  ;;  %v9362_v22 = vpop.f32.mrb[31].mxu1 }
 0x2e9   : > { %12882 = vst [vmem:[#allocation41_spill] sm:$0xff] %v9360_v36  ;;  %12883 = vst [vmem:[#allocation42_spill] sm:$0xff] %v9362_v22  ;;  %7459 = vset.pattern.permute.xlu1 %v12631_v55  ;;  %7466 = vset.pattern.permute.xlu0 %v12623_v2 }
 0x2ea   : > { %2382 = vperm.xlu1 %7459, %v7244_v11   ;;  %2214 = vperm.xlu0 %7466, %v9315_v14  }
 0x2ed   : > { %v9367_v23 = vpop.f32.mrb[32].mxu0  ;;  %v9369_v60 = vpop.f32.mrb[32].mxu1 }
 0x2ee   : > { %12884 = vst [vmem:[#allocation43_spill] sm:$0xff] %v9367_v23  ;;  %7461 = vset.pattern.permute.xlu1 %v12629_v44  ;;  %7469 = vset.pattern.permute.xlu0 %v12629_v44  ;;  %v9373_v41 = vpop.f32.mrb[33].mxu0  ;;  %v9397_v2 = vpop.f32.mrb[33].mxu1 }
 0x2ef   : > { %12885 = vst [vmem:[#allocation44_spill] sm:$0xff] %v9373_v41  ;;  %2534 = vperm.xlu1 %7461, %v9315_v14   ;;  %2546 = vperm.xlu0 %7469, %v9319_v45   ;;  %v9377_v31 = vpop.f32.mrb[34].mxu0 }
 0x2f0   : > { %12886 = vst [vmem:[#allocation45_spill] sm:$0xff] %v9377_v31  ;;  %v9379_v7 = vpop.f32.mrb[35].mxu0 }
 0x2f1   : > { %12887 = vst [vmem:[#allocation46_spill] sm:$0xff] %v9379_v7 }
 0x2f3   : > { %7462 = vset.pattern.permute.xlu1 %v12625_v21  ;;  %7472 = vset.pattern.permute.xlu0 %v12634_v40 }
 0x2f4   : > { %1894 = vperm.xlu1 %7462, %v9315_v14   ;;  %2066 = vperm.xlu0 %7472, %v9319_v45  }
 0x2f5   : > { %v9385_v6 = vpop.f32.mrb[36].mxu0 }
 0x2f6   : > { %12888 = vst [vmem:[#allocation47_spill] sm:$0xff] %v9385_v6  ;;  %v9387_v43 = vpop.f32.mrb[37].mxu0 }
 0x2f7   : > { %12889 = vst [vmem:[#allocation48_spill] sm:$0xff] %v9387_v43  ;;  %v9389_v9 = vpop.f32.mrb[38].mxu0 }
 0x2f8   : > { %12890 = vst [vmem:[#allocation49_spill] sm:$0xff] %v9389_v9  ;;  %7464 = vset.pattern.permute.xlu1 %v12634_v40  ;;  %7476 = vset.pattern.permute.xlu0 %v12629_v44  ;;  %v9393_v11 = vpop.f32.mrb[39].mxu0 }
 0x2f9   : > { %12891 = vst [vmem:[#allocation50_spill] sm:$0xff] %v9393_v11  ;;  %2054 = vperm.xlu1 %7464, %v9315_v14   ;;  %2538 = vperm.xlu0 %7476, %v9323_v15  }
 0x2fd   : > { %7465 = vset.pattern.permute.xlu1 %v12636_v49  ;;  %7479 = vset.pattern.permute.xlu0 %v12634_v40  ;;  %v9401_v21 = vpop.f32.mrb[40].mxu0  ;;  %v12897_v40 = vmov 6   ;;  %v9419_v49 = vpop.f32.mrb[34].mxu1 }
 0x2fe   : > { %12892 = vst [vmem:[#allocation51_spill] sm:$0xff] %v9401_v21  ;;  %2854 = vperm.xlu1 %7465, %v9315_v14   ;;  %2058 = vperm.xlu0 %7479, %v9323_v15   ;;  %v9405_v63 = vpop.f32.mrb[41].mxu0 }
 0x2ff   : > { %12893 = vst [vmem:[#allocation52_spill] sm:$0xff] %v9405_v63  ;;  %v9407_v44 = vpop.f32.mrb[42].mxu0 }
 0x300   : > { %12894 = vst [vmem:[#allocation53_spill] sm:$0xff] %v9407_v44  ;;  %v9409_v55 = vpop.f32.mrb[43].mxu0 }
 0x301   : > { %12895 = vst [vmem:[#allocation54_spill] sm:$0xff] %v9409_v55 }
 0x302   : > { %7467 = vset.pattern.permute.xlu1 %v12896_v58  ;;  %7483 = vset.pattern.permute.xlu0 %v12873_v0 }
 0x303   : > { %2374 = vperm.xlu1 %7467, %v9315_v14   ;;  %1708 = vperm.xlu0 %7483, %v9323_v15  }
 0x307   : > { %7468 = vset.pattern.permute.xlu1 %v12873_v0  ;;  %7486 = vset.pattern.permute.xlu0 %v12897_v40 }
 0x308   : > { %1703 = vperm.xlu1 %7468, %v9315_v14   ;;  %2718 = vperm.xlu0 %7486, %v9329_v47   ;;  %v9429_v14 = vpop.f32.mrb[35].mxu1 }
 0x309   : > { %v9439_v20 = vpop.f32.mrb[36].mxu1 }
 0x30a   : > { %v9449_v53 = vpop.f32.mrb[37].mxu1 }
 0x30b   : > { %v9463_v57 = vpop.f32.mrb[38].mxu1 }
 0x30c   : > { %7470 = vset.pattern.permute.xlu1 %v12898_v18  ;;  %7489 = vset.pattern.permute.xlu0 %v12899_v30  ;;  %v9477_v38 = vpop.f32.mrb[39].mxu1 }
 0x30d   : > { %1906 = vperm.xlu1 %7470, %v9319_v45   ;;  %2238 = vperm.xlu0 %7489, %v9329_v47  }
 0x311   : > { %7471 = vset.pattern.permute.xlu1 %v12897_v40  ;;  %7491 = vset.pattern.permute.xlu0 %v12873_v0 }
 0x312   : > { %2706 = vperm.xlu1 %7471, %v9319_v45   ;;  %1733 = vperm.xlu0 %7491, %v9329_v47  }
 0x316   : > { %7473 = vset.pattern.permute.xlu1 %v12900_v42  ;;  %7494 = vset.pattern.permute.xlu0 %v12897_v40 }
 0x317   : > { %2866 = vperm.xlu1 %7473, %v9319_v45   ;;  %2710 = vperm.xlu0 %7494, %v9333_v26  }
 0x31b   : > { %7474 = vset.pattern.permute.xlu1 %v12899_v30  ;;  %7497 = vset.pattern.permute.xlu0 %v12899_v30 }
 0x31c   : > { %2226 = vperm.xlu1 %7474, %v9319_v45   ;;  %2230 = vperm.xlu0 %7497, %v9333_v26  }
 0x320   : > { %7475 = vset.pattern.permute.xlu1 %v12873_v0  ;;  %7499 = vset.pattern.permute.xlu0 %v12873_v0 }
 0x321   : > { %1718 = vperm.xlu1 %7475, %v9319_v45   ;;  %1723 = vperm.xlu0 %7499, %v9333_v26  }
 0x325   : > { %7477 = vset.pattern.permute.xlu1 %v12898_v18  ;;  %7500 = vset.pattern.permute.xlu0 %v12901_v39 }
 0x326   : > { %1898 = vperm.xlu1 %7477, %v9323_v15   ;;  %2562 = vperm.xlu0 %7500, %v9339_v46  }
 0x32a   : > { %7478 = vset.pattern.permute.xlu1 %v12897_v40  ;;  %7503 = vset.pattern.permute.xlu0 %v12902_v8 }
 0x32b   : > { %2698 = vperm.xlu1 %7478, %v9323_v15   ;;  %2082 = vperm.xlu0 %7503, %v9339_v46  }
 0x32f   : > { %7480 = vset.pattern.permute.xlu1 %v12900_v42  ;;  %7507 = vset.pattern.permute.xlu0 %v12901_v39 }
 0x330   : > { %2858 = vperm.xlu1 %7480, %v9323_v15   ;;  %2554 = vperm.xlu0 %7507, %v9343_v59  }
 0x334   : > { %7481 = vset.pattern.permute.xlu1 %v12899_v30  ;;  %7510 = vset.pattern.permute.xlu0 %v12902_v8 }
 0x335   : > { %2218 = vperm.xlu1 %7481, %v9323_v15   ;;  %2074 = vperm.xlu0 %7510, %v9343_v59  }
 0x339   : > { %7482 = vset.pattern.permute.xlu1 %v12896_v58  ;;  %7516 = vset.pattern.permute.xlu0 %v12897_v40 }
 0x33a   : > { %2378 = vperm.xlu1 %7482, %v9323_v15   ;;  %2734 = vperm.xlu0 %7516, %v9350_v54   ;;  %v9487_v15 = vpop.f32.mrb[40].mxu1 }
 0x33b   : > { %v9499_v24 = vpop.f32.mrb[41].mxu1 }
 0x33c   : > { %v9515_v4 = vpop.f32.mrb[42].mxu1 }
 0x33d   : > { %12904 = vst [vmem:[#allocation56_spill] sm:$0xff] %v9515_v4  ;;  %v9533_v63 = vpop.f32.mrb[43].mxu1 }
 0x33e   : > { %7484 = vset.pattern.permute.xlu1 %v12901_v39  ;;  %7519 = vset.pattern.permute.xlu0 %v12899_v30  ;;  %12906 = vst [vmem:[#allocation58_spill] sm:$0xff] %v9533_v63 }
 0x33f   : > { %2558 = vperm.xlu1 %7484, %v9329_v47   ;;  %2254 = vperm.xlu0 %7519, %v9350_v54  }
 0x343   : > { %7485 = vset.pattern.permute.xlu1 %v12898_v18  ;;  %7521 = vset.pattern.permute.xlu0 %v12873_v0 }
 0x344   : > { %1918 = vperm.xlu1 %7485, %v9329_v47   ;;  %1753 = vperm.xlu0 %7521, %v9350_v54  }
 0x348   : > { %7487 = vset.pattern.permute.xlu1 %v12902_v8  ;;  %7524 = vset.pattern.permute.xlu0 %v12897_v40 }
 0x349   : > { %2078 = vperm.xlu1 %7487, %v9329_v47   ;;  %2726 = vperm.xlu0 %7524, %v9354_v32  }
 0x34d   : > { %7488 = vset.pattern.permute.xlu1 %v12900_v42  ;;  %7527 = vset.pattern.permute.xlu0 %v12899_v30 }
 0x34e   : > { %2878 = vperm.xlu1 %7488, %v9329_v47   ;;  %2246 = vperm.xlu0 %7527, %v9354_v32  }
 0x352   : > { %7490 = vset.pattern.permute.xlu1 %v12896_v58  ;;  %7529 = vset.pattern.permute.xlu0 %v12873_v0 }
 0x353   : > { %2398 = vperm.xlu1 %7490, %v9329_v47   ;;  %1743 = vperm.xlu0 %7529, %v9354_v32  }
 0x355   : > { %v9493_v61 = vpop.permute.xlu0 %2702  ;;  %v2543_v3 = vpop.permute.xlu1 %2542 }
 0x356   : > { %v9536_v44 = vmul.f32 %v9289_v52, %v2543_v3 }
 0x357   : > { %7492 = vset.pattern.permute.xlu1 %v12901_v39  ;;  %7530 = vset.pattern.permute.xlu0 %v12901_v39 }
 0x358   : > { %2550 = vperm.xlu1 %7492, %v9333_v26   ;;  %2578 = vperm.xlu0 %7530, %v9358_v35   ;;  %12907 = vst [vmem:[#allocation59_spill] sm:$0xff] %v9536_v44 }
 0x35a   : > { %v9501_v1 = vpop.permute.xlu0 %2222  ;;  %v9503_v56 = vpop.permute.xlu1 %1902 }
 0x35c   : > { %7493 = vset.pattern.permute.xlu1 %v12898_v18  ;;  %7533 = vset.pattern.permute.xlu0 %v12902_v8 }
 0x35d   : > { %1910 = vperm.xlu1 %7493, %v9333_v26   ;;  %2098 = vperm.xlu0 %7533, %v9358_v35  }
 0x35f   : > { %v9509_v47 = vpop.permute.xlu0 %1713  ;;  %v2063_v5 = vpop.permute.xlu1 %2062 }
 0x360   : > { %12903 = vst [vmem:[#allocation55_spill] sm:$0xff] %v9509_v47  ;;  %v9550_v3 = vmul.f32 %v9289_v52, %v2063_v5 }
 0x361   : > { %7495 = vset.pattern.permute.xlu1 %v12902_v8  ;;  %7537 = vset.pattern.permute.xlu0 %v12901_v39 }
 0x362   : > { %2070 = vperm.xlu1 %7495, %v9333_v26   ;;  %2570 = vperm.xlu0 %7537, %v9362_v22   ;;  %12909 = vst [vmem:[#allocation61_spill] sm:$0xff] %v9550_v3 }
 0x364   : > { %v9517_v12 = vpop.permute.xlu1 %2862  ;;  %v9519_v17 = vpop.permute.xlu0 %2694 }
 0x366   : > { %7496 = vset.pattern.permute.xlu1 %v12900_v42  ;;  %7540 = vset.pattern.permute.xlu0 %v12902_v8 }
 0x367   : > { %2870 = vperm.xlu1 %7496, %v9333_v26   ;;  %2090 = vperm.xlu0 %7540, %v9362_v22  }
 0x369   : > { %v9525_v47 = vpop.permute.xlu1 %2382  ;;  %v9527_v25 = vpop.permute.xlu0 %2214 }
 0x36a   : > { %12905 = vst [vmem:[#allocation57_spill] sm:$0xff] %v9525_v47  ;;  %v9573_v47 = vpop.f32.mrb[44].mxu1 }
 0x36b   : > { %7498 = vset.pattern.permute.xlu1 %v12896_v58  ;;  %7546 = vset.pattern.permute.xlu0 %v12897_v40  ;;  %12913 = vst [vmem:[#allocation65_spill] sm:$0xff] %v9573_v47 }
 0x36c   : > { %2390 = vperm.xlu1 %7498, %v9333_v26   ;;  %2750 = vperm.xlu0 %7546, %v9369_v60  }
 0x36e   : > { %v2535_v55 = vpop.permute.xlu1 %2534  ;;  %v2547_v21 = vpop.permute.xlu0 %2546 }
 0x36f   : > { %v9539_v43 = vmul.f32 %v9301_v62, %v2547_v21  ;;  %v9562_v45 = vmul.f32 %v2535_v55, %v9295_v33 }
 0x370   : > { %7501 = vset.pattern.permute.xlu1 %v12898_v18  ;;  %7548 = vset.pattern.permute.xlu0 %v12900_v42 }
 0x371   : > { %12908 = vst [vmem:[#allocation60_spill] sm:$0xff] %v9539_v43  ;;  %1922 = vperm.xlu1 %7501, %v9339_v46   ;;  %2910 = vperm.xlu0 %7548, %v9369_v60   ;;  %12911 = vst [vmem:[#allocation63_spill] sm:$0xff] %v9562_v45 }
 0x373   : > { %v9547_v26 = vpop.permute.xlu1 %1894  ;;  %v2067_v11 = vpop.permute.xlu0 %2066 }
 0x374   : > { %v9553_v21 = vmul.f32 %v9301_v62, %v2067_v11 }
 0x375   : > { %7502 = vset.pattern.permute.xlu1 %v12897_v40  ;;  %7551 = vset.pattern.permute.xlu0 %v12873_v0 }
 0x376   : > { %12910 = vst [vmem:[#allocation62_spill] sm:$0xff] %v9553_v21  ;;  %2722 = vperm.xlu1 %7502, %v9339_v46   ;;  %1773 = vperm.xlu0 %7551, %v9369_v60  }
 0x378   : > { %v2055_v44 = vpop.permute.xlu1 %2054  ;;  %v2539_v43 = vpop.permute.xlu0 %2538 }
 0x379   : > { %v9565_v5 = vmul.f32 %v2539_v43, %v9305_v10  ;;  %v9578_v21 = vmul.f32 %v2055_v44, %v9295_v33  ;;  %v9595_v44 = vpop.f32.mrb[45].mxu1 }
 0x37a   : > { %7504 = vset.pattern.permute.xlu1 %v12900_v42  ;;  %7554 = vset.pattern.permute.xlu0 %v12897_v40 }
 0x37b   : > { %12912 = vst [vmem:[#allocation64_spill] sm:$0xff] %v9565_v5  ;;  %2882 = vperm.xlu1 %7504, %v9339_v46   ;;  %2742 = vperm.xlu0 %7554, %v9397_v2   ;;  %12914 = vst [vmem:[#allocation66_spill] sm:$0xff] %v9578_v21 }
 0x37d   : > { %v9575_v3 = vpop.permute.xlu1 %2854  ;;  %v2059_v55 = vpop.permute.xlu0 %2058 }
 0x37e   : > { %v9581_v43 = vmul.f32 %v2059_v55, %v9305_v10 }
 0x37f   : > { %7505 = vset.pattern.permute.xlu1 %v12899_v30  ;;  %7557 = vset.pattern.permute.xlu0 %v12899_v30 }
 0x380   : > { %12915 = vst [vmem:[#allocation67_spill] sm:$0xff] %v9581_v43  ;;  %2242 = vperm.xlu1 %7505, %v9339_v46   ;;  %2262 = vperm.xlu0 %7557, %v9397_v2   ;;  %v9616_v43 = vpop.f32.mrb[46].mxu1 }
 0x382   : > { %v9589_v45 = vpop.permute.xlu1 %2374 }
 0x383   : > { %12916 = vst [vmem:[#allocation68_spill] sm:$0xff] %v9589_v45  ;;  %v9605_v45 = vmul.f32 %v9289_v52, %v9503_v56  ;;  %v9620_v56 = vmul.f32 %v9289_v52, %v9493_v61  ;;  %v9635_v61 = vmul.f32 %v9289_v52, %v9517_v12 }
 0x384   : > { %7506 = vset.pattern.permute.xlu1 %v12873_v0  ;;  %7559 = vset.pattern.permute.xlu0 %v12873_v0 }
 0x385   : > { %1738 = vperm.xlu1 %7506, %v9339_v46   ;;  %1763 = vperm.xlu0 %7559, %v9397_v2   ;;  %12918 = vst [vmem:[#allocation70_spill] sm:$0xff] %v9605_v45 }
 0x387   : > { %v9597_v55 = vpop.permute.xlu1 %1703 }
 0x388   : > { %12917 = vst [vmem:[#allocation69_spill] sm:$0xff] %v9597_v55  ;;  %v9677_v55 = vmul.f32 %v9547_v26, %v9295_v33  ;;  %v9692_v26 = vmul.f32 %v9519_v17, %v9295_v33  ;;  %v9707_v17 = vmul.f32 %v9575_v3, %v9295_v33  ;;  %v9722_v3 = vmul.f32 %v9527_v25, %v9295_v33 }
 0x389   : > { %7508 = vset.pattern.permute.xlu1 %v12898_v18  ;;  %7560 = vset.pattern.permute.xlu0 %v12901_v39 }
 0x38a   : > { %1914 = vperm.xlu1 %7508, %v9343_v59   ;;  %2594 = vperm.xlu0 %7560, %v9419_v49   ;;  %12925 = vst [vmem:[#allocation77_spill] sm:$0xff] %v9677_v55  ;;  %12927 = vst [vmem:[#allocation79_spill] sm:$0xff] %v9722_v3 }
 0x38c   : > { %v1907_v11 = vpop.permute.xlu1 %1906 }
 0x38d   : > { %v9608_v21 = vmul.f32 %v9301_v62, %v1907_v11  ;;  %v9622_v11 = vpop.permute.xlu0 %1708 }
 0x38e   : > { %7509 = vset.pattern.permute.xlu1 %v12897_v40  ;;  %7563 = vset.pattern.permute.xlu0 %v12902_v8  ;;  %12920 = vst [vmem:[#allocation72_spill] sm:$0xff] %v9622_v11 }
 0x38f   : > { %12919 = vst [vmem:[#allocation71_spill] sm:$0xff] %v9608_v21  ;;  %2714 = vperm.xlu1 %7509, %v9343_v59   ;;  %2114 = vperm.xlu0 %7563, %v9419_v49   ;;  %v9648_v21 = vpop.f32.mrb[47].mxu1 }
 0x391   : > { %v2707_v5 = vpop.permute.xlu1 %2706 }
 0x392   : > { %v9625_v46 = vmul.f32 %v9301_v62, %v2707_v5  ;;  %v9640_v5 = vpop.permute.xlu0 %2718 }
 0x393   : > { %7511 = vset.pattern.permute.xlu1 %v12900_v42  ;;  %7567 = vset.pattern.permute.xlu0 %v12901_v39 }
 0x394   : > { %2874 = vperm.xlu1 %7511, %v9343_v59   ;;  %2586 = vperm.xlu0 %7567, %v9429_v14  }
 0x396   : > { %v2867_v45 = vpop.permute.xlu1 %2866  ;;  %v9659_v9 = vpop.permute.xlu0 %2238 }
 0x397   : > { %v9638_v11 = vmul.f32 %v9301_v62, %v2867_v45  ;;  %v9652_v45 = vmul.f32 %v9289_v52, %v9501_v1 }
 0x398   : > { %7512 = vset.pattern.permute.xlu1 %v12899_v30  ;;  %7570 = vset.pattern.permute.xlu0 %v12902_v8 }
 0x399   : > { %2234 = vperm.xlu1 %7512, %v9343_v59   ;;  %2106 = vperm.xlu0 %7570, %v9429_v14   ;;  %12921 = vst [vmem:[#allocation73_spill] sm:$0xff] %v9652_v45 }
 0x39a   : > { %v9671_v1 = vpop.permute.xlu0 %1733 }
 0x39b   : > { %v2227_v12 = vpop.permute.xlu1 %2226  ;;  %12924 = vst [vmem:[#allocation76_spill] sm:$0xff] %v9671_v1 }
 0x39c   : > { %v9655_v6 = vmul.f32 %v9301_v62, %v2227_v12  ;;  %v9673_v12 = vpop.f32.mrb[48].mxu1 }
 0x39d   : > { %7513 = vset.pattern.permute.xlu1 %v12873_v0  ;;  %7574 = vset.pattern.permute.xlu0 %v12901_v39  ;;  %v9703_v55 = vpop.f32.mrb[49].mxu1 }
 0x39e   : > { %12922 = vst [vmem:[#allocation74_spill] sm:$0xff] %v9655_v6  ;;  %1728 = vperm.xlu1 %7513, %v9343_v59   ;;  %2606 = vperm.xlu0 %7574, %v9439_v20   ;;  %v9688_v1 = vpop.permute.xlu0 %2710  ;;  %v9735_v23 = vpop.f32.mrb[50].mxu1 }
 0x3a0   : > { %v9665_v41 = vpop.permute.xlu1 %1718 }
 0x3a1   : > { %12923 = vst [vmem:[#allocation75_spill] sm:$0xff] %v9665_v41 }
 0x3a2   : > { %7514 = vset.pattern.permute.xlu1 %v12901_v39  ;;  %7577 = vset.pattern.permute.xlu0 %v12902_v8 }
 0x3a3   : > { %2574 = vperm.xlu1 %7514, %v9350_v54   ;;  %2126 = vperm.xlu0 %7577, %v9439_v20  }
 0x3a5   : > { %v1899_v62 = vpop.permute.xlu1 %1898 }
 0x3a6   : > { %v9680_v52 = vmul.f32 %v1899_v62, %v9305_v10 }
 0x3a7   : > { %7515 = vset.pattern.permute.xlu1 %v12898_v18  ;;  %7581 = vset.pattern.permute.xlu0 %v12901_v39 }
 0x3a8   : > { %12926 = vst [vmem:[#allocation78_spill] sm:$0xff] %v9680_v52  ;;  %1934 = vperm.xlu1 %7515, %v9350_v54   ;;  %2598 = vperm.xlu0 %7581, %v9449_v53  }
 0x3aa   : > { %v2699_v45 = vpop.permute.xlu1 %2698 }
 0x3ab   : > { %v9695_v62 = vmul.f32 %v2699_v45, %v9305_v10  ;;  %v9709_v45 = vpop.permute.xlu0 %2230 }
 0x3ac   : > { %7517 = vset.pattern.permute.xlu1 %v12902_v8  ;;  %7584 = vset.pattern.permute.xlu0 %v12902_v8 }
 0x3ad   : > { %2094 = vperm.xlu1 %7517, %v9350_v54   ;;  %2118 = vperm.xlu0 %7584, %v9449_v53  }
 0x3af   : > { %v2859_v52 = vpop.permute.xlu1 %2858 }
 0x3b0   : > { %v9712_v6 = vmul.f32 %v2859_v52, %v9305_v10  ;;  %v9727_v52 = vpop.permute.xlu0 %1723 }
 0x3b1   : > { %7518 = vset.pattern.permute.xlu1 %v12900_v42  ;;  %7588 = vset.pattern.permute.xlu0 %v12873_v0  ;;  %12929 = vst [vmem:[#allocation81_spill] sm:$0xff] %v9727_v52 }
 0x3b2   : > { %2894 = vperm.xlu1 %7518, %v9350_v54   ;;  %1783 = vperm.xlu0 %7588, %v9449_v53  }
 0x3b4   : > { %v2219_v59 = vpop.permute.xlu1 %2218 }
 0x3b5   : > { %v9725_v7 = vmul.f32 %v2219_v59, %v9305_v10  ;;  %v2563_v59 = vpop.permute.xlu0 %2562  ;;  %v9755_v10 = vpop.f32.mrb[51].mxu1 }
 0x3b6   : > { %7520 = vset.pattern.permute.xlu1 %v12896_v58  ;;  %7590 = vset.pattern.permute.xlu0 %v12898_v18  ;;  %v9744_v41 = vmul.f32 %v9317_v13, %v2563_v59 }
 0x3b7   : > { %12928 = vst [vmem:[#allocation80_spill] sm:$0xff] %v9725_v7  ;;  %2414 = vperm.xlu1 %7520, %v9350_v54   ;;  %1970 = vperm.xlu0 %7590, %v9463_v57  }
 0x3b8   : > { %12931 = vst [vmem:[#allocation83_spill] sm:$0xff] %v9744_v41 }
 0x3b9   : > { %v9737_v25 = vpop.permute.xlu1 %2378 }
 0x3ba   : > { %12930 = vst [vmem:[#allocation82_spill] sm:$0xff] %v9737_v25 }
 0x3bb   : > { %7522 = vset.pattern.permute.xlu1 %v12901_v39  ;;  %7594 = vset.pattern.permute.xlu0 %v12899_v30 }
 0x3bc   : > { %2566 = vperm.xlu1 %7522, %v9354_v32   ;;  %2290 = vperm.xlu0 %7594, %v9463_v57  }
 0x3be   : > { %v2559_v52 = vpop.permute.xlu1 %2558 }
 0x3bf   : > { %v9747_v54 = vmul.f32 %v9311_v34, %v2559_v52  ;;  %v2083_v52 = vpop.permute.xlu0 %2082 }
 0x3c0   : > { %7523 = vset.pattern.permute.xlu1 %v12898_v18  ;;  %7596 = vset.pattern.permute.xlu0 %v12873_v0  ;;  %v9762_v3 = vmul.f32 %v9317_v13, %v2083_v52 }
 0x3c1   : > { %12932 = vst [vmem:[#allocation84_spill] sm:$0xff] %v9747_v54  ;;  %1926 = vperm.xlu1 %7523, %v9354_v32   ;;  %1798 = vperm.xlu0 %7596, %v9463_v57  }
 0x3c2   : > { %12933 = vst [vmem:[#allocation85_spill] sm:$0xff] %v9762_v3 }
 0x3c3   : > { %v1919_v33 = vpop.permute.xlu1 %1918 }
 0x3c5   : > { %7525 = vset.pattern.permute.xlu1 %v12902_v8  ;;  %7598 = vset.pattern.permute.xlu0 %v12898_v18 }
 0x3c6   : > { %2086 = vperm.xlu1 %7525, %v9354_v32   ;;  %1962 = vperm.xlu0 %7598, %v9477_v38  }
 0x3c8   : > { %v2079_v59 = vpop.permute.xlu1 %2078 }
 0x3c9   : > { %v9765_v25 = vmul.f32 %v9311_v34, %v2079_v59  ;;  %v2555_v59 = vpop.permute.xlu0 %2554 }
 0x3ca   : > { %7526 = vset.pattern.permute.xlu1 %v12900_v42  ;;  %7602 = vset.pattern.permute.xlu0 %v12899_v30 }
 0x3cb   : > { %12934 = vst [vmem:[#allocation86_spill] sm:$0xff] %v9765_v25  ;;  %2886 = vperm.xlu1 %7526, %v9354_v32   ;;  %2282 = vperm.xlu0 %7602, %v9477_v38   ;;  %v9784_v25 = vmul.f32 %v2555_v59, %v9321_v16 }
 0x3cd   : > { %v2879_v41 = vpop.permute.xlu1 %2878  ;;  %12936 = vst [vmem:[#allocation88_spill] sm:$0xff] %v9784_v25  ;;  %v2075_v59 = vpop.permute.xlu0 %2074 }
 0x3ce   : > { %v9802_v7 = vmul.f32 %v2075_v59, %v9321_v16 }
 0x3cf   : > { %7528 = vset.pattern.permute.xlu1 %v12896_v58  ;;  %7604 = vset.pattern.permute.xlu0 %v12901_v39 }
 0x3d0   : > { %2406 = vperm.xlu1 %7528, %v9354_v32   ;;  %2622 = vperm.xlu0 %7604, %v9487_v15   ;;  %12938 = vst [vmem:[#allocation90_spill] sm:$0xff] %v9802_v7 }
 0x3d2   : > { %v9777_v52 = vpop.permute.xlu1 %2398 }
 0x3d3   : > { %12935 = vst [vmem:[#allocation87_spill] sm:$0xff] %v9777_v52 }
 0x3d4   : > { %7531 = vset.pattern.permute.xlu1 %v12898_v18  ;;  %7607 = vset.pattern.permute.xlu0 %v12902_v8 }
 0x3d5   : > { %1938 = vperm.xlu1 %7531, %v9358_v35   ;;  %2142 = vperm.xlu0 %7607, %v9487_v15  }
 0x3d7   : > { %v2551_v54 = vpop.permute.xlu1 %2550 }
 0x3d8   : > { %v9787_v3 = vmul.f32 %v2551_v54, %v9313_v27 }
 0x3d9   : > { %7532 = vset.pattern.permute.xlu1 %v12897_v40  ;;  %7610 = vset.pattern.permute.xlu0 %v12901_v39 }
 0x3da   : > { %12937 = vst [vmem:[#allocation89_spill] sm:$0xff] %v9787_v3  ;;  %2738 = vperm.xlu1 %7532, %v9358_v35   ;;  %2614 = vperm.xlu0 %7610, %v9499_v24   ;;  %v9826_v3 = vmul.f32 %v9311_v34, %v1919_v33 }
 0x3dc   : > { %v9795_v52 = vpop.permute.xlu1 %1910  ;;  %12941 = vst [vmem:[#allocation93_spill] sm:$0xff] %v9826_v3  ;;  %v9851_v3 = vmul.f32 %v9311_v34, %v2879_v41  ;;  %v9866_v41 = vmul.f32 %v9311_v34, %v9659_v9 }
 0x3de   : > { %7534 = vset.pattern.permute.xlu1 %v12900_v42  ;;  %7613 = vset.pattern.permute.xlu0 %v12902_v8  ;;  %12943 = vst [vmem:[#allocation95_spill] sm:$0xff] %v9866_v41 }
 0x3df   : > { %2898 = vperm.xlu1 %7534, %v9358_v35   ;;  %2134 = vperm.xlu0 %7613, %v9499_v24  }
 0x3e1   : > { %v2071_v54 = vpop.permute.xlu1 %2070 }
 0x3e2   : > { %v9805_v32 = vmul.f32 %v2071_v54, %v9313_v27 }
 0x3e3   : > { %7535 = vset.pattern.permute.xlu1 %v12899_v30  ;;  %7618 = vset.pattern.permute.xlu0 %v12898_v18 }
 0x3e4   : > { %12939 = vst [vmem:[#allocation91_spill] sm:$0xff] %v9805_v32  ;;  %2258 = vperm.xlu1 %7535, %v9358_v35   ;;  %1986 = vperm.xlu0 %7618, %v9515_v4  }
 0x3e6   : > { %v9813_v25 = vpop.permute.xlu1 %2870 }
 0x3e8   : > { %7536 = vset.pattern.permute.xlu1 %v12873_v0  ;;  %7622 = vset.pattern.permute.xlu0 %v12899_v30 }
 0x3e9   : > { %1758 = vperm.xlu1 %7536, %v9358_v35   ;;  %2306 = vperm.xlu0 %7622, %v9515_v4   ;;  %v9839_v35 = vmul.f32 %v9311_v34, %v9640_v5 }
 0x3eb   : > { %v9819_v59 = vpop.permute.xlu1 %2390 }
 0x3ec   : > { %12940 = vst [vmem:[#allocation92_spill] sm:$0xff] %v9819_v59 }
 0x3ed   : > { %7538 = vset.pattern.permute.xlu1 %v12898_v18  ;;  %7625 = vset.pattern.permute.xlu0 %v12898_v18 }
 0x3ee   : > { %1930 = vperm.xlu1 %7538, %v9362_v22   ;;  %1978 = vperm.xlu0 %7625, %v9533_v63  }
 0x3f0   : > { %v1923_v54 = vpop.permute.xlu1 %1922 }
 0x3f1   : > { %v9829_v32 = vmul.f32 %v9317_v13, %v1923_v54  ;;  %v9889_v54 = vmul.f32 %v9795_v52, %v9313_v27  ;;  %v9904_v52 = vmul.f32 %v9688_v1, %v9313_v27  ;;  %v9919_v1 = vmul.f32 %v9813_v25, %v9313_v27 }
 0x3f2   : > { %7539 = vset.pattern.permute.xlu1 %v12897_v40  ;;  %7629 = vset.pattern.permute.xlu0 %v12899_v30 }
 0x3f3   : > { %12942 = vst [vmem:[#allocation94_spill] sm:$0xff] %v9829_v32  ;;  %2730 = vperm.xlu1 %7539, %v9362_v22   ;;  %2298 = vperm.xlu0 %7629, %v9533_v63   ;;  %12947 = vst [vmem:[#allocation99_spill] sm:$0xff] %v9889_v54 }
 0x3f5   : > { %v2723_v7 = vpop.permute.xlu1 %2722 }
 0x3f6   : > { %v9842_v33 = vmul.f32 %v9317_v13, %v2723_v7  ;;  %v9856_v7 = vpop.permute.xlu0 %2734 }
 0x3f7   : > { %7541 = vset.pattern.permute.xlu1 %v12900_v42  ;;  %7631 = vset.pattern.permute.xlu0 %v12873_v0 }
 0x3f8   : > { %2890 = vperm.xlu1 %7541, %v9362_v22   ;;  %1808 = vperm.xlu0 %7631, %v9533_v63  }
 0x3fa   : > { %v2883_v59 = vpop.permute.xlu1 %2882  ;;  %v9873_v63 = vpop.permute.xlu0 %2254 }
 0x3fb   : > { %v9854_v5 = vmul.f32 %v9317_v13, %v2883_v59 }
 0x3fc   : > { %7542 = vset.pattern.permute.xlu1 %v12899_v30  ;;  %7632 = vset.pattern.permute.xlu0 %v12901_v39 }
 0x3fd   : > { %2250 = vperm.xlu1 %7542, %v9362_v22   ;;  %2638 = vperm.xlu0 %7632, %v9573_v47  }
 0x3fe   : > { %v9885_v9 = vpop.permute.xlu0 %1753 }
 0x3ff   : > { %v2243_v32 = vpop.permute.xlu1 %2242  ;;  %12946 = vst [vmem:[#allocation98_spill] sm:$0xff] %v9885_v9 }
 0x400   : > { %v9869_v59 = vmul.f32 %v9317_v13, %v2243_v32 }
 0x401   : > { %7543 = vset.pattern.permute.xlu1 %v12873_v0  ;;  %7635 = vset.pattern.permute.xlu0 %v12902_v8 }
 0x402   : > { %12944 = vst [vmem:[#allocation96_spill] sm:$0xff] %v9869_v59  ;;  %1748 = vperm.xlu1 %7543, %v9362_v22   ;;  %2158 = vperm.xlu0 %7635, %v9573_v47   ;;  %v9900_v9 = vpop.permute.xlu0 %2726  ;;  %v9932_v59 = vmul.f32 %v9709_v45, %v9313_v27 }
 0x404   : > { %v9879_v4 = vpop.permute.xlu1 %1738 }
 0x405   : > { %12945 = vst [vmem:[#allocation97_spill] sm:$0xff] %v9879_v4 }
 0x406   : > { %7544 = vset.pattern.permute.xlu1 %v12901_v39  ;;  %7638 = vset.pattern.permute.xlu0 %v12901_v39 }
 0x407   : > { %2590 = vperm.xlu1 %7544, %v9369_v60   ;;  %2630 = vperm.xlu0 %7638, %v9595_v44  }
 0x409   : > { %v1915_v32 = vpop.permute.xlu1 %1914 }
 0x40a   : > { %v9892_v13 = vmul.f32 %v1915_v32, %v9321_v16 }
 0x40b   : > { %7545 = vset.pattern.permute.xlu1 %v12898_v18  ;;  %7641 = vset.pattern.permute.xlu0 %v12902_v8 }
 0x40c   : > { %12948 = vst [vmem:[#allocation100_spill] sm:$0xff] %v9892_v13  ;;  %1950 = vperm.xlu1 %7545, %v9369_v60   ;;  %2150 = vperm.xlu0 %7641, %v9595_v44   ;;  %v9915_v13 = vpop.permute.xlu0 %2246 }
 0x40e   : > { %v2715_v34 = vpop.permute.xlu1 %2714 }
 0x40f   : > { %v9907_v32 = vmul.f32 %v2715_v34, %v9321_v16 }
 0x410   : > { %7547 = vset.pattern.permute.xlu1 %v12902_v8  ;;  %7645 = vset.pattern.permute.xlu0 %v12898_v18 }
 0x411   : > { %2110 = vperm.xlu1 %7547, %v9369_v60   ;;  %2002 = vperm.xlu0 %7645, %v9616_v43  }
 0x413   : > { %v2875_v54 = vpop.permute.xlu1 %2874 }
 0x414   : > { %v9922_v34 = vmul.f32 %v2875_v54, %v9321_v16  ;;  %v9937_v54 = vpop.permute.xlu0 %1743 }
 0x415   : > { %7549 = vset.pattern.permute.xlu1 %v12899_v30  ;;  %7649 = vset.pattern.permute.xlu0 %v12899_v30  ;;  %12949 = vst [vmem:[#allocation101_spill] sm:$0xff] %v9937_v54 }
 0x416   : > { %2270 = vperm.xlu1 %7549, %v9369_v60   ;;  %2322 = vperm.xlu0 %7649, %v9616_v43  }
 0x418   : > { %v2235_v41 = vpop.permute.xlu1 %2234  ;;  %v2579_v45 = vpop.permute.xlu0 %2578 }
 0x419   : > { %v9935_v25 = vmul.f32 %v2235_v41, %v9321_v16  ;;  %v9952_v54 = vmul.f32 %v9337_v37, %v2579_v45 }
 0x41a   : > { %7550 = vset.pattern.permute.xlu1 %v12896_v58  ;;  %7651 = vset.pattern.permute.xlu0 %v12898_v18 }
 0x41b   : > { %2430 = vperm.xlu1 %7550, %v9369_v60   ;;  %1994 = vperm.xlu0 %7651, %v9648_v21   ;;  %12951 = vst [vmem:[#allocation103_spill] sm:$0xff] %v9952_v54 }
 0x41c   : > { %v2099_v45 = vpop.permute.xlu0 %2098 }
 0x41d   : > { %v9945_v22 = vpop.permute.xlu1 %1728  ;;  %v9968_v16 = vmul.f32 %v9337_v37, %v2099_v45 }
 0x41e   : > { %12950 = vst [vmem:[#allocation102_spill] sm:$0xff] %v9945_v22 }
 0x41f   : > { %7552 = vset.pattern.permute.xlu1 %v12901_v39  ;;  %7655 = vset.pattern.permute.xlu0 %v12899_v30  ;;  %12953 = vst [vmem:[#allocation105_spill] sm:$0xff] %v9968_v16 }
 0x420   : > { %2582 = vperm.xlu1 %7552, %v9397_v2   ;;  %2314 = vperm.xlu0 %7655, %v9648_v21  }
 0x422   : > { %v2575_v41 = vpop.permute.xlu1 %2574 }
 0x423   : > { %v9955_v4 = vmul.f32 %v9327_v19, %v2575_v41 }
 0x424   : > { %7553 = vset.pattern.permute.xlu1 %v12898_v18  ;;  %7656 = vset.pattern.permute.xlu0 %v12901_v39 }
 0x425   : > { %12952 = vst [vmem:[#allocation104_spill] sm:$0xff] %v9955_v4  ;;  %1942 = vperm.xlu1 %7553, %v9397_v2   ;;  %2654 = vperm.xlu0 %7656, %v9673_v12  }
 0x427   : > { %v1935_v22 = vpop.permute.xlu1 %1934 }
 0x429   : > { %7555 = vset.pattern.permute.xlu1 %v12902_v8  ;;  %7659 = vset.pattern.permute.xlu0 %v12902_v8 }
 0x42a   : > { %2102 = vperm.xlu1 %7555, %v9397_v2   ;;  %2174 = vperm.xlu0 %7659, %v9673_v12  }
 0x42c   : > { %v2095_v41 = vpop.permute.xlu1 %2094 }
 0x42d   : > { %v9971_v60 = vmul.f32 %v9327_v19, %v2095_v41  ;;  %v2571_v41 = vpop.permute.xlu0 %2570 }
 0x42e   : > { %7556 = vset.pattern.permute.xlu1 %v12900_v42  ;;  %7662 = vset.pattern.permute.xlu0 %v12901_v39 }
 0x42f   : > { %12954 = vst [vmem:[#allocation106_spill] sm:$0xff] %v9971_v60  ;;  %2902 = vperm.xlu1 %7556, %v9397_v2   ;;  %2646 = vperm.xlu0 %7662, %v9703_v55   ;;  %v9990_v60 = vmul.f32 %v2571_v41, %v9341_v48 }
 0x431   : > { %v2895_v4 = vpop.permute.xlu1 %2894  ;;  %12956 = vst [vmem:[#allocation108_spill] sm:$0xff] %v9990_v60  ;;  %v2091_v41 = vpop.permute.xlu0 %2090 }
 0x432   : > { %v10008_v54 = vmul.f32 %v2091_v41, %v9341_v48  ;;  %v12960_v41 = vpack.i.bf16 %v9625_v46, %v9620_v56  ;;  %v12963_v46 = vpack.i.bf16 %v9695_v62, %v9692_v26  ;;  %v10043_v56 = vmul.f32 %v9327_v19, %v1935_v22 }
 0x433   : > { %7558 = vset.pattern.permute.xlu1 %v12896_v58  ;;  %7665 = vset.pattern.permute.xlu0 %v12902_v8  ;;  %v2831_v22 = vmul.f32 %v9327_v19, %v9856_v7  ;;  %v12967_v7 = vpack.i.bf16 %v9854_v5, %v9851_v3 }
 0x434   : > { %2422 = vperm.xlu1 %7558, %v9397_v2   ;;  %2166 = vperm.xlu0 %7665, %v9703_v55   ;;  %12958 = vst [vmem:[#allocation110_spill] sm:$0xff] %v10008_v54 }
 0x436   : > { %v9983_v45 = vpop.permute.xlu1 %2414 }
 0x437   : > { %12955 = vst [vmem:[#allocation107_spill] sm:$0xff] %v9983_v45 }
 0x438   : > { %7561 = vset.pattern.permute.xlu1 %v12898_v18  ;;  %7669 = vset.pattern.permute.xlu0 %v12898_v18 }
 0x439   : > { %1954 = vperm.xlu1 %7561, %v9419_v49   ;;  %2018 = vperm.xlu0 %7669, %v9735_v23  }
 0x43b   : > { %v2567_v27 = vpop.permute.xlu1 %2566 }
 0x43c   : > { %v9993_v16 = vmul.f32 %v2567_v27, %v9331_v29 }
 0x43d   : > { %7562 = vset.pattern.permute.xlu1 %v12897_v40  ;;  %7673 = vset.pattern.permute.xlu0 %v12899_v30 }
 0x43e   : > { %12957 = vst [vmem:[#allocation109_spill] sm:$0xff] %v9993_v16  ;;  %2754 = vperm.xlu1 %7562, %v9419_v49   ;;  %2338 = vperm.xlu0 %7673, %v9735_v23   ;;  %v12962_v16 = vpack.i.bf16 %v9638_v11, %v9635_v61  ;;  %v12964_v61 = vpack.i.bf16 %v9712_v6, %v9707_v17 }
 0x43f   : > { %v2991_v17 = vmul.f32 %v9327_v19, %v2895_v4 }
 0x440   : > { %v10001_v45 = vpop.permute.xlu1 %1926 }
 0x442   : > { %7564 = vset.pattern.permute.xlu1 %v12900_v42  ;;  %7675 = vset.pattern.permute.xlu0 %v12898_v18 }
 0x443   : > { %2914 = vperm.xlu1 %7564, %v9419_v49   ;;  %2010 = vperm.xlu0 %7675, %v9755_v10  }
 0x445   : > { %v2087_v27 = vpop.permute.xlu1 %2086 }
 0x446   : > { %v10011_v2 = vmul.f32 %v2087_v27, %v9331_v29 }
 0x447   : > { %7565 = vset.pattern.permute.xlu1 %v12899_v30  ;;  %7679 = vset.pattern.permute.xlu0 %v12899_v30 }
 0x448   : > { %12959 = vst [vmem:[#allocation111_spill] sm:$0xff] %v10011_v2  ;;  %2274 = vperm.xlu1 %7565, %v9419_v49   ;;  %2330 = vperm.xlu0 %7679, %v9755_v10   ;;  %v10035_v2 = vpop.permute.xlu0 %2750 }
 0x44a   : > { %v10019_v60 = vpop.permute.xlu1 %2886 }
 0x44c   : > { %7566 = vset.pattern.permute.xlu1 %v12873_v0  ;;  %7691 = vrot.lane.b32.xlu0 %v12960_v41, %s8720_s30  ;;  %v10052_v11 = vpop.permute.xlu0 %2910 }
 0x44d   : > { %1778 = vperm.xlu1 %7566, %v9419_v49   ;;  %7981 = vset.pattern.permute.xlu0 %v12873_v0 }
 0x44f   : > { %v10028_v27 = vpop.permute.xlu1 %2406 }
 0x450   : > { %12961 = vst [vmem:[#allocation112_spill] sm:$0xff] %v10028_v27  ;;  %7701 = vrot.lane.b32.xlu0 %v12962_v16, %s8712_s13  ;;  %v10067_v16 = vpop.permute.xlu0 %1773 }
 0x451   : > { %7568 = vset.pattern.permute.xlu1 %v12898_v18  ;;  %12966 = vst [vmem:[#allocation113_spill] sm:$0xff] %v10067_v16 }
 0x452   : > { %1946 = vperm.xlu1 %7568, %v9429_v14  }
 0x454   : > { %v1939_v54 = vpop.permute.xlu1 %1938  ;;  %7721 = vrot.lane.b32.xlu0 %v12963_v46, %s8720_s30  ;;  %v12965_v46 = vpack.i.bf16 %v9842_v33, %v9839_v35  ;;  %v10079_v35 = vmul.f32 %v9327_v19, %v9873_v63  ;;  %v10081_v33 = vpop.permute.xlu0 %2742  ;;  %v12970_v63 = vpack.i.bf16 %v9922_v34, %v9919_v1 }
 0x455   : > { %v10046_v41 = vmul.f32 %v9337_v37, %v1939_v54 }
 0x456   : > { %7569 = vset.pattern.permute.xlu1 %v12897_v40 }
 0x457   : > { %2746 = vperm.xlu1 %7569, %v9429_v14  }
 0x458   : > { %7731 = vrot.lane.b32.xlu0 %v12964_v61, %s8712_s13 }
 0x459   : > { %v2739_v26 = vpop.permute.xlu1 %2738 }
 0x45a   : > { %v2832_v62 = vmul.f32 %v9337_v37, %v2739_v26 }
 0x45b   : > { %7571 = vset.pattern.permute.xlu1 %v12900_v42 }
 0x45c   : > { %v7810_v54 = vpack.i.bf16 %v2832_v62, %v2831_v22  ;;  %2906 = vperm.xlu1 %7571, %v9429_v14   ;;  %7751 = vrot.lane.b32.xlu0 %v12965_v46, %s8720_s30  ;;  %v12968_v62 = vpack.i.bf16 %v9907_v32, %v9904_v52  ;;  %v10100_v46 = vpop.permute.xlu0 %2262  ;;  %v10107_v32 = vmul.f32 %v10001_v45, %v9331_v29 }
 0x45e   : > { %v2899_v6 = vpop.permute.xlu1 %2898  ;;  %12971 = vst [vmem:[#allocation115_spill] sm:$0xff] %v10107_v32 }
 0x45f   : > { %v2992_v61 = vmul.f32 %v9337_v37, %v2899_v6 }
 0x460   : > { %7572 = vset.pattern.permute.xlu1 %v12899_v30  ;;  %7761 = vrot.lane.b32.xlu0 %v12967_v7, %s8712_s13  ;;  %v10113_v1 = vpop.permute.xlu0 %1763 }
 0x461   : > { %v7820_v26 = vpack.i.bf16 %v2992_v61, %v2991_v17  ;;  %2266 = vperm.xlu1 %7572, %v9429_v14   ;;  %12973 = vst [vmem:[#allocation117_spill] sm:$0xff] %v10113_v1  ;;  %v2829_v17 = vmul.f32 %v9900_v9, %v9331_v29 }
 0x463   : > { %v2259_v22 = vpop.permute.xlu1 %2258 }
 0x464   : > { %v10084_v4 = vmul.f32 %v9337_v37, %v2259_v22  ;;  %7781 = vrot.lane.b32.xlu0 %v12968_v62, %s8720_s30  ;;  %v2595_v7 = vpop.permute.xlu0 %2594  ;;  %v2989_v62 = vmul.f32 %v10019_v60, %v9331_v29 }
 0x465   : > { %7573 = vset.pattern.permute.xlu1 %v12873_v0 }
 0x466   : > { %1768 = vperm.xlu1 %7573, %v9429_v14  }
 0x468   : > { %v10094_v5 = vpop.permute.xlu1 %1758  ;;  %7791 = vrot.lane.b32.xlu0 %v12970_v63, %s8712_s13  ;;  %v2115_v9 = vpop.permute.xlu0 %2114 }
 0x469   : > { %12969 = vst [vmem:[#allocation114_spill] sm:$0xff] %v10094_v5  ;;  %v10161_v34 = vmul.f32 %v9356_v28, %v2115_v9 }
 0x46a   : > { %7575 = vset.pattern.permute.xlu1 %v12898_v18 }
 0x46b   : > { %1966 = vperm.xlu1 %7575, %v9439_v20   ;;  %12979 = vst [vmem:[#allocation123_spill] sm:$0xff] %v10161_v34 }
 0x46c   : > { %7811 = vrot.lane.b32.xlu0 %v7810_v54, %s8720_s30 }
 0x46d   : > { %v1931_v52 = vpop.permute.xlu1 %1930 }
 0x46e   : > { %v10110_v6 = vmul.f32 %v1931_v52, %v9341_v48 }
 0x46f   : > { %7576 = vset.pattern.permute.xlu1 %v12897_v40 }
 0x470   : > { %12972 = vst [vmem:[#allocation116_spill] sm:$0xff] %v10110_v6  ;;  %2766 = vperm.xlu1 %7576, %v9439_v20   ;;  %7821 = vrot.lane.b32.xlu0 %v7820_v26, %s8712_s13 }
 0x472   : > { %v2731_v54 = vpop.permute.xlu1 %2730 }
 0x473   : > { %v2830_v45 = vmul.f32 %v2731_v54, %v9341_v48  ;;  %v10133_v54 = vmul.f32 %v9915_v13, %v9331_v29  ;;  %v10147_v13 = vmul.f32 %v9356_v28, %v2595_v7 }
 0x474   : > { %7578 = vset.pattern.permute.xlu1 %v12900_v42 }
 0x475   : > { %v7840_v61 = vpack.i.bf16 %v2830_v45, %v2829_v17  ;;  %2926 = vperm.xlu1 %7578, %v9439_v20   ;;  %12974 = vst [vmem:[#allocation118_spill] sm:$0xff] %v10133_v54  ;;  %12977 = vst [vmem:[#allocation121_spill] sm:$0xff] %v10147_v13 }
 0x477   : > { %v2891_v22 = vpop.permute.xlu1 %2890  ;;  %7841 = vrot.lane.b32.xlu0 %v7840_v61, %s8720_s30  ;;  %v2587_v61 = vpop.permute.xlu0 %2586 }
 0x478   : > { %v2990_v26 = vmul.f32 %v2891_v22, %v9341_v48 }
 0x479   : > { %7579 = vset.pattern.permute.xlu1 %v12899_v30 }
 0x47a   : > { %v7850_v63 = vpack.i.bf16 %v2990_v26, %v2989_v62  ;;  %2286 = vperm.xlu1 %7579, %v9439_v20   ;;  %v10181_v26 = vmul.f32 %v2587_v61, %v9360_v36 }
 0x47c   : > { %v2251_v52 = vpop.permute.xlu1 %2250  ;;  %7851 = vrot.lane.b32.xlu0 %v7850_v63, %s8712_s13  ;;  %v2107_v63 = vpop.permute.xlu0 %2106  ;;  %12982 = vst [vmem:[#allocation126_spill] sm:$0xff] %v10181_v26 }
 0x47d   : > { %v10136_v17 = vmul.f32 %v2251_v52, %v9341_v48 }
 0x47e   : > { %7580 = vset.pattern.permute.xlu1 %v12873_v0 }
 0x47f   : > { %12975 = vst [vmem:[#allocation119_spill] sm:$0xff] %v10136_v17  ;;  %1793 = vperm.xlu1 %7580, %v9439_v20  }
 0x480   : > { %v10158_v60 = vpop.permute.xlu0 %2606 }
 0x481   : > { %v10142_v45 = vpop.permute.xlu1 %1748 }
 0x482   : > { %12976 = vst [vmem:[#allocation120_spill] sm:$0xff] %v10142_v45 }
 0x483   : > { %7582 = vset.pattern.permute.xlu1 %v12898_v18 }
 0x484   : > { %1958 = vperm.xlu1 %7582, %v9449_v53   ;;  %v10170_v1 = vpop.permute.xlu0 %2126 }
 0x486   : > { %v2591_v22 = vpop.permute.xlu1 %2590 }
 0x487   : > { %v10150_v62 = vmul.f32 %v9348_v51, %v2591_v22 }
 0x488   : > { %7583 = vset.pattern.permute.xlu1 %v12897_v40  ;;  %v10176_v9 = vpop.permute.xlu0 %2598 }
 0x489   : > { %12978 = vst [vmem:[#allocation122_spill] sm:$0xff] %v10150_v62  ;;  %2758 = vperm.xlu1 %7583, %v9449_v53   ;;  %v13013_v62 = vld [vmem:[#allocation58_spill] sm:$0xff] }
 0x48b   : > { %v1951_v52 = vpop.permute.xlu1 %1950 }
 0x48c   : > { %v10187_v48 = vpop.permute.xlu0 %2118 }
 0x48d   : > { %7585 = vset.pattern.permute.xlu1 %v12900_v42 }
 0x48e   : > { %2918 = vperm.xlu1 %7585, %v9449_v53  }
 0x490   : > { %v2111_v7 = vpop.permute.xlu1 %2110  ;;  %v10194_v27 = vpop.permute.xlu0 %1783 }
 0x491   : > { %v10164_v22 = vmul.f32 %v9348_v51, %v2111_v7  ;;  %12984 = vst [vmem:[#allocation128_spill] sm:$0xff] %v10194_v27 }
 0x492   : > { %7586 = vset.pattern.permute.xlu1 %v12899_v30 }
 0x493   : > { %12980 = vst [vmem:[#allocation124_spill] sm:$0xff] %v10164_v22  ;;  %2278 = vperm.xlu1 %7586, %v9449_v53  }
 0x494   : > { %v10206_v5 = vpop.permute.xlu0 %1970 }
 0x495   : > { %v2271_v3 = vpop.permute.xlu1 %2270 }
 0x497   : > { %7587 = vset.pattern.permute.xlu1 %v12896_v58 }
 0x498   : > { %2438 = vperm.xlu1 %7587, %v9449_v53   ;;  %v10217_v53 = vmul.f32 %v9348_v51, %v1951_v52 }
 0x49a   : > { %v10174_v16 = vpop.permute.xlu1 %2430  ;;  %12988 = vst [vmem:[#allocation132_spill] sm:$0xff] %v10217_v53  ;;  %v13009_v53 = vld [vmem:[#allocation44_spill] sm:$0xff] }
 0x49b   : > { %12981 = vst [vmem:[#allocation125_spill] sm:$0xff] %v10174_v16 }
 0x49c   : > { %7589 = vset.pattern.permute.xlu1 %v12901_v39 }
 0x49d   : > { %2610 = vperm.xlu1 %7589, %v9463_v57  }
 0x49f   : > { %v2583_v7 = vpop.permute.xlu1 %2582 }
 0x4a0   : > { %v10184_v45 = vmul.f32 %v2583_v7, %v9352_v50  ;;  %v10197_v7 = vmul.f32 %v2107_v63, %v9360_v36  ;;  %v10212_v63 = vpop.permute.xlu0 %2290 }
 0x4a1   : > { %7591 = vset.pattern.permute.xlu1 %v12897_v40 }
 0x4a2   : > { %12983 = vst [vmem:[#allocation127_spill] sm:$0xff] %v10184_v45  ;;  %2770 = vperm.xlu1 %7591, %v9463_v57   ;;  %12985 = vst [vmem:[#allocation129_spill] sm:$0xff] %v10197_v7  ;;  %v2835_v7 = vmul.f32 %v9348_v51, %v10035_v2 }
 0x4a4   : > { %v1943_v16 = vpop.permute.xlu1 %1942 }
 0x4a6   : > { %7592 = vset.pattern.permute.xlu1 %v12902_v8 }
 0x4a7   : > { %2130 = vperm.xlu1 %7592, %v9463_v57  }
 0x4a9   : > { %v2103_v61 = vpop.permute.xlu1 %2102 }
 0x4aa   : > { %v10200_v29 = vmul.f32 %v2103_v61, %v9352_v50 }
 0x4ab   : > { %7593 = vset.pattern.permute.xlu1 %v12900_v42 }
 0x4ac   : > { %12986 = vst [vmem:[#allocation130_spill] sm:$0xff] %v10200_v29  ;;  %2930 = vperm.xlu1 %7593, %v9463_v57   ;;  %v10222_v29 = vpop.permute.xlu0 %1798 }
 0x4ad   : > { %12990 = vst [vmem:[#allocation134_spill] sm:$0xff] %v10222_v29 }
 0x4ae   : > { %v2903_v37 = vpop.permute.xlu1 %2902 }
 0x4b0   : > { %7595 = vset.pattern.permute.xlu1 %v12896_v58  ;;  %v10232_v52 = vpop.permute.xlu0 %1962 }
 0x4b1   : > { %2450 = vperm.xlu1 %7595, %v9463_v57   ;;  %v2995_v57 = vmul.f32 %v9348_v51, %v10052_v11 }
 0x4b3   : > { %v10210_v27 = vpop.permute.xlu1 %2422 }
 0x4b4   : > { %12987 = vst [vmem:[#allocation131_spill] sm:$0xff] %v10210_v27 }
 0x4b5   : > { %7597 = vset.pattern.permute.xlu1 %v12901_v39 }
 0x4b6   : > { %2602 = vperm.xlu1 %7597, %v9477_v38  }
 0x4b8   : > { %v1955_v61 = vpop.permute.xlu1 %1954 }
 0x4b9   : > { %v10220_v19 = vmul.f32 %v9356_v28, %v1955_v61 }
 0x4ba   : > { %7599 = vset.pattern.permute.xlu1 %v12897_v40 }
 0x4bb   : > { %12989 = vst [vmem:[#allocation133_spill] sm:$0xff] %v10220_v19  ;;  %2762 = vperm.xlu1 %7599, %v9477_v38  }
 0x4bd   : > { %v2755_v27 = vpop.permute.xlu1 %2754 }
 0x4be   : > { %v2836_v45 = vmul.f32 %v9356_v28, %v2755_v27  ;;  %v10241_v27 = vpop.permute.xlu0 %2282 }
 0x4bf   : > { %7600 = vset.pattern.permute.xlu1 %v12902_v8 }
 0x4c0   : > { %v7870_v61 = vpack.i.bf16 %v2836_v45, %v2835_v7  ;;  %2122 = vperm.xlu1 %7600, %v9477_v38   ;;  %v10245_v45 = vmul.f32 %v9348_v51, %v2271_v3 }
 0x4c2   : > { %v2915_v29 = vpop.permute.xlu1 %2914  ;;  %7871 = vrot.lane.b32.xlu0 %v7870_v61, %s8720_s30  ;;  %12991 = vst [vmem:[#allocation135_spill] sm:$0xff] %v10245_v45  ;;  %v10254_v11 = vpop.permute.xlu0 %2622 }
 0x4c3   : > { %v2996_v26 = vmul.f32 %v9356_v28, %v2915_v29 }
 0x4c4   : > { %7601 = vset.pattern.permute.xlu1 %v12900_v42 }
 0x4c5   : > { %v7880_v2 = vpack.i.bf16 %v2996_v26, %v2995_v57  ;;  %2922 = vperm.xlu1 %7601, %v9477_v38  }
 0x4c6   : > { %v10260_v57 = vpop.permute.xlu0 %2142 }
 0x4c7   : > { %v2275_v22 = vpop.permute.xlu1 %2274  ;;  %7881 = vrot.lane.b32.xlu0 %v7880_v2, %s8712_s13  ;;  %v2993_v2 = vmul.f32 %v2903_v37, %v9352_v50  ;;  %v10329_v37 = vmul.f32 %v9377_v31, %v10212_v63 }
 0x4c8   : > { %v10248_v7 = vmul.f32 %v9356_v28, %v2275_v22  ;;  %v10263_v22 = vmul.f32 %v1943_v16, %v9352_v50 }
 0x4c9   : > { %7603 = vset.pattern.permute.xlu1 %v12873_v0  ;;  %13002 = vst [vmem:[#allocation145_spill] sm:$0xff] %v10329_v37 }
 0x4ca   : > { %12992 = vst [vmem:[#allocation136_spill] sm:$0xff] %v10248_v7  ;;  %1788 = vperm.xlu1 %7603, %v9477_v38   ;;  %12994 = vst [vmem:[#allocation138_spill] sm:$0xff] %v10263_v22  ;;  %v10275_v51 = vpop.permute.xlu0 %2614 }
 0x4cc   : > { %v10256_v26 = vpop.permute.xlu1 %1778 }
 0x4cd   : > { %12993 = vst [vmem:[#allocation137_spill] sm:$0xff] %v10256_v26  ;;  %v2833_v26 = vmul.f32 %v10081_v33, %v9352_v50 }
 0x4ce   : > { %7605 = vset.pattern.permute.xlu1 %v12898_v18 }
 0x4cf   : > { %1982 = vperm.xlu1 %7605, %v9487_v15  }
 0x4d1   : > { %v1947_v3 = vpop.permute.xlu1 %1946 }
 0x4d2   : > { %v10266_v61 = vmul.f32 %v1947_v3, %v9360_v36 }
 0x4d3   : > { %7606 = vset.pattern.permute.xlu1 %v12897_v40 }
 0x4d4   : > { %12995 = vst [vmem:[#allocation139_spill] sm:$0xff] %v10266_v61  ;;  %2782 = vperm.xlu1 %7606, %v9487_v15   ;;  %v10283_v61 = vpop.permute.xlu0 %2134 }
 0x4d6   : > { %v2747_v29 = vpop.permute.xlu1 %2746 }
 0x4d7   : > { %v2834_v28 = vmul.f32 %v2747_v29, %v9360_v36 }
 0x4d8   : > { %7608 = vset.pattern.permute.xlu1 %v12900_v42 }
 0x4d9   : > { %v7900_v16 = vpack.i.bf16 %v2834_v28, %v2833_v26  ;;  %2942 = vperm.xlu1 %7608, %v9487_v15   ;;  %v10289_v28 = vmul.f32 %v10100_v46, %v9352_v50 }
 0x4db   : > { %v2907_v3 = vpop.permute.xlu1 %2906  ;;  %7901 = vrot.lane.b32.xlu0 %v7900_v16, %s8720_s30  ;;  %12996 = vst [vmem:[#allocation140_spill] sm:$0xff] %v10289_v28 }
 0x4dc   : > { %v2994_v22 = vmul.f32 %v2907_v3, %v9360_v36  ;;  %v10308_v3 = vmul.f32 %v9377_v31, %v10206_v5 }
 0x4dd   : > { %7609 = vset.pattern.permute.xlu1 %v12899_v30 }
 0x4de   : > { %v7910_v33 = vpack.i.bf16 %v2994_v22, %v2993_v2  ;;  %2302 = vperm.xlu1 %7609, %v9487_v15   ;;  %v10298_v22 = vpop.permute.xlu0 %1986  ;;  %12999 = vst [vmem:[#allocation143_spill] sm:$0xff] %v10308_v3 }
 0x4e0   : > { %v2267_v29 = vpop.permute.xlu1 %2266  ;;  %7911 = vrot.lane.b32.xlu0 %v7910_v33, %s8712_s13  ;;  %v13000_v33 = vld [vmem:[#allocation43_spill] sm:$0xff] }
 0x4e1   : > { %v10292_v26 = vmul.f32 %v2267_v29, %v9360_v36  ;;  %v10408_v19 = vmul.f32 %v13000_v33, %v10170_v1 }
 0x4e2   : > { %7611 = vset.pattern.permute.xlu1 %v12898_v18  ;;  %v10304_v46 = vpop.permute.xlu0 %2306 }
 0x4e3   : > { %12997 = vst [vmem:[#allocation141_spill] sm:$0xff] %v10292_v26  ;;  %1974 = vperm.xlu1 %7611, %v9499_v24   ;;  %v13005_v26 = vld [vmem:[#allocation56_spill] sm:$0xff]  ;;  %13017 = vst [vmem:[#allocation154_spill] sm:$0xff] %v10408_v19 }
 0x4e4   : > { %v13035_v19 = vld [vmem:[#allocation40_spill] sm:$0xff] }
 0x4e5   : > { %v10300_v2 = vpop.permute.xlu1 %1768 }
 0x4e6   : > { %12998 = vst [vmem:[#allocation142_spill] sm:$0xff] %v10300_v2  ;;  %v10317_v36 = vpop.permute.xlu0 %1978 }
 0x4e7   : > { %7612 = vset.pattern.permute.xlu1 %v12897_v40 }
 0x4e8   : > { %2774 = vperm.xlu1 %7612, %v9499_v24  }
 0x4ea   : > { %v1967_v16 = vpop.permute.xlu1 %1966  ;;  %v10323_v5 = vpop.permute.xlu0 %2298 }
 0x4eb   : > { %v10311_v29 = vmul.f32 %v13000_v33, %v1967_v16 }
 0x4ec   : > { %7614 = vset.pattern.permute.xlu1 %v12900_v42 }
 0x4ed   : > { %13001 = vst [vmem:[#allocation144_spill] sm:$0xff] %v10311_v29  ;;  %2934 = vperm.xlu1 %7614, %v9499_v24  }
 0x4ee   : > { %v10335_v3 = vpop.permute.xlu0 %1808 }
 0x4ef   : > { %v2767_v2 = vpop.permute.xlu1 %2766  ;;  %13004 = vst [vmem:[#allocation147_spill] sm:$0xff] %v10335_v3 }
 0x4f1   : > { %7615 = vset.pattern.permute.xlu1 %v12899_v30 }
 0x4f2   : > { %2294 = vperm.xlu1 %7615, %v9499_v24   ;;  %v10344_v63 = vpop.permute.xlu0 %2638 }
 0x4f4   : > { %v10321_v50 = vpop.permute.xlu1 %2926 }
 0x4f6   : > { %7616 = vset.pattern.permute.xlu1 %v12873_v0 }
 0x4f7   : > { %1803 = vperm.xlu1 %7616, %v9499_v24  }
 0x4f9   : > { %v2287_v16 = vpop.permute.xlu1 %2286 }
 0x4fa   : > { %v10332_v29 = vmul.f32 %v13000_v33, %v2287_v16  ;;  %v13007_v16 = vld [vmem:[#allocation46_spill] sm:$0xff] }
 0x4fb   : > { %7617 = vset.pattern.permute.xlu1 %v12901_v39  ;;  %v10348_v34 = vmul.f32 %v10232_v52, %v13007_v16  ;;  %v10369_v28 = vmul.f32 %v10241_v27, %v13007_v16 }
 0x4fc   : > { %13003 = vst [vmem:[#allocation146_spill] sm:$0xff] %v10332_v29  ;;  %2626 = vperm.xlu1 %7617, %v13005_v26  }
 0x4fd   : > { %13008 = vst [vmem:[#allocation148_spill] sm:$0xff] %v10348_v34  ;;  %13011 = vst [vmem:[#allocation150_spill] sm:$0xff] %v10369_v28  ;;  %v2839_v28 = vmul.f32 %v13000_v33, %v2767_v2 }
 0x4fe   : > { %v10340_v45 = vpop.permute.xlu1 %1793 }
 0x4ff   : > { %13006 = vst [vmem:[#allocation56_spill] sm:$0xff] %v10340_v45  ;;  %v10357_v45 = vpop.permute.xlu0 %2158 }
 0x500   : > { %7619 = vset.pattern.permute.xlu1 %v12897_v40 }
 0x501   : > { %2786 = vperm.xlu1 %7619, %v13005_v26  }
 0x503   : > { %v1959_v7 = vpop.permute.xlu1 %1958  ;;  %v10363_v52 = vpop.permute.xlu0 %2630 }
 0x504   : > { %v10351_v3 = vmul.f32 %v1959_v7, %v13009_v53 }
 0x505   : > { %7620 = vset.pattern.permute.xlu1 %v12902_v8 }
 0x506   : > { %13010 = vst [vmem:[#allocation149_spill] sm:$0xff] %v10351_v3  ;;  %2146 = vperm.xlu1 %7620, %v13005_v26  }
 0x507   : > { %v10374_v34 = vpop.permute.xlu0 %2150 }
 0x508   : > { %v2759_v29 = vpop.permute.xlu1 %2758 }
 0x50a   : > { %7621 = vset.pattern.permute.xlu1 %v12900_v42 }
 0x50b   : > { %2946 = vperm.xlu1 %7621, %v13005_v26   ;;  %v10383_v54 = vpop.permute.xlu0 %2002 }
 0x50d   : > { %v10361_v37 = vpop.permute.xlu1 %2918 }
 0x50f   : > { %7623 = vset.pattern.permute.xlu1 %v12896_v58 }
 0x510   : > { %2466 = vperm.xlu1 %7623, %v13005_v26  }
 0x512   : > { %v2279_v7 = vpop.permute.xlu1 %2278 }
 0x513   : > { %v10372_v3 = vmul.f32 %v2279_v7, %v13009_v53  ;;  %v10388_v7 = vmul.f32 %v13000_v33, %v10158_v60 }
 0x514   : > { %7624 = vset.pattern.permute.xlu1 %v12901_v39 }
 0x515   : > { %13012 = vst [vmem:[#allocation151_spill] sm:$0xff] %v10372_v3  ;;  %2618 = vperm.xlu1 %7624, %v13013_v62   ;;  %13015 = vst [vmem:[#allocation152_spill] sm:$0xff] %v10388_v7 }
 0x517   : > { %v10380_v13 = vpop.permute.xlu1 %2438 }
 0x518   : > { %13014 = vst [vmem:[#allocation58_spill] sm:$0xff] %v10380_v13  ;;  %v10397_v13 = vpop.permute.xlu0 %2322 }
 0x519   : > { %7626 = vset.pattern.permute.xlu1 %v12897_v40 }
 0x51a   : > { %2778 = vperm.xlu1 %7626, %v13013_v62  }
 0x51c   : > { %v2611_v27 = vpop.permute.xlu1 %2610 }
 0x51d   : > { %v10391_v17 = vmul.f32 %v9377_v31, %v2611_v27  ;;  %v10403_v27 = vpop.permute.xlu0 %1994 }
 0x51e   : > { %7627 = vset.pattern.permute.xlu1 %v12902_v8 }
 0x51f   : > { %13016 = vst [vmem:[#allocation153_spill] sm:$0xff] %v10391_v17  ;;  %2138 = vperm.xlu1 %7627, %v13013_v62  }
 0x521   : > { %v2771_v3 = vpop.permute.xlu1 %2770 }
 0x522   : > { %v2840_v32 = vmul.f32 %v9377_v31, %v2771_v3  ;;  %v2999_v3 = vmul.f32 %v13000_v33, %v10321_v50  ;;  %v10433_v50 = vmul.f32 %v10176_v9, %v13009_v53  ;;  %v2837_v33 = vmul.f32 %v2759_v29, %v13009_v53 }
 0x523   : > { %7628 = vset.pattern.permute.xlu1 %v12900_v42 }
 0x524   : > { %v7930_v60 = vpack.i.bf16 %v2840_v32, %v2839_v28  ;;  %2938 = vperm.xlu1 %7628, %v13013_v62   ;;  %v10417_v28 = vpop.permute.xlu0 %2314  ;;  %13020 = vst [vmem:[#allocation157_spill] sm:$0xff] %v10433_v50 }
 0x526   : > { %v2131_v6 = vpop.permute.xlu1 %2130  ;;  %7931 = vrot.lane.b32.xlu0 %v7930_v60, %s8720_s30 }
 0x527   : > { %v10411_v7 = vmul.f32 %v9377_v31, %v2131_v6 }
 0x528   : > { %7630 = vset.pattern.permute.xlu1 %v12896_v58  ;;  %v10427_v2 = vpop.permute.xlu0 %2654 }
 0x529   : > { %13018 = vst [vmem:[#allocation155_spill] sm:$0xff] %v10411_v7  ;;  %2458 = vperm.xlu1 %7630, %v13013_v62   ;;  %v13036_v7 = vld [vmem:[#allocation50_spill] sm:$0xff] }
 0x52b   : > { %v2931_v32 = vpop.permute.xlu1 %2930 }
 0x52c   : > { %v3000_v60 = vmul.f32 %v9377_v31, %v2931_v32 }
 0x52d   : > { %7633 = vset.pattern.permute.xlu1 %v12898_v18 }
 0x52e   : > { %v7940_v1 = vpack.i.bf16 %v3000_v60, %v2999_v3  ;;  %1998 = vperm.xlu1 %7633, %v9573_v47   ;;  %v10439_v3 = vpop.permute.xlu0 %2174  ;;  %v10453_v60 = vmul.f32 %v10187_v48, %v13009_v53 }
 0x530   : > { %v10424_v6 = vpop.permute.xlu1 %2450  ;;  %7941 = vrot.lane.b32.xlu0 %v7940_v1, %s8712_s13  ;;  %13022 = vst [vmem:[#allocation159_spill] sm:$0xff] %v10453_v60 }
 0x531   : > { %13019 = vst [vmem:[#allocation156_spill] sm:$0xff] %v10424_v6 }
 0x532   : > { %7634 = vset.pattern.permute.xlu1 %v12897_v40 }
 0x533   : > { %2798 = vperm.xlu1 %7634, %v9573_v47  }
 0x535   : > { %v2603_v62 = vpop.permute.xlu1 %2602 }
 0x536   : > { %v10436_v32 = vmul.f32 %v2603_v62, %v13007_v16  ;;  %v10448_v62 = vpop.permute.xlu0 %2646 }
 0x537   : > { %7636 = vset.pattern.permute.xlu1 %v12900_v42 }
 0x538   : > { %13021 = vst [vmem:[#allocation158_spill] sm:$0xff] %v10436_v32  ;;  %2958 = vperm.xlu1 %7636, %v9573_v47  }
 0x53a   : > { %v2763_v1 = vpop.permute.xlu1 %2762 }
 0x53b   : > { %v2838_v31 = vmul.f32 %v2763_v1, %v13007_v16  ;;  %v2997_v1 = vmul.f32 %v10361_v37, %v13009_v53 }
 0x53c   : > { %7637 = vset.pattern.permute.xlu1 %v12899_v30 }
 0x53d   : > { %v7960_v9 = vpack.i.bf16 %v2838_v31, %v2837_v33  ;;  %2318 = vperm.xlu1 %7637, %v9573_v47   ;;  %v10462_v31 = vpop.permute.xlu0 %2166 }
 0x53f   : > { %v2123_v6 = vpop.permute.xlu1 %2122  ;;  %7961 = vrot.lane.b32.xlu0 %v7960_v9, %s8720_s30 }
 0x540   : > { %v10456_v50 = vmul.f32 %v2123_v6, %v13007_v16 }
 0x541   : > { %7639 = vset.pattern.permute.xlu1 %v12898_v18  ;;  %v10472_v29 = vpop.permute.xlu0 %2018 }
 0x542   : > { %13023 = vst [vmem:[#allocation160_spill] sm:$0xff] %v10456_v50  ;;  %1990 = vperm.xlu1 %7639, %v9595_v44   ;;  %v13034_v50 = vld [vmem:[#allocation42_spill] sm:$0xff] }
 0x544   : > { %v2923_v33 = vpop.permute.xlu1 %2922 }
 0x545   : > { %v2998_v9 = vmul.f32 %v2923_v33, %v13007_v16  ;;  %v13025_v33 = vld [vmem:[#allocation49_spill] sm:$0xff]  ;;  %v10484_v53 = vpop.permute.xlu0 %2338 }
 0x546   : > { %7640 = vset.pattern.permute.xlu1 %v12897_v40  ;;  %v10479_v16 = vmul.f32 %v13025_v33, %v10298_v22 }
 0x547   : > { %v7970_v48 = vpack.i.bf16 %v2998_v9, %v2997_v1  ;;  %2790 = vperm.xlu1 %7640, %v9595_v44   ;;  %v13027_v1 = vld [vmem:[#allocation47_spill] sm:$0xff] }
 0x548   : > { %13026 = vst [vmem:[#allocation162_spill] sm:$0xff] %v10479_v16  ;;  %v10506_v16 = vmul.f32 %v13025_v33, %v10304_v46  ;;  %v10521_v46 = vmul.f32 %v10317_v36, %v13036_v7 }
 0x549   : > { %v10469_v6 = vpop.permute.xlu1 %1788  ;;  %7971 = vrot.lane.b32.xlu0 %v7970_v48, %s8712_s13  ;;  %v10493_v22 = vpop.permute.xlu0 %2010  ;;  %v13031_v48 = vld [vmem:[#allocation34_spill] sm:$0xff] }
 0x54a   : > { %13024 = vst [vmem:[#allocation161_spill] sm:$0xff] %v10469_v6 }
 0x54b   : > { %7642 = vset.pattern.permute.xlu1 %v12900_v42 }
 0x54c   : > { %2950 = vperm.xlu1 %7642, %v9595_v44  }
 0x54d   : > { %1818 = vperm.xlu0 %7981, %v13005_v26   ;;  %v13029_v26 = vld [vmem:[#allocation29_spill] sm:$0xff] }
 0x54e   : > { %v1983_v37 = vpop.permute.xlu1 %1982  ;;  %13032 = vst [vmem:[#allocation29_spill] sm:$0xff] %v10506_v16 }
 0x54f   : > { %v10482_v9 = vmul.f32 %v13027_v1, %v1983_v37  ;;  %v13030_v37 = vld [vmem:[#allocation36_spill] sm:$0xff] }
 0x550   : > { %7643 = vset.pattern.permute.xlu1 %v12899_v30 }
 0x551   : > { %13028 = vst [vmem:[#allocation163_spill] sm:$0xff] %v10482_v9  ;;  %2310 = vperm.xlu1 %7643, %v9595_v44   ;;  %7982 = vset.pattern.permute.xlu0 %v12896_v58  ;;  %v10502_v9 = vpop.permute.xlu0 %2330 }
 0x552   : > { %2386 = vperm.xlu0 %7982, %v13029_v26  }
 0x553   : > { %v2783_v6 = vpop.permute.xlu1 %2782 }
 0x555   : > { %7644 = vset.pattern.permute.xlu1 %v12901_v39 }
 0x556   : > { %2642 = vperm.xlu1 %7644, %v9616_v43   ;;  %2394 = vperm.xlu0 %7982, %v13030_v37  }
 0x558   : > { %v10497_v60 = vpop.permute.xlu1 %2942 }
 0x55a   : > { %7646 = vset.pattern.permute.xlu1 %v12897_v40  ;;  %2402 = vperm.xlu0 %7982, %v13031_v48   ;;  %v10516_v48 = vpop.permute.xlu0 %7691 }
 0x55b   : > { %2802 = vperm.xlu1 %7646, %v9616_v43  }
 0x55d   : > { %v2303_v26 = vpop.permute.xlu1 %2302 }
 0x55e   : > { %v10509_v58 = vmul.f32 %v13027_v1, %v2303_v26  ;;  %2410 = vperm.xlu0 %7982, %v13034_v50   ;;  %v13037_v26 = vld [vmem:[#allocation48_spill] sm:$0xff] }
 0x55f   : > { %7647 = vset.pattern.permute.xlu1 %v12902_v8 }
 0x560   : > { %13033 = vst [vmem:[#allocation36_spill] sm:$0xff] %v10509_v58  ;;  %2162 = vperm.xlu1 %7647, %v9616_v43   ;;  %v10533_v58 = vpop.permute.xlu0 %7701 }
 0x562   : > { %v1975_v32 = vpop.permute.xlu1 %1974  ;;  %2418 = vperm.xlu0 %7982, %v13035_v19  }
 0x563   : > { %v10524_v17 = vmul.f32 %v1975_v32, %v13037_v26  ;;  %v10547_v32 = vmul.f32 %v10323_v5, %v13036_v7 }
 0x564   : > { %7648 = vset.pattern.permute.xlu1 %v12900_v42  ;;  %v10540_v36 = vpop.permute.xlu0 %7721 }
 0x565   : > { %13038 = vst [vmem:[#allocation34_spill] sm:$0xff] %v10524_v17  ;;  %2962 = vperm.xlu1 %7648, %v9616_v43   ;;  %13039 = vst [vmem:[#allocation42_spill] sm:$0xff] %v10547_v32  ;;  %v10581_v32 = vmul.f32 %v13027_v1, %v2783_v6 }
 0x566   : > { %2426 = vperm.xlu0 %7982, %v9429_v14  }
 0x567   : > { %v10531_v37 = vpop.permute.xlu1 %2774 }
 0x569   : > { %7650 = vset.pattern.permute.xlu1 %v12901_v39 }
 0x56a   : > { %2634 = vperm.xlu1 %7650, %v9648_v21   ;;  %2434 = vperm.xlu0 %7982, %v9419_v49   ;;  %v10554_v49 = vpop.permute.xlu0 %7731 }
 0x56c   : > { %v10538_v19 = vpop.permute.xlu1 %2934 }
 0x56e   : > { %7652 = vset.pattern.permute.xlu1 %v12897_v40  ;;  %2442 = vperm.xlu0 %7982, %v9477_v38   ;;  %v10564_v5 = vpop.permute.xlu0 %7751 }
 0x56f   : > { %2794 = vperm.xlu1 %7652, %v9648_v21  }
 0x571   : > { %v2295_v14 = vpop.permute.xlu1 %2294 }
 0x572   : > { %v10550_v50 = vmul.f32 %v2295_v14, %v13037_v26  ;;  %2446 = vperm.xlu0 %7982, %v9439_v20   ;;  %v10569_v14 = vmul.f32 %v13027_v1, %v10254_v11 }
 0x573   : > { %7653 = vset.pattern.permute.xlu1 %v12902_v8 }
 0x574   : > { %13040 = vst [vmem:[#allocation40_spill] sm:$0xff] %v10550_v50  ;;  %2154 = vperm.xlu1 %7653, %v9648_v21   ;;  %13042 = vst [vmem:[#allocation165_spill] sm:$0xff] %v10569_v14 }
 0x576   : > { %v10559_v38 = vpop.permute.xlu1 %1803  ;;  %2454 = vperm.xlu0 %7982, %v9499_v24   ;;  %v10592_v24 = vmul.f32 %v13027_v1, %v10260_v57 }
 0x577   : > { %13041 = vst [vmem:[#allocation164_spill] sm:$0xff] %v10559_v38  ;;  %v10578_v38 = vpop.permute.xlu0 %7761 }
 0x578   : > { %7654 = vset.pattern.permute.xlu1 %v12900_v42  ;;  %13044 = vst [vmem:[#allocation167_spill] sm:$0xff] %v10592_v24 }
 0x579   : > { %2954 = vperm.xlu1 %7654, %v9648_v21  }
 0x57a   : > { %2462 = vperm.xlu0 %7982, %v9487_v15  }
 0x57b   : > { %v2627_v20 = vpop.permute.xlu1 %2626  ;;  %v10594_v14 = vpop.permute.xlu0 %7781 }
 0x57c   : > { %v10572_v16 = vmul.f32 %v13025_v33, %v2627_v20  ;;  %13045 = vst [vmem:[#allocation168_spill] sm:$0xff] %v10594_v14 }
 0x57d   : > { %7657 = vset.pattern.permute.xlu1 %v12898_v18 }
 0x57e   : > { %13043 = vst [vmem:[#allocation166_spill] sm:$0xff] %v10572_v16  ;;  %2014 = vperm.xlu1 %7657, %v9673_v12  }
 0x57f   : > { %v10606_v57 = vpop.permute.xlu0 %7791 }
 0x580   : > { %v2787_v50 = vpop.permute.xlu1 %2786 }
 0x581   : > { %v10584_v17 = vmul.f32 %v13025_v33, %v2787_v50 }
 0x582   : > { %7658 = vset.pattern.permute.xlu1 %v12897_v40 }
 0x583   : > { %v8025_v11 = vpack.i.bf16 %v10584_v17, %v10581_v32  ;;  %2814 = vperm.xlu1 %7658, %v9673_v12   ;;  %v3003_v32 = vmul.f32 %v13027_v1, %v10497_v60  ;;  %v10613_v50 = vpop.permute.xlu0 %7811  ;;  %v10618_v60 = vmul.f32 %v10275_v51, %v13037_v26  ;;  %v2841_v1 = vmul.f32 %v10531_v37, %v13037_v26 }
 0x585   : > { %v2147_v20 = vpop.permute.xlu1 %2146 }
 0x586   : > { %v10597_v6 = vmul.f32 %v13025_v33, %v2147_v20 }
 0x587   : > { %7660 = vset.pattern.permute.xlu1 %v12900_v42 }
 0x588   : > { %13046 = vst [vmem:[#allocation169_spill] sm:$0xff] %v10597_v6  ;;  %2974 = vperm.xlu1 %7660, %v9673_v12  }
 0x58a   : > { %v2947_v17 = vpop.permute.xlu1 %2946 }
 0x58b   : > { %v3004_v16 = vmul.f32 %v13025_v33, %v2947_v17 }
 0x58c   : > { %7661 = vset.pattern.permute.xlu1 %v12899_v30 }
 0x58d   : > { %v8035_v14 = vpack.i.bf16 %v3004_v16, %v3003_v32  ;;  %2334 = vperm.xlu1 %7661, %v9673_v12   ;;  %v10639_v16 = vmul.f32 %v10283_v61, %v13037_v26 }
 0x58f   : > { %v10610_v20 = vpop.permute.xlu1 %2466 }
 0x590   : > { %13047 = vst [vmem:[#allocation170_spill] sm:$0xff] %v10610_v20 }
 0x591   : > { %7663 = vset.pattern.permute.xlu1 %v12898_v18  ;;  %v10627_v18 = vpop.permute.xlu0 %7821 }
 0x592   : > { %2006 = vperm.xlu1 %7663, %v9703_v55   ;;  %13048 = vst [vmem:[#allocation171_spill] sm:$0xff] %v10627_v18 }
 0x594   : > { %v2619_v24 = vpop.permute.xlu1 %2618 }
 0x595   : > { %v10621_v17 = vmul.f32 %v2619_v24, %v13036_v7  ;;  %v10634_v24 = vpop.permute.xlu0 %7841 }
 0x596   : > { %7664 = vset.pattern.permute.xlu1 %v12897_v40 }
 0x597   : > { %2806 = vperm.xlu1 %7664, %v9703_v55  }
 0x599   : > { %v2779_v32 = vpop.permute.xlu1 %2778 }
 0x59a   : > { %v2842_v20 = vmul.f32 %v2779_v32, %v13036_v7  ;;  %v3001_v32 = vmul.f32 %v10538_v19, %v13037_v26 }
 0x59b   : > { %7666 = vset.pattern.permute.xlu1 %v12900_v42 }
 0x59c   : > { %v7993_v51 = vpack.i.bf16 %v2842_v20, %v2841_v1  ;;  %2966 = vperm.xlu1 %7666, %v9703_v55   ;;  %v10648_v20 = vpop.permute.xlu0 %7851 }
 0x59e   : > { %v2139_v6 = vpop.permute.xlu1 %2138  ;;  %7994 = vrot.lane.b32.xlu0 %v7993_v51, %s8720_s30 }
 0x59f   : > { %v10642_v18 = vmul.f32 %v2139_v6, %v13036_v7 }
 0x5a0   : > { %7667 = vset.pattern.permute.xlu1 %v12899_v30  ;;  %v10655_v6 = vpop.permute.xlu0 %7871 }
 0x5a1   : > { %2326 = vperm.xlu1 %7667, %v9703_v55   ;;  %13049 = vst [vmem:[#allocation172_spill] sm:$0xff] %v10655_v6  ;;  %v13069_v6 = vld [vmem:[#allocation60_spill] sm:$0xff] }
 0x5a3   : > { %v2939_v1 = vpop.permute.xlu1 %2938 }
 0x5a4   : > { %v3002_v51 = vmul.f32 %v2939_v1, %v13036_v7  ;;  %v13051_v1 = vld [vmem:[#allocation53_spill] sm:$0xff] }
 0x5a5   : > { %7668 = vset.pattern.permute.xlu1 %v12901_v39  ;;  %v10665_v37 = vmul.f32 %v13051_v1, %v10383_v54 }
 0x5a6   : > { %v8003_v61 = vpack.i.bf16 %v3002_v51, %v3001_v32  ;;  %2658 = vperm.xlu1 %7668, %v9735_v23   ;;  %v10667_v32 = vpop.permute.xlu0 %7881  ;;  %v13054_v51 = vld [vmem:[#allocation51_spill] sm:$0xff] }
 0x5a7   : > { %13052 = vst [vmem:[#allocation174_spill] sm:$0xff] %v10665_v37  ;;  %13053 = vst [vmem:[#allocation175_spill] sm:$0xff] %v10667_v32  ;;  %v13064_v32 = vld [vmem:[#allocation52_spill] sm:$0xff] }
 0x5a8   : > { %v10657_v30 = vpop.permute.xlu1 %2458  ;;  %8004 = vrot.lane.b32.xlu0 %v8003_v61, %s8712_s13 }
 0x5a9   : > { %13050 = vst [vmem:[#allocation173_spill] sm:$0xff] %v10657_v30 }
 0x5aa   : > { %7670 = vset.pattern.permute.xlu1 %v12897_v40  ;;  %v10677_v30 = vpop.permute.xlu0 %7901 }
 0x5ab   : > { %2818 = vperm.xlu1 %7670, %v9735_v23   ;;  %13056 = vst [vmem:[#allocation177_spill] sm:$0xff] %v10677_v30  ;;  %v13062_v30 = vld [vmem:[#allocation54_spill] sm:$0xff] }
 0x5ac   : > { %2470 = vperm.xlu0 %7982, %v9595_v44  }
 0x5ad   : > { %v1999_v19 = vpop.permute.xlu1 %1998 }
 0x5ae   : > { %v10670_v26 = vmul.f32 %v13054_v51, %v1999_v19  ;;  %v10686_v19 = vpop.permute.xlu0 %7911 }
 0x5af   : > { %7671 = vset.pattern.permute.xlu1 %v12902_v8  ;;  %13057 = vst [vmem:[#allocation178_spill] sm:$0xff] %v10686_v19 }
 0x5b0   : > { %13055 = vst [vmem:[#allocation176_spill] sm:$0xff] %v10670_v26  ;;  %2178 = vperm.xlu1 %7671, %v9735_v23   ;;  %8026 = vrot.lane.b32.xlu0 %v8025_v11, %s8720_s30  ;;  %v10695_v26 = vmul.f32 %v13051_v1, %v10397_v13 }
 0x5b2   : > { %v10679_v7 = vpop.permute.xlu1 %2798  ;;  %v10691_v11 = vpop.permute.xlu0 %7931  ;;  %13059 = vst [vmem:[#allocation180_spill] sm:$0xff] %v10695_v26 }
 0x5b3   : > { %13058 = vst [vmem:[#allocation179_spill] sm:$0xff] %v10691_v11  ;;  %v10708_v11 = vmul.f32 %v10403_v27, %v13062_v30 }
 0x5b4   : > { %7672 = vset.pattern.permute.xlu1 %v12900_v42  ;;  %8036 = vrot.lane.b32.xlu0 %v8035_v14, %s8712_s13 }
 0x5b5   : > { %2978 = vperm.xlu1 %7672, %v9735_v23   ;;  %13063 = vst [vmem:[#allocation183_spill] sm:$0xff] %v10708_v11 }
 0x5b7   : > { %v10684_v54 = vpop.permute.xlu1 %2958 }
 0x5b8   : > { %2478 = vperm.xlu0 %7982, %v9573_v47  }
 0x5b9   : > { %7674 = vset.pattern.permute.xlu1 %v12901_v39  ;;  %v10704_v39 = vpop.permute.xlu0 %7941 }
 0x5ba   : > { %2650 = vperm.xlu1 %7674, %v9755_v10   ;;  %13061 = vst [vmem:[#allocation182_spill] sm:$0xff] %v10704_v39 }
 0x5bc   : > { %v2319_v61 = vpop.permute.xlu1 %2318 }
 0x5bd   : > { %v10698_v14 = vmul.f32 %v13054_v51, %v2319_v61  ;;  %v10714_v61 = vpop.permute.xlu0 %7961 }
 0x5be   : > { %7676 = vset.pattern.permute.xlu1 %v12897_v40  ;;  %13066 = vst [vmem:[#allocation185_spill] sm:$0xff] %v10714_v61 }
 0x5bf   : > { %13060 = vst [vmem:[#allocation181_spill] sm:$0xff] %v10698_v14  ;;  %2810 = vperm.xlu1 %7676, %v9755_v10   ;;  %v3976_v14 = vld [vmem:[%s12613_s9 + $0x8] sm:$0xff] }
 0x5c1   : > { %v1991_v19 = vpop.permute.xlu1 %1990  ;;  %v10721_v39 = vpop.permute.xlu0 %7971 }
 0x5c2   : > { %v10711_v13 = vmul.f32 %v1991_v19, %v13064_v32  ;;  %13067 = vst [vmem:[#allocation186_spill] sm:$0xff] %v10721_v39  ;;  %v3992_v19 = vld [vmem:[%s12613_s9 + $0x88] sm:$0xff]  ;;  %v3975_v39 = vld [vmem:[%s12613_s9] sm:$0xff] }
 0x5c3   : > { %7677 = vset.pattern.permute.xlu1 %v12902_v8  ;;  %v3991_v8 = vld [vmem:[%s12613_s9 + $0x80] sm:$0xff]  ;;  %v4039_v47 = vpack.c.bf16 %v3976_v14, %v3975_v39  ;;  %v13074_v39 = vld [vmem:[#allocation71_spill] sm:$0xff] }
 0x5c4   : > { %13065 = vst [vmem:[#allocation184_spill] sm:$0xff] %v10711_v13  ;;  %2170 = vperm.xlu1 %7677, %v9755_v10   ;;  %v4047_v61 = vpack.c.bf16 %v3992_v19, %v3991_v8  ;;  %v13070_v13 = vld [vmem:[#allocation59_spill] sm:$0xff]  ;;  %v3993_v8 = vld [vmem:[%s12613_s9 + $0x90] sm:$0xff]  ;;  %v3994_v19 = vld [vmem:[%s12613_s9 + $0x98] sm:$0xff] }
 0x5c5   : > { %v13071_v11 = vpack.i.bf16 %v13069_v6, %v13070_v13  ;;  %v3977_v6 = vld [vmem:[%s12613_s9 + $0x10] sm:$0xff]  ;;  %v13075_v13 = vld [vmem:[#allocation70_spill] sm:$0xff] }
 0x5c6   : > { %v10719_v37 = vpop.permute.xlu1 %2790  ;;  %6906 = vmatprep.subr.bf16.mxu0 %v4047_v61  ;;  %v13076_v61 = vpack.i.bf16 %v13074_v39, %v13075_v13  ;;  %v3979_v39 = vld [vmem:[%s12613_s9 + $0x20] sm:$0xff]  ;;  %v13078_v13 = vld [vmem:[#allocation61_spill] sm:$0xff] }
 0x5c7   : > { %6907 = vmatpush3.bf16.msra.mxu0 %v4039_v47  ;;  %v10761_v47 = vmul.f32 %v10417_v28, %v13062_v30  ;;  %v3996_v28 = vld [vmem:[%s12613_s9 + $0xa8] sm:$0xff] }
 0x5c8   : > { %7678 = vset.pattern.permute.xlu1 %v12900_v42 }
 0x5c9   : > { %2970 = vperm.xlu1 %7678, %v9755_v10   ;;  %13072 = vst [vmem:[#allocation60_spill] sm:$0xff] %v10761_v47 }
 0x5cb   : > { %v10725_v27 = vpop.permute.xlu1 %2950 }
 0x5cc   : > { %v1819_v40 = vpop.permute.xlu0 %1818 }
 0x5cd   : > { %v10740_v26 = vmul.f32 %v13025_v33, %v1819_v40  ;;  %7681 = vrot.lane.b32.xlu1 %v13071_v11, %s8711_s28  ;;  %v3978_v11 = vld [vmem:[%s12613_s9 + $0x18] sm:$0xff]  ;;  %v3995_v33 = vld [vmem:[%s12613_s9 + $0xa0] sm:$0xff] }
 0x5ce   : > { %7980 = vset.pattern.permute.xlu1 %v12873_v0 }
 0x5cf   : > { %13068 = vst [vmem:[#allocation187_spill] sm:$0xff] %v10740_v26  ;;  %v4048_v26 = vpack.c.bf16 %v3994_v19, %v3993_v8  ;;  %v4040_v8 = vpack.c.bf16 %v3978_v11, %v3977_v6  ;;  %v13077_v11 = vld [vmem:[#allocation62_spill] sm:$0xff]  ;;  %v10790_v19 = vmul.f32 %v13054_v51, %v10344_v63  ;;  %v3981_v63 = vld [vmem:[%s12613_s9 + $0x30] sm:$0xff] }
 0x5d0   : > { %v2311_v40 = vpop.permute.xlu1 %2310 }
 0x5d1   : > { %v10764_v14 = vmul.f32 %v2311_v40, %v13064_v32  ;;  %7686 = vrot.lane.b32.xlu1 %v13076_v61, %s8711_s28  ;;  %6908 = vmatprep.subr.bf16.mxu0 %v4048_v26  ;;  %v4049_v40 = vpack.c.bf16 %v3996_v28, %v3995_v33  ;;  %v3980_v26 = vld [vmem:[%s12613_s9 + $0x28] sm:$0xff]  ;;  %v13079_v61 = vpack.i.bf16 %v13077_v11, %v13078_v13  ;;  %v3997_v28 = vld [vmem:[%s12613_s9 + $0xb0] sm:$0xff]  ;;  %v13083_v11 = vld [vmem:[#allocation73_spill] sm:$0xff] }
 0x5d2   : > { %6909 = vmatpush3.bf16.msra.mxu0 %v4040_v8  ;;  %v4041_v8 = vpack.c.bf16 %v3980_v26, %v3979_v39  ;;  %13080 = vst [vmem:[#allocation71_spill] sm:$0xff] %v10790_v19  ;;  %v10815_v39 = vmul.f32 %v13054_v51, %v10679_v7  ;;  %v3984_v7 = vld [vmem:[%s12613_s9 + $0x48] sm:$0xff] }
 0x5d3   : > { %13073 = vst [vmem:[#allocation59_spill] sm:$0xff] %v10764_v14  ;;  %6910 = vmatprep.subr.bf16.mxu0 %v4049_v40  ;;  %v3998_v14 = vld [vmem:[%s12613_s9 + $0xb8] sm:$0xff] }
 0x5d4   : > { %v4050_v26 = vpack.c.bf16 %v3998_v14, %v3997_v28  ;;  %v3982_v40 = vld [vmem:[%s12613_s9 + $0x38] sm:$0xff]  ;;  %v3999_v28 = vld [vmem:[%s12613_s9 + $0xc0] sm:$0xff] }
 0x5d5   : > { %v2643_v6 = vpop.permute.xlu1 %2642  ;;  %7696 = vrot.lane.b32.xlu1 %v13079_v61, %s8720_s30  ;;  %v4042_v61 = vpack.c.bf16 %v3982_v40, %v3981_v63  ;;  %v13085_v40 = vld [vmem:[#allocation64_spill] sm:$0xff]  ;;  %v10846_v63 = vmul.f32 %v13054_v51, %v10357_v45 }
 0x5d6   : > { %v10793_v33 = vmul.f32 %v13051_v1, %v2643_v6  ;;  %6911 = vmatpush3.bf16.msra.mxu0 %v4041_v8  ;;  %v13082_v6 = vld [vmem:[#allocation74_spill] sm:$0xff] }
 0x5d7   : > { %v13084_v13 = vpack.i.bf16 %v13082_v6, %v13083_v11  ;;  %6912 = vmatprep.subr.bf16.mxu0 %v4050_v26  ;;  %v4000_v6 = vld [vmem:[%s12613_s9 + $0xc8] sm:$0xff]  ;;  %v3983_v26 = vld [vmem:[%s12613_s9 + $0x40] sm:$0xff]  ;;  %13088 = vst [vmem:[#allocation62_spill] sm:$0xff] %v10846_v63  ;;  %v4006_v63 = vld [vmem:[%s12613_s9 + $0xf8] sm:$0xff] }
 0x5d8   : > { %13081 = vst [vmem:[#allocation70_spill] sm:$0xff] %v10793_v33  ;;  %v4051_v11 = vpack.c.bf16 %v4000_v6, %v3999_v28  ;;  %v4001_v28 = vld [vmem:[%s12613_s9 + $0xd0] sm:$0xff]  ;;  %v4002_v6 = vld [vmem:[%s12613_s9 + $0xd8] sm:$0xff] }
 0x5d9   : > { %7706 = vrot.lane.b32.xlu1 %v13084_v13, %s8712_s13  ;;  %v13086_v13 = vld [vmem:[#allocation63_spill] sm:$0xff] }
 0x5da   : > { %v2803_v8 = vpop.permute.xlu1 %2802  ;;  %6913 = vmatpush3.bf16.msra.mxu0 %v4042_v61  ;;  %v13087_v61 = vpack.i.bf16 %v13085_v40, %v13086_v13  ;;  %v4052_v40 = vpack.c.bf16 %v4002_v6, %v4001_v28  ;;  %v13090_v13 = vld [vmem:[#allocation77_spill] sm:$0xff]  ;;  %v4004_v28 = vld [vmem:[%s12613_s9 + $0xe8] sm:$0xff] }
 0x5db   : > { %v10818_v14 = vmul.f32 %v13051_v1, %v2803_v8  ;;  %v4043_v8 = vpack.c.bf16 %v3984_v7, %v3983_v26  ;;  %6914 = vmatprep.subr.bf16.mxu0 %v4051_v11  ;;  %v3985_v11 = vld [vmem:[%s12613_s9 + $0x50] sm:$0xff]  ;;  %v3986_v26 = vld [vmem:[%s12613_s9 + $0x58] sm:$0xff]  ;;  %v13089_v7 = vld [vmem:[#allocation78_spill] sm:$0xff] }
 0x5dd   : > { %7711 = vrot.lane.b32.xlu1 %v13087_v61, %s8711_s28  ;;  %v13091_v61 = vpack.i.bf16 %v13089_v7, %v13090_v13  ;;  %v3987_v7 = vld [vmem:[%s12613_s9 + $0x60] sm:$0xff]  ;;  %v13092_v13 = vld [vmem:[#allocation67_spill] sm:$0xff] }
 0x5de   : > { %6915 = vmatpush3.bf16.msra.mxu0 %v4043_v8  ;;  %v4044_v8 = vpack.c.bf16 %v3986_v26, %v3985_v11  ;;  %v3988_v11 = vld [vmem:[%s12613_s9 + $0x68] sm:$0xff] }
 0x5df   : > { %v2163_v19 = vpop.permute.xlu1 %2162  ;;  %6916 = vmatprep.subr.bf16.mxu0 %v4052_v40  ;;  %v3007_v40 = vmul.f32 %v13054_v51, %v10684_v54  ;;  %v4045_v45 = vpack.c.bf16 %v3988_v11, %v3987_v7  ;;  %v3990_v7 = vld [vmem:[%s12613_s9 + $0x78] sm:$0xff]  ;;  %v13096_v11 = vld [vmem:[#allocation79_spill] sm:$0xff] }
 0x5e0   : > { %v10849_v33 = vmul.f32 %v13051_v1, %v2163_v19  ;;  %v4003_v19 = vld [vmem:[%s12613_s9 + $0xe0] sm:$0xff] }
 0x5e1   : > { %7716 = vrot.lane.b32.xlu1 %v13091_v61, %s8711_s28  ;;  %v4053_v47 = vpack.c.bf16 %v4004_v28, %v4003_v19  ;;  %v13093_v61 = vld [vmem:[#allocation66_spill] sm:$0xff]  ;;  %v4005_v28 = vld [vmem:[%s12613_s9 + $0xf0] sm:$0xff] }
 0x5e2   : > { %6917 = vmatpush3.bf16.msra.mxu0 %v4044_v8  ;;  %v13094_v8 = vpack.i.bf16 %v13092_v13, %v13093_v61  ;;  %v4054_v54 = vpack.c.bf16 %v4006_v63, %v4005_v28  ;;  %v10900_v13 = vmul.f32 %v10363_v52, %v13064_v32  ;;  %v13099_v28 = vld [vmem:[#allocation84_spill] sm:$0xff] }
 0x5e3   : > { %6918 = vmatprep.subr.bf16.mxu0 %v4053_v47  ;;  %v13110_v61 = vld [vmem:[#allocation88_spill] sm:$0xff] }
 0x5e4   : > { %v2963_v6 = vpop.permute.xlu1 %2962 }
 0x5e5   : > { %v3008_v26 = vmul.f32 %v13051_v1, %v2963_v6  ;;  %7726 = vrot.lane.b32.xlu1 %v13094_v8, %s8720_s30  ;;  %v3989_v6 = vld [vmem:[%s12613_s9 + $0x70] sm:$0xff]  ;;  %v13098_v8 = vld [vmem:[#allocation83_spill] sm:$0xff] }
 0x5e6   : > { %6919 = vmatpush3.bf16.msra.mxu0 %v4045_v45  ;;  %v13095_v45 = vld [vmem:[#allocation80_spill] sm:$0xff]  ;;  %v13100_v1 = vpack.i.bf16 %v13098_v8, %v13099_v28  ;;  %v13105_v8 = vld [vmem:[#allocation86_spill] sm:$0xff] }
 0x5e7   : > { %v8099_v19 = vpack.i.bf16 %v3008_v26, %v3007_v40  ;;  %v13097_v40 = vpack.i.bf16 %v13095_v45, %v13096_v11  ;;  %v4046_v26 = vpack.c.bf16 %v3990_v7, %v3989_v6  ;;  %6920 = vmatprep.subr.bf16.mxu0 %v4054_v54  ;;  %v2845_v6 = vmul.f32 %v10719_v37, %v13064_v32  ;;  %v13102_v11 = vld [vmem:[#allocation93_spill] sm:$0xff] }
 0x5e8   : > { %v13104_v37 = vld [vmem:[#allocation85_spill] sm:$0xff] }
 0x5e9   : > { %v2635_v47 = vpop.permute.xlu1 %2634  ;;  %7736 = vrot.lane.b32.xlu1 %v13097_v40, %s8712_s13  ;;  %v13106_v28 = vpack.i.bf16 %v13104_v37, %v13105_v8  ;;  %v13111_v37 = vld [vmem:[#allocation89_spill] sm:$0xff] }
 0x5ea   : > { %v10903_v63 = vmul.f32 %v2635_v47, %v13062_v30  ;;  %6921 = vmatpush3.bf16.msra.mxu0 %v4046_v26  ;;  %v13101_v47 = vld [vmem:[#allocation94_spill] sm:$0xff]  ;;  %v10921_v26 = vmul.f32 %v10374_v34, %v13064_v32  ;;  %v13107_v34 = vld [vmem:[#allocation96_spill] sm:$0xff]  ;;  %v13112_v8 = vpack.i.bf16 %v13110_v61, %v13111_v37 }
 0x5eb   : > { %v13103_v54 = vpack.i.bf16 %v13101_v47, %v13102_v11  ;;  %v13108_v47 = vld [vmem:[#allocation95_spill] sm:$0xff] }
 0x5ec   : > { %v13109_v11 = vpack.i.bf16 %v13107_v34, %v13108_v47 }
 0x5ed   : > { %7741 = vrot.lane.b32.xlu1 %v13100_v1, %s8711_s28 }
 0x5ee   : > { %v2795_v45 = vpop.permute.xlu1 %2794 }
 0x5ef   : > { %v2846_v52 = vmul.f32 %v2795_v45, %v13062_v30 }
 0x5f1   : > { %v8057_v7 = vpack.i.bf16 %v2846_v52, %v2845_v6  ;;  %7746 = vrot.lane.b32.xlu1 %v13103_v54, %s8711_s28  ;;  %v3005_v52 = vmul.f32 %v10725_v27, %v13064_v32  ;;  %v13114_v27 = vld [vmem:[#allocation2_spill] sm:$0xff] }
 0x5f3   : > { %v2155_v40 = vpop.permute.xlu1 %2154  ;;  %8058 = vrot.lane.b32.xlu0 %v8057_v7, %s8720_s30 }
 0x5f4   : > { %v10924_v1 = vmul.f32 %v2155_v40, %v13062_v30 }
 0x5f5   : > { %7756 = vrot.lane.b32.xlu1 %v13106_v28, %s8720_s30  ;;  %v13113_v28 = vld [vmem:[#allocation23_spill] sm:$0xff] }
 0x5f6   : > { %v10946_v45 = vmul.f32 %v13113_v28, %v10472_v29  ;;  %v13121_v29 = vpack.i.bf16 %v10818_v14, %v10815_v39  ;;  %v13126_v39 = vld [vmem:[#allocation104_spill] sm:$0xff] }
 0x5f8   : > { %v2955_v6 = vpop.permute.xlu1 %2954 }
 0x5f9   : > { %v3006_v7 = vmul.f32 %v2955_v6, %v13062_v30  ;;  %7766 = vrot.lane.b32.xlu1 %v13109_v11, %s8712_s13  ;;  %v13118_v11 = vld [vmem:[#allocation90_spill] sm:$0xff]  ;;  %v13173_v30 = vld [vmem:[#allocation3_spill] sm:$0xff] }
 0x5fb   : > { %v8067_v54 = vpack.i.bf16 %v3006_v7, %v3005_v52  ;;  %v13115_v52 = vld [vmem:[#allocation100_spill] sm:$0xff]  ;;  %v13116_v7 = vld [vmem:[#allocation99_spill] sm:$0xff] }
 0x5fc   : > { %v13117_v47 = vpack.i.bf16 %v13115_v52, %v13116_v7  ;;  %v10973_v7 = vmul.f32 %v13113_v28, %v10484_v53  ;;  %v13129_v53 = vld [vmem:[#allocation25_spill] sm:$0xff] }
 0x5fd   : > { %v2015_v40 = vpop.permute.xlu1 %2014  ;;  %7771 = vrot.lane.b32.xlu1 %v13112_v8, %s8711_s28  ;;  %8068 = vrot.lane.b32.xlu0 %v8067_v54, %s8712_s13  ;;  %v13119_v54 = vld [vmem:[#allocation91_spill] sm:$0xff]  ;;  %v13122_v8 = vpack.i.bf16 %v9935_v25, %v9932_v59 }
 0x5fe   : > { %v10949_v6 = vmul.f32 %v13114_v27, %v2015_v40  ;;  %v13120_v37 = vpack.i.bf16 %v13118_v11, %v13119_v54  ;;  %13123 = vst [vmem:[#allocation61_spill] sm:$0xff] %v10973_v7  ;;  %v13125_v11 = vld [vmem:[#allocation103_spill] sm:$0xff]  ;;  %v10992_v54 = vmul.f32 %v10493_v22, %v13129_v53  ;;  %v13175_v7 = vld [vmem:[#allocation153_spill] sm:$0xff] }
 0x5ff   : > { %v13127_v14 = vpack.i.bf16 %v13125_v11, %v13126_v39  ;;  %v13132_v11 = vld [vmem:[#allocation106_spill] sm:$0xff]  ;;  %v13142_v59 = vld [vmem:[#allocation111_spill] sm:$0xff] }
 0x601   : > { %7776 = vrot.lane.b32.xlu1 %v13117_v47, %s8711_s28  ;;  %2486 = vperm.xlu0 %7982, %v9703_v55  }
 0x602   : > { %v2815_v61 = vpop.permute.xlu1 %2814 }
 0x605   : > { %7786 = vrot.lane.b32.xlu1 %v13120_v37, %s8720_s30  ;;  %8090 = vrot.lane.b32.xlu0 %v13121_v29, %s8720_s30  ;;  %v13130_v37 = vld [vmem:[#allocation21_spill] sm:$0xff] }
 0x607   : > { %v2975_v40 = vpop.permute.xlu1 %2974 }
 0x609   : > { %7796 = vrot.lane.b32.xlu1 %v13122_v8, %s8712_s13  ;;  %8100 = vrot.lane.b32.xlu0 %v8099_v19, %s8712_s13  ;;  %v13128_v19 = vpack.i.bf16 %v10046_v41, %v10043_v56  ;;  %v13134_v41 = vpack.i.bf16 %v10084_v4, %v10079_v35  ;;  %v13138_v35 = vld [vmem:[#allocation116_spill] sm:$0xff]  ;;  %v13139_v4 = vld [vmem:[#allocation115_spill] sm:$0xff] }
 0x60c   : > { %v2335_v52 = vpop.permute.xlu1 %2334 }
 0x60d   : > { %v10976_v47 = vmul.f32 %v13114_v27, %v2335_v52  ;;  %7801 = vrot.lane.b32.xlu1 %v13127_v14, %s8711_s28  ;;  %2494 = vperm.xlu0 %7982, %v9673_v12   ;;  %v13131_v52 = vld [vmem:[#allocation105_spill] sm:$0xff]  ;;  %v13135_v14 = vld [vmem:[#allocation108_spill] sm:$0xff] }
 0x60e   : > { %v13133_v39 = vpack.i.bf16 %v13131_v52, %v13132_v11  ;;  %v11017_v11 = vmul.f32 %v10502_v9, %v13129_v53  ;;  %v2691_v9 = vmul.f32 %v13114_v27, %v10427_v2  ;;  %v13147_v2 = vld [vmem:[#allocation121_spill] sm:$0xff] }
 0x60f   : > { %13124 = vst [vmem:[#allocation74_spill] sm:$0xff] %v10976_v47 }
 0x611   : > { %v2007_v25 = vpop.permute.xlu1 %2006  ;;  %7806 = vrot.lane.b32.xlu1 %v13128_v19, %s8711_s28  ;;  %8109 = vset.pattern.permute.xlu0 %v12873_v0 }
 0x612   : > { %v10995_v29 = vmul.f32 %v2007_v25, %v13130_v37  ;;  %1828 = vperm.xlu0 %8109, %v9648_v21   ;;  %v13136_v25 = vld [vmem:[#allocation109_spill] sm:$0xff] }
 0x613   : > { %v13137_v19 = vpack.i.bf16 %v13135_v14, %v13136_v25  ;;  %v11041_v14 = vmul.f32 %v13114_v27, %v2815_v61  ;;  %v13151_v61 = vld [vmem:[#allocation133_spill] sm:$0xff] }
 0x615   : > { %7816 = vrot.lane.b32.xlu1 %v13133_v39, %s8720_s30 }
 0x616   : > { %v2807_v56 = vpop.permute.xlu1 %2806  ;;  %1838 = vperm.xlu0 %8109, %v9616_v43  }
 0x619   : > { %7826 = vrot.lane.b32.xlu1 %v13134_v41, %s8712_s13  ;;  %v13140_v41 = vpack.i.bf16 %v13138_v35, %v13139_v4  ;;  %v13144_v35 = vld [vmem:[#allocation119_spill] sm:$0xff]  ;;  %v13145_v4 = vld [vmem:[#allocation118_spill] sm:$0xff] }
 0x61a   : > { %1848 = vperm.xlu0 %8109, %v9755_v10  }
 0x61b   : > { %v2967_v22 = vpop.permute.xlu1 %2966 }
 0x61d   : > { %7831 = vrot.lane.b32.xlu1 %v13137_v19, %s8711_s28  ;;  %v13141_v19 = vld [vmem:[#allocation110_spill] sm:$0xff] }
 0x61e   : > { %1858 = vperm.xlu0 %8109, %v9735_v23   ;;  %v13143_v34 = vpack.i.bf16 %v13141_v19, %v13142_v59  ;;  %v13148_v59 = vld [vmem:[#allocation122_spill] sm:$0xff] }
 0x620   : > { %v2327_v52 = vpop.permute.xlu1 %2326 }
 0x621   : > { %v11020_v39 = vmul.f32 %v2327_v52, %v13130_v37  ;;  %7836 = vrot.lane.b32.xlu1 %v13140_v41, %s8711_s28  ;;  %v13146_v41 = vpack.i.bf16 %v13144_v35, %v13145_v4  ;;  %v13152_v35 = vld [vmem:[#allocation132_spill] sm:$0xff] }
 0x622   : > { %8172 = vset.pattern.permute.xlu0 %v12900_v42  ;;  %v13153_v4 = vpack.i.bf16 %v13151_v61, %v13152_v35  ;;  %v13157_v61 = vld [vmem:[#allocation136_spill] sm:$0xff]  ;;  %v13158_v35 = vld [vmem:[#allocation135_spill] sm:$0xff] }
 0x625   : > { %v2659_v25 = vpop.permute.xlu1 %2658  ;;  %7846 = vrot.lane.b32.xlu1 %v13143_v34, %s8720_s30 }
 0x626   : > { %v2692_v52 = vmul.f32 %v13113_v28, %v2659_v25  ;;  %v13149_v25 = vpack.i.bf16 %v13147_v2, %v13148_v59  ;;  %v13155_v2 = vld [vmem:[#allocation124_spill] sm:$0xff] }
 0x628   : > { %v8142_v8 = vpack.i.bf16 %v2692_v52, %v2691_v9  ;;  %v11054_v9 = vmul.f32 %v13114_v27, %v10439_v3  ;;  %v13154_v3 = vld [vmem:[#allocation123_spill] sm:$0xff] }
 0x629   : > { %7856 = vrot.lane.b32.xlu1 %v13146_v41, %s8712_s13  ;;  %v11066_v41 = vmul.f32 %v13114_v27, %v2975_v40  ;;  %v13156_v59 = vpack.i.bf16 %v13154_v3, %v13155_v2  ;;  %v11083_v40 = vmul.f32 %v10448_v62, %v13130_v37  ;;  %v13160_v2 = vld [vmem:[#allocation126_spill] sm:$0xff]  ;;  %v13163_v62 = vld [vmem:[#allocation139_spill] sm:$0xff]  ;;  %v11103_v3 = vmul.f32 %v10462_v31, %v13130_v37  ;;  %v13170_v31 = vld [vmem:[#allocation140_spill] sm:$0xff] }
 0x62a   : > { %v2819_v42 = vpop.permute.xlu1 %2818  ;;  %13150 = vst [vmem:[#allocation73_spill] sm:$0xff] %v11054_v9  ;;  %v13172_v27 = vld [vmem:[#allocation57_spill] sm:$0xff] }
 0x62b   : > { %v11044_v51 = vmul.f32 %v13113_v28, %v2819_v42  ;;  %v2503_v32 = vmul.f32 %v13173_v30, %v13172_v27  ;;  %v7704_v27 = vunpack.i.h.bf16 %v10533_v58 }
 0x62d   : > { %v8152_v34 = vpack.i.bf16 %v11044_v51, %v11041_v14  ;;  %7861 = vrot.lane.b32.xlu1 %v13149_v25, %s8711_s28  ;;  %v2849_v51 = vmul.f32 %v2807_v56, %v13130_v37  ;;  %v13166_v56 = vld [vmem:[#allocation129_spill] sm:$0xff] }
 0x62f   : > { %v2179_v19 = vpop.permute.xlu1 %2178 }
 0x630   : > { %v11057_v52 = vmul.f32 %v13113_v28, %v2179_v19 }
 0x631   : > { %7866 = vrot.lane.b32.xlu1 %v13153_v4, %s8711_s28  ;;  %v13159_v4 = vpack.i.bf16 %v13157_v61, %v13158_v35 }
 0x634   : > { %v2979_v14 = vpop.permute.xlu1 %2978 }
 0x635   : > { %v11069_v42 = vmul.f32 %v13113_v28, %v2979_v14  ;;  %7876 = vrot.lane.b32.xlu1 %v13156_v59, %s8720_s30  ;;  %v13161_v59 = vld [vmem:[#allocation127_spill] sm:$0xff] }
 0x637   : > { %v8162_v25 = vpack.i.bf16 %v11069_v42, %v11066_v41  ;;  %v13162_v41 = vpack.i.bf16 %v13160_v2, %v13161_v59  ;;  %v13167_v59 = vld [vmem:[#allocation130_spill] sm:$0xff] }
 0x639   : > { %v2651_v19 = vpop.permute.xlu1 %2650  ;;  %7886 = vrot.lane.b32.xlu1 %v13159_v4, %s8712_s13  ;;  %v13164_v4 = vld [vmem:[#allocation138_spill] sm:$0xff] }
 0x63a   : > { %v11086_v14 = vmul.f32 %v2651_v19, %v13129_v53  ;;  %v13165_v28 = vpack.i.bf16 %v13163_v62, %v13164_v4  ;;  %v2387_v4 = vpop.permute.xlu0 %2386 }
 0x63d   : > { %7891 = vrot.lane.b32.xlu1 %v13162_v41, %s8711_s28  ;;  %v13168_v41 = vpack.i.bf16 %v13166_v56, %v13167_v59  ;;  %v13174_v59 = vld [vmem:[#allocation22_spill] sm:$0xff] }
 0x63e   : > { %v2811_v42 = vpop.permute.xlu1 %2810 }
 0x63f   : > { %v2850_v61 = vmul.f32 %v2811_v42, %v13129_v53 }
 0x641   : > { %v8122_v35 = vpack.i.bf16 %v2850_v61, %v2849_v51  ;;  %7896 = vrot.lane.b32.xlu1 %v13165_v28, %s8711_s28  ;;  %v3009_v28 = vmul.f32 %v2967_v22, %v13130_v37  ;;  %v13176_v22 = vld [vmem:[#allocation152_spill] sm:$0xff] }
 0x642   : > { %v13177_v37 = vpack.i.bf16 %v13175_v7, %v13176_v22  ;;  %v13181_v22 = vld [vmem:[#allocation155_spill] sm:$0xff] }
 0x643   : > { %v2171_v19 = vpop.permute.xlu1 %2170  ;;  %8123 = vrot.lane.b32.xlu0 %v8122_v35, %s8720_s30  ;;  %v13169_v35 = vld [vmem:[#allocation141_spill] sm:$0xff] }
 0x644   : > { %v11106_v2 = vmul.f32 %v2171_v19, %v13129_v53  ;;  %v13171_v62 = vpack.i.bf16 %v13169_v35, %v13170_v31 }
 0x645   : > { %7906 = vrot.lane.b32.xlu1 %v13168_v41, %s8720_s30  ;;  %v2504_v41 = vmul.f32 %v13174_v59, %v2387_v4  ;;  %v13178_v4 = vld [vmem:[#allocation143_spill] sm:$0xff] }
 0x648   : > { %v2971_v42 = vpop.permute.xlu1 %2970 }
 0x649   : > { %v3010_v61 = vmul.f32 %v2971_v42, %v13129_v53  ;;  %7916 = vrot.lane.b32.xlu1 %v13171_v62, %s8712_s13  ;;  %v7694_v42 = vunpack.i.h.bf16 %v10516_v48 }
 0x64b   : > { %v8132_v19 = vpack.i.bf16 %v3010_v61, %v3009_v28  ;;  %v7693_v28 = vunpack.i.l.bf16 %v10516_v48  ;;  %v7703_v61 = vunpack.i.l.bf16 %v10533_v58 }
 0x64c   : > { %v7682_v56 = vpop.permute.xlu1 %7681 }
 0x64d   : > { %v7684_v47 = vunpack.i.h.bf16 %v7682_v56  ;;  %v7683_v51 = vunpack.i.l.bf16 %v7682_v56  ;;  %7921 = vrot.lane.b32.xlu1 %v13177_v37, %s8711_s28  ;;  %8133 = vrot.lane.b32.xlu0 %v8132_v19, %s8712_s13  ;;  %v13179_v19 = vld [vmem:[#allocation144_spill] sm:$0xff] }
 0x64e   : > { %v13180_v56 = vpack.i.bf16 %v13178_v4, %v13179_v19 }
 0x64f   : > { %v3881_v35 = vsel %vm681_vm2, %v2503_v32, %v7683_v51  ;;  %v3882_v31 = vsel %vm681_vm2, %v2504_v41, %v7684_v47 }
 0x650   : > { %v7687_v62 = vpop.permute.xlu1 %7686  ;;  %v3913_v7 = vsel %vm3813_vm6, %v3881_v35, %v7693_v28  ;;  %v3914_v37 = vsel %vm3813_vm6, %v3882_v31, %v7694_v42  ;;  %v13182_v42 = vld [vmem:[#allocation154_spill] sm:$0xff] }
 0x651   : > { %7926 = vrot.lane.b32.xlu1 %v13180_v56, %s8711_s28  ;;  %8143 = vrot.lane.b32.xlu0 %v8142_v8, %s8711_s28  ;;  %v11142_v48 = vsel %vm3846_vm7, %v3913_v7, %v7703_v61  ;;  %v11145_v58 = vsel %vm3846_vm7, %v3914_v37, %v7704_v27  ;;  %v7689_v51 = vunpack.i.h.bf16 %v7687_v62  ;;  %v7688_v41 = vunpack.i.l.bf16 %v7687_v62  ;;  %v13184_v61 = vld [vmem:[#allocation55_spill] sm:$0xff] }
 0x652   : > { %v13183_v28 = vpack.i.bf16 %v13181_v22, %v13182_v42  ;;  %v1863_v31 = vmul.f32 %v13173_v30, %v13184_v61  ;;  %v13185_v27 = vld [vmem:[#allocation75_spill] sm:$0xff]  ;;  %v13186_v22 = vld [vmem:[#allocation145_spill] sm:$0xff]  ;;  %v13187_v42 = vld [vmem:[#allocation146_spill] sm:$0xff] }
 0x653   : > { %v1864_v7 = vmul.f32 %v13174_v59, %v13185_v27  ;;  %v13189_v61 = vld [vmem:[#allocation20_spill] sm:$0xff] }
 0x654   : > { %v7697_v47 = vpop.permute.xlu1 %7696  ;;  %v3783_v4 = vsel %vm681_vm2, %v1863_v31, %v7688_v41  ;;  %v13190_v31 = vld [vmem:[#allocation68_spill] sm:$0xff] }
 0x655   : > { %7936 = vrot.lane.b32.xlu1 %v13183_v28, %s8720_s30  ;;  %8153 = vrot.lane.b32.xlu0 %v8152_v34, %s8720_s30  ;;  %v7699_v8 = vunpack.i.h.bf16 %v7697_v47  ;;  %v7698_v35 = vunpack.i.l.bf16 %v7697_v47  ;;  %v3784_v62 = vsel %vm681_vm2, %v1864_v7, %v7689_v51  ;;  %v13188_v28 = vpack.i.bf16 %v13186_v22, %v13187_v42  ;;  %v13191_v7 = vld [vmem:[#allocation24_spill] sm:$0xff] }
 0x656   : > { %v2501_v27 = vmul.f32 %v13190_v31, %v13189_v61  ;;  %v7734_v42 = vunpack.i.h.bf16 %v10554_v49 }
 0x657   : > { %v3816_v34 = vsel %vm3813_vm6, %v3783_v4, %v7698_v35  ;;  %v3817_v30 = vsel %vm3813_vm6, %v3784_v62, %v7699_v8  ;;  %v13193_v8 = vld [vmem:[#allocation158_spill] sm:$0xff]  ;;  %v13194_v4 = vld [vmem:[#allocation157_spill] sm:$0xff] }
 0x658   : > { %v7707_v37 = vpop.permute.xlu1 %7706  ;;  %v13195_v62 = vpack.i.bf16 %v13193_v8, %v13194_v4  ;;  %v13196_v8 = vld [vmem:[#allocation148_spill] sm:$0xff]  ;;  %v13197_v4 = vld [vmem:[#allocation149_spill] sm:$0xff] }
 0x659   : > { %v7709_v19 = vunpack.i.h.bf16 %v7707_v37  ;;  %v7708_v56 = vunpack.i.l.bf16 %v7707_v37  ;;  %7946 = vrot.lane.b32.xlu1 %v13188_v28, %s8712_s13  ;;  %8163 = vrot.lane.b32.xlu0 %v8162_v25, %s8712_s13  ;;  %v13192_v37 = vld [vmem:[#allocation82_spill] sm:$0xff]  ;;  %v7733_v28 = vunpack.i.l.bf16 %v10554_v49  ;;  %v11197_v49 = vpop.permute.xlu0 %2394 }
 0x65a   : > { %v2502_v25 = vmul.f32 %v13192_v37, %v13191_v7 }
 0x65b   : > { %v11168_v59 = vsel %vm3846_vm7, %v3816_v34, %v7708_v56  ;;  %v11171_v47 = vsel %vm3846_vm7, %v3817_v30, %v7709_v19  ;;  %v7724_v19 = vunpack.i.h.bf16 %v10540_v36  ;;  %v7723_v56 = vunpack.i.l.bf16 %v10540_v36 }
 0x65c   : > { %v7712_v51 = vpop.permute.xlu1 %7711 }
 0x65d   : > { %v7714_v22 = vunpack.i.h.bf16 %v7712_v51  ;;  %v7713_v35 = vunpack.i.l.bf16 %v7712_v51  ;;  %7951 = vrot.lane.b32.xlu1 %v13195_v62, %s8711_s28  ;;  %v13198_v62 = vpack.i.bf16 %v13196_v8, %v13197_v4  ;;  %v13202_v8 = vld [vmem:[#allocation72_spill] sm:$0xff] }
 0x65e   : > { %v1862_v4 = vmul.f32 %v13202_v8, %v13191_v7 }
 0x65f   : > { %v3879_v34 = vsel %vm681_vm2, %v2501_v27, %v7713_v35  ;;  %v3880_v30 = vsel %vm681_vm2, %v2502_v25, %v7714_v22  ;;  %v13199_v35 = vld [vmem:[#allocation160_spill] sm:$0xff] }
 0x660   : > { %v7717_v31 = vpop.permute.xlu1 %7716  ;;  %v3911_v51 = vsel %vm3813_vm6, %v3879_v34, %v7723_v56  ;;  %v3912_v37 = vsel %vm3813_vm6, %v3880_v30, %v7724_v19  ;;  %v13200_v56 = vld [vmem:[#allocation159_spill] sm:$0xff] }
 0x661   : > { %7956 = vrot.lane.b32.xlu1 %v13198_v62, %s8711_s28  ;;  %v3943_v36 = vsel %vm3846_vm7, %v3911_v51, %v7733_v28  ;;  %v3944_v41 = vsel %vm3846_vm7, %v3912_v37, %v7734_v42  ;;  %v7719_v25 = vunpack.i.h.bf16 %v7717_v31  ;;  %v7718_v22 = vunpack.i.l.bf16 %v7717_v31  ;;  %v13203_v28 = vld [vmem:[#allocation69_spill] sm:$0xff]  ;;  %v13204_v62 = vld [vmem:[#allocation150_spill] sm:$0xff] }
 0x662   : > { %v4008_v32 = vpack.c.bf16 %v3944_v41, %v3943_v36  ;;  %v13201_v19 = vpack.i.bf16 %v13199_v35, %v13200_v56  ;;  %v1861_v42 = vmul.f32 %v13203_v28, %v13189_v61  ;;  %v13205_v36 = vld [vmem:[#allocation151_spill] sm:$0xff]  ;;  %v2403_v56 = vpop.permute.xlu0 %2402 }
 0x663   : > { %v13206_v35 = vpack.i.bf16 %v13204_v62, %v13205_v36  ;;  %v13207_v28 = vld [vmem:[#allocation87_spill] sm:$0xff]  ;;  %v7754_v62 = vunpack.i.h.bf16 %v10564_v5 }
 0x664   : > { %4087 = vmatprep.mubr.bf16.mxu0 %v4008_v32  ;;  %v7727_v27 = vpop.permute.xlu1 %7726  ;;  %v3781_v51 = vsel %vm681_vm2, %v1861_v42, %v7718_v22  ;;  %v3782_v32 = vsel %vm681_vm2, %v1862_v4, %v7719_v25  ;;  %v13208_v25 = vld [vmem:[#allocation26_spill] sm:$0xff]  ;;  %v13209_v42 = vld [vmem:[#allocation28_spill] sm:$0xff] }
 0x665   : > { %7966 = vrot.lane.b32.xlu1 %v13201_v19, %s8720_s30  ;;  %v7729_v34 = vunpack.i.h.bf16 %v7727_v27  ;;  %v7728_v30 = vunpack.i.l.bf16 %v7727_v27  ;;  %v2507_v4 = vmul.f32 %v13208_v25, %v13207_v28  ;;  %v13217_v28 = vld [vmem:[#allocation97_spill] sm:$0xff] }
 0x667   : > { %v3814_v27 = vsel %vm3813_vm6, %v3781_v51, %v7728_v30  ;;  %v3815_v7 = vsel %vm3813_vm6, %v3782_v32, %v7729_v34  ;;  %v7753_v30 = vunpack.i.l.bf16 %v10564_v5  ;;  %v7764_v34 = vunpack.i.h.bf16 %v10578_v38 }
 0x668   : > { %v7737_v41 = vpop.permute.xlu1 %7736  ;;  %v7763_v51 = vunpack.i.l.bf16 %v10578_v38  ;;  %v13211_v5 = vpack.i.bf16 %v10621_v17, %v10618_v60 }
 0x669   : > { %v7739_v37 = vunpack.i.h.bf16 %v7737_v41  ;;  %v7738_v31 = vunpack.i.l.bf16 %v7737_v41  ;;  %7976 = vrot.lane.b32.xlu1 %v13206_v35, %s8712_s13  ;;  %v2508_v41 = vmul.f32 %v13209_v42, %v2403_v56 }
 0x66b   : > { %v3847_v19 = vsel %vm3846_vm7, %v3814_v27, %v7738_v31  ;;  %v3848_v61 = vsel %vm3846_vm7, %v3815_v7, %v7739_v37  ;;  %v13210_v31 = vpack.c.bf16 %v11145_v58, %v11142_v48  ;;  %v13213_v7 = vld [vmem:[#allocation34_spill] sm:$0xff] }
 0x66c   : > { %v4007_v8 = vpack.c.bf16 %v3848_v61, %v3847_v19  ;;  %v7742_v22 = vpop.permute.xlu1 %7741  ;;  %v13214_v19 = vpack.i.bf16 %v10521_v46, %v13213_v7  ;;  %v13215_v61 = vpack.c.bf16 %v11171_v47, %v11168_v59  ;;  %v13225_v7 = vld [vmem:[#allocation168_spill] sm:$0xff] }
 0x66d   : > { %v7744_v53 = vunpack.i.h.bf16 %v7742_v22  ;;  %v7743_v9 = vunpack.i.l.bf16 %v7742_v22  ;;  %1813 = vperm.xlu1 %7980, %v9487_v15  }
 0x66e   : > { %4088 = vmatmul.mubr.bf16.vlgmr.msra.gmra.mrb[44].mxu0 %v4007_v8  ;;  %v13216_v8 = vld [vmem:[#allocation76_spill] sm:$0xff] }
 0x66f   : > { %v3885_v32 = vsel %vm681_vm2, %v2507_v4, %v7743_v9  ;;  %v3886_v37 = vsel %vm681_vm2, %v2508_v41, %v7744_v53  ;;  %4095 = vmatprep.mubr.bf16.mxu0 %v13210_v31  ;;  %v13212_v53 = vmov 4   ;;  %v1867_v22 = vmul.f32 %v13208_v25, %v13216_v8  ;;  %v13219_v31 = vld [vmem:[#allocation27_spill] sm:$0xff] }
 0x670   : > { %v7747_v36 = vpop.permute.xlu1 %7746  ;;  %v3917_v15 = vsel %vm3813_vm6, %v3885_v32, %v7753_v30  ;;  %v3918_v35 = vsel %vm3813_vm6, %v3886_v37, %v7754_v62  ;;  %v1868_v4 = vmul.f32 %v13209_v42, %v13217_v28 }
 0x671   : > { %7984 = vrot.lane.b32.xlu1 %v13211_v5, %s8711_s28  ;;  %v11237_v38 = vsel %vm3846_vm7, %v3917_v15, %v7763_v51  ;;  %v11240_v9 = vsel %vm3846_vm7, %v3918_v35, %v7764_v34  ;;  %v7749_v56 = vunpack.i.h.bf16 %v7747_v36  ;;  %v7748_v27 = vunpack.i.l.bf16 %v7747_v36  ;;  %v13220_v36 = vld [vmem:[#allocation92_spill] sm:$0xff]  ;;  %v13221_v35 = vld [vmem:[#allocation30_spill] sm:$0xff] }
 0x672   : > { %8013 = vset.pattern.permute.xlu1 %v13212_v53  ;;  %v4014_v48 = vpack.c.bf16 %v11240_v9, %v11237_v38  ;;  %v13218_v51 = vpack.i.bf16 %v10642_v18, %v10639_v16  ;;  %v2505_v15 = vmul.f32 %v13220_v36, %v13219_v31  ;;  %v2506_v16 = vmul.f32 %v11197_v49, %v13221_v35  ;;  %v13227_v36 = vld [vmem:[#allocation102_spill] sm:$0xff] }
 0x673   : > { %v3787_v62 = vsel %vm681_vm2, %v1867_v22, %v7748_v27  ;;  %v3788_v30 = vsel %vm681_vm2, %v1868_v4, %v7749_v56  ;;  %v13223_v56 = vld [vmem:[#allocation40_spill] sm:$0xff]  ;;  %v7794_v22 = vunpack.i.h.bf16 %v10606_v57 }
 0x674   : > { %v7757_v58 = vpop.permute.xlu1 %7756 }
 0x675   : > { %7989 = vrot.lane.b32.xlu1 %v13214_v19, %s8711_s28  ;;  %v7759_v60 = vunpack.i.h.bf16 %v7757_v58  ;;  %v7758_v17 = vunpack.i.l.bf16 %v7757_v58  ;;  %v13222_v58 = vld [vmem:[#allocation42_spill] sm:$0xff]  ;;  %v7784_v19 = vunpack.i.h.bf16 %v13225_v7 }
 0x676   : > { %4096 = vmatmul.mubr.bf16.gmra.mrb[48].mxu0 %v13215_v61  ;;  %v13224_v27 = vpack.i.bf16 %v13222_v58, %v13223_v56 }
 0x677   : > { %v3820_v59 = vsel %vm3813_vm6, %v3787_v62, %v7758_v17  ;;  %v3821_v47 = vsel %vm3813_vm6, %v3788_v30, %v7759_v60  ;;  %v7783_v60 = vunpack.i.l.bf16 %v13225_v7  ;;  %v7793_v17 = vunpack.i.l.bf16 %v10606_v57  ;;  %v13228_v7 = vld [vmem:[#allocation166_spill] sm:$0xff] }
 0x678   : > { %v7767_v41 = vpop.permute.xlu1 %7766 }
 0x679   : > { %v7769_v34 = vunpack.i.h.bf16 %v7767_v41  ;;  %v7768_v46 = vunpack.i.l.bf16 %v7767_v41  ;;  %7999 = vrot.lane.b32.xlu1 %v13218_v51, %s8720_s30 }
 0x67b   : > { %v11265_v25 = vsel %vm3846_vm7, %v3820_v59, %v7768_v46  ;;  %v11268_v42 = vsel %vm3846_vm7, %v3821_v47, %v7769_v34  ;;  %v11291_v34 = vpop.permute.xlu0 %2410 }
 0x67c   : > { %v7772_v32 = vpop.permute.xlu1 %7771  ;;  %v4013_v37 = vpack.c.bf16 %v11268_v42, %v11265_v25 }
 0x67d   : > { %v7774_v18 = vunpack.i.h.bf16 %v7772_v32  ;;  %v7773_v5 = vunpack.i.l.bf16 %v7772_v32  ;;  %8009 = vrot.lane.b32.xlu1 %v13224_v27, %s8712_s13  ;;  %v13226_v32 = vld [vmem:[#allocation81_spill] sm:$0xff] }
 0x67f   : > { %v3883_v61 = vsel %vm681_vm2, %v2505_v15, %v7773_v5  ;;  %v3884_v8 = vsel %vm681_vm2, %v2506_v16, %v7774_v18  ;;  %v1866_v15 = vmul.f32 %v13227_v36, %v13221_v35  ;;  %v2419_v27 = vpop.permute.xlu0 %2418 }
 0x680   : > { %v7777_v49 = vpop.permute.xlu1 %7776  ;;  %v3915_v28 = vsel %vm3813_vm6, %v3883_v61, %v7783_v60  ;;  %v3916_v4 = vsel %vm3813_vm6, %v3884_v8, %v7784_v19  ;;  %v13229_v19 = vld [vmem:[#allocation165_spill] sm:$0xff] }
 0x681   : > { %2474 = vperm.xlu1 %8013, %v9648_v21   ;;  %v3947_v41 = vsel %vm3846_vm7, %v3915_v28, %v7793_v17  ;;  %v3948_v62 = vsel %vm3846_vm7, %v3916_v4, %v7794_v22  ;;  %v7779_v51 = vunpack.i.h.bf16 %v7777_v49  ;;  %v7778_v59 = vunpack.i.l.bf16 %v7777_v49  ;;  %v13231_v22 = vld [vmem:[#allocation107_spill] sm:$0xff]  ;;  %v13233_v4 = vld [vmem:[#allocation33_spill] sm:$0xff] }
 0x682   : > { %v4012_v30 = vpack.c.bf16 %v3948_v62, %v3947_v41  ;;  %v1865_v21 = vmul.f32 %v13226_v32, %v13219_v31  ;;  %v13230_v60 = vpack.i.bf16 %v13228_v7, %v13229_v19  ;;  %v13232_v49 = vld [vmem:[#allocation31_spill] sm:$0xff]  ;;  %v2512_v41 = vmul.f32 %v13233_v4, %v2419_v27  ;;  %v13238_v27 = vld [vmem:[#allocation169_spill] sm:$0xff] }
 0x683   : > { %v3786_v5 = vsel %vm681_vm2, %v1866_v15, %v7779_v51  ;;  %v2511_v28 = vmul.f32 %v13232_v49, %v13231_v22  ;;  %v7813_v51 = vunpack.i.l.bf16 %v10613_v50  ;;  %v13237_v32 = vld [vmem:[#allocation171_spill] sm:$0xff] }
 0x684   : > { %v7787_v46 = vpop.permute.xlu1 %7786  ;;  %4103 = vmatprep.mubr.bf16.mxu0 %v4012_v30  ;;  %v3785_v18 = vsel %vm681_vm2, %v1865_v21, %v7778_v59  ;;  %v13234_v59 = vld [vmem:[#allocation162_spill] sm:$0xff]  ;;  %v7824_v21 = vunpack.i.h.bf16 %v13237_v32  ;;  %v7823_v36 = vunpack.i.l.bf16 %v13237_v32  ;;  %v13239_v7 = vld [vmem:[#allocation167_spill] sm:$0xff]  ;;  %v13247_v32 = vld [vmem:[#allocation112_spill] sm:$0xff] }
 0x685   : > { %8014 = vset.pattern.permute.xlu1 %v12873_v0  ;;  %v7789_v57 = vunpack.i.h.bf16 %v7787_v46  ;;  %v7788_v47 = vunpack.i.l.bf16 %v7787_v46  ;;  %v7814_v46 = vunpack.i.h.bf16 %v10613_v50  ;;  %v13240_v19 = vpack.i.bf16 %v13238_v27, %v13239_v7 }
 0x686   : > { %1823 = vperm.xlu1 %8014, %v9595_v44   ;;  %v7853_v27 = vunpack.i.l.bf16 %v10648_v20 }
 0x687   : > { %v3818_v44 = vsel %vm3813_vm6, %v3785_v18, %v7788_v47  ;;  %v3819_v31 = vsel %vm3813_vm6, %v3786_v5, %v7789_v57  ;;  %v13235_v57 = vld [vmem:[#allocation163_spill] sm:$0xff] }
 0x688   : > { %v7797_v16 = vpop.permute.xlu1 %7796  ;;  %v13236_v47 = vpack.i.bf16 %v13234_v59, %v13235_v57 }
 0x689   : > { %v7799_v58 = vunpack.i.h.bf16 %v7797_v16  ;;  %v7798_v56 = vunpack.i.l.bf16 %v7797_v16 }
 0x68a   : > { %8016 = vrot.lane.b32.xlu1 %v13230_v60, %s8711_s28 }
 0x68b   : > { %v3851_v17 = vsel %vm3846_vm7, %v3818_v44, %v7798_v56  ;;  %v3852_v35 = vsel %vm3846_vm7, %v3819_v31, %v7799_v58  ;;  %8045 = vset.pattern.permute.xlu1 %v13212_v53 }
 0x68c   : > { %v7802_v61 = vpop.permute.xlu1 %7801  ;;  %v4011_v8 = vpack.c.bf16 %v3852_v35, %v3851_v17  ;;  %v13241_v17 = vld [vmem:[#allocation29_spill] sm:$0xff]  ;;  %v13242_v35 = vld [vmem:[#allocation36_spill] sm:$0xff] }
 0x68d   : > { %v7804_v62 = vunpack.i.h.bf16 %v7802_v61  ;;  %v7803_v30 = vunpack.i.l.bf16 %v7802_v61  ;;  %v13243_v61 = vpack.i.bf16 %v13241_v17, %v13242_v35  ;;  %v11384_v17 = vpop.permute.xlu0 %2426 }
 0x68e   : > { %4104 = vmatmul.mubr.bf16.gmra.mrb[52].mxu0 %v4011_v8  ;;  %8021 = vrot.lane.b32.xlu1 %v13236_v47, %s8711_s28  ;;  %v13244_v8 = vld [vmem:[#allocation98_spill] sm:$0xff]  ;;  %v13246_v47 = vld [vmem:[#allocation32_spill] sm:$0xff] }
 0x68f   : > { %v3889_v15 = vsel %vm681_vm2, %v2511_v28, %v7803_v30  ;;  %v3890_v16 = vsel %vm681_vm2, %v2512_v41, %v7804_v62  ;;  %4111 = vmatprep.mubr.bf16.mxu0 %v4014_v48  ;;  %v1871_v22 = vmul.f32 %v13232_v49, %v13244_v8  ;;  %v13245_v28 = vld [vmem:[#allocation114_spill] sm:$0xff] }
 0x690   : > { %v7807_v18 = vpop.permute.xlu1 %7806  ;;  %v3921_v50 = vsel %vm3813_vm6, %v3889_v15, %v7813_v51  ;;  %v3922_v5 = vsel %vm3813_vm6, %v3890_v16, %v7814_v46  ;;  %v1872_v41 = vmul.f32 %v13233_v4, %v13245_v28 }
 0x691   : > { %v11329_v58 = vsel %vm3846_vm7, %v3921_v50, %v7823_v36  ;;  %v11332_v56 = vsel %vm3846_vm7, %v3922_v5, %v7824_v21  ;;  %v7809_v48 = vunpack.i.h.bf16 %v7807_v18  ;;  %v7808_v60 = vunpack.i.l.bf16 %v7807_v18  ;;  %v13248_v36 = vld [vmem:[#allocation35_spill] sm:$0xff] }
 0x692   : > { %8031 = vrot.lane.b32.xlu1 %v13240_v19, %s8720_s30  ;;  %v4018_v38 = vpack.c.bf16 %v11332_v56, %v11329_v58  ;;  %v2509_v21 = vmul.f32 %v13247_v32, %v13246_v47  ;;  %v7844_v18 = vunpack.i.h.bf16 %v10634_v24  ;;  %v7843_v50 = vunpack.i.l.bf16 %v10634_v24 }
 0x693   : > { %v3791_v30 = vsel %vm681_vm2, %v1871_v22, %v7808_v60  ;;  %v3792_v46 = vsel %vm681_vm2, %v1872_v41, %v7809_v48  ;;  %v7854_v5 = vunpack.i.h.bf16 %v10648_v20  ;;  %v13250_v20 = vpack.i.bf16 %v10903_v63, %v10900_v13  ;;  %v13251_v41 = vld [vmem:[#allocation101_spill] sm:$0xff]  ;;  %v13254_v13 = vld [vmem:[#allocation184_spill] sm:$0xff] }
 0x694   : > { %v7817_v9 = vpop.permute.xlu1 %7816 }
 0x695   : > { %v7819_v44 = vunpack.i.h.bf16 %v7817_v9  ;;  %v7818_v31 = vunpack.i.l.bf16 %v7817_v9  ;;  %v13249_v9 = vld [vmem:[#allocation65_spill] sm:$0xff] }
 0x696   : > { %4112 = vmatmul.mubr.bf16.gmra.mrb[56].mxu0 %v4013_v37  ;;  %8041 = vrot.lane.b32.xlu1 %v13243_v61, %s8712_s13 }
 0x697   : > { %v3824_v25 = vsel %vm3813_vm6, %v3791_v30, %v7818_v31  ;;  %v3825_v42 = vsel %vm3813_vm6, %v3792_v46, %v7819_v44  ;;  %v13252_v30 = vld [vmem:[#allocation120_spill] sm:$0xff] }
 0x698   : > { %v7827_v62 = vpop.permute.xlu1 %7826  ;;  %v1870_v46 = vmul.f32 %v13252_v30, %v13248_v36 }
 0x699   : > { %v7829_v51 = vunpack.i.h.bf16 %v7827_v62  ;;  %v7828_v59 = vunpack.i.l.bf16 %v7827_v62  ;;  %v1869_v62 = vmul.f32 %v13251_v41, %v13246_v47 }
 0x69a   : > { %2482 = vperm.xlu1 %8045, %v9616_v43   ;;  %v2510_v43 = vmul.f32 %v11291_v34, %v13248_v36  ;;  %v13256_v36 = vpack.i.bf16 %v10924_v1, %v10921_v26  ;;  %v13261_v26 = vld [vmem:[#allocation175_spill] sm:$0xff] }
 0x69b   : > { %v11357_v37 = vsel %vm3846_vm7, %v3824_v25, %v7828_v59  ;;  %v11360_v49 = vsel %vm3846_vm7, %v3825_v42, %v7829_v51  ;;  %v13253_v51 = vld [vmem:[#allocation183_spill] sm:$0xff]  ;;  %v7884_v1 = vunpack.i.h.bf16 %v13261_v26 }
 0x69c   : > { %v7832_v4 = vpop.permute.xlu1 %7831  ;;  %v4017_v57 = vpack.c.bf16 %v11360_v49, %v11357_v37  ;;  %v13255_v63 = vpack.i.bf16 %v13253_v51, %v13254_v13 }
 0x69d   : > { %v7834_v15 = vunpack.i.h.bf16 %v7832_v4  ;;  %v7833_v16 = vunpack.i.l.bf16 %v7832_v4 }
 0x69e   : > { %8046 = vset.pattern.permute.xlu1 %v12873_v0 }
 0x69f   : > { %v3887_v7 = vsel %vm681_vm2, %v2509_v21, %v7833_v16  ;;  %v3888_v19 = vsel %vm681_vm2, %v2510_v43, %v7834_v15  ;;  %1833 = vperm.xlu1 %8046, %v13249_v9   ;;  %v2435_v21 = vpop.permute.xlu0 %2434 }
 0x6a0   : > { %v7837_v48 = vpop.permute.xlu1 %7836  ;;  %v3919_v34 = vsel %vm3813_vm6, %v3887_v7, %v7843_v50  ;;  %v3920_v60 = vsel %vm3813_vm6, %v3888_v19, %v7844_v18  ;;  %v13259_v19 = vld [vmem:[#allocation39_spill] sm:$0xff] }
 0x6a1   : > { %v3951_v44 = vsel %vm3846_vm7, %v3919_v34, %v7853_v27  ;;  %v3952_v24 = vsel %vm3846_vm7, %v3920_v60, %v7854_v5  ;;  %v7839_v61 = vunpack.i.h.bf16 %v7837_v48  ;;  %v7838_v8 = vunpack.i.l.bf16 %v7837_v48  ;;  %v13257_v5 = vld [vmem:[#allocation125_spill] sm:$0xff]  ;;  %v13260_v60 = vld [vmem:[#allocation172_spill] sm:$0xff] }
 0x6a2   : > { %v4016_v31 = vpack.c.bf16 %v3952_v24, %v3951_v44  ;;  %v13258_v27 = vld [vmem:[#allocation37_spill] sm:$0xff]  ;;  %v2516_v9 = vmul.f32 %v13259_v19, %v2435_v21  ;;  %v7874_v44 = vunpack.i.h.bf16 %v13260_v60  ;;  %v7873_v24 = vunpack.i.l.bf16 %v13260_v60 }
 0x6a3   : > { %8048 = vrot.lane.b32.xlu1 %v13250_v20, %s8711_s28  ;;  %v3789_v25 = vsel %vm681_vm2, %v1869_v62, %v7838_v8  ;;  %v3790_v42 = vsel %vm681_vm2, %v1870_v46, %v7839_v61  ;;  %v2515_v7 = vmul.f32 %v13258_v27, %v13257_v5  ;;  %v13262_v61 = vld [vmem:[#allocation60_spill] sm:$0xff]  ;;  %v13263_v8 = vld [vmem:[#allocation59_spill] sm:$0xff]  ;;  %v13270_v5 = vld [vmem:[#allocation38_spill] sm:$0xff] }
 0x6a4   : > { %v7847_v35 = vpop.permute.xlu1 %7846  ;;  %4119 = vmatprep.mubr.bf16.mxu0 %v4016_v31  ;;  %8077 = vset.pattern.permute.xlu1 %v13212_v53  ;;  %v7883_v31 = vunpack.i.l.bf16 %v13261_v26  ;;  %v13273_v60 = vld [vmem:[#allocation177_spill] sm:$0xff]  ;;  %v13274_v26 = vld [vmem:[#allocation178_spill] sm:$0xff] }
 0x6a5   : > { %v7849_v22 = vunpack.i.h.bf16 %v7847_v35  ;;  %v7848_v28 = vunpack.i.l.bf16 %v7847_v35 }
 0x6a7   : > { %8053 = vrot.lane.b32.xlu1 %v13255_v63, %s8711_s28  ;;  %v3822_v43 = vsel %vm3813_vm6, %v3789_v25, %v7848_v28  ;;  %v3823_v47 = vsel %vm3813_vm6, %v3790_v42, %v7849_v22  ;;  %v13264_v22 = vpack.i.bf16 %v13262_v61, %v13263_v8  ;;  %v13266_v42 = vld [vmem:[#allocation137_spill] sm:$0xff]  ;;  %v13275_v8 = vld [vmem:[#allocation174_spill] sm:$0xff] }
 0x6a8   : > { %v7857_v59 = vpop.permute.xlu1 %7856 }
 0x6a9   : > { %v7859_v4 = vunpack.i.h.bf16 %v7857_v59  ;;  %v7858_v32 = vunpack.i.l.bf16 %v7857_v59  ;;  %v13265_v59 = vld [vmem:[#allocation113_spill] sm:$0xff] }
 0x6aa   : > { %v1875_v25 = vmul.f32 %v13258_v27, %v13265_v59  ;;  %v13271_v27 = vld [vmem:[#allocation131_spill] sm:$0xff] }
 0x6ab   : > { %8063 = vrot.lane.b32.xlu1 %v13256_v36, %s8720_s30  ;;  %v3855_v15 = vsel %vm3846_vm7, %v3822_v43, %v7858_v32  ;;  %v3856_v16 = vsel %vm3846_vm7, %v3823_v47, %v7859_v4  ;;  %v1876_v4 = vmul.f32 %v13259_v19, %v13266_v42  ;;  %v13272_v19 = vld [vmem:[#allocation41_spill] sm:$0xff] }
 0x6ac   : > { %v7862_v18 = vpop.permute.xlu1 %7861  ;;  %v4015_v50 = vpack.c.bf16 %v3856_v16, %v3855_v15  ;;  %v13267_v16 = vld [vmem:[#allocation70_spill] sm:$0xff] }
 0x6ad   : > { %v7864_v48 = vunpack.i.h.bf16 %v7862_v18  ;;  %v7863_v34 = vunpack.i.l.bf16 %v7862_v18 }
 0x6ae   : > { %4120 = vmatmul.mubr.bf16.gmra.mrb[60].mxu0 %v4015_v50 }
 0x6af   : > { %v3893_v20 = vsel %vm681_vm2, %v2515_v7, %v7863_v34  ;;  %v3894_v35 = vsel %vm681_vm2, %v2516_v9, %v7864_v48  ;;  %4127 = vmatprep.mubr.bf16.mxu0 %v4018_v38  ;;  %8073 = vrot.lane.b32.xlu1 %v13264_v22, %s8712_s13  ;;  %v2513_v7 = vmul.f32 %v13271_v27, %v13270_v5 }
 0x6b0   : > { %v7867_v28 = vpop.permute.xlu1 %7866  ;;  %v3925_v41 = vsel %vm3813_vm6, %v3893_v20, %v7873_v24  ;;  %v3926_v62 = vsel %vm3813_vm6, %v3894_v35, %v7874_v44  ;;  %v2514_v9 = vmul.f32 %v11384_v17, %v13272_v19  ;;  %v7904_v44 = vunpack.i.h.bf16 %v13273_v60  ;;  %v13276_v17 = vld [vmem:[#allocation176_spill] sm:$0xff] }
 0x6b1   : > { %v11424_v30 = vsel %vm3846_vm7, %v3925_v41, %v7883_v31  ;;  %v11427_v46 = vsel %vm3846_vm7, %v3926_v62, %v7884_v1  ;;  %v7869_v38 = vunpack.i.h.bf16 %v7867_v28  ;;  %v7868_v51 = vunpack.i.l.bf16 %v7867_v28 }
 0x6b2   : > { %v4022_v58 = vpack.c.bf16 %v11427_v46, %v11424_v30  ;;  %v7903_v24 = vunpack.i.l.bf16 %v13273_v60  ;;  %v7914_v1 = vunpack.i.h.bf16 %v13274_v26  ;;  %v7913_v31 = vunpack.i.l.bf16 %v13274_v26  ;;  %v13285_v60 = vld [vmem:[#allocation156_spill] sm:$0xff]  ;;  %v13287_v26 = vld [vmem:[#allocation43_spill] sm:$0xff] }
 0x6b3   : > { %2490 = vperm.xlu1 %8077, %v9755_v10   ;;  %v3795_v10 = vsel %vm681_vm2, %v1875_v25, %v7868_v51  ;;  %v3796_v21 = vsel %vm681_vm2, %v1876_v4, %v7869_v38  ;;  %v13277_v22 = vpack.i.bf16 %v13275_v8, %v13276_v17  ;;  %v11476_v38 = vpop.permute.xlu0 %2442  ;;  %v13289_v17 = vld [vmem:[#allocation182_spill] sm:$0xff] }
 0x6b4   : > { %v7877_v56 = vpop.permute.xlu1 %7876 }
 0x6b5   : > { %v7879_v13 = vunpack.i.h.bf16 %v7877_v56  ;;  %v7878_v63 = vunpack.i.l.bf16 %v7877_v56 }
 0x6b6   : > { %4128 = vmatmul.mubr.bf16.gmra.mrb[64].mxu0 %v4017_v57 }
 0x6b7   : > { %8078 = vset.pattern.permute.xlu1 %v12873_v0  ;;  %v3828_v37 = vsel %vm3813_vm6, %v3795_v10, %v7878_v63  ;;  %v3829_v49 = vsel %vm3813_vm6, %v3796_v21, %v7879_v13  ;;  %v13278_v13 = vld [vmem:[#allocation62_spill] sm:$0xff]  ;;  %v2447_v27 = vpop.permute.xlu0 %2446 }
 0x6b8   : > { %v7887_v32 = vpop.permute.xlu1 %7886  ;;  %1843 = vperm.xlu1 %8078, %v9703_v55   ;;  %v13268_v55 = vld [vmem:[#allocation71_spill] sm:$0xff]  ;;  %v13279_v63 = vpack.i.bf16 %v10849_v33, %v13278_v13  ;;  %v13281_v21 = vld [vmem:[#allocation142_spill] sm:$0xff] }
 0x6b9   : > { %v7889_v43 = vunpack.i.h.bf16 %v7887_v32  ;;  %v7888_v47 = vunpack.i.l.bf16 %v7887_v32  ;;  %v13269_v18 = vpack.i.bf16 %v13267_v16, %v13268_v55  ;;  %v13280_v32 = vld [vmem:[#allocation117_spill] sm:$0xff] }
 0x6ba   : > { %v1873_v10 = vmul.f32 %v13280_v32, %v13270_v5  ;;  %v13292_v32 = vld [vmem:[#allocation56_spill] sm:$0xff] }
 0x6bb   : > { %v11446_v57 = vsel %vm3846_vm7, %v3828_v37, %v7888_v47  ;;  %v11449_v36 = vsel %vm3846_vm7, %v3829_v49, %v7889_v43  ;;  %v1874_v43 = vmul.f32 %v13281_v21, %v13272_v19  ;;  %v13282_v37 = vld [vmem:[#allocation180_spill] sm:$0xff]  ;;  %v13283_v49 = vld [vmem:[#allocation181_spill] sm:$0xff]  ;;  %v11521_v30 = vpop.permute.xlu0 %2454 }
 0x6bc   : > { %v7892_v15 = vpop.permute.xlu1 %7891  ;;  %8080 = vrot.lane.b32.xlu1 %v13269_v18, %s8711_s28  ;;  %v4021_v50 = vpack.c.bf16 %v11449_v36, %v11446_v57 }
 0x6bd   : > { %v7894_v48 = vunpack.i.h.bf16 %v7892_v15  ;;  %v7893_v34 = vunpack.i.l.bf16 %v7892_v15  ;;  %8110 = vset.pattern.permute.xlu1 %v13212_v53  ;;  %v13284_v15 = vpack.i.bf16 %v13282_v37, %v13283_v49 }
 0x6bf   : > { %v3891_v20 = vsel %vm681_vm2, %v2513_v7, %v7893_v34  ;;  %v3892_v35 = vsel %vm681_vm2, %v2514_v9, %v7894_v48  ;;  %v11540_v57 = vpop.permute.xlu0 %2462 }
 0x6c0   : > { %v7897_v61 = vpop.permute.xlu1 %7896  ;;  %8085 = vrot.lane.b32.xlu1 %v13277_v22, %s8711_s28  ;;  %v3923_v53 = vsel %vm3813_vm6, %v3891_v20, %v7903_v24  ;;  %v3924_v28 = vsel %vm3813_vm6, %v3892_v35, %v7904_v44  ;;  %v13286_v44 = vld [vmem:[#allocation45_spill] sm:$0xff]  ;;  %v13288_v35 = vld [vmem:[#allocation179_spill] sm:$0xff]  ;;  %v7944_v22 = vunpack.i.h.bf16 %v13289_v17 }
 0x6c1   : > { %v3955_v41 = vsel %vm3846_vm7, %v3923_v53, %v7913_v31  ;;  %v3956_v62 = vsel %vm3846_vm7, %v3924_v28, %v7914_v1  ;;  %v7899_v59 = vunpack.i.h.bf16 %v7897_v61  ;;  %v7898_v25 = vunpack.i.l.bf16 %v7897_v61 }
 0x6c2   : > { %v4020_v56 = vpack.c.bf16 %v3956_v62, %v3955_v41  ;;  %v2520_v24 = vmul.f32 %v13286_v44, %v13285_v60  ;;  %v2519_v1 = vmul.f32 %v13287_v26, %v2447_v27  ;;  %v7934_v61 = vunpack.i.h.bf16 %v13288_v35 }
 0x6c3   : > { %v3793_v16 = vsel %vm681_vm2, %v1873_v10, %v7898_v25  ;;  %v3794_v33 = vsel %vm681_vm2, %v1874_v43, %v7899_v59  ;;  %v7933_v8 = vunpack.i.l.bf16 %v13288_v35  ;;  %v7943_v53 = vunpack.i.l.bf16 %v13289_v17  ;;  %v7995_v60 = vpop.permute.xlu0 %7994 }
 0x6c4   : > { %v7907_v51 = vpop.permute.xlu1 %7906  ;;  %4135 = vmatprep.mubr.bf16.mxu0 %v4020_v56  ;;  %8095 = vrot.lane.b32.xlu1 %v13279_v63, %s8720_s30  ;;  %v13290_v59 = vpack.i.bf16 %v11086_v14, %v11083_v40  ;;  %v1879_v10 = vmul.f32 %v13287_v26, %v13292_v32  ;;  %v13293_v14 = vpack.i.bf16 %v10992_v54, %v10995_v29  ;;  %v13296_v29 = vld [vmem:[#allocation46_spill] sm:$0xff] }
 0x6c5   : > { %v7909_v42 = vunpack.i.h.bf16 %v7907_v51  ;;  %v7908_v4 = vunpack.i.l.bf16 %v7907_v51  ;;  %v2518_v27 = vmul.f32 %v11476_v38, %v13296_v29 }
 0x6c7   : > { %v3826_v7 = vsel %vm3813_vm6, %v3793_v16, %v7908_v4  ;;  %v3827_v5 = vsel %vm3813_vm6, %v3794_v33, %v7909_v42  ;;  %v13291_v42 = vld [vmem:[#allocation134_spill] sm:$0xff] }
 0x6c8   : > { %v7917_v47 = vpop.permute.xlu1 %7916  ;;  %8105 = vrot.lane.b32.xlu1 %v13284_v15, %s8712_s13  ;;  %v1880_v4 = vmul.f32 %v13286_v44, %v13291_v42  ;;  %v13299_v44 = vld [vmem:[#allocation186_spill] sm:$0xff] }
 0x6c9   : > { %v7919_v55 = vunpack.i.h.bf16 %v7917_v47  ;;  %v7918_v18 = vunpack.i.l.bf16 %v7917_v47  ;;  %v7973_v26 = vunpack.i.l.bf16 %v13299_v44 }
 0x6cb   : > { %v3859_v9 = vsel %vm3846_vm7, %v3826_v7, %v7918_v18  ;;  %v3860_v19 = vsel %vm3846_vm7, %v3827_v5, %v7919_v55  ;;  %v13294_v55 = vld [vmem:[#allocation44_spill] sm:$0xff]  ;;  %v13295_v18 = vld [vmem:[#allocation58_spill] sm:$0xff] }
 0x6cc   : > { %v7922_v48 = vpop.permute.xlu1 %7921  ;;  %2498 = vperm.xlu1 %8110, %v9735_v23   ;;  %v4019_v34 = vpack.c.bf16 %v3860_v19, %v3859_v9  ;;  %v2517_v54 = vmul.f32 %v13295_v18, %v13294_v55  ;;  %v13297_v9 = vpack.i.bf16 %v11106_v2, %v11103_v3  ;;  %v13298_v19 = vld [vmem:[#allocation185_spill] sm:$0xff]  ;;  %v13300_v3 = vpack.i.bf16 %v11017_v11, %v11020_v39  ;;  %v13302_v39 = vld [vmem:[#allocation128_spill] sm:$0xff] }
 0x6cd   : > { %v7924_v31 = vunpack.i.h.bf16 %v7922_v48  ;;  %v7923_v20 = vunpack.i.l.bf16 %v7922_v48  ;;  %v7964_v48 = vunpack.i.h.bf16 %v13298_v19  ;;  %v13311_v18 = vld [vmem:[#allocation48_spill] sm:$0xff] }
 0x6ce   : > { %4136 = vmatmul.mubr.bf16.gmra.mrb[68].mxu0 %v4019_v34  ;;  %v7963_v34 = vunpack.i.l.bf16 %v13298_v19 }
 0x6cf   : > { %v3897_v28 = vsel %vm681_vm2, %v2519_v1, %v7923_v20  ;;  %v3898_v23 = vsel %vm681_vm2, %v2520_v24, %v7924_v31  ;;  %4143 = vmatprep.mubr.bf16.mxu0 %v4022_v58  ;;  %v7974_v24 = vunpack.i.h.bf16 %v13299_v44 }
 0x6d0   : > { %v7927_v41 = vpop.permute.xlu1 %7926  ;;  %8111 = vset.pattern.permute.xlu1 %v12873_v0  ;;  %v3929_v62 = vsel %vm3813_vm6, %v3897_v28, %v7933_v8  ;;  %v3930_v56 = vsel %vm3813_vm6, %v3898_v23, %v7934_v61  ;;  %v8005_v8 = vpop.permute.xlu0 %8004  ;;  %v13301_v23 = vpack.i.bf16 %v10946_v45, %v10949_v6  ;;  %v13304_v45 = vld [vmem:[#allocation73_spill] sm:$0xff] }
 0x6d1   : > { %1853 = vperm.xlu1 %8111, %v9673_v12   ;;  %v11514_v51 = vsel %vm3846_vm7, %v3929_v62, %v7943_v53  ;;  %v11517_v13 = vsel %vm3846_vm7, %v3930_v56, %v7944_v22  ;;  %v7929_v58 = vunpack.i.h.bf16 %v7927_v41  ;;  %v7928_v0 = vunpack.i.l.bf16 %v7927_v41 }
 0x6d2   : > { %v4026_v63 = vpack.c.bf16 %v11517_v13, %v11514_v51  ;;  %v1877_v56 = vmul.f32 %v13302_v39, %v13294_v55  ;;  %v13305_v6 = vpack.i.bf16 %v11057_v52, %v13304_v45  ;;  %v8007_v19 = vunpack.i.h.bf16 %v8005_v8  ;;  %v13316_v45 = vld [vmem:[#allocation47_spill] sm:$0xff] }
 0x6d3   : > { %v3799_v43 = vsel %vm681_vm2, %v1879_v10, %v7928_v0  ;;  %v3800_v47 = vsel %vm681_vm2, %v1880_v4, %v7929_v58 }
 0x6d4   : > { %v7937_v46 = vpop.permute.xlu1 %7936  ;;  %v11578_v41 = vpop.permute.xlu0 %2470 }
 0x6d5   : > { %8113 = vrot.lane.b32.xlu1 %v13290_v59, %s8711_s28  ;;  %v7939_v12 = vunpack.i.h.bf16 %v7937_v46  ;;  %v7938_v25 = vunpack.i.l.bf16 %v7937_v46  ;;  %v13303_v46 = vld [vmem:[#allocation161_spill] sm:$0xff] }
 0x6d6   : > { %4144 = vmatmul.mubr.bf16.gmra.mrb[72].mxu0 %v4021_v50  ;;  %v1878_v58 = vmul.f32 %v13303_v46, %v13296_v29 }
 0x6d7   : > { %v3832_v36 = vsel %vm3813_vm6, %v3799_v43, %v7938_v25  ;;  %v3833_v50 = vsel %vm3813_vm6, %v3800_v47, %v7939_v12 }
 0x6d8   : > { %v7947_v21 = vpop.permute.xlu1 %7946  ;;  %v11594_v43 = vpop.permute.xlu0 %8026 }
 0x6d9   : > { %v7949_v37 = vunpack.i.h.bf16 %v7947_v21  ;;  %v7948_v40 = vunpack.i.l.bf16 %v7947_v21  ;;  %8118 = vrot.lane.b32.xlu1 %v13293_v14, %s8711_s28  ;;  %v13307_v14 = vld [vmem:[#allocation74_spill] sm:$0xff] }
 0x6db   : > { %v11545_v49 = vsel %vm3846_vm7, %v3832_v36, %v7948_v40  ;;  %v11548_v15 = vsel %vm3846_vm7, %v3833_v50, %v7949_v37  ;;  %v13306_v40 = vld [vmem:[#allocation61_spill] sm:$0xff]  ;;  %v13309_v50 = vld [vmem:[#allocation50_spill] sm:$0xff] }
 0x6dc   : > { %v7952_v16 = vpop.permute.xlu1 %7951  ;;  %v4025_v33 = vpack.c.bf16 %v11548_v15, %v11545_v49  ;;  %v13308_v36 = vpack.i.bf16 %v13306_v40, %v13307_v14 }
 0x6dd   : > { %v7954_v7 = vunpack.i.h.bf16 %v7952_v16  ;;  %v7953_v5 = vunpack.i.l.bf16 %v7952_v16  ;;  %8128 = vrot.lane.b32.xlu1 %v13297_v9, %s8720_s30  ;;  %v13310_v16 = vld [vmem:[#allocation173_spill] sm:$0xff]  ;;  %v8037_v9 = vpop.permute.xlu0 %8036 }
 0x6de   : > { %v2522_v55 = vmul.f32 %v13310_v16, %v13309_v50  ;;  %v8039_v40 = vunpack.i.h.bf16 %v8037_v9  ;;  %v8038_v14 = vunpack.i.l.bf16 %v8037_v9 }
 0x6df   : > { %v3896_v1 = vsel %vm681_vm2, %v2518_v27, %v7954_v7  ;;  %v3895_v38 = vsel %vm681_vm2, %v2517_v54, %v7953_v5  ;;  %v2521_v54 = vmul.f32 %v11521_v30, %v13311_v18  ;;  %v7997_v7 = vunpack.i.h.bf16 %v7995_v60 }
 0x6e0   : > { %v7957_v31 = vpop.permute.xlu1 %7956  ;;  %v3927_v20 = vsel %vm3813_vm6, %v3895_v38, %v7963_v34  ;;  %v3928_v35 = vsel %vm3813_vm6, %v3896_v1, %v7964_v48  ;;  %v7996_v5 = vunpack.i.l.bf16 %v7995_v60  ;;  %v8006_v48 = vunpack.i.l.bf16 %v8005_v8 }
 0x6e1   : > { %8138 = vrot.lane.b32.xlu1 %v13300_v3, %s8712_s13  ;;  %v3959_v2 = vsel %vm3846_vm7, %v3927_v20, %v7973_v26  ;;  %v3960_v61 = vsel %vm3846_vm7, %v3928_v35, %v7974_v24  ;;  %v7959_v53 = vunpack.i.h.bf16 %v7957_v31  ;;  %v7958_v28 = vunpack.i.l.bf16 %v7957_v31  ;;  %v11618_v26 = vpop.permute.xlu0 %2478  ;;  %v13312_v3 = vld [vmem:[#allocation147_spill] sm:$0xff] }
 0x6e2   : > { %v4024_v17 = vpack.c.bf16 %v3960_v61, %v3959_v2  ;;  %v1882_v2 = vmul.f32 %v13312_v3, %v13309_v50  ;;  %v13313_v61 = vld [vmem:[#allocation164_spill] sm:$0xff] }
 0x6e3   : > { %v3797_v59 = vsel %vm681_vm2, %v1877_v56, %v7958_v28  ;;  %v3798_v12 = vsel %vm681_vm2, %v1878_v58, %v7959_v53  ;;  %v1881_v8 = vmul.f32 %v13313_v61, %v13311_v18  ;;  %v13318_v61 = vld [vmem:[#allocation52_spill] sm:$0xff] }
 0x6e4   : > { %4151 = vmatprep.mubr.bf16.mxu0 %v4024_v17  ;;  %v7967_v22 = vpop.permute.xlu1 %7966 }
 0x6e5   : > { %8148 = vrot.lane.b32.xlu1 %v13301_v23, %s8711_s28  ;;  %v7969_v62 = vunpack.i.h.bf16 %v7967_v22  ;;  %v7968_v11 = vunpack.i.l.bf16 %v7967_v22  ;;  %v11624_v17 = vpop.permute.xlu0 %8058  ;;  %s6453_s28 = sshll.u32 %s13347_s22, 1 }
 0x6e6   : > { %s485_s24 = scalar_lea.vmem %s12608_s4, %s6453_s28 }
 0x6e7   : > { %v3830_v4 = vsel %vm3813_vm6, %v3797_v59, %v7968_v11  ;;  %v3831_v32 = vsel %vm3813_vm6, %v3798_v12, %v7969_v62  ;;  %v13314_v12 = vld [vmem:[#allocation170_spill] sm:$0xff] }
 0x6e8   : > { %v7977_v0 = vpop.permute.xlu1 %7976 }
 0x6e9   : > { %v7979_v25 = vunpack.i.h.bf16 %v7977_v0  ;;  %v7978_v42 = vunpack.i.l.bf16 %v7977_v0  ;;  %8158 = vrot.lane.b32.xlu1 %v13305_v6, %s8720_s30  ;;  %v11632_v39 = vpop.permute.xlu0 %8068  ;;  %v2523_v6 = vmul.f32 %v13316_v45, %v11540_v57 }
 0x6eb   : > { %v3863_v10 = vsel %vm3846_vm7, %v3830_v4, %v7978_v42  ;;  %v3864_v21 = vsel %vm3846_vm7, %v3831_v32, %v7979_v25  ;;  %v13315_v25 = vld [vmem:[#allocation49_spill] sm:$0xff] }
 0x6ec   : > { %v11596_v47 = vpop.permute.xlu1 %1813  ;;  %v4023_v37 = vpack.c.bf16 %v3864_v21, %v3863_v10  ;;  %v2524_v42 = vmul.f32 %v13315_v25, %v13314_v12  ;;  %v8029_v21 = vunpack.i.h.bf16 %v11594_v43 }
 0x6ed   : > { %8168 = vrot.lane.b32.xlu1 %v13308_v36, %s8712_s13  ;;  %v11634_v58 = vpop.permute.xlu0 %2486 }
 0x6ee   : > { %4152 = vmatmul.mubr.bf16.gmra.mrb[76].mxu0 %v4023_v37  ;;  %v8028_v37 = vunpack.i.l.bf16 %v11594_v43 }
 0x6ef   : > { %4159 = vmatprep.mubr.bf16.mxu0 %v4026_v63 }
 0x6f0   : > { %v7985_v52 = vpop.permute.xlu1 %7984 }
 0x6f1   : > { %v7987_v29 = vunpack.i.h.bf16 %v7985_v52  ;;  %v7986_v27 = vunpack.i.l.bf16 %v7985_v52  ;;  %v11642_v4 = vpop.permute.xlu0 %8090 }
 0x6f3   : > { %v3899_v34 = vsel %vm681_vm2, %v2521_v54, %v7986_v27  ;;  %v3900_v44 = vsel %vm681_vm2, %v2522_v55, %v7987_v29 }
 0x6f4   : > { %v7990_v51 = vpop.permute.xlu1 %7989  ;;  %v3931_v13 = vsel %vm3813_vm6, %v3899_v34, %v7996_v5  ;;  %v3932_v63 = vsel %vm3813_vm6, %v3900_v44, %v7997_v7  ;;  %v13317_v44 = vld [vmem:[#allocation187_spill] sm:$0xff] }
 0x6f5   : > { %v3963_v24 = vsel %vm3846_vm7, %v3931_v13, %v8006_v48  ;;  %v3964_v30 = vsel %vm3846_vm7, %v3932_v63, %v8007_v19  ;;  %v7992_v38 = vunpack.i.h.bf16 %v7990_v51  ;;  %v7991_v31 = vunpack.i.l.bf16 %v7990_v51  ;;  %v11652_v29 = vpop.permute.xlu0 %8100 }
 0x6f6   : > { %4160 = vmatmul.mubr.bf16.gmra.mrb[80].mxu0 %v4025_v33  ;;  %v4028_v60 = vpack.c.bf16 %v3964_v30, %v3963_v24  ;;  %v1883_v19 = vmul.f32 %v13316_v45, %v11596_v47 }
 0x6f7   : > { %v3801_v49 = vsel %vm681_vm2, %v1881_v8, %v7991_v31  ;;  %v3802_v15 = vsel %vm681_vm2, %v1882_v2, %v7992_v38  ;;  %v2525_v8 = vmul.f32 %v11578_v41, %v13318_v61 }
 0x6f8   : > { %4167 = vmatprep.mubr.bf16.mxu0 %v4028_v60  ;;  %v8000_v1 = vpop.permute.xlu1 %7999 }
 0x6f9   : > { %v8002_v20 = vunpack.i.h.bf16 %v8000_v1  ;;  %v8001_v35 = vunpack.i.l.bf16 %v8000_v1  ;;  %v11656_v34 = vpop.permute.xlu0 %2494 }
 0x6fb   : > { %v3834_v28 = vsel %vm3813_vm6, %v3801_v49, %v8001_v35  ;;  %v3835_v23 = vsel %vm3813_vm6, %v3802_v15, %v8002_v20 }
 0x6fc   : > { %v8010_v22 = vpop.permute.xlu1 %8009 }
 0x6fd   : > { %v8012_v33 = vunpack.i.h.bf16 %v8010_v22  ;;  %v8011_v53 = vunpack.i.l.bf16 %v8010_v22  ;;  %v1829_v20 = vpop.permute.xlu0 %1828  ;;  %v13319_v22 = vld [vmem:[#allocation54_spill] sm:$0xff] }
 0x6ff   : > { %v3867_v62 = vsel %vm3846_vm7, %v3834_v28, %v8011_v53  ;;  %v3868_v11 = vsel %vm3846_vm7, %v3835_v23, %v8012_v33  ;;  %v8061_v53 = vunpack.i.h.bf16 %v11624_v17  ;;  %v8060_v28 = vunpack.i.l.bf16 %v11624_v17 }
 0x700   : > { %v2475_v56 = vpop.permute.xlu1 %2474  ;;  %v4027_v46 = vpack.c.bf16 %v3868_v11, %v3867_v62  ;;  %v8071_v23 = vunpack.i.h.bf16 %v11632_v39  ;;  %v8070_v62 = vunpack.i.l.bf16 %v11632_v39 }
 0x701   : > { %v11667_v3 = vpop.permute.xlu0 %1838  ;;  %v2526_v49 = vmul.f32 %v2475_v56, %v13319_v22 }
 0x702   : > { %4168 = vmatmul.mubr.bf16.gmra.mrb[84].mxu0 %v4027_v46 }
 0x705   : > { %v11636_v0 = vpop.permute.xlu1 %1823 }
 0x709   : > { %v8017_v59 = vpop.permute.xlu1 %8016 }
 0x70a   : > { %v8019_v32 = vunpack.i.h.bf16 %v8017_v59  ;;  %v8018_v10 = vunpack.i.l.bf16 %v8017_v59 }
 0x70c   : > { %v3902_v36 = vsel %vm681_vm2, %v2524_v42, %v8019_v32  ;;  %v3901_v52 = vsel %vm681_vm2, %v2523_v6, %v8018_v10  ;;  %v11682_v42 = vpop.permute.xlu0 %1848 }
 0x70d   : > { %v8022_v50 = vpop.permute.xlu1 %8021  ;;  %v3933_v16 = vsel %vm3813_vm6, %v3901_v52, %v8028_v37  ;;  %v3934_v55 = vsel %vm3813_vm6, %v3902_v36, %v8029_v21  ;;  %v1886_v21 = vmul.f32 %v1829_v20, %v13319_v22  ;;  %v1885_v37 = vmul.f32 %v11636_v0, %v13318_v61 }
 0x70e   : > { %v3965_v57 = vsel %vm3846_vm7, %v3933_v16, %v8038_v14  ;;  %v3966_v18 = vsel %vm3846_vm7, %v3934_v55, %v8039_v40  ;;  %v8024_v43 = vunpack.i.h.bf16 %v8022_v50  ;;  %v8023_v7 = vunpack.i.l.bf16 %v8022_v50 }
 0x70f   : > { %v4030_v54 = vpack.c.bf16 %v3966_v18, %v3965_v57 }
 0x710   : > { %v3804_v51 = vsel %vm681_vm2, %v13317_v44, %v8024_v43  ;;  %v3803_v13 = vsel %vm681_vm2, %v1883_v19, %v8023_v7  ;;  %v11687_v40 = vpop.permute.xlu0 %1858  ;;  %v13320_v19 = vld [vmem:[#allocation51_spill] sm:$0xff] }
 0x711   : > { %v8032_v27 = vpop.permute.xlu1 %8031  ;;  %4175 = vmatprep.mubr.bf16.mxu0 %v4030_v54 }
 0x712   : > { %v8034_v5 = vunpack.i.h.bf16 %v8032_v27  ;;  %v8033_v9 = vunpack.i.l.bf16 %v8032_v27 }
 0x714   : > { %v3836_v30 = vsel %vm3813_vm6, %v3803_v13, %v8033_v9  ;;  %v3837_v60 = vsel %vm3813_vm6, %v3804_v51, %v8034_v5  ;;  %v11695_v27 = vpop.permute.xlu0 %8123  ;;  %v13321_v51 = vld [vmem:[#allocation53_spill] sm:$0xff] }
 0x715   : > { %v8042_v48 = vpop.permute.xlu1 %8041 }
 0x716   : > { %v8044_v63 = vunpack.i.h.bf16 %v8042_v48  ;;  %v8043_v24 = vunpack.i.l.bf16 %v8042_v48  ;;  %v2527_v48 = vmul.f32 %v13320_v19, %v11618_v26 }
 0x718   : > { %v3869_v1 = vsel %vm3846_vm7, %v3836_v30, %v8043_v24  ;;  %v3870_v38 = vsel %vm3846_vm7, %v3837_v60, %v8044_v63  ;;  %v11699_v7 = vpop.permute.xlu0 %8133  ;;  %v8093_v30 = vunpack.i.h.bf16 %v11642_v4  ;;  %v8092_v60 = vunpack.i.l.bf16 %v11642_v4 }
 0x719   : > { %v2483_v31 = vpop.permute.xlu1 %2482  ;;  %v4029_v47 = vpack.c.bf16 %v3870_v38, %v3869_v1  ;;  %v8103_v1 = vunpack.i.h.bf16 %v11652_v29  ;;  %v8102_v38 = vunpack.i.l.bf16 %v11652_v29 }
 0x71a   : > { %v2528_v13 = vmul.f32 %v13321_v51, %v2483_v31 }
 0x71b   : > { %4176 = vmatmul.mubr.bf16.gmra.mrb[88].mxu0 %v4029_v47 }
 0x71c   : > { %v8144_v44 = vpop.permute.xlu0 %8143 }
 0x71e   : > { %v11665_v35 = vpop.permute.xlu1 %1833 }
 0x720   : > { %v8154_v4 = vpop.permute.xlu0 %8153 }
 0x722   : > { %v8049_v2 = vpop.permute.xlu1 %8048 }
 0x723   : > { %v8051_v15 = vunpack.i.h.bf16 %v8049_v2  ;;  %v8050_v33 = vunpack.i.l.bf16 %v8049_v2 }
 0x725   : > { %v3903_v11 = vsel %vm681_vm2, %v2525_v8, %v8050_v33  ;;  %v3904_v46 = vsel %vm681_vm2, %v2526_v49, %v8051_v15 }
 0x726   : > { %v8054_v59 = vpop.permute.xlu1 %8053  ;;  %v3935_v12 = vsel %vm3813_vm6, %v3903_v11, %v8060_v28  ;;  %v3936_v41 = vsel %vm3813_vm6, %v3904_v46, %v8061_v53 }
 0x727   : > { %v3967_v56 = vsel %vm3846_vm7, %v3935_v12, %v8070_v62  ;;  %v3968_v25 = vsel %vm3846_vm7, %v3936_v41, %v8071_v23  ;;  %v8056_v6 = vunpack.i.h.bf16 %v8054_v59  ;;  %v8055_v39 = vunpack.i.l.bf16 %v8054_v59 }
 0x728   : > { %v4032_v17 = vpack.c.bf16 %v3968_v25, %v3967_v56  ;;  %v1888_v12 = vmul.f32 %v13321_v51, %v11667_v3  ;;  %v1887_v41 = vmul.f32 %v13320_v19, %v11665_v35  ;;  %v8145_v3 = vunpack.i.l.bf16 %v8144_v44  ;;  %v13323_v19 = vld [vmem:[#allocation23_spill] sm:$0xff] }
 0x729   : > { %v3806_v36 = vsel %vm681_vm2, %v1886_v21, %v8056_v6  ;;  %v3805_v52 = vsel %vm681_vm2, %v1885_v37, %v8055_v39 }
 0x72a   : > { %4183 = vmatprep.mubr.bf16.mxu0 %v4032_v17  ;;  %v8064_v45 = vpop.permute.xlu1 %8063 }
 0x72b   : > { %v8066_v32 = vunpack.i.h.bf16 %v8064_v45  ;;  %v8065_v10 = vunpack.i.l.bf16 %v8064_v45 }
 0x72d   : > { %v3838_v55 = vsel %vm3813_vm6, %v3805_v52, %v8065_v10  ;;  %v3839_v57 = vsel %vm3813_vm6, %v3806_v36, %v8066_v32  ;;  %v8164_v32 = vpop.permute.xlu0 %8163  ;;  %v8155_v52 = vunpack.i.l.bf16 %v8154_v4 }
 0x72e   : > { %v8074_v14 = vpop.permute.xlu1 %8073 }
 0x72f   : > { %v8076_v50 = vunpack.i.h.bf16 %v8074_v14  ;;  %v8075_v16 = vunpack.i.l.bf16 %v8074_v14 }
 0x731   : > { %v3871_v18 = vsel %vm3846_vm7, %v3838_v55, %v8075_v16  ;;  %v3872_v54 = vsel %vm3846_vm7, %v3839_v57, %v8076_v50 }
 0x732   : > { %v11697_v0 = vpop.permute.xlu1 %2490  ;;  %v4031_v43 = vpack.c.bf16 %v3872_v54, %v3871_v18  ;;  %v13322_v18 = vld [vmem:[#allocation2_spill] sm:$0xff] }
 0x733   : > { %v2531_v54 = vmul.f32 %v13322_v18, %v11656_v34 }
 0x734   : > { %4184 = vmatmul.mubr.bf16.gmra.mrb[92].mxu0 %v4031_v43  ;;  %v8146_v43 = vunpack.i.h.bf16 %v8144_v44 }
 0x737   : > { %v11701_v5 = vpop.permute.xlu1 %1843 }
 0x73b   : > { %v8081_v9 = vpop.permute.xlu1 %8080 }
 0x73c   : > { %v8083_v63 = vunpack.i.h.bf16 %v8081_v9  ;;  %v8082_v24 = vunpack.i.l.bf16 %v8081_v9  ;;  %v8165_v9 = vunpack.i.l.bf16 %v8164_v32 }
 0x73e   : > { %v3906_v47 = vsel %vm681_vm2, %v2528_v13, %v8083_v63  ;;  %v3905_v20 = vsel %vm681_vm2, %v2527_v48, %v8082_v24  ;;  %v8156_v13 = vunpack.i.h.bf16 %v8154_v4  ;;  %v3909_v24 = vsel %vm681_vm2, %v2531_v54, %v8145_v3 }
 0x73f   : > { %v8086_v2 = vpop.permute.xlu1 %8085  ;;  %v3937_v26 = vsel %vm3813_vm6, %v3905_v20, %v8092_v60  ;;  %v3938_v61 = vsel %vm3813_vm6, %v3906_v47, %v8093_v30  ;;  %v8166_v30 = vunpack.i.h.bf16 %v8164_v32 }
 0x740   : > { %v3969_v31 = vsel %vm3846_vm7, %v3937_v26, %v8102_v38  ;;  %v3970_v8 = vsel %vm3846_vm7, %v3938_v61, %v8103_v1  ;;  %v8088_v28 = vunpack.i.h.bf16 %v8086_v2  ;;  %v8087_v23 = vunpack.i.l.bf16 %v8086_v2  ;;  %v13324_v61 = vld [vmem:[#allocation21_spill] sm:$0xff] }
 0x741   : > { %v6922_v22 = vpop.f32.mrb[44].mxu0  ;;  %v4034_v49 = vpack.c.bf16 %v3970_v8, %v3969_v31  ;;  %v3941_v1 = vsel %vm3813_vm6, %v3909_v24, %v8155_v52  ;;  %v2529_v31 = vmul.f32 %v11634_v58, %v13324_v61  ;;  %v13325_v8 = vld [vmem:[#allocation25_spill] sm:$0xff] }
 0x742   : > { %v6923_v15 = vpop.f32.mrb[45].mxu0  ;;  %v3808_v17 = vsel %vm681_vm2, %v1888_v12, %v8088_v28  ;;  %v3807_v45 = vsel %vm681_vm2, %v1887_v41, %v8087_v23  ;;  %v3973_v47 = vsel %vm3846_vm7, %v3941_v1, %v8165_v9  ;;  %v8135_v28 = vunpack.i.l.bf16 %v11699_v7 }
 0x743   : > { %v11716_v33 = vadd.f32 %v6923_v15, %v6922_v22  ;;  %v6925_v29 = vpop.f32.mrb[46].mxu0  ;;  %v8096_v53 = vpop.permute.xlu1 %8095  ;;  %4191 = vmatprep.mubr.bf16.mxu0 %v4034_v49  ;;  %v2530_v22 = vmul.f32 %v11697_v0, %v13325_v8  ;;  %v8126_v15 = vunpack.i.h.bf16 %v11695_v27 }
 0x744   : > { %v6926_v62 = vpop.f32.mrb[47].mxu0  ;;  %v8098_v11 = vunpack.i.h.bf16 %v8096_v53  ;;  %v8097_v46 = vunpack.i.l.bf16 %v8096_v53  ;;  %v8136_v53 = vunpack.i.h.bf16 %v11699_v7 }
 0x745   : > { %v11718_v59 = vadd.f32 %v6926_v62, %v6925_v29  ;;  %v8125_v29 = vunpack.i.l.bf16 %v11695_v27 }
 0x746   : > { %v3840_v10 = vsel %vm3813_vm6, %v3807_v45, %v8097_v46  ;;  %v3841_v21 = vsel %vm3813_vm6, %v3808_v17, %v8098_v11 }
 0x747   : > { %v4354_v56 = vpack.c.bf16 %v11718_v59, %v11716_v33  ;;  %v8106_v25 = vpop.permute.xlu1 %8105  ;;  %v13327_v33 = vmov 1.0|1.0  }
 0x748   : > { %v8108_v6 = vunpack.i.h.bf16 %v8106_v25  ;;  %v8107_v39 = vunpack.i.l.bf16 %v8106_v25 }
 0x749   : > { %v6928_v37 = vpop.f32.mrb[48].mxu0 }
 0x74a   : > { %v6929_v14 = vpop.f32.mrb[49].mxu0  ;;  %v3873_v35 = vsel %vm3846_vm7, %v3840_v10, %v8107_v39  ;;  %v3874_v36 = vsel %vm3846_vm7, %v3841_v21, %v8108_v6  ;;  %v1890_v6 = vmul.f32 %v11682_v42, %v13325_v8  ;;  %v1889_v39 = vmul.f32 %v11701_v5, %v13324_v61 }
 0x74b   : > { %v11732_v50 = vadd.f32 %v6929_v14, %v6928_v37  ;;  %v6931_v16 = vpop.f32.mrb[50].mxu0  ;;  %v2499_v55 = vpop.permute.xlu1 %2498  ;;  %v4033_v57 = vpack.c.bf16 %v3874_v36, %v3873_v35 }
 0x74c   : > { %v2532_v48 = vmul.f32 %v13323_v19, %v2499_v55  ;;  %v6932_v51 = vpop.f32.mrb[51].mxu0 }
 0x74d   : > { %v11737_v63 = vadd.f32 %v6932_v51, %v6931_v16  ;;  %4192 = vmatmul.mubr.bf16.gmra.mrb[96].mxu0 %v4033_v57 }
 0x74e   : > { %v3910_v60 = vsel %vm681_vm2, %v2532_v48, %v8146_v43 }
 0x74f   : > { %v4355_v38 = vpack.c.bf16 %v11737_v63, %v11732_v50  ;;  %v3942_v34 = vsel %vm3813_vm6, %v3910_v60, %v8156_v13  ;;  %v1892_v60 = vmul.f32 %v13323_v19, %v11687_v40 }
 0x750   : > { %v1854_v44 = vpop.permute.xlu1 %1853  ;;  %v3974_v20 = vsel %vm3846_vm7, %v3942_v34, %v8166_v30 }
 0x751   : > { %v4038_v2 = vpack.c.bf16 %v3974_v20, %v3973_v47  ;;  %v1891_v20 = vmul.f32 %v13322_v18, %v1854_v44 }
 0x754   : > { %v8114_v26 = vpop.permute.xlu1 %8113 }
 0x755   : > { %v8116_v49 = vunpack.i.h.bf16 %v8114_v26  ;;  %v8115_v4 = vunpack.i.l.bf16 %v8114_v26 }
 0x757   : > { %v3908_v23 = vsel %vm681_vm2, %v2530_v22, %v8116_v49  ;;  %v3907_v62 = vsel %vm681_vm2, %v2529_v31, %v8115_v4 }
 0x758   : > { %v8119_v11 = vpop.permute.xlu1 %8118  ;;  %v3939_v58 = vsel %vm3813_vm6, %v3907_v62, %v8125_v29  ;;  %v3940_v46 = vsel %vm3813_vm6, %v3908_v23, %v8126_v15 }
 0x759   : > { %v3971_v0 = vsel %vm3846_vm7, %v3939_v58, %v8135_v28  ;;  %v3972_v12 = vsel %vm3846_vm7, %v3940_v46, %v8136_v53  ;;  %v8121_v27 = vunpack.i.h.bf16 %v8119_v11  ;;  %v8120_v17 = vunpack.i.l.bf16 %v8119_v11 }
 0x75a   : > { %v4036_v41 = vpack.c.bf16 %v3972_v12, %v3971_v0 }
 0x75b   : > { %v3810_v10 = vsel %vm681_vm2, %v1890_v6, %v8121_v27  ;;  %v3809_v21 = vsel %vm681_vm2, %v1889_v39, %v8120_v17 }
 0x75c   : > { %v8129_v25 = vpop.permute.xlu1 %8128  ;;  %4199 = vmatprep.mubr.bf16.mxu0 %v4036_v41 }
 0x75d   : > { %v8131_v45 = vunpack.i.h.bf16 %v8129_v25  ;;  %v8130_v7 = vunpack.i.l.bf16 %v8129_v25 }
 0x75f   : > { %v3842_v35 = vsel %vm3813_vm6, %v3809_v21, %v8130_v7  ;;  %v3843_v36 = vsel %vm3813_vm6, %v3810_v10, %v8131_v45 }
 0x760   : > { %v8139_v32 = vpop.permute.xlu1 %8138 }
 0x761   : > { %v8141_v37 = vunpack.i.h.bf16 %v8139_v32  ;;  %v8140_v3 = vunpack.i.l.bf16 %v8139_v32  ;;  %v6934_v14 = vpop.f32.mrb[52].mxu0 }
 0x762   : > { %v6935_v52 = vpop.f32.mrb[53].mxu0 }
 0x763   : > { %v11769_v16 = vadd.f32 %v6935_v52, %v6934_v14  ;;  %v6937_v55 = vpop.f32.mrb[54].mxu0  ;;  %v3875_v42 = vsel %vm3846_vm7, %v3842_v35, %v8140_v3  ;;  %v3876_v5 = vsel %vm3846_vm7, %v3843_v36, %v8141_v37 }
 0x764   : > { %v6938_v57 = vpop.f32.mrb[55].mxu0  ;;  %v8149_v54 = vpop.permute.xlu1 %8148  ;;  %v4035_v43 = vpack.c.bf16 %v3876_v5, %v3875_v42 }
 0x765   : > { %v11773_v9 = vadd.f32 %v6938_v57, %v6937_v55  ;;  %v8151_v51 = vunpack.i.h.bf16 %v8149_v54  ;;  %v8150_v24 = vunpack.i.l.bf16 %v8149_v54  ;;  %v13326_v54 = vlaneseq }
 0x766   : > { %4200 = vmatmul.mubr.bf16.gmra.mrb[100].mxu0 %v4035_v43 }
 0x767   : > { %v4356_v48 = vpack.c.bf16 %v11773_v9, %v11769_v16  ;;  %4207 = vmatprep.mubr.bf16.mxu0 %v4038_v2  ;;  %v3812_v31 = vsel %vm681_vm2, %v1892_v60, %v8151_v51  ;;  %v3811_v2 = vsel %vm681_vm2, %v1891_v20, %v8150_v24  ;;  %v11818_v43 = vshrl.u32 %v13326_v54, 7 }
 0x768   : > { %v8159_v13 = vpop.permute.xlu1 %8158 }
 0x769   : > { %v6940_v30 = vpop.f32.mrb[56].mxu0  ;;  %v8161_v1 = vunpack.i.h.bf16 %v8159_v13  ;;  %v8160_v34 = vunpack.i.l.bf16 %v8159_v13 }
 0x76a   : > { %v6941_v47 = vpop.f32.mrb[57].mxu0 }
 0x76b   : > { %v11780_v26 = vadd.f32 %v6941_v47, %v6940_v30  ;;  %v6943_v61 = vpop.f32.mrb[58].mxu0  ;;  %v3844_v40 = vsel %vm3813_vm6, %v3811_v2, %v8160_v34  ;;  %v3845_v19 = vsel %vm3813_vm6, %v3812_v31, %v8161_v1  ;;  %v4236_v1 = vsub.s32 0, %v11818_v43  ;;  %v4216_v47 = vld [vmem:[%s485_s24] sm:$0x3] }
 0x76c   : > { %v6944_v8 = vpop.f32.mrb[59].mxu0  ;;  %v8169_v22 = vpop.permute.xlu1 %8168  ;;  %v4240_v34 = vsub.s32 1, %v11818_v43 }
 0x76d   : > { %v11784_v49 = vadd.f32 %v6944_v8, %v6943_v61  ;;  %v8171_v4 = vunpack.i.h.bf16 %v8169_v22  ;;  %v8170_v15 = vunpack.i.l.bf16 %v8169_v22  ;;  %v11825_v31 = vrot.slane %v4216_v47, %v4236_v1 }
 0x76e   : > { %v11827_v8 = vrot.slane %v4216_v47, %v4240_v34  ;;  %v4468_v47 = vld [vmem:[%s12614_s10 + $0x8] sm:$0xff] }
 0x76f   : > { %v4357_v18 = vpack.c.bf16 %v11784_v49, %v11780_v26  ;;  %v3877_v44 = vsel %vm3846_vm7, %v3844_v40, %v8170_v15  ;;  %v3878_v29 = vsel %vm3846_vm7, %v3845_v19, %v8171_v4  ;;  %v4219_v19 = vadd.s32 8, %v11818_v43 }
 0x770   : > { %v4037_v53 = vpack.c.bf16 %v3878_v29, %v3877_v44  ;;  %vm4243_vm8 = vcmp.eq.s32.totalorder %v11818_v43, %v11827_v8  ;;  %vm4242_vm9 = vcmp.eq.s32.totalorder %v11818_v43, %v11825_v31 }
 0x771   : > { %vm4244_vm10 = vcmp.eq.s32.totalorder %v4219_v19, %v11825_v31  ;;  %vm4245_vm11 = vcmp.eq.s32.totalorder %v4219_v19, %v11827_v8  ;;  %v4232_v19 = vadd.s32 112, %v11818_v43 }
 0x772   : > { %4208 = vmatmul.mubr.bf16.gmra.mrb[104].mxu0 %v4037_v53  ;;  %vm6601_vm12 = vmpackc.low %vm4245_vm11, %vm4243_vm8 }
 0x773   : > { %6602 = vmatprep.mubr.msk.bf16.mxu1 %vm6601_vm12, %v13327_v33  ;;  %vm11840_vm13 = vmpackc.low %vm4244_vm10, %vm4242_vm9 }
 0x781   : > { %v6946_v28 = vpop.f32.mrb[60].mxu0 }
 0x782   : > { %v6947_v23 = vpop.f32.mrb[61].mxu0 }
 0x783   : > { %v11792_v62 = vadd.f32 %v6947_v23, %v6946_v28  ;;  %v6949_v11 = vpop.f32.mrb[62].mxu0 }
 0x784   : > { %v6950_v58 = vpop.f32.mrb[63].mxu0 }
 0x785   : > { %v11794_v46 = vadd.f32 %v6950_v58, %v6949_v11 }
 0x787   : > { %v4358_v0 = vpack.c.bf16 %v11794_v46, %v11792_v62 }
 0x789   : > { %v6952_v12 = vpop.f32.mrb[64].mxu0 }
 0x78a   : > { %v6953_v41 = vpop.f32.mrb[65].mxu0 }
 0x78b   : > { %v11798_v25 = vadd.f32 %v6953_v41, %v6952_v12  ;;  %v6955_v27 = vpop.f32.mrb[66].mxu0 }
 0x78c   : > { %v6956_v17 = vpop.f32.mrb[67].mxu0 }
 0x78d   : > { %v11800_v45 = vadd.f32 %v6956_v17, %v6955_v27 }
 0x78f   : > { %v4359_v7 = vpack.c.bf16 %v11800_v45, %v11798_v25  ;;  %v4220_v25 = vadd.s32 16, %v11818_v43  ;;  %v4221_v45 = vadd.s32 24, %v11818_v43 }
 0x791   : > { %vm4247_vm14 = vcmp.eq.s32.totalorder %v4220_v25, %v11827_v8  ;;  %vm4249_vm15 = vcmp.eq.s32.totalorder %v4221_v45, %v11827_v8  ;;  %vm4246_vm1 = vcmp.eq.s32.totalorder %v4220_v25, %v11825_v31  ;;  %vm4248_vm3 = vcmp.eq.s32.totalorder %v4221_v45, %v11825_v31 }
 0x792   : > { %vm6605_vm0 = vmpackc.low %vm4249_vm15, %vm4247_vm14 }
 0x793   : > { %vm6607_vm6 = vmpackc.low %vm4248_vm3, %vm4246_vm1 }
 0x7a1   : > { %v6958_v6 = vpop.f32.mrb[68].mxu0 }
 0x7a2   : > { %v6959_v39 = vpop.f32.mrb[69].mxu0 }
 0x7a3   : > { %v11804_v32 = vadd.f32 %v6959_v39, %v6958_v6  ;;  %v6961_v10 = vpop.f32.mrb[70].mxu0 }
 0x7a4   : > { %v6962_v21 = vpop.f32.mrb[71].mxu0 }
 0x7a5   : > { %v11806_v37 = vadd.f32 %v6962_v21, %v6961_v10 }
 0x7a7   : > { %v4360_v3 = vpack.c.bf16 %v11806_v37, %v11804_v32 }
 0x7a9   : > { %v6964_v14 = vpop.f32.mrb[72].mxu0 }
 0x7aa   : > { %v6965_v35 = vpop.f32.mrb[73].mxu0 }
 0x7ab   : > { %v11810_v36 = vadd.f32 %v6965_v35, %v6964_v14  ;;  %v6967_v52 = vpop.f32.mrb[74].mxu0 }
 0x7ac   : > { %v6968_v55 = vpop.f32.mrb[75].mxu0 }
 0x7ad   : > { %v11812_v42 = vadd.f32 %v6968_v55, %v6967_v52 }
 0x7af   : > { %v4361_v5 = vpack.c.bf16 %v11812_v42, %v11810_v36  ;;  %v4224_v36 = vadd.s32 48, %v11818_v43  ;;  %v4225_v42 = vadd.s32 56, %v11818_v43 }
 0x7b1   : > { %vm4255_vm10 = vcmp.eq.s32.totalorder %v4224_v36, %v11827_v8  ;;  %vm4257_vm11 = vcmp.eq.s32.totalorder %v4225_v42, %v11827_v8  ;;  %vm4254_vm14 = vcmp.eq.s32.totalorder %v4224_v36, %v11825_v31  ;;  %vm4256_vm15 = vcmp.eq.s32.totalorder %v4225_v42, %v11825_v31  ;;  %v13339_v42 = vld [vmem:[#allocation15_spill] sm:$0xff] }
 0x7b2   : > { %vm6615_vm3 = vmpackc.low %vm4256_vm15, %vm4254_vm14 }
 0x7c1   : > { %v6970_v57 = vpop.f32.mrb[76].mxu0 }
 0x7c2   : > { %v6971_v51 = vpop.f32.mrb[77].mxu0 }
 0x7c3   : > { %v6972_v13 = vadd.f32 %v6971_v51, %v6970_v57  ;;  %v6973_v24 = vpop.f32.mrb[78].mxu0 }
 0x7c4   : > { %v6974_v30 = vpop.f32.mrb[79].mxu0 }
 0x7c5   : > { %v6975_v60 = vadd.f32 %v6974_v30, %v6973_v24 }
 0x7c7   : > { %v4362_v20 = vpack.c.bf16 %v6975_v60, %v6972_v13 }
 0x7c9   : > { %v6976_v61 = vpop.f32.mrb[80].mxu0  ;;  %7018 = vmatprep.subr.bf16.mxu1 %v4362_v20 }
 0x7ca   : > { %v6977_v22 = vpop.f32.mrb[81].mxu0  ;;  %7019 = vmatpush3.bf16.msra.mxu1 %v4354_v56 }
 0x7cb   : > { %v6978_v2 = vadd.f32 %v6977_v22, %v6976_v61  ;;  %v6979_v4 = vpop.f32.mrb[82].mxu0  ;;  %v4223_v61 = vadd.s32 40, %v11818_v43  ;;  %v4227_v22 = vadd.s32 72, %v11818_v43 }
 0x7cc   : > { %v6980_v15 = vpop.f32.mrb[83].mxu0 }
 0x7cd   : > { %v6981_v40 = vadd.f32 %v6980_v15, %v6979_v4  ;;  %vm4253_vm5 = vcmp.eq.s32.totalorder %v4223_v61, %v11827_v8  ;;  %vm4252_vm9 = vcmp.eq.s32.totalorder %v4223_v61, %v11825_v31  ;;  %vm4261_vm1 = vcmp.eq.s32.totalorder %v4227_v22, %v11827_v8  ;;  %v13338_v61 = vld [vmem:[#allocation14_spill] sm:$0xff] }
 0x7ce   : > { %v4229_v4 = vadd.s32 88, %v11818_v43  ;;  %v4230_v15 = vadd.s32 96, %v11818_v43 }
 0x7cf   : > { %v4363_v44 = vpack.c.bf16 %v6981_v40, %v6978_v2  ;;  %v4228_v2 = vadd.s32 80, %v11818_v43  ;;  %v4231_v40 = vadd.s32 104, %v11818_v43 }
 0x7d1   : > { %7020 = vmatprep.subr.bf16.mxu1 %v4363_v44  ;;  %vm4269_vm14 = vcmp.eq.s32.totalorder %v4231_v40, %v11827_v8  ;;  %v4233_v44 = vadd.s32 120, %v11818_v43 }
 0x7d2   : > { %7021 = vmatpush3.bf16.msra.mxu1 %v4355_v38 }
 0x7d5   : > { %v6982_v56 = vpop.f32.mrb[84].mxu0 }
 0x7d6   : > { %v6983_v29 = vpop.f32.mrb[85].mxu0 }
 0x7d7   : > { %v6984_v53 = vadd.f32 %v6983_v29, %v6982_v56  ;;  %v6985_v28 = vpop.f32.mrb[86].mxu0 }
 0x7d8   : > { %v6986_v23 = vpop.f32.mrb[87].mxu0 }
 0x7d9   : > { %v6987_v11 = vadd.f32 %v6986_v23, %v6985_v28 }
 0x7db   : > { %v4364_v58 = vpack.c.bf16 %v6987_v11, %v6984_v53  ;;  %v13330_v11 = vld [vmem:[#allocation6_spill] sm:$0xff] }
 0x7dd   : > { %7022 = vmatprep.subr.bf16.mxu1 %v4364_v58 }
 0x7de   : > { %7023 = vmatpush3.bf16.msra.mxu1 %v4356_v48 }
 0x7ee   : > { %v6988_v12 = vpop.f32.mrb[88].mxu0 }
 0x7ef   : > { %v6989_v41 = vpop.f32.mrb[89].mxu0 }
 0x7f0   : > { %v6990_v27 = vadd.f32 %v6989_v41, %v6988_v12  ;;  %v6991_v17 = vpop.f32.mrb[90].mxu0 }
 0x7f1   : > { %v6992_v6 = vpop.f32.mrb[91].mxu0 }
 0x7f2   : > { %v6993_v39 = vadd.f32 %v6992_v6, %v6991_v17 }
 0x7f4   : > { %v4365_v50 = vpack.c.bf16 %v6993_v39, %v6990_v27 }
 0x7f6   : > { %7024 = vmatprep.subr.bf16.mxu1 %v4365_v50 }
 0x7f7   : > { %7025 = vmatpush3.bf16.msra.mxu1 %v4357_v18 }
 0x807   : > { %v6994_v63 = vpop.f32.mrb[92].mxu0 }
 0x808   : > { %v6995_v38 = vpop.f32.mrb[93].mxu0 }
 0x809   : > { %v6996_v10 = vadd.f32 %v6995_v38, %v6994_v63  ;;  %v6997_v21 = vpop.f32.mrb[94].mxu0  ;;  %v13332_v38 = vld [vmem:[#allocation4_spill] sm:$0xff] }
 0x80a   : > { %v6998_v14 = vpop.f32.mrb[95].mxu0 }
 0x80b   : > { %v6999_v35 = vadd.f32 %v6998_v14, %v6997_v21  ;;  %v13333_v21 = vld [vmem:[#allocation5_spill] sm:$0xff] }
 0x80d   : > { %v4366_v16 = vpack.c.bf16 %v6999_v35, %v6996_v10 }
 0x80f   : > { %7026 = vmatprep.subr.bf16.mxu1 %v4366_v16 }
 0x810   : > { %7027 = vmatpush3.bf16.msra.mxu1 %v4358_v0 }
 0x820   : > { %v7000_v9 = vpop.f32.mrb[96].mxu0 }
 0x821   : > { %v7001_v48 = vpop.f32.mrb[97].mxu0 }
 0x822   : > { %v7002_v52 = vadd.f32 %v7001_v48, %v7000_v9  ;;  %v7003_v55 = vpop.f32.mrb[98].mxu0 }
 0x823   : > { %v7004_v57 = vpop.f32.mrb[99].mxu0 }
 0x824   : > { %v7005_v54 = vadd.f32 %v7004_v57, %v7003_v55 }
 0x826   : > { %v4367_v26 = vpack.c.bf16 %v7005_v54, %v7002_v52  ;;  %v13334_v54 = vld [vmem:[#allocation10_spill] sm:$0xff] }
 0x828   : > { %7028 = vmatprep.subr.bf16.mxu1 %v4367_v26 }
 0x829   : > { %7029 = vmatpush3.bf16.msra.mxu1 %v4359_v7  ;;  %v4467_v7 = vld [vmem:[%s12614_s10] sm:$0xff] }
 0x82a   : > { %v4479_v37 = vpack.c.bf16 %v4468_v47, %v4467_v7 }
 0x839   : > { %v7006_v49 = vpop.f32.mrb[100].mxu0 }
 0x83a   : > { %v7007_v18 = vpop.f32.mrb[101].mxu0 }
 0x83b   : > { %v7008_v51 = vadd.f32 %v7007_v18, %v7006_v49  ;;  %v7009_v13 = vpop.f32.mrb[102].mxu0  ;;  %v13335_v49 = vld [vmem:[#allocation11_spill] sm:$0xff] }
 0x83c   : > { %v7010_v24 = vpop.f32.mrb[103].mxu0 }
 0x83d   : > { %v7011_v30 = vadd.f32 %v7010_v24, %v7009_v13 }
 0x83f   : > { %v4368_v62 = vpack.c.bf16 %v7011_v30, %v7008_v51 }
 0x841   : > { %7030 = vmatprep.subr.bf16.mxu1 %v4368_v62 }
 0x842   : > { %7031 = vmatpush3.bf16.msra.mxu1 %v4360_v3  ;;  %v4222_v3 = vadd.s32 32, %v11818_v43 }
 0x844   : > { %vm4251_vm4 = vcmp.eq.s32.totalorder %v4222_v3, %v11827_v8  ;;  %vm4250_vm8 = vcmp.eq.s32.totalorder %v4222_v3, %v11825_v31 }
 0x845   : > { %v7012_v46 = vpop.f32.mrb[104].mxu0  ;;  %vm6609_vm7 = vmpackc.low %vm4253_vm5, %vm4251_vm4 }
 0x846   : > { %v7013_v0 = vpop.f32.mrb[105].mxu0  ;;  %vm6611_vm12 = vmpackc.low %vm4252_vm9, %vm4250_vm8  ;;  %vm4265_vm8 = vcmp.eq.s32.totalorder %v4229_v4, %v11827_v8 }
 0x847   : > { %v7014_v60 = vadd.f32 %v7013_v0, %v7012_v46  ;;  %v7015_v1 = vpop.f32.mrb[106].mxu0 }
 0x848   : > { %v7016_v34 = vpop.f32.mrb[107].mxu0 }
 0x849   : > { %v7017_v20 = vadd.f32 %v7016_v34, %v7015_v1  ;;  %v13337_v34 = vld [vmem:[#allocation9_spill] sm:$0xff] }
 0x84b   : > { %v4369_v32 = vpack.c.bf16 %v7017_v20, %v7014_v60  ;;  %v13336_v60 = vld [vmem:[#allocation8_spill] sm:$0xff] }
 0x84d   : > { %7032 = vmatprep.subr.bf16.mxu1 %v4369_v32 }
 0x84e   : > { %7033 = vmatpush3.bf16.msra.mxu1 %v4361_v5  ;;  %v4226_v5 = vadd.s32 64, %v11818_v43  ;;  %v4469_v43 = vld [vmem:[%s12614_s10 + $0x10] sm:$0xff] }
 0x84f   : > { %7274 = vmatprep.subr.bf16.mxu1 %v4479_v37 }
 0x850   : > { %vm4258_vm5 = vcmp.eq.s32.totalorder %v4226_v5, %v11825_v31 }
 0x851   : > { %6604 = vmatmul.mubr.msk.bf16.vlgmr.msra.gmra.mrb[52].mxu1 %vm11840_vm13, %v13327_v33  ;;  %vm6613_vm13 = vmpackc.low %vm4257_vm11, %vm4255_vm10  ;;  %vm4262_vm11 = vcmp.eq.s32.totalorder %v4228_v2, %v11825_v31 }
 0x852   : > { %6606 = vmatprep.mubr.msk.bf16.mxu1 %vm6605_vm0, %v13327_v33  ;;  %7275 = vmatpush3.bf16.msra.mxu1 %v4479_v37  ;;  %vm4259_vm0 = vcmp.eq.s32.totalorder %v4226_v5, %v11827_v8 }
 0x853   : > { %vm6617_vm4 = vmpackc.low %vm4261_vm1, %vm4259_vm0  ;;  %vm4266_vm1 = vcmp.eq.s32.totalorder %v4230_v15, %v11825_v31 }
 0x859   : > { %6608 = vmatmul.mubr.msk.bf16.gmra.mrb[56].mxu1 %vm6607_vm6, %v13327_v33  ;;  %vm4260_vm6 = vcmp.eq.s32.totalorder %v4227_v22, %v11825_v31 }
 0x85a   : > { %6610 = vmatprep.mubr.msk.bf16.mxu1 %vm6609_vm7, %v13327_v33  ;;  %vm4263_vm7 = vcmp.eq.s32.totalorder %v4228_v2, %v11827_v8  ;;  %vm6619_vm9 = vmpackc.low %vm4260_vm6, %vm4258_vm5  ;;  %vm4273_vm5 = vcmp.eq.s32.totalorder %v4233_v44, %v11827_v8 }
 0x85b   : > { %vm6621_vm10 = vmpackc.low %vm4265_vm8, %vm4263_vm7  ;;  %vm4270_vm8 = vcmp.eq.s32.totalorder %v4232_v19, %v11825_v31 }
 0x861   : > { %6612 = vmatmul.mubr.msk.bf16.gmra.mrb[60].mxu1 %vm6611_vm12, %v13327_v33  ;;  %vm4264_vm12 = vcmp.eq.s32.totalorder %v4229_v4, %v11825_v31 }
 0x862   : > { %6614 = vmatprep.mubr.msk.bf16.mxu1 %vm6613_vm13, %v13327_v33  ;;  %vm4267_vm13 = vcmp.eq.s32.totalorder %v4230_v15, %v11827_v8  ;;  %vm6623_vm15 = vmpackc.low %vm4264_vm12, %vm4262_vm11 }
 0x863   : > { %vm6625_vm0 = vmpackc.low %vm4269_vm14, %vm4267_vm13 }
 0x869   : > { %6616 = vmatmul.mubr.msk.bf16.gmra.mrb[64].mxu1 %vm6615_vm3, %v13327_v33  ;;  %vm4268_vm3 = vcmp.eq.s32.totalorder %v4231_v40, %v11825_v31 }
 0x86a   : > { %6618 = vmatprep.mubr.msk.bf16.mxu1 %vm6617_vm4, %v13327_v33  ;;  %vm4271_vm4 = vcmp.eq.s32.totalorder %v4232_v19, %v11827_v8  ;;  %vm6627_vm6 = vmpackc.low %vm4268_vm3, %vm4266_vm1  ;;  %v4470_v8 = vld [vmem:[%s12614_s10 + $0x18] sm:$0xff] }
 0x86b   : > { %vm6629_vm7 = vmpackc.low %vm4273_vm5, %vm4271_vm4  ;;  %v4480_v59 = vpack.c.bf16 %v4470_v8, %v4469_v43  ;;  %v13340_v43 = vld [vmem:[#allocation12_spill] sm:$0xff] }
 0x86d   : > { %7276 = vmatprep.subr.bf16.mxu1 %v4480_v59 }
 0x86e   : > { %7277 = vmatpush3.bf16.msra.mxu1 %v4480_v59  ;;  %v13341_v59 = vld [vmem:[#allocation13_spill] sm:$0xff] }
 0x871   : > { %6620 = vmatmul.mubr.msk.bf16.gmra.mrb[68].mxu1 %vm6619_vm9, %v13327_v33  ;;  %vm4272_vm9 = vcmp.eq.s32.totalorder %v4233_v44, %v11825_v31 }
 0x872   : > { %6622 = vmatprep.mubr.msk.bf16.mxu1 %vm6621_vm10, %v13327_v33  ;;  %vm6631_vm10 = vmpackc.low %vm4272_vm9, %vm4270_vm8 }
 0x879   : > { %6624 = vmatmul.mubr.msk.bf16.gmra.mrb[72].mxu1 %vm6623_vm15, %v13327_v33 }
 0x87a   : > { %6626 = vmatprep.mubr.msk.bf16.mxu1 %vm6625_vm0, %v13327_v33 }
 0x881   : > { %6628 = vmatmul.mubr.msk.bf16.gmra.mrb[76].mxu1 %vm6627_vm6, %v13327_v33 }
 0x882   : > { %6630 = vmatprep.mubr.msk.bf16.mxu1 %vm6629_vm7, %v13327_v33 }
 0x889   : > { %6632 = vmatmul.mubr.msk.bf16.gmra.mrb[80].mxu1 %vm6631_vm10, %v13327_v33  ;;  %v13331_v33 = vld [vmem:[#allocation7_spill] sm:$0xff] }
 0x924   : > { %v7034_v56 = vpop.f32.mrb[52].mxu1 }
 0x925   : > { %v7035_v29 = vpop.f32.mrb[53].mxu1 }
 0x926   : > { %v7036_v53 = vadd.f32 %v7035_v29, %v7034_v56  ;;  %v7037_v28 = vpop.f32.mrb[54].mxu1 }
 0x927   : > { %v7038_v23 = vpop.f32.mrb[55].mxu1 }
 0x928   : > { %v7039_v31 = vadd.f32 %v7038_v23, %v7037_v28  ;;  %v11937_v58 = vadd.f32 %v7036_v53, %v13330_v11 }
 0x92a   : > { %v11940_v12 = vadd.f32 %v7039_v31, %v13331_v33 }
 0x92c   : > { %v4471_v41 = vpack.c.bf16 %v11940_v12, %v11937_v58  ;;  %v7040_v27 = vpop.f32.mrb[56].mxu1 }
 0x92d   : > { %v7041_v17 = vpop.f32.mrb[57].mxu1 }
 0x92e   : > { %v7042_v6 = vadd.f32 %v7041_v17, %v7040_v27  ;;  %v7043_v39 = vpop.f32.mrb[58].mxu1  ;;  %7278 = vmatprep.mubr.msk.bf16.mxu1 %vm681_vm2, %v4471_v41  ;;  %v13342_v41 = vld [vmem:[#allocation18_spill] sm:$0xff]  ;;  %v13343_v17 = vld [vmem:[#allocation19_spill] sm:$0xff] }
 0x92f   : > { %v7044_v50 = vpop.f32.mrb[59].mxu1 }
 0x930   : > { %v7045_v63 = vadd.f32 %v7044_v50, %v7043_v39  ;;  %v11946_v10 = vadd.f32 %v7042_v6, %v13332_v38 }
 0x932   : > { %v11949_v14 = vadd.f32 %v7045_v63, %v13333_v21 }
 0x934   : > { %v4472_v35 = vpack.c.bf16 %v11949_v14, %v11946_v10  ;;  %v7046_v16 = vpop.f32.mrb[60].mxu1 }
 0x935   : > { %v7047_v9 = vpop.f32.mrb[61].mxu1 }
 0x936   : > { %v7048_v48 = vadd.f32 %v7047_v9, %v7046_v16  ;;  %v7049_v52 = vpop.f32.mrb[62].mxu1  ;;  %7279 = vmatmul.mubr.msk.bf16.vlgmr.msra.gmra.mrb[84].mxu1 %vm681_vm2, %v4472_v35  ;;  %v13344_v9 = vld [vmem:[#allocation16_spill] sm:$0xff] }
 0x937   : > { %v7050_v55 = vpop.f32.mrb[63].mxu1 }
 0x938   : > { %v7051_v57 = vadd.f32 %v7050_v55, %v7049_v52  ;;  %v11955_v26 = vadd.f32 %v7048_v48, %v13334_v54  ;;  %v13345_v52 = vld [vmem:[#allocation17_spill] sm:$0xff]  ;;  %v6658_v54 = vld [vmem:[%s12614_s10 + $0x20] sm:$0xff] }
 0x93a   : > { %v11958_v18 = vadd.f32 %v7051_v57, %v13335_v49  ;;  %v6659_v49 = vld [vmem:[%s12614_s10 + $0x28] sm:$0xff] }
 0x93c   : > { %v4473_v51 = vpack.c.bf16 %v11958_v18, %v11955_v26  ;;  %v7052_v13 = vpop.f32.mrb[64].mxu1 }
 0x93d   : > { %v7053_v24 = vpop.f32.mrb[65].mxu1 }
 0x93e   : > { %v7054_v30 = vadd.f32 %v7053_v24, %v7052_v13  ;;  %v7055_v62 = vpop.f32.mrb[66].mxu1  ;;  %7282 = vmatprep.mubr.msk.bf16.mxu1 %vm681_vm2, %v4473_v51  ;;  %v4734_v51 = vpack.c.bf16 %v6659_v49, %v6658_v54  ;;  %v6660_v13 = vld [vmem:[%s12614_s10 + $0x30] sm:$0xff]  ;;  %v6661_v24 = vld [vmem:[%s12614_s10 + $0x38] sm:$0xff] }
 0x93f   : > { %v7056_v46 = vpop.f32.mrb[67].mxu1 }
 0x940   : > { %v7057_v0 = vadd.f32 %v7056_v46, %v7055_v62  ;;  %v11964_v1 = vadd.f32 %v7054_v30, %v13336_v60  ;;  %7294 = vmatprep.subr.bf16.mxu1 %v4734_v51  ;;  %v4735_v30 = vpack.c.bf16 %v6661_v24, %v6660_v13  ;;  %v6688_v62 = vld [vmem:[%s12614_s10 + $0x40] sm:$0xff]  ;;  %v6689_v46 = vld [vmem:[%s12614_s10 + $0x48] sm:$0xff] }
 0x941   : > { %7295 = vmatpush3.bf16.msra.mxu1 %v4734_v51  ;;  %v12029_v60 = vld [vmem:[%s12615_s11] ss:$0 sm:$0xff] }
 0x942   : > { %v11967_v25 = vadd.f32 %v7057_v0, %v13337_v34  ;;  %7296 = vmatprep.subr.bf16.mxu1 %v4735_v30  ;;  %v5006_v0 = vpack.c.bf16 %v6689_v46, %v6688_v62 }
 0x944   : > { %v4474_v45 = vpack.c.bf16 %v11967_v25, %v11964_v1  ;;  %v7058_v7 = vpop.f32.mrb[68].mxu1  ;;  %7314 = vmatprep.subr.bf16.mxu0 %v5006_v0 }
 0x945   : > { %v7059_v47 = vpop.f32.mrb[69].mxu1  ;;  %7297 = vmatpush3.bf16.msra.mxu1 %v4735_v30  ;;  %7315 = vmatpush3.bf16.msra.mxu0 %v5006_v0 }
 0x946   : > { %v7060_v20 = vadd.f32 %v7059_v47, %v7058_v7  ;;  %v7061_v32 = vpop.f32.mrb[70].mxu1  ;;  %7283 = vmatmul.mubr.msk.bf16.gmra.mrb[88].mxu1 %vm681_vm2, %v4474_v45 }
 0x947   : > { %v7062_v37 = vpop.f32.mrb[71].mxu1 }
 0x948   : > { %v7063_v3 = vadd.f32 %v7062_v37, %v7061_v32  ;;  %v11973_v36 = vadd.f32 %v7060_v20, %v13338_v61 }
 0x94a   : > { %v11976_v5 = vadd.f32 %v7063_v3, %v13339_v42 }
 0x94c   : > { %v4475_v22 = vpack.c.bf16 %v11976_v5, %v11973_v36  ;;  %v7064_v2 = vpop.f32.mrb[72].mxu1 }
 0x94d   : > { %v7065_v4 = vpop.f32.mrb[73].mxu1 }
 0x94e   : > { %v7066_v15 = vadd.f32 %v7065_v4, %v7064_v2  ;;  %v7067_v40 = vpop.f32.mrb[74].mxu1  ;;  %7286 = vmatprep.mubr.msk.bf16.mxu1 %vm681_vm2, %v4475_v22 }
 0x94f   : > { %v7068_v19 = vpop.f32.mrb[75].mxu1 }
 0x950   : > { %v7069_v44 = vadd.f32 %v7068_v19, %v7067_v40  ;;  %v11982_v8 = vadd.f32 %v7066_v15, %v13340_v43 }
 0x952   : > { %v11985_v56 = vadd.f32 %v7069_v44, %v13341_v59 }
 0x954   : > { %v4476_v29 = vpack.c.bf16 %v11985_v56, %v11982_v8  ;;  %v7070_v53 = vpop.f32.mrb[76].mxu1 }
 0x955   : > { %v7071_v28 = vpop.f32.mrb[77].mxu1 }
 0x956   : > { %v7072_v23 = vadd.f32 %v7071_v28, %v7070_v53  ;;  %v7073_v31 = vpop.f32.mrb[78].mxu1  ;;  %7287 = vmatmul.mubr.msk.bf16.gmra.mrb[92].mxu1 %vm681_vm2, %v4476_v29 }
 0x957   : > { %v7074_v11 = vpop.f32.mrb[79].mxu1 }
 0x958   : > { %v7075_v33 = vadd.f32 %v7074_v11, %v7073_v31  ;;  %v11991_v27 = vadd.f32 %v7072_v23, %v13342_v41 }
 0x95a   : > { %v11994_v6 = vadd.f32 %v7075_v33, %v13343_v17 }
 0x95c   : > { %v4477_v39 = vpack.c.bf16 %v11994_v6, %v11991_v27  ;;  %v7076_v50 = vpop.f32.mrb[80].mxu1 }
 0x95d   : > { %v7077_v63 = vpop.f32.mrb[81].mxu1 }
 0x95e   : > { %v7078_v38 = vadd.f32 %v7077_v63, %v7076_v50  ;;  %v7079_v21 = vpop.f32.mrb[82].mxu1  ;;  %7290 = vmatprep.mubr.msk.bf16.mxu1 %vm681_vm2, %v4477_v39 }
 0x95f   : > { %v7080_v35 = vpop.f32.mrb[83].mxu1 }
 0x960   : > { %v7081_v16 = vadd.f32 %v7080_v35, %v7079_v21  ;;  %v12000_v48 = vadd.f32 %v7078_v38, %v13344_v9 }
 0x962   : > { %v12003_v55 = vadd.f32 %v7081_v16, %v13345_v52 }
 0x964   : > { %v4478_v57 = vpack.c.bf16 %v12003_v55, %v12000_v48 }
 0x966   : > { %7291 = vmatmul.mubr.msk.bf16.gmra.mrb[96].mxu1 %vm681_vm2, %v4478_v57 }
 0xa09   : > { %v7280_v34 = vpop.f32.mrb[84].mxu1 }
 0xa0a   : > { %v4555_v45 = vadd.f32 %v7280_v34, %v12029_v60  ;;  %v4546_v7 = vpop.f32.mrb[85].mxu1 }
 0xa0b   : > { %v4547_v47 = vadd.f32 %v12029_v60, %v4546_v7  ;;  %v7281_v20 = vpop.f32.mrb[86].mxu1 }
 0xa0c   : > { %v6644_v32 = vmul.f32 -1.442695, %v4555_v45  ;;  %v4558_v37 = vadd.f32 %v7281_v20, %v12029_v60  ;;  %v4549_v3 = vpop.f32.mrb[87].mxu1 }
 0xa0d   : > { %v6642_v61 = vmul.f32 -1.442695, %v4547_v47  ;;  %v4550_v42 = vadd.f32 %v12029_v60, %v4549_v3 }
 0xa0e   : > { %8237 = vpow2.f32 %v6644_v32  ;;  %v6645_v22 = vmul.f32 -1.442695, %v4558_v37 }
 0xa0f   : > { %8239 = vpow2.f32 %v6642_v61  ;;  %v6643_v2 = vmul.f32 -1.442695, %v4550_v42 }
 0xa10   : > { %8241 = vpow2.f32 %v6645_v22 }
 0xa11   : > { %8243 = vpow2.f32 %v6643_v2 }
 0xa18   : > { %v8238_v4 = vpop.eup %8237 }
 0xa19   : > { %v8240_v15 = vpop.eup %8239  ;;  %v4659_v40 = vadd.f32 1.0, %v8238_v4  ;;  %v7284_v19 = vpop.f32.mrb[88].mxu1 }
 0xa1a   : > { %v8242_v44 = vpop.eup %8241  ;;  %v4657_v43 = vadd.f32 1.0, %v8240_v15  ;;  %v12036_v59 = vadd.f32 %v7284_v19, %v12029_v60  ;;  %v4562_v29 = vpop.f32.mrb[89].mxu1 }
 0xa1b   : > { %v8244_v53 = vpop.eup %8243  ;;  %8245 = vrcp.f32 %v4659_v40  ;;  %v4660_v28 = vadd.f32 1.0, %v8242_v44  ;;  %v12039_v23 = vadd.f32 %v12029_v60, %v4562_v29  ;;  %v7285_v31 = vpop.f32.mrb[90].mxu1 }
 0xa1c   : > { %8247 = vrcp.f32 %v4657_v43  ;;  %v4658_v11 = vadd.f32 1.0, %v8244_v53  ;;  %v6648_v33 = vmul.f32 -1.442695, %v12036_v59  ;;  %v4574_v41 = vadd.f32 %v7285_v31, %v12029_v60  ;;  %v4565_v17 = vpop.f32.mrb[91].mxu1 }
 0xa1d   : > { %8249 = vrcp.f32 %v4660_v28  ;;  %v6646_v39 = vmul.f32 -1.442695, %v12039_v23  ;;  %v4566_v50 = vadd.f32 %v12029_v60, %v4565_v17 }
 0xa1e   : > { %8251 = vrcp.f32 %v4658_v11  ;;  %v6649_v63 = vmul.f32 -1.442695, %v4574_v41 }
 0xa1f   : > { %8253 = vpow2.f32 %v6648_v33  ;;  %v6647_v38 = vmul.f32 -1.442695, %v4566_v50 }
 0xa20   : > { %8255 = vpow2.f32 %v6646_v39 }
 0xa21   : > { %8257 = vpow2.f32 %v6649_v63 }
 0xa22   : > { %8259 = vpow2.f32 %v6647_v38 }
 0xa25   : > { %v8246_v21 = vpop.eup %8245 }
 0xa26   : > { %v8248_v35 = vpop.eup %8247  ;;  %v4707_v52 = vmul.f32 %v8246_v21, %v4555_v45 }
 0xa27   : > { %v8250_v16 = vpop.eup %8249  ;;  %v4705_v49 = vmul.f32 %v8248_v35, %v4547_v47 }
 0xa28   : > { %v8252_v9 = vpop.eup %8251  ;;  %v4708_v57 = vmul.f32 %v8250_v16, %v4558_v37 }
 0xa29   : > { %v8254_v54 = vpop.eup %8253  ;;  %v4706_v51 = vmul.f32 %v8252_v9, %v4550_v42  ;;  %v7288_v13 = vpop.f32.mrb[92].mxu1 }
 0xa2a   : > { %v8256_v24 = vpop.eup %8255  ;;  %v4727_v30 = vpack.c.bf16 %v4708_v57, %v4707_v52  ;;  %v4663_v62 = vadd.f32 1.0, %v8254_v54  ;;  %v12046_v46 = vadd.f32 %v7288_v13, %v12029_v60  ;;  %v4578_v0 = vpop.f32.mrb[93].mxu1 }
 0xa2b   : > { %v8258_v34 = vpop.eup %8257  ;;  %v4726_v7 = vpack.c.bf16 %v4706_v51, %v4705_v49  ;;  %v4661_v20 = vadd.f32 1.0, %v8256_v24  ;;  %v12049_v32 = vadd.f32 %v12029_v60, %v4578_v0  ;;  %v7289_v3 = vpop.f32.mrb[94].mxu1 }
 0xa2c   : > { %v8260_v45 = vpop.eup %8259  ;;  %8261 = vrcp.f32 %v4663_v62  ;;  %v4664_v37 = vadd.f32 1.0, %v8258_v34  ;;  %v6652_v47 = vmul.f32 -1.442695, %v12046_v46  ;;  %v4590_v61 = vadd.f32 %v7289_v3, %v12029_v60  ;;  %v4581_v42 = vpop.f32.mrb[95].mxu1 }
 0xa2d   : > { %8263 = vrcp.f32 %v4661_v20  ;;  %v4662_v22 = vadd.f32 1.0, %v8260_v45  ;;  %v6650_v2 = vmul.f32 -1.442695, %v12049_v32  ;;  %v4582_v4 = vadd.f32 %v12029_v60, %v4581_v42  ;;  %7298 = vmatprep.mubr.msk.bf16.mxu1 %vm681_vm2, %v4726_v7 }
 0xa2e   : > { %8265 = vrcp.f32 %v4664_v37  ;;  %v6653_v15 = vmul.f32 -1.442695, %v4590_v61  ;;  %7299 = vmatmul.mubr.msk.bf16.vlgmr.msra.gmra.mrb[100].mxu1 %vm681_vm2, %v4727_v30 }
 0xa2f   : > { %8267 = vrcp.f32 %v4662_v22  ;;  %v6651_v40 = vmul.f32 -1.442695, %v4582_v4 }
 0xa30   : > { %8269 = vpow2.f32 %v6652_v47 }
 0xa31   : > { %8271 = vpow2.f32 %v6650_v2 }
 0xa32   : > { %8273 = vpow2.f32 %v6653_v15 }
 0xa33   : > { %8275 = vpow2.f32 %v6651_v40 }
 0xa36   : > { %v8262_v19 = vpop.eup %8261 }
 0xa37   : > { %v8264_v44 = vpop.eup %8263  ;;  %v4711_v53 = vmul.f32 %v8262_v19, %v12036_v59 }
 0xa38   : > { %v8266_v43 = vpop.eup %8265  ;;  %v4709_v33 = vmul.f32 %v8264_v44, %v12039_v23 }
 0xa39   : > { %v8268_v29 = vpop.eup %8267  ;;  %v4712_v28 = vmul.f32 %v8266_v43, %v4574_v41  ;;  %v7292_v31 = vpop.f32.mrb[96].mxu1 }
 0xa3a   : > { %v8270_v11 = vpop.eup %8269  ;;  %v4710_v17 = vmul.f32 %v8268_v29, %v4566_v50  ;;  %v4603_v39 = vadd.f32 %v7292_v31, %v12029_v60  ;;  %v4594_v63 = vpop.f32.mrb[97].mxu1 }
 0xa3b   : > { %v8272_v38 = vpop.eup %8271  ;;  %v4729_v21 = vpack.c.bf16 %v4712_v28, %v4711_v53  ;;  %v4667_v35 = vadd.f32 1.0, %v8270_v11  ;;  %v4595_v16 = vadd.f32 %v12029_v60, %v4594_v63  ;;  %v7293_v9 = vpop.f32.mrb[98].mxu1  ;;  %v6690_v63 = vld [vmem:[%s12614_s10 + $0x50] sm:$0xff] }
 0xa3c   : > { %v8274_v52 = vpop.eup %8273  ;;  %v4728_v57 = vpack.c.bf16 %v4710_v17, %v4709_v33  ;;  %v4665_v54 = vadd.f32 1.0, %v8272_v38  ;;  %v4606_v59 = vadd.f32 %v7293_v9, %v12029_v60  ;;  %v4597_v41 = vpop.f32.mrb[99].mxu1  ;;  %v6656_v23 = vmul.f32 -1.442695, %v4603_v39  ;;  %v6691_v38 = vld [vmem:[%s12614_s10 + $0x58] sm:$0xff] }
 0xa3d   : > { %v8276_v49 = vpop.eup %8275  ;;  %8277 = vrcp.f32 %v4667_v35  ;;  %v4668_v51 = vadd.f32 1.0, %v8274_v52  ;;  %v4598_v50 = vadd.f32 %v12029_v60, %v4597_v41  ;;  %v6654_v24 = vmul.f32 -1.442695, %v4595_v16 }
 0xa3e   : > { %8279 = vrcp.f32 %v4665_v54  ;;  %v4666_v13 = vadd.f32 1.0, %v8276_v49  ;;  %7302 = vmatprep.mubr.msk.bf16.mxu1 %vm681_vm2, %v4728_v57  ;;  %v6657_v30 = vmul.f32 -1.442695, %v4606_v59 }
 0xa3f   : > { %8281 = vrcp.f32 %v4668_v51  ;;  %7303 = vmatmul.mubr.msk.bf16.gmra.mrb[104].mxu1 %vm681_vm2, %v4729_v21  ;;  %v6655_v62 = vmul.f32 -1.442695, %v4598_v50  ;;  %v5007_v21 = vpack.c.bf16 %v6691_v38, %v6690_v63 }
 0xa40   : > { %8283 = vrcp.f32 %v4666_v13 }
 0xa41   : > { %8285 = vpow2.f32 %v6656_v23  ;;  %7316 = vmatprep.subr.bf16.mxu0 %v5007_v21 }
 0xa42   : > { %8287 = vpow2.f32 %v6654_v24  ;;  %7317 = vmatpush3.bf16.msra.mxu0 %v5007_v21 }
 0xa43   : > { %8289 = vpow2.f32 %v6657_v30 }
 0xa44   : > { %8291 = vpow2.f32 %v6655_v62 }
 0xa47   : > { %v8278_v0 = vpop.eup %8277 }
 0xa48   : > { %v8280_v34 = vpop.eup %8279  ;;  %v4715_v60 = vmul.f32 %v8278_v0, %v12046_v46 }
 0xa49   : > { %v8282_v7 = vpop.eup %8281  ;;  %v4713_v37 = vmul.f32 %v8280_v34, %v12049_v32 }
 0xa4a   : > { %v8284_v20 = vpop.eup %8283  ;;  %v4716_v3 = vmul.f32 %v8282_v7, %v4590_v61 }
 0xa4b   : > { %v8286_v45 = vpop.eup %8285  ;;  %v4714_v47 = vmul.f32 %v8284_v20, %v4582_v4 }
 0xa4c   : > { %v8288_v42 = vpop.eup %8287  ;;  %v4731_v22 = vpack.c.bf16 %v4716_v3, %v4715_v60  ;;  %v4671_v2 = vadd.f32 1.0, %v8286_v45 }
 0xa4d   : > { %v8290_v15 = vpop.eup %8289  ;;  %v4730_v40 = vpack.c.bf16 %v4714_v47, %v4713_v37  ;;  %v4669_v19 = vadd.f32 1.0, %v8288_v42 }
 0xa4e   : > { %v8292_v44 = vpop.eup %8291  ;;  %8293 = vrcp.f32 %v4671_v2  ;;  %v4672_v43 = vadd.f32 1.0, %v8290_v15 }
 0xa4f   : > { %8295 = vrcp.f32 %v4669_v19  ;;  %v4670_v29 = vadd.f32 1.0, %v8292_v44  ;;  %7306 = vmatprep.mubr.msk.bf16.mxu1 %vm681_vm2, %v4730_v40 }
 0xa50   : > { %8297 = vrcp.f32 %v4672_v43  ;;  %7307 = vmatmul.mubr.msk.bf16.gmra.mrb[108].mxu1 %vm681_vm2, %v4731_v22 }
 0xa51   : > { %8299 = vrcp.f32 %v4670_v29 }
 0xa58   : > { %v8294_v46 = vpop.eup %8293 }
 0xa59   : > { %v8296_v32 = vpop.eup %8295  ;;  %v4719_v53 = vmul.f32 %v8294_v46, %v4603_v39  ;;  %v12080_v39 = vld [vmem:[%s12615_s11 + $0x1] ss:$0 sm:$0xff] }
 0xa5a   : > { %v8298_v61 = vpop.eup %8297  ;;  %v4717_v31 = vmul.f32 %v8296_v32, %v4595_v16 }
 0xa5b   : > { %v8300_v4 = vpop.eup %8299  ;;  %v4720_v28 = vmul.f32 %v8298_v61, %v4606_v59 }
 0xa5c   : > { %v4718_v11 = vmul.f32 %v8300_v4, %v4598_v50 }
 0xa5d   : > { %v4733_v33 = vpack.c.bf16 %v4720_v28, %v4719_v53 }
 0xa5e   : > { %v4732_v17 = vpack.c.bf16 %v4718_v11, %v4717_v31 }
 0xa60   : > { %7310 = vmatprep.mubr.msk.bf16.mxu1 %vm681_vm2, %v4732_v17 }
 0xa61   : > { %7311 = vmatmul.mubr.msk.bf16.gmra.mrb[112].mxu1 %vm681_vm2, %v4733_v33 }
 0xb01   : > { %v7300_v35 = vpop.f32.mrb[100].mxu1 }
 0xb02   : > { %v4811_v16 = vadd.f32 %v7300_v35, %v12080_v39  ;;  %v4802_v9 = vpop.f32.mrb[101].mxu1 }
 0xb03   : > { %v4803_v52 = vadd.f32 %v12080_v39, %v4802_v9  ;;  %v7301_v57 = vpop.f32.mrb[102].mxu1 }
 0xb04   : > { %v6674_v54 = vmul.f32 -1.442695, %v4811_v16  ;;  %v4814_v59 = vadd.f32 %v7301_v57, %v12080_v39  ;;  %v4805_v41 = vpop.f32.mrb[103].mxu1 }
 0xb05   : > { %v6672_v49 = vmul.f32 -1.442695, %v4803_v52  ;;  %v4806_v51 = vadd.f32 %v12080_v39, %v4805_v41 }
 0xb06   : > { %8301 = vpow2.f32 %v6674_v54  ;;  %v6675_v23 = vmul.f32 -1.442695, %v4814_v59 }
 0xb07   : > { %8303 = vpow2.f32 %v6672_v49  ;;  %v6673_v50 = vmul.f32 -1.442695, %v4806_v51 }
 0xb08   : > { %8305 = vpow2.f32 %v6675_v23 }
 0xb09   : > { %8307 = vpow2.f32 %v6673_v50 }
 0xb10   : > { %v8302_v13 = vpop.eup %8301 }
 0xb11   : > { %v8304_v24 = vpop.eup %8303  ;;  %v4915_v30 = vadd.f32 1.0, %v8302_v13 }
 0xb12   : > { %v8306_v62 = vpop.eup %8305  ;;  %v4913_v0 = vadd.f32 1.0, %v8304_v24  ;;  %v7304_v34 = vpop.f32.mrb[104].mxu1 }
 0xb13   : > { %v8308_v7 = vpop.eup %8307  ;;  %8309 = vrcp.f32 %v4915_v30  ;;  %v4916_v20 = vadd.f32 1.0, %v8306_v62  ;;  %v12087_v60 = vadd.f32 %v7304_v34, %v12080_v39  ;;  %v4818_v3 = vpop.f32.mrb[105].mxu1 }
 0xb14   : > { %8311 = vrcp.f32 %v4913_v0  ;;  %v4914_v45 = vadd.f32 1.0, %v8308_v7  ;;  %v12090_v37 = vadd.f32 %v12080_v39, %v4818_v3  ;;  %v7305_v47 = vpop.f32.mrb[106].mxu1 }
 0xb15   : > { %8313 = vrcp.f32 %v4916_v20  ;;  %v6678_v42 = vmul.f32 -1.442695, %v12087_v60  ;;  %v4830_v22 = vadd.f32 %v7305_v47, %v12080_v39  ;;  %v4821_v2 = vpop.f32.mrb[107].mxu1 }
 0xb16   : > { %8315 = vrcp.f32 %v4914_v45  ;;  %v6676_v15 = vmul.f32 -1.442695, %v12090_v37  ;;  %v4822_v40 = vadd.f32 %v12080_v39, %v4821_v2 }
 0xb17   : > { %8317 = vpow2.f32 %v6678_v42  ;;  %v6679_v19 = vmul.f32 -1.442695, %v4830_v22 }
 0xb18   : > { %8319 = vpow2.f32 %v6676_v15  ;;  %v6677_v44 = vmul.f32 -1.442695, %v4822_v40 }
 0xb19   : > { %8321 = vpow2.f32 %v6679_v19 }
 0xb1a   : > { %8323 = vpow2.f32 %v6677_v44 }
 0xb1d   : > { %v8310_v43 = vpop.eup %8309 }
 0xb1e   : > { %v8312_v29 = vpop.eup %8311  ;;  %v4963_v46 = vmul.f32 %v8310_v43, %v4811_v16 }
 0xb1f   : > { %v8314_v32 = vpop.eup %8313  ;;  %v4961_v61 = vmul.f32 %v8312_v29, %v4803_v52 }
 0xb20   : > { %v8316_v4 = vpop.eup %8315  ;;  %v4964_v53 = vmul.f32 %v8314_v32, %v4814_v59  ;;  %v4979_v33 = vadd.f32 %v4963_v46, %v11946_v10 }
 0xb21   : > { %v8318_v28 = vpop.eup %8317  ;;  %v4962_v31 = vmul.f32 %v8316_v4, %v4806_v51  ;;  %v4977_v21 = vadd.f32 %v4961_v61, %v11937_v58 }
 0xb22   : > { %v8320_v11 = vpop.eup %8319  ;;  %v4980_v17 = vadd.f32 %v4964_v53, %v11949_v14  ;;  %v4919_v63 = vadd.f32 1.0, %v8318_v28 }
 0xb23   : > { %v8322_v38 = vpop.eup %8321  ;;  %v4978_v35 = vadd.f32 %v4962_v31, %v11940_v12  ;;  %v4917_v9 = vadd.f32 1.0, %v8320_v11  ;;  %v7308_v57 = vpop.f32.mrb[108].mxu1 }
 0xb24   : > { %v8324_v16 = vpop.eup %8323  ;;  %v4999_v54 = vpack.c.bf16 %v4980_v17, %v4979_v33  ;;  %8325 = vrcp.f32 %v4919_v63  ;;  %v4920_v52 = vadd.f32 1.0, %v8322_v38  ;;  %v12101_v59 = vadd.f32 %v7308_v57, %v12080_v39  ;;  %v4834_v41 = vpop.f32.mrb[109].mxu1 }
 0xb25   : > { %v4998_v49 = vpack.c.bf16 %v4978_v35, %v4977_v21  ;;  %8327 = vrcp.f32 %v4917_v9  ;;  %v4918_v10 = vadd.f32 1.0, %v8324_v16  ;;  %v12104_v14 = vadd.f32 %v12080_v39, %v4834_v41  ;;  %v7309_v51 = vpop.f32.mrb[110].mxu1 }
 0xb26   : > { %8329 = vrcp.f32 %v4920_v52  ;;  %v6682_v58 = vmul.f32 -1.442695, %v12101_v59  ;;  %v12108_v12 = vadd.f32 %v7309_v51, %v12080_v39  ;;  %v4837_v23 = vpop.f32.mrb[111].mxu1 }
 0xb27   : > { %8331 = vrcp.f32 %v4918_v10  ;;  %v6680_v50 = vmul.f32 -1.442695, %v12104_v14  ;;  %v4838_v13 = vadd.f32 %v12080_v39, %v4837_v23  ;;  %7318 = vmatprep.mubr.msk.bf16.mxu0 %vm681_vm2, %v4998_v49 }
 0xb28   : > { %8333 = vpow2.f32 %v6682_v58  ;;  %v6683_v24 = vmul.f32 -1.442695, %v12108_v12  ;;  %7319 = vmatmul.mubr.msk.bf16.vlgmr.msra.gmra.mrb[108].mxu0 %vm681_vm2, %v4999_v54 }
 0xb29   : > { %8335 = vpow2.f32 %v6680_v50  ;;  %v6681_v30 = vmul.f32 -1.442695, %v4838_v13 }
 0xb2a   : > { %8337 = vpow2.f32 %v6683_v24 }
 0xb2b   : > { %8339 = vpow2.f32 %v6681_v30 }
 0xb2e   : > { %v8326_v62 = vpop.eup %8325 }
 0xb2f   : > { %v8328_v0 = vpop.eup %8327  ;;  %v4967_v34 = vmul.f32 %v8326_v62, %v12087_v60 }
 0xb30   : > { %v8330_v7 = vpop.eup %8329  ;;  %v4965_v20 = vmul.f32 %v8328_v0, %v12090_v37 }
 0xb31   : > { %v8332_v3 = vpop.eup %8331  ;;  %v4968_v45 = vmul.f32 %v8330_v7, %v4830_v22  ;;  %v4983_v15 = vadd.f32 %v4967_v34, %v11964_v1 }
 0xb32   : > { %v8334_v47 = vpop.eup %8333  ;;  %v4966_v42 = vmul.f32 %v8332_v3, %v4822_v40  ;;  %v4981_v29 = vadd.f32 %v4965_v20, %v11955_v26 }
 0xb33   : > { %v8336_v2 = vpop.eup %8335  ;;  %v4984_v19 = vadd.f32 %v4968_v45, %v11967_v25  ;;  %v4923_v44 = vadd.f32 1.0, %v8334_v47 }
 0xb34   : > { %v8338_v43 = vpop.eup %8337  ;;  %v4982_v46 = vadd.f32 %v4966_v42, %v11958_v18  ;;  %v4921_v32 = vadd.f32 1.0, %v8336_v2  ;;  %v7312_v60 = vpop.f32.mrb[112].mxu1 }
 0xb35   : > { %v8340_v61 = vpop.eup %8339  ;;  %v5001_v4 = vpack.c.bf16 %v4984_v19, %v4983_v15  ;;  %8341 = vrcp.f32 %v4923_v44  ;;  %v4924_v37 = vadd.f32 1.0, %v8338_v43  ;;  %v4859_v22 = vadd.f32 %v7312_v60, %v12080_v39  ;;  %v4850_v40 = vpop.f32.mrb[113].mxu1  ;;  %v6718_v15 = vld [vmem:[%s12614_s10 + $0x60] sm:$0xff] }
 0xb36   : > { %v5000_v53 = vpack.c.bf16 %v4982_v46, %v4981_v29  ;;  %8343 = vrcp.f32 %v4921_v32  ;;  %v4922_v1 = vadd.f32 1.0, %v8340_v61  ;;  %v4851_v25 = vadd.f32 %v12080_v39, %v4850_v40  ;;  %v7313_v28 = vpop.f32.mrb[114].mxu1  ;;  %v12157_v44 = vld [vmem:[%s12615_s11 + $0x2] ss:$0 sm:$0xff] }
 0xb37   : > { %8345 = vrcp.f32 %v4924_v37  ;;  %v6686_v31 = vmul.f32 -1.442695, %v4859_v22  ;;  %v4862_v26 = vadd.f32 %v7313_v28, %v12080_v39  ;;  %v4853_v18 = vpop.f32.mrb[115].mxu1 }
 0xb38   : > { %8347 = vrcp.f32 %v4922_v1  ;;  %v6684_v11 = vmul.f32 -1.442695, %v4851_v25  ;;  %v4854_v33 = vadd.f32 %v12080_v39, %v4853_v18  ;;  %7322 = vmatprep.mubr.msk.bf16.mxu0 %vm681_vm2, %v5000_v53 }
 0xb39   : > { %8349 = vpow2.f32 %v6686_v31  ;;  %v6687_v17 = vmul.f32 -1.442695, %v4862_v26  ;;  %7323 = vmatmul.mubr.msk.bf16.gmra.mrb[112].mxu0 %vm681_vm2, %v5001_v4 }
 0xb3a   : > { %8351 = vpow2.f32 %v6684_v11  ;;  %v6685_v63 = vmul.f32 -1.442695, %v4854_v33 }
 0xb3b   : > { %8353 = vpow2.f32 %v6687_v17 }
 0xb3c   : > { %8355 = vpow2.f32 %v6685_v63 }
 0xb3f   : > { %v8342_v38 = vpop.eup %8341 }
 0xb40   : > { %v8344_v21 = vpop.eup %8343  ;;  %v4971_v35 = vmul.f32 %v8342_v38, %v12101_v59 }
 0xb41   : > { %v8346_v9 = vpop.eup %8345  ;;  %v4969_v57 = vmul.f32 %v8344_v21, %v12104_v14 }
 0xb42   : > { %v8348_v16 = vpop.eup %8347  ;;  %v4972_v39 = vmul.f32 %v8346_v9, %v12108_v12  ;;  %v4987_v49 = vadd.f32 %v4971_v35, %v11982_v8 }
 0xb43   : > { %v8350_v54 = vpop.eup %8349  ;;  %v4970_v52 = vmul.f32 %v8348_v16, %v4838_v13  ;;  %v4985_v23 = vadd.f32 %v4969_v57, %v11973_v36 }
 0xb44   : > { %v8352_v41 = vpop.eup %8351  ;;  %v4988_v10 = vadd.f32 %v4972_v39, %v11985_v56  ;;  %v4927_v51 = vadd.f32 1.0, %v8350_v54 }
 0xb45   : > { %v8354_v58 = vpop.eup %8353  ;;  %v4986_v50 = vadd.f32 %v4970_v52, %v11976_v5  ;;  %v4925_v59 = vadd.f32 1.0, %v8352_v41 }
 0xb46   : > { %v8356_v24 = vpop.eup %8355  ;;  %v5003_v30 = vpack.c.bf16 %v4988_v10, %v4987_v49  ;;  %8357 = vrcp.f32 %v4927_v51  ;;  %v4928_v14 = vadd.f32 1.0, %v8354_v58 }
 0xb47   : > { %v5002_v62 = vpack.c.bf16 %v4986_v50, %v4985_v23  ;;  %8359 = vrcp.f32 %v4925_v59  ;;  %v4926_v12 = vadd.f32 1.0, %v8356_v24 }
 0xb48   : > { %8361 = vrcp.f32 %v4928_v14 }
 0xb49   : > { %8363 = vrcp.f32 %v4926_v12  ;;  %7326 = vmatprep.mubr.msk.bf16.mxu0 %vm681_vm2, %v5002_v62  ;;  %v8685_v12 = vld [vmem:[%s8832_s23 + $0x18] sm:$0xff] }
 0xb4a   : > { %7327 = vmatmul.mubr.msk.bf16.gmra.mrb[116].mxu0 %vm681_vm2, %v5003_v30 }
 0xb50   : > { %v8358_v8 = vpop.eup %8357 }
 0xb51   : > { %v8360_v56 = vpop.eup %8359  ;;  %v4975_v13 = vmul.f32 %v8358_v8, %v4859_v22 }
 0xb52   : > { %v8362_v36 = vpop.eup %8361  ;;  %v4973_v0 = vmul.f32 %v8360_v56, %v4851_v25 }
 0xb53   : > { %v8364_v5 = vpop.eup %8363  ;;  %v4976_v34 = vmul.f32 %v8362_v36, %v4862_v26  ;;  %v4991_v20 = vadd.f32 %v4975_v13, %v12000_v48  ;;  %v6719_v48 = vld [vmem:[%s12614_s10 + $0x68] sm:$0xff]  ;;  %v8686_v36 = vld [vmem:[%s8832_s23] sm:$0xff] }
 0xb54   : > { %v4974_v7 = vmul.f32 %v8364_v5, %v4854_v33  ;;  %v4989_v45 = vadd.f32 %v4973_v0, %v11991_v27  ;;  %v5278_v19 = vpack.c.bf16 %v6719_v48, %v6718_v15  ;;  %v6720_v27 = vld [vmem:[%s12614_s10 + $0x70] sm:$0xff]  ;;  %v8687_v5 = vld [vmem:[%s8832_s23 + $0x8] sm:$0xff] }
 0xb55   : > { %v4992_v3 = vadd.f32 %v4976_v34, %v12003_v55 }
 0xb56   : > { %v4990_v47 = vadd.f32 %v4974_v7, %v11994_v6  ;;  %7334 = vmatprep.subr.bf16.mxu1 %v5278_v19  ;;  %v6721_v6 = vld [vmem:[%s12614_s10 + $0x78] sm:$0xff] }
 0xb57   : > { %v5005_v42 = vpack.c.bf16 %v4992_v3, %v4991_v20  ;;  %7335 = vmatpush3.bf16.msra.mxu1 %v5278_v19  ;;  %v5279_v55 = vpack.c.bf16 %v6721_v6, %v6720_v27 }
 0xb58   : > { %v5004_v2 = vpack.c.bf16 %v4990_v47, %v4989_v45  ;;  %v8688_v45 = vld [vmem:[%s8832_s23 + $0x10] sm:$0xff] }
 0xb59   : > { %7336 = vmatprep.subr.bf16.mxu1 %v5279_v55 }
 0xb5a   : > { %7330 = vmatprep.mubr.msk.bf16.mxu0 %vm681_vm2, %v5004_v2 }
 0xb5b   : > { %7331 = vmatmul.mubr.msk.bf16.gmra.mrb[120].mxu0 %vm681_vm2, %v5005_v42  ;;  %7337 = vmatpush3.bf16.msra.mxu1 %v5279_v55 }
 0xbfb   : > { %v7320_v43 = vpop.f32.mrb[108].mxu0 }
 0xbfc   : > { %v5083_v29 = vadd.f32 %v7320_v43, %v12157_v44  ;;  %v5074_v46 = vpop.f32.mrb[109].mxu0 }
 0xbfd   : > { %v5075_v32 = vadd.f32 %v12157_v44, %v5074_v46  ;;  %v7321_v60 = vpop.f32.mrb[110].mxu0 }
 0xbfe   : > { %v6704_v61 = vmul.f32 -1.442695, %v5083_v29  ;;  %v5086_v4 = vadd.f32 %v7321_v60, %v12157_v44  ;;  %v5077_v37 = vpop.f32.mrb[111].mxu0 }
 0xbff   : > { %v6702_v22 = vmul.f32 -1.442695, %v5075_v32  ;;  %v5078_v40 = vadd.f32 %v12157_v44, %v5077_v37 }
 0xc00   : > { %8365 = vpow2.f32 %v6704_v61  ;;  %v6705_v53 = vmul.f32 -1.442695, %v5086_v4 }
 0xc01   : > { %8367 = vpow2.f32 %v6702_v22  ;;  %v6703_v1 = vmul.f32 -1.442695, %v5078_v40 }
 0xc02   : > { %8369 = vpow2.f32 %v6705_v53 }
 0xc03   : > { %8371 = vpow2.f32 %v6703_v1 }
 0xc0a   : > { %v8366_v25 = vpop.eup %8365 }
 0xc0b   : > { %v8368_v28 = vpop.eup %8367  ;;  %v5187_v31 = vadd.f32 1.0, %v8366_v25 }
 0xc0c   : > { %v8370_v26 = vpop.eup %8369  ;;  %v5185_v18 = vadd.f32 1.0, %v8368_v28  ;;  %v7324_v11 = vpop.f32.mrb[112].mxu0 }
 0xc0d   : > { %v8372_v33 = vpop.eup %8371  ;;  %8373 = vrcp.f32 %v5187_v31  ;;  %v5188_v17 = vadd.f32 1.0, %v8370_v26  ;;  %v12164_v63 = vadd.f32 %v7324_v11, %v12157_v44  ;;  %v5090_v38 = vpop.f32.mrb[113].mxu0  ;;  %v8689_v11 = vld [vmem:[%s8832_s23 + $0x38] sm:$0xff] }
 0xc0e   : > { %8375 = vrcp.f32 %v5185_v18  ;;  %v5186_v21 = vadd.f32 1.0, %v8372_v33  ;;  %v12167_v35 = vadd.f32 %v12157_v44, %v5090_v38  ;;  %v7325_v9 = vpop.f32.mrb[114].mxu0 }
 0xc0f   : > { %8377 = vrcp.f32 %v5188_v17  ;;  %v6708_v57 = vmul.f32 -1.442695, %v12164_v63  ;;  %v12171_v16 = vadd.f32 %v7325_v9, %v12157_v44  ;;  %v5093_v39 = vpop.f32.mrb[115].mxu0 }
 0xc10   : > { %8379 = vrcp.f32 %v5186_v21  ;;  %v6706_v54 = vmul.f32 -1.442695, %v12167_v35  ;;  %v12175_v52 = vadd.f32 %v12157_v44, %v5093_v39  ;;  %v8690_v21 = vld [vmem:[%s8832_s23 + $0x20] sm:$0xff] }
 0xc11   : > { %8381 = vpow2.f32 %v6708_v57  ;;  %v6709_v41 = vmul.f32 -1.442695, %v12171_v16  ;;  %v8691_v57 = vld [vmem:[%s8832_s23 + $0x28] sm:$0xff] }
 0xc12   : > { %8383 = vpow2.f32 %v6706_v54  ;;  %v6707_v49 = vmul.f32 -1.442695, %v12175_v52 }
 0xc13   : > { %8385 = vpow2.f32 %v6709_v41  ;;  %v8692_v41 = vld [vmem:[%s8832_s23 + $0x30] sm:$0xff] }
 0xc14   : > { %8387 = vpow2.f32 %v6707_v49 }
 0xc17   : > { %v8374_v10 = vpop.eup %8373 }
 0xc18   : > { %v8376_v51 = vpop.eup %8375  ;;  %v5235_v59 = vmul.f32 %v8374_v10, %v5083_v29 }
 0xc19   : > { %v8378_v58 = vpop.eup %8377  ;;  %v5233_v23 = vmul.f32 %v8376_v51, %v5075_v32 }
 0xc1a   : > { %v8380_v50 = vpop.eup %8379  ;;  %v5236_v24 = vmul.f32 %v8378_v58, %v5086_v4  ;;  %v12189_v47 = vadd.f32 %v8688_v45, %v5235_v59 }
 0xc1b   : > { %v8382_v30 = vpop.eup %8381  ;;  %v5234_v14 = vmul.f32 %v8380_v50, %v5078_v40  ;;  %v12183_v0 = vadd.f32 %v8686_v36, %v5233_v23 }
 0xc1c   : > { %v8384_v62 = vpop.eup %8383  ;;  %v12180_v8 = vadd.f32 %v8685_v12, %v5236_v24  ;;  %v5191_v56 = vadd.f32 1.0, %v8382_v30 }
 0xc1d   : > { %v8386_v13 = vpop.eup %8385  ;;  %v12186_v34 = vadd.f32 %v8687_v5, %v5234_v14  ;;  %v5189_v7 = vadd.f32 1.0, %v8384_v62  ;;  %v7328_v20 = vpop.f32.mrb[116].mxu0 }
 0xc1e   : > { %v8388_v3 = vpop.eup %8387  ;;  %8389 = vrcp.f32 %v5191_v56  ;;  %v5192_v42 = vadd.f32 1.0, %v8386_v13  ;;  %v12192_v2 = vadd.f32 %v7328_v20, %v12157_v44  ;;  %v5106_v15 = vpop.f32.mrb[117].mxu0  ;;  %v5271_v55 = vpack.c.bf16 %v12180_v8, %v12189_v47 }
 0xc1f   : > { %v5270_v48 = vpack.c.bf16 %v12186_v34, %v12183_v0  ;;  %8391 = vrcp.f32 %v5189_v7  ;;  %v5190_v19 = vadd.f32 1.0, %v8388_v3  ;;  %v12197_v27 = vadd.f32 %v12157_v44, %v5106_v15  ;;  %v7329_v6 = vpop.f32.mrb[118].mxu0 }
 0xc20   : > { %8393 = vrcp.f32 %v5192_v42  ;;  %v6712_v43 = vmul.f32 -1.442695, %v12192_v2  ;;  %v12203_v29 = vadd.f32 %v7329_v6, %v12157_v44  ;;  %v5109_v46 = vpop.f32.mrb[119].mxu0 }
 0xc21   : > { %8395 = vrcp.f32 %v5190_v19  ;;  %v6710_v32 = vmul.f32 -1.442695, %v12197_v27  ;;  %v12207_v60 = vadd.f32 %v12157_v44, %v5109_v46  ;;  %7338 = vmatprep.mubr.msk.bf16.mxu1 %vm681_vm2, %v5270_v48  ;;  %v8693_v19 = vld [vmem:[%s8832_s23 + $0x58] sm:$0xff]  ;;  %v8694_v46 = vld [vmem:[%s8832_s23 + $0x40] sm:$0xff] }
 0xc22   : > { %8397 = vpow2.f32 %v6712_v43  ;;  %v6713_v61 = vmul.f32 -1.442695, %v12203_v29  ;;  %7339 = vmatmul.mubr.msk.bf16.vlgmr.msra.gmra.mrb[116].mxu1 %vm681_vm2, %v5271_v55 }
 0xc23   : > { %8399 = vpow2.f32 %v6710_v32  ;;  %v6711_v4 = vmul.f32 -1.442695, %v12207_v60 }
 0xc24   : > { %8401 = vpow2.f32 %v6713_v61  ;;  %v8695_v61 = vld [vmem:[%s8832_s23 + $0x48] sm:$0xff] }
 0xc25   : > { %8403 = vpow2.f32 %v6711_v4 }
 0xc28   : > { %v8390_v37 = vpop.eup %8389 }
 0xc29   : > { %v8392_v22 = vpop.eup %8391  ;;  %v5239_v25 = vmul.f32 %v8390_v37, %v12164_v63 }
 0xc2a   : > { %v8394_v40 = vpop.eup %8393  ;;  %v5237_v53 = vmul.f32 %v8392_v22, %v12167_v35 }
 0xc2b   : > { %v8396_v1 = vpop.eup %8395  ;;  %v5240_v28 = vmul.f32 %v8394_v40, %v12171_v16  ;;  %v12227_v16 = vadd.f32 %v8692_v41, %v5239_v25  ;;  %v8700_v41 = vld [vmem:[%s8832_s23 + $0x70] sm:$0xff] }
 0xc2c   : > { %v8398_v31 = vpop.eup %8397  ;;  %v5238_v26 = vmul.f32 %v8396_v1, %v12175_v52  ;;  %v12221_v9 = vadd.f32 %v8690_v21, %v5237_v53 }
 0xc2d   : > { %v8400_v18 = vpop.eup %8399  ;;  %v12218_v33 = vadd.f32 %v8689_v11, %v5240_v28  ;;  %v5195_v17 = vadd.f32 1.0, %v8398_v31 }
 0xc2e   : > { %v8402_v38 = vpop.eup %8401  ;;  %v12224_v35 = vadd.f32 %v8691_v57, %v5238_v26  ;;  %v5193_v39 = vadd.f32 1.0, %v8400_v18  ;;  %v7332_v63 = vpop.f32.mrb[120].mxu0  ;;  %v8698_v57 = vld [vmem:[%s8832_s23 + $0x60] sm:$0xff] }
 0xc2f   : > { %v8404_v54 = vpop.eup %8403  ;;  %8405 = vrcp.f32 %v5195_v17  ;;  %v5196_v52 = vadd.f32 1.0, %v8402_v38  ;;  %v5131_v49 = vadd.f32 %v7332_v63, %v12157_v44  ;;  %v5122_v10 = vpop.f32.mrb[121].mxu0  ;;  %v5273_v59 = vpack.c.bf16 %v12218_v33, %v12227_v16  ;;  %v8697_v38 = vld [vmem:[%s8832_s23 + $0x78] sm:$0xff]  ;;  %v8699_v63 = vld [vmem:[%s8832_s23 + $0x68] sm:$0xff] }
 0xc30   : > { %v5272_v51 = vpack.c.bf16 %v12224_v35, %v12221_v9  ;;  %8407 = vrcp.f32 %v5193_v39  ;;  %v5194_v58 = vadd.f32 1.0, %v8404_v54  ;;  %v5123_v23 = vadd.f32 %v12157_v44, %v5122_v10  ;;  %v7333_v50 = vpop.f32.mrb[122].mxu0 }
 0xc31   : > { %8409 = vrcp.f32 %v5196_v52  ;;  %v6716_v24 = vmul.f32 -1.442695, %v5131_v49  ;;  %v5134_v30 = vadd.f32 %v7333_v50, %v12157_v44  ;;  %v5125_v14 = vpop.f32.mrb[123].mxu0  ;;  %v6750_v50 = vld [vmem:[%s12614_s10 + $0x90] sm:$0xff] }
 0xc32   : > { %8411 = vrcp.f32 %v5194_v58  ;;  %v6714_v62 = vmul.f32 -1.442695, %v5123_v23  ;;  %v5126_v12 = vadd.f32 %v12157_v44, %v5125_v14  ;;  %7342 = vmatprep.mubr.msk.bf16.mxu1 %vm681_vm2, %v5272_v51  ;;  %v6748_v51 = vld [vmem:[%s12614_s10 + $0x80] sm:$0xff]  ;;  %v6749_v58 = vld [vmem:[%s12614_s10 + $0x88] sm:$0xff] }
 0xc33   : > { %8413 = vpow2.f32 %v6716_v24  ;;  %v6717_v56 = vmul.f32 -1.442695, %v5134_v30  ;;  %7343 = vmatmul.mubr.msk.bf16.gmra.mrb[120].mxu1 %vm681_vm2, %v5273_v59  ;;  %v6751_v59 = vld [vmem:[%s12614_s10 + $0x98] sm:$0xff] }
 0xc34   : > { %8415 = vpow2.f32 %v6714_v62  ;;  %v6715_v13 = vmul.f32 -1.442695, %v5126_v12  ;;  %v5535_v24 = vpack.c.bf16 %v6751_v59, %v6750_v50 }
 0xc35   : > { %8417 = vpow2.f32 %v6717_v56 }
 0xc36   : > { %8419 = vpow2.f32 %v6715_v13 }
 0xc39   : > { %v8406_v36 = vpop.eup %8405 }
 0xc3a   : > { %v8408_v5 = vpop.eup %8407  ;;  %v5243_v44 = vmul.f32 %v8406_v36, %v12192_v2  ;;  %v8696_v2 = vld [vmem:[%s8832_s23 + $0x50] sm:$0xff] }
 0xc3b   : > { %v8410_v7 = vpop.eup %8409  ;;  %v5241_v20 = vmul.f32 %v8408_v5, %v12197_v27 }
 0xc3c   : > { %v8412_v3 = vpop.eup %8411  ;;  %v5244_v45 = vmul.f32 %v8410_v7, %v12203_v29  ;;  %v12253_v22 = vadd.f32 %v8696_v2, %v5243_v44 }
 0xc3d   : > { %v8414_v42 = vpop.eup %8413  ;;  %v5242_v15 = vmul.f32 %v8412_v3, %v12207_v60  ;;  %v12247_v32 = vadd.f32 %v8694_v46, %v5241_v20 }
 0xc3e   : > { %v8416_v48 = vpop.eup %8415  ;;  %v12244_v6 = vadd.f32 %v8693_v19, %v5244_v45  ;;  %v5199_v55 = vadd.f32 1.0, %v8414_v42 }
 0xc3f   : > { %v8418_v43 = vpop.eup %8417  ;;  %v12250_v27 = vadd.f32 %v8695_v61, %v5242_v15  ;;  %v5197_v4 = vadd.f32 1.0, %v8416_v48 }
 0xc40   : > { %v8420_v37 = vpop.eup %8419  ;;  %8421 = vrcp.f32 %v5199_v55  ;;  %v5200_v29 = vadd.f32 1.0, %v8418_v43  ;;  %v5275_v53 = vpack.c.bf16 %v12244_v6, %v12253_v22 }
 0xc41   : > { %v5274_v60 = vpack.c.bf16 %v12250_v27, %v12247_v32  ;;  %8423 = vrcp.f32 %v5197_v4  ;;  %v5198_v40 = vadd.f32 1.0, %v8420_v37 }
 0xc42   : > { %8425 = vrcp.f32 %v5200_v29 }
 0xc43   : > { %8427 = vrcp.f32 %v5198_v40  ;;  %7346 = vmatprep.mubr.msk.bf16.mxu1 %vm681_vm2, %v5274_v60 }
 0xc44   : > { %7347 = vmatmul.mubr.msk.bf16.gmra.mrb[124].mxu1 %vm681_vm2, %v5275_v53 }
 0xc4a   : > { %v8422_v1 = vpop.eup %8421 }
 0xc4b   : > { %v8424_v25 = vpop.eup %8423  ;;  %v5247_v18 = vmul.f32 %v8422_v1, %v5131_v49 }
 0xc4c   : > { %v8426_v28 = vpop.eup %8425  ;;  %v5245_v31 = vmul.f32 %v8424_v25, %v5123_v23  ;;  %v5534_v23 = vpack.c.bf16 %v6749_v58, %v6748_v51 }
 0xc4d   : > { %v8428_v26 = vpop.eup %8427  ;;  %v5248_v11 = vmul.f32 %v8426_v28, %v5134_v30  ;;  %v12271_v52 = vadd.f32 %v8700_v41, %v5247_v18  ;;  %v12294_v30 = vld [vmem:[%s12615_s11 + $0x3] ss:$0 sm:$0xff] }
 0xc4e   : > { %v5246_v17 = vmul.f32 %v8428_v26, %v5126_v12  ;;  %v12265_v39 = vadd.f32 %v8698_v57, %v5245_v31  ;;  %7354 = vmatprep.subr.bf16.mxu0 %v5534_v23 }
 0xc4f   : > { %v12262_v21 = vadd.f32 %v8697_v38, %v5248_v11  ;;  %7355 = vmatpush3.bf16.msra.mxu0 %v5534_v23 }
 0xc50   : > { %v12268_v54 = vadd.f32 %v8699_v63, %v5246_v17  ;;  %7356 = vmatprep.subr.bf16.mxu0 %v5535_v24 }
 0xc51   : > { %v5277_v49 = vpack.c.bf16 %v12262_v21, %v12271_v52 }
 0xc52   : > { %v5276_v10 = vpack.c.bf16 %v12268_v54, %v12265_v39 }
 0xc53   : > { %7357 = vmatpush3.bf16.msra.mxu0 %v5535_v24 }
 0xc54   : > { %7350 = vmatprep.mubr.msk.bf16.mxu1 %vm681_vm2, %v5276_v10 }
 0xc55   : > { %7351 = vmatmul.mubr.msk.bf16.gmra.mrb[128].mxu1 %vm681_vm2, %v5277_v49 }
 0xcf5   : > { %v7340_v14 = vpop.f32.mrb[116].mxu1 }
 0xcf6   : > { %v5355_v62 = vadd.f32 %v7340_v14, %v12294_v30  ;;  %v5346_v12 = vpop.f32.mrb[117].mxu1 }
 0xcf7   : > { %v5347_v56 = vadd.f32 %v12294_v30, %v5346_v12  ;;  %v7341_v13 = vpop.f32.mrb[118].mxu1 }
 0xcf8   : > { %v6734_v36 = vmul.f32 -1.442695, %v5355_v62  ;;  %v5358_v5 = vadd.f32 %v7341_v13, %v12294_v30  ;;  %v5349_v7 = vpop.f32.mrb[119].mxu1 }
 0xcf9   : > { %v6732_v20 = vmul.f32 -1.442695, %v5347_v56  ;;  %v5350_v3 = vadd.f32 %v12294_v30, %v5349_v7 }
 0xcfa   : > { %8429 = vpow2.f32 %v6734_v36  ;;  %v6735_v44 = vmul.f32 -1.442695, %v5358_v5 }
 0xcfb   : > { %8431 = vpow2.f32 %v6732_v20  ;;  %v6733_v45 = vmul.f32 -1.442695, %v5350_v3 }
 0xcfc   : > { %8433 = vpow2.f32 %v6735_v44 }
 0xcfd   : > { %8435 = vpow2.f32 %v6733_v45 }
 0xd04   : > { %v8430_v42 = vpop.eup %8429 }
 0xd05   : > { %v8432_v15 = vpop.eup %8431  ;;  %v5459_v48 = vadd.f32 1.0, %v8430_v42 }
 0xd06   : > { %v8434_v19 = vpop.eup %8433  ;;  %v5457_v55 = vadd.f32 1.0, %v8432_v15  ;;  %v7344_v43 = vpop.f32.mrb[120].mxu1 }
 0xd07   : > { %v8436_v46 = vpop.eup %8435  ;;  %8437 = vrcp.f32 %v5459_v48  ;;  %v5460_v61 = vadd.f32 1.0, %v8434_v19  ;;  %v12301_v4 = vadd.f32 %v7344_v43, %v12294_v30  ;;  %v5362_v37 = vpop.f32.mrb[121].mxu1 }
 0xd08   : > { %8439 = vrcp.f32 %v5457_v55  ;;  %v5458_v2 = vadd.f32 1.0, %v8436_v46  ;;  %v5363_v29 = vadd.f32 %v12294_v30, %v5362_v37  ;;  %v7345_v60 = vpop.f32.mrb[122].mxu1 }
 0xd09   : > { %8441 = vrcp.f32 %v5460_v61  ;;  %v6738_v40 = vmul.f32 -1.442695, %v12301_v4  ;;  %v5374_v53 = vadd.f32 %v7345_v60, %v12294_v30  ;;  %v5365_v1 = vpop.f32.mrb[123].mxu1 }
 0xd0a   : > { %8443 = vrcp.f32 %v5458_v2  ;;  %v6736_v25 = vmul.f32 -1.442695, %v5363_v29  ;;  %v5366_v28 = vadd.f32 %v12294_v30, %v5365_v1 }
 0xd0b   : > { %8445 = vpow2.f32 %v6738_v40  ;;  %v6739_v31 = vmul.f32 -1.442695, %v5374_v53 }
 0xd0c   : > { %8447 = vpow2.f32 %v6736_v25  ;;  %v6737_v26 = vmul.f32 -1.442695, %v5366_v28 }
 0xd0d   : > { %8449 = vpow2.f32 %v6739_v31 }
 0xd0e   : > { %8451 = vpow2.f32 %v6737_v26 }
 0xd11   : > { %v8438_v18 = vpop.eup %8437 }
 0xd12   : > { %v8440_v11 = vpop.eup %8439  ;;  %v5507_v57 = vmul.f32 %v8438_v18, %v5355_v62 }
 0xd13   : > { %v8442_v17 = vpop.eup %8441  ;;  %v5505_v10 = vmul.f32 %v8440_v11, %v5347_v56 }
 0xd14   : > { %v8444_v38 = vpop.eup %8443  ;;  %v5508_v63 = vmul.f32 %v8442_v17, %v5358_v5 }
 0xd15   : > { %v8446_v41 = vpop.eup %8445  ;;  %v5506_v49 = vmul.f32 %v8444_v38, %v5350_v3 }
 0xd16   : > { %v8448_v51 = vpop.eup %8447  ;;  %v5527_v58 = vpack.c.bf16 %v5508_v63, %v5507_v57  ;;  %v5463_v23 = vadd.f32 1.0, %v8446_v41 }
 0xd17   : > { %v8450_v50 = vpop.eup %8449  ;;  %v5526_v59 = vpack.c.bf16 %v5506_v49, %v5505_v10  ;;  %v5461_v24 = vadd.f32 1.0, %v8448_v51  ;;  %v7348_v14 = vpop.f32.mrb[124].mxu1 }
 0xd18   : > { %v8452_v12 = vpop.eup %8451  ;;  %8453 = vrcp.f32 %v5463_v23  ;;  %v5464_v13 = vadd.f32 1.0, %v8450_v50  ;;  %v12308_v36 = vadd.f32 %v7348_v14, %v12294_v30  ;;  %v5378_v7 = vpop.f32.mrb[125].mxu1 }
 0xd19   : > { %8455 = vrcp.f32 %v5461_v24  ;;  %v5462_v62 = vadd.f32 1.0, %v8452_v12  ;;  %v12311_v5 = vadd.f32 %v12294_v30, %v5378_v7  ;;  %v7349_v56 = vpop.f32.mrb[126].mxu1  ;;  %7358 = vmatprep.mubr.msk.bf16.mxu0 %vm681_vm2, %v5526_v59 }
 0xd1a   : > { %8457 = vrcp.f32 %v5464_v13  ;;  %v6742_v20 = vmul.f32 -1.442695, %v12308_v36  ;;  %v5390_v3 = vadd.f32 %v7349_v56, %v12294_v30  ;;  %v5381_v44 = vpop.f32.mrb[127].mxu1  ;;  %7359 = vmatmul.mubr.msk.bf16.vlgmr.msra.gmra.mrb[124].mxu0 %vm681_vm2, %v5527_v58 }
 0xd1b   : > { %8459 = vrcp.f32 %v5462_v62  ;;  %v6740_v45 = vmul.f32 -1.442695, %v12311_v5  ;;  %v5382_v42 = vadd.f32 %v12294_v30, %v5381_v44 }
 0xd1c   : > { %8461 = vpow2.f32 %v6742_v20  ;;  %v6743_v15 = vmul.f32 -1.442695, %v5390_v3 }
 0xd1d   : > { %8463 = vpow2.f32 %v6740_v45  ;;  %v6741_v48 = vmul.f32 -1.442695, %v5382_v42 }
 0xd1e   : > { %8465 = vpow2.f32 %v6743_v15 }
 0xd1f   : > { %8467 = vpow2.f32 %v6741_v48 }
 0xd22   : > { %v8454_v19 = vpop.eup %8453 }
 0xd23   : > { %v8456_v55 = vpop.eup %8455  ;;  %v5511_v61 = vmul.f32 %v8454_v19, %v12301_v4 }
 0xd24   : > { %v8458_v43 = vpop.eup %8457  ;;  %v5509_v60 = vmul.f32 %v8456_v55, %v5363_v29 }
 0xd25   : > { %v8460_v46 = vpop.eup %8459  ;;  %v5512_v37 = vmul.f32 %v8458_v43, %v5374_v53 }
 0xd26   : > { %v8462_v2 = vpop.eup %8461  ;;  %v5510_v40 = vmul.f32 %v8460_v46, %v5366_v28 }
 0xd27   : > { %v8464_v1 = vpop.eup %8463  ;;  %v5529_v25 = vpack.c.bf16 %v5512_v37, %v5511_v61  ;;  %v5467_v31 = vadd.f32 1.0, %v8462_v2 }
 0xd28   : > { %v8466_v26 = vpop.eup %8465  ;;  %v5528_v18 = vpack.c.bf16 %v5510_v40, %v5509_v60  ;;  %v5465_v11 = vadd.f32 1.0, %v8464_v1  ;;  %v7352_v17 = vpop.f32.mrb[128].mxu1 }
 0xd29   : > { %v8468_v38 = vpop.eup %8467  ;;  %8469 = vrcp.f32 %v5467_v31  ;;  %v5468_v57 = vadd.f32 1.0, %v8466_v26  ;;  %v5403_v63 = vadd.f32 %v7352_v17, %v12294_v30  ;;  %v5394_v41 = vpop.f32.mrb[129].mxu1  ;;  %v6779_v31 = vld [vmem:[%s12614_s10 + $0xa8] sm:$0xff] }
 0xd2a   : > { %8471 = vrcp.f32 %v5465_v11  ;;  %v5466_v10 = vadd.f32 1.0, %v8468_v38  ;;  %v5395_v4 = vadd.f32 %v12294_v30, %v5394_v41  ;;  %v7353_v53 = vpop.f32.mrb[130].mxu1  ;;  %7362 = vmatprep.mubr.msk.bf16.mxu0 %vm681_vm2, %v5528_v18  ;;  %v6780_v18 = vld [vmem:[%s12614_s10 + $0xb0] sm:$0xff]  ;;  %v6781_v11 = vld [vmem:[%s12614_s10 + $0xb8] sm:$0xff]  ;;  %v12347_v38 = vld [vmem:[%s12615_s11 + $0x4] ss:$0 sm:$0xff] }
 0xd2b   : > { %8473 = vrcp.f32 %v5468_v57  ;;  %v6746_v29 = vmul.f32 -1.442695, %v5403_v63  ;;  %v5406_v28 = vadd.f32 %v7353_v53, %v12294_v30  ;;  %v5397_v49 = vpop.f32.mrb[131].mxu1  ;;  %7363 = vmatmul.mubr.msk.bf16.gmra.mrb[128].mxu0 %vm681_vm2, %v5529_v25  ;;  %v6778_v25 = vld [vmem:[%s12614_s10 + $0xa0] sm:$0xff]  ;;  %v5807_v17 = vpack.c.bf16 %v6781_v11, %v6780_v18 }
 0xd2c   : > { %8475 = vrcp.f32 %v5466_v10  ;;  %v6744_v51 = vmul.f32 -1.442695, %v5395_v4  ;;  %v5398_v58 = vadd.f32 %v12294_v30, %v5397_v49  ;;  %v5806_v26 = vpack.c.bf16 %v6779_v31, %v6778_v25 }
 0xd2d   : > { %8477 = vpow2.f32 %v6746_v29  ;;  %v6747_v23 = vmul.f32 -1.442695, %v5406_v28 }
 0xd2e   : > { %8479 = vpow2.f32 %v6744_v51  ;;  %v6745_v50 = vmul.f32 -1.442695, %v5398_v58  ;;  %7374 = vmatprep.subr.bf16.mxu1 %v5806_v26 }
 0xd2f   : > { %8481 = vpow2.f32 %v6747_v23  ;;  %7375 = vmatpush3.bf16.msra.mxu1 %v5806_v26 }
 0xd30   : > { %8483 = vpow2.f32 %v6745_v50  ;;  %7376 = vmatprep.subr.bf16.mxu1 %v5807_v17 }
 0xd33   : > { %v8470_v59 = vpop.eup %8469  ;;  %7377 = vmatpush3.bf16.msra.mxu1 %v5807_v17 }
 0xd34   : > { %v8472_v24 = vpop.eup %8471  ;;  %v5515_v13 = vmul.f32 %v8470_v59, %v12308_v36 }
 0xd35   : > { %v8474_v14 = vpop.eup %8473  ;;  %v5513_v56 = vmul.f32 %v8472_v24, %v12311_v5 }
 0xd36   : > { %v8476_v12 = vpop.eup %8475  ;;  %v5516_v7 = vmul.f32 %v8474_v14, %v5390_v3 }
 0xd37   : > { %v8478_v62 = vpop.eup %8477  ;;  %v5514_v20 = vmul.f32 %v8476_v12, %v5382_v42 }
 0xd38   : > { %v8480_v44 = vpop.eup %8479  ;;  %v5531_v45 = vpack.c.bf16 %v5516_v7, %v5515_v13  ;;  %v5471_v30 = vadd.f32 1.0, %v8478_v62 }
 0xd39   : > { %v8482_v15 = vpop.eup %8481  ;;  %v5530_v48 = vpack.c.bf16 %v5514_v20, %v5513_v56  ;;  %v5469_v19 = vadd.f32 1.0, %v8480_v44 }
 0xd3a   : > { %v8484_v55 = vpop.eup %8483  ;;  %8485 = vrcp.f32 %v5471_v30  ;;  %v5472_v43 = vadd.f32 1.0, %v8482_v15 }
 0xd3b   : > { %8487 = vrcp.f32 %v5469_v19  ;;  %v5470_v46 = vadd.f32 1.0, %v8484_v55  ;;  %7366 = vmatprep.mubr.msk.bf16.mxu0 %vm681_vm2, %v5530_v48 }
 0xd3c   : > { %8489 = vrcp.f32 %v5472_v43  ;;  %7367 = vmatmul.mubr.msk.bf16.gmra.mrb[132].mxu0 %vm681_vm2, %v5531_v45 }
 0xd3d   : > { %8491 = vrcp.f32 %v5470_v46 }
 0xd44   : > { %v8486_v36 = vpop.eup %8485 }
 0xd45   : > { %v8488_v5 = vpop.eup %8487  ;;  %v5519_v61 = vmul.f32 %v8486_v36, %v5403_v63 }
 0xd46   : > { %v8490_v3 = vpop.eup %8489  ;;  %v5517_v2 = vmul.f32 %v8488_v5, %v5395_v4 }
 0xd47   : > { %v8492_v42 = vpop.eup %8491  ;;  %v5520_v37 = vmul.f32 %v8490_v3, %v5406_v28 }
 0xd48   : > { %v5518_v60 = vmul.f32 %v8492_v42, %v5398_v58 }
 0xd49   : > { %v5533_v40 = vpack.c.bf16 %v5520_v37, %v5519_v61 }
 0xd4a   : > { %v5532_v1 = vpack.c.bf16 %v5518_v60, %v5517_v2 }
 0xd4c   : > { %7370 = vmatprep.mubr.msk.bf16.mxu0 %vm681_vm2, %v5532_v1 }
 0xd4d   : > { %7371 = vmatmul.mubr.msk.bf16.gmra.mrb[136].mxu0 %vm681_vm2, %v5533_v40 }
 0xded   : > { %v7360_v57 = vpop.f32.mrb[124].mxu0 }
 0xdee   : > { %v5611_v63 = vadd.f32 %v7360_v57, %v12347_v38  ;;  %v5602_v41 = vpop.f32.mrb[125].mxu0 }
 0xdef   : > { %v5603_v10 = vadd.f32 %v12347_v38, %v5602_v41  ;;  %v7361_v4 = vpop.f32.mrb[126].mxu0 }
 0xdf0   : > { %v6764_v53 = vmul.f32 -1.442695, %v5611_v63  ;;  %v5614_v29 = vadd.f32 %v7361_v4, %v12347_v38  ;;  %v5605_v28 = vpop.f32.mrb[127].mxu0 }
 0xdf1   : > { %v6762_v49 = vmul.f32 -1.442695, %v5603_v10  ;;  %v5606_v51 = vadd.f32 %v12347_v38, %v5605_v28 }
 0xdf2   : > { %8493 = vpow2.f32 %v6764_v53  ;;  %v6765_v58 = vmul.f32 -1.442695, %v5614_v29 }
 0xdf3   : > { %8495 = vpow2.f32 %v6762_v49  ;;  %v6763_v23 = vmul.f32 -1.442695, %v5606_v51 }
 0xdf4   : > { %8497 = vpow2.f32 %v6765_v58 }
 0xdf5   : > { %8499 = vpow2.f32 %v6763_v23 }
 0xdfc   : > { %v8494_v50 = vpop.eup %8493 }
 0xdfd   : > { %v8496_v59 = vpop.eup %8495  ;;  %v5715_v24 = vadd.f32 1.0, %v8494_v50 }
 0xdfe   : > { %v8498_v14 = vpop.eup %8497  ;;  %v5713_v12 = vadd.f32 1.0, %v8496_v59  ;;  %v7364_v13 = vpop.f32.mrb[128].mxu0 }
 0xdff   : > { %v8500_v7 = vpop.eup %8499  ;;  %8501 = vrcp.f32 %v5715_v24  ;;  %v5716_v62 = vadd.f32 1.0, %v8498_v14  ;;  %v12354_v56 = vadd.f32 %v7364_v13, %v12347_v38  ;;  %v5618_v20 = vpop.f32.mrb[129].mxu0 }
 0xe00   : > { %8503 = vrcp.f32 %v5713_v12  ;;  %v5714_v44 = vadd.f32 1.0, %v8500_v7  ;;  %v5619_v45 = vadd.f32 %v12347_v38, %v5618_v20  ;;  %v7365_v30 = vpop.f32.mrb[130].mxu0 }
 0xe01   : > { %8505 = vrcp.f32 %v5716_v62  ;;  %v6768_v15 = vmul.f32 -1.442695, %v12354_v56  ;;  %v5630_v48 = vadd.f32 %v7365_v30, %v12347_v38  ;;  %v5621_v19 = vpop.f32.mrb[131].mxu0 }
 0xe02   : > { %8507 = vrcp.f32 %v5714_v44  ;;  %v6766_v55 = vmul.f32 -1.442695, %v5619_v45  ;;  %v5622_v43 = vadd.f32 %v12347_v38, %v5621_v19 }
 0xe03   : > { %8509 = vpow2.f32 %v6768_v15  ;;  %v6769_v46 = vmul.f32 -1.442695, %v5630_v48 }
 0xe04   : > { %8511 = vpow2.f32 %v6766_v55  ;;  %v6767_v36 = vmul.f32 -1.442695, %v5622_v43 }
 0xe05   : > { %8513 = vpow2.f32 %v6769_v46 }
 0xe06   : > { %8515 = vpow2.f32 %v6767_v36 }
 0xe09   : > { %v8502_v5 = vpop.eup %8501 }
 0xe0a   : > { %v8504_v3 = vpop.eup %8503  ;;  %v5763_v2 = vmul.f32 %v8502_v5, %v5611_v63 }
 0xe0b   : > { %v8506_v42 = vpop.eup %8505  ;;  %v5761_v61 = vmul.f32 %v8504_v3, %v5603_v10 }
 0xe0c   : > { %v8508_v37 = vpop.eup %8507  ;;  %v5764_v60 = vmul.f32 %v8506_v42, %v5614_v29  ;;  %v12370_v63 = vadd.f32 %v5763_v2, %v12189_v47 }
 0xe0d   : > { %v8510_v40 = vpop.eup %8509  ;;  %v5762_v1 = vmul.f32 %v8508_v37, %v5606_v51  ;;  %v12364_v11 = vadd.f32 %v5761_v61, %v12183_v0 }
 0xe0e   : > { %v8512_v25 = vpop.eup %8511  ;;  %v12361_v31 = vadd.f32 %v5764_v60, %v12180_v8  ;;  %v5719_v26 = vadd.f32 1.0, %v8510_v40 }
 0xe0f   : > { %v8514_v18 = vpop.eup %8513  ;;  %v12367_v17 = vadd.f32 %v5762_v1, %v12186_v34  ;;  %v5717_v57 = vadd.f32 1.0, %v8512_v25  ;;  %v7368_v41 = vpop.f32.mrb[132].mxu0 }
 0xe10   : > { %v8516_v10 = vpop.eup %8515  ;;  %8517 = vrcp.f32 %v5719_v26  ;;  %v5720_v4 = vadd.f32 1.0, %v8514_v18  ;;  %v12373_v53 = vadd.f32 %v7368_v41, %v12347_v38  ;;  %v5634_v8 = vpop.f32.mrb[133].mxu0  ;;  %v5799_v49 = vpack.c.bf16 %v12361_v31, %v12370_v63 }
 0xe11   : > { %v5798_v29 = vpack.c.bf16 %v12367_v17, %v12364_v11  ;;  %8519 = vrcp.f32 %v5717_v57  ;;  %v5718_v0 = vadd.f32 1.0, %v8516_v10  ;;  %v12378_v34 = vadd.f32 %v12347_v38, %v5634_v8  ;;  %v7369_v28 = vpop.f32.mrb[134].mxu0 }
 0xe12   : > { %8521 = vrcp.f32 %v5720_v4  ;;  %v6772_v47 = vmul.f32 -1.442695, %v12373_v53  ;;  %v12384_v51 = vadd.f32 %v7369_v28, %v12347_v38  ;;  %v5637_v58 = vpop.f32.mrb[135].mxu0 }
 0xe13   : > { %8523 = vrcp.f32 %v5718_v0  ;;  %v6770_v23 = vmul.f32 -1.442695, %v12378_v34  ;;  %v5638_v50 = vadd.f32 %v12347_v38, %v5637_v58  ;;  %7378 = vmatprep.mubr.msk.bf16.mxu1 %vm681_vm2, %v5798_v29 }
 0xe14   : > { %8525 = vpow2.f32 %v6772_v47  ;;  %v6773_v59 = vmul.f32 -1.442695, %v12384_v51  ;;  %7379 = vmatmul.mubr.msk.bf16.vlgmr.msra.gmra.mrb[132].mxu1 %vm681_vm2, %v5799_v49 }
 0xe15   : > { %8527 = vpow2.f32 %v6770_v23  ;;  %v6771_v24 = vmul.f32 -1.442695, %v5638_v50 }
 0xe16   : > { %8529 = vpow2.f32 %v6773_v59 }
 0xe17   : > { %8531 = vpow2.f32 %v6771_v24 }
 0xe1a   : > { %v8518_v14 = vpop.eup %8517 }
 0xe1b   : > { %v8520_v12 = vpop.eup %8519  ;;  %v5767_v20 = vmul.f32 %v8518_v14, %v12354_v56 }
 0xe1c   : > { %v8522_v13 = vpop.eup %8521  ;;  %v5765_v7 = vmul.f32 %v8520_v12, %v5619_v45 }
 0xe1d   : > { %v8524_v62 = vpop.eup %8523  ;;  %v5768_v44 = vmul.f32 %v8522_v13, %v5630_v48  ;;  %v12402_v56 = vadd.f32 %v5767_v20, %v12227_v16 }
 0xe1e   : > { %v8526_v30 = vpop.eup %8525  ;;  %v5766_v15 = vmul.f32 %v8524_v62, %v5622_v43  ;;  %v12396_v5 = vadd.f32 %v5765_v7, %v12221_v9 }
 0xe1f   : > { %v8528_v19 = vpop.eup %8527  ;;  %v12393_v55 = vadd.f32 %v5768_v44, %v12218_v33  ;;  %v5723_v46 = vadd.f32 1.0, %v8526_v30 }
 0xe20   : > { %v8530_v36 = vpop.eup %8529  ;;  %v12399_v3 = vadd.f32 %v5766_v15, %v12224_v35  ;;  %v5721_v42 = vadd.f32 1.0, %v8528_v19  ;;  %v7372_v45 = vpop.f32.mrb[136].mxu0 }
 0xe21   : > { %v8532_v61 = vpop.eup %8531  ;;  %8533 = vrcp.f32 %v5723_v46  ;;  %v5724_v48 = vadd.f32 1.0, %v8530_v36  ;;  %v5659_v43 = vadd.f32 %v7372_v45, %v12347_v38  ;;  %v5650_v33 = vpop.f32.mrb[137].mxu0  ;;  %v5801_v60 = vpack.c.bf16 %v12393_v55, %v12402_v56 }
 0xe22   : > { %v5800_v37 = vpack.c.bf16 %v12399_v3, %v12396_v5  ;;  %8535 = vrcp.f32 %v5721_v42  ;;  %v5722_v9 = vadd.f32 1.0, %v8532_v61  ;;  %v5651_v2 = vadd.f32 %v12347_v38, %v5650_v33  ;;  %v7373_v35 = vpop.f32.mrb[138].mxu0  ;;  %v6811_v61 = vld [vmem:[%s12614_s10 + $0xd8] sm:$0xff] }
 0xe23   : > { %8537 = vrcp.f32 %v5724_v48  ;;  %v6776_v40 = vmul.f32 -1.442695, %v5659_v43  ;;  %v5662_v16 = vadd.f32 %v7373_v35, %v12347_v38  ;;  %v5653_v1 = vpop.f32.mrb[139].mxu0 }
 0xe24   : > { %8539 = vrcp.f32 %v5722_v9  ;;  %v6774_v25 = vmul.f32 -1.442695, %v5651_v2  ;;  %v5654_v26 = vadd.f32 %v12347_v38, %v5653_v1  ;;  %7382 = vmatprep.mubr.msk.bf16.mxu1 %vm681_vm2, %v5800_v37 }
 0xe25   : > { %8541 = vpow2.f32 %v6776_v40  ;;  %v6777_v18 = vmul.f32 -1.442695, %v5662_v16  ;;  %7383 = vmatmul.mubr.msk.bf16.gmra.mrb[136].mxu1 %vm681_vm2, %v5801_v60 }
 0xe26   : > { %8543 = vpow2.f32 %v6774_v25  ;;  %v6775_v57 = vmul.f32 -1.442695, %v5654_v26 }
 0xe27   : > { %8545 = vpow2.f32 %v6777_v18 }
 0xe28   : > { %8547 = vpow2.f32 %v6775_v57 }
 0xe2b   : > { %v8534_v41 = vpop.eup %8533 }
 0xe2c   : > { %v8536_v10 = vpop.eup %8535  ;;  %v5771_v0 = vmul.f32 %v8534_v41, %v12373_v53 }
 0xe2d   : > { %v8538_v4 = vpop.eup %8537  ;;  %v5769_v8 = vmul.f32 %v8536_v10, %v12378_v34 }
 0xe2e   : > { %v8540_v29 = vpop.eup %8539  ;;  %v5772_v38 = vmul.f32 %v8538_v4, %v12384_v51  ;;  %v12427_v53 = vadd.f32 %v5771_v0, %v12253_v22 }
 0xe2f   : > { %v8542_v28 = vpop.eup %8541  ;;  %v5770_v49 = vmul.f32 %v8540_v29, %v5638_v50  ;;  %v12421_v24 = vadd.f32 %v5769_v8, %v12247_v32 }
 0xe30   : > { %v8544_v47 = vpop.eup %8543  ;;  %v12418_v58 = vadd.f32 %v5772_v38, %v12244_v6  ;;  %v5727_v23 = vadd.f32 1.0, %v8542_v28 }
 0xe31   : > { %v8546_v59 = vpop.eup %8545  ;;  %v12424_v14 = vadd.f32 %v5770_v49, %v12250_v27  ;;  %v5725_v34 = vadd.f32 1.0, %v8544_v47 }
 0xe32   : > { %v8548_v12 = vpop.eup %8547  ;;  %8549 = vrcp.f32 %v5727_v23  ;;  %v5728_v51 = vadd.f32 1.0, %v8546_v59  ;;  %v5803_v13 = vpack.c.bf16 %v12418_v58, %v12427_v53 }
 0xe33   : > { %v5802_v50 = vpack.c.bf16 %v12424_v14, %v12421_v24  ;;  %8551 = vrcp.f32 %v5725_v34  ;;  %v5726_v6 = vadd.f32 1.0, %v8548_v12 }
 0xe34   : > { %8553 = vrcp.f32 %v5728_v51 }
 0xe35   : > { %8555 = vrcp.f32 %v5726_v6  ;;  %7386 = vmatprep.mubr.msk.bf16.mxu1 %vm681_vm2, %v5802_v50 }
 0xe36   : > { %7387 = vmatmul.mubr.msk.bf16.gmra.mrb[140].mxu1 %vm681_vm2, %v5803_v13 }
 0xe3c   : > { %v8550_v32 = vpop.eup %8549 }
 0xe3d   : > { %v8552_v27 = vpop.eup %8551  ;;  %v5775_v20 = vmul.f32 %v8550_v32, %v5659_v43  ;;  %v12468_v43 = vld [vmem:[%s12615_s11 + $0x5] ss:$0 sm:$0xff] }
 0xe3e   : > { %v8554_v22 = vpop.eup %8553  ;;  %v5773_v7 = vmul.f32 %v8552_v27, %v5651_v2 }
 0xe3f   : > { %v8556_v62 = vpop.eup %8555  ;;  %v5776_v44 = vmul.f32 %v8554_v22, %v5662_v16  ;;  %v12445_v36 = vadd.f32 %v5775_v20, %v12271_v52  ;;  %v6810_v52 = vld [vmem:[%s12614_s10 + $0xd0] sm:$0xff] }
 0xe40   : > { %v5774_v30 = vmul.f32 %v8556_v62, %v5654_v26  ;;  %v12439_v19 = vadd.f32 %v5773_v7, %v12265_v39  ;;  %v6809_v39 = vld [vmem:[%s12614_s10 + $0xc8] sm:$0xff]  ;;  %v6063_v48 = vpack.c.bf16 %v6811_v61, %v6810_v52 }
 0xe41   : > { %v12436_v15 = vadd.f32 %v5776_v44, %v12262_v21  ;;  %v6808_v21 = vld [vmem:[%s12614_s10 + $0xc0] sm:$0xff] }
 0xe42   : > { %v12442_v46 = vadd.f32 %v5774_v30, %v12268_v54  ;;  %v6062_v54 = vpack.c.bf16 %v6809_v39, %v6808_v21 }
 0xe43   : > { %v5805_v45 = vpack.c.bf16 %v12436_v15, %v12445_v36 }
 0xe44   : > { %v5804_v42 = vpack.c.bf16 %v12442_v46, %v12439_v19  ;;  %7394 = vmatprep.subr.bf16.mxu0 %v6062_v54 }
 0xe45   : > { %7395 = vmatpush3.bf16.msra.mxu0 %v6062_v54 }
 0xe46   : > { %7390 = vmatprep.mubr.msk.bf16.mxu1 %vm681_vm2, %v5804_v42  ;;  %7396 = vmatprep.subr.bf16.mxu0 %v6063_v48 }
 0xe47   : > { %7391 = vmatmul.mubr.msk.bf16.gmra.mrb[144].mxu1 %vm681_vm2, %v5805_v45 }
 0xe49   : > { %7397 = vmatpush3.bf16.msra.mxu0 %v6063_v48 }
 0xee7   : > { %v7380_v33 = vpop.f32.mrb[132].mxu1 }
 0xee8   : > { %v5883_v37 = vadd.f32 %v7380_v33, %v12468_v43  ;;  %v5874_v9 = vpop.f32.mrb[133].mxu1 }
 0xee9   : > { %v5875_v2 = vadd.f32 %v12468_v43, %v5874_v9  ;;  %v7381_v35 = vpop.f32.mrb[134].mxu1 }
 0xeea   : > { %v6794_v60 = vmul.f32 -1.442695, %v5883_v37  ;;  %v5886_v40 = vadd.f32 %v7381_v35, %v12468_v43  ;;  %v5877_v16 = vpop.f32.mrb[135].mxu1 }
 0xeeb   : > { %v6792_v1 = vmul.f32 -1.442695, %v5875_v2  ;;  %v5878_v25 = vadd.f32 %v12468_v43, %v5877_v16 }
 0xeec   : > { %8557 = vpow2.f32 %v6794_v60  ;;  %v6795_v26 = vmul.f32 -1.442695, %v5886_v40 }
 0xeed   : > { %8559 = vpow2.f32 %v6792_v1  ;;  %v6793_v18 = vmul.f32 -1.442695, %v5878_v25 }
 0xeee   : > { %8561 = vpow2.f32 %v6795_v26 }
 0xeef   : > { %8563 = vpow2.f32 %v6793_v18 }
 0xef6   : > { %v8558_v57 = vpop.eup %8557 }
 0xef7   : > { %v8560_v41 = vpop.eup %8559  ;;  %v5987_v10 = vadd.f32 1.0, %v8558_v57 }
 0xef8   : > { %v8562_v4 = vpop.eup %8561  ;;  %v5985_v8 = vadd.f32 1.0, %v8560_v41  ;;  %v7384_v29 = vpop.f32.mrb[136].mxu1 }
 0xef9   : > { %v8564_v0 = vpop.eup %8563  ;;  %8565 = vrcp.f32 %v5987_v10  ;;  %v5988_v38 = vadd.f32 1.0, %v8562_v4  ;;  %v12475_v28 = vadd.f32 %v7384_v29, %v12468_v43  ;;  %v5890_v49 = vpop.f32.mrb[137].mxu1 }
 0xefa   : > { %8567 = vrcp.f32 %v5985_v8  ;;  %v5986_v47 = vadd.f32 1.0, %v8564_v0  ;;  %v5891_v23 = vadd.f32 %v12468_v43, %v5890_v49  ;;  %v7385_v59 = vpop.f32.mrb[138].mxu1 }
 0xefb   : > { %8569 = vrcp.f32 %v5988_v38  ;;  %v6798_v34 = vmul.f32 -1.442695, %v12475_v28  ;;  %v5902_v12 = vadd.f32 %v7385_v59, %v12468_v43  ;;  %v5893_v51 = vpop.f32.mrb[139].mxu1 }
 0xefc   : > { %8571 = vrcp.f32 %v5986_v47  ;;  %v6796_v50 = vmul.f32 -1.442695, %v5891_v23  ;;  %v5894_v6 = vadd.f32 %v12468_v43, %v5893_v51 }
 0xefd   : > { %8573 = vpow2.f32 %v6798_v34  ;;  %v6799_v13 = vmul.f32 -1.442695, %v5902_v12 }
 0xefe   : > { %8575 = vpow2.f32 %v6796_v50  ;;  %v6797_v32 = vmul.f32 -1.442695, %v5894_v6 }
 0xeff   : > { %8577 = vpow2.f32 %v6799_v13 }
 0xf00   : > { %8579 = vpow2.f32 %v6797_v32 }
 0xf03   : > { %v8566_v27 = vpop.eup %8565 }
 0xf04   : > { %v8568_v22 = vpop.eup %8567  ;;  %v6035_v20 = vmul.f32 %v8566_v27, %v5883_v37 }
 0xf05   : > { %v8570_v7 = vpop.eup %8569  ;;  %v6033_v42 = vmul.f32 %v8568_v22, %v5875_v2 }
 0xf06   : > { %v8572_v62 = vpop.eup %8571  ;;  %v6036_v44 = vmul.f32 %v8570_v7, %v5886_v40 }
 0xf07   : > { %v8574_v30 = vpop.eup %8573  ;;  %v6034_v45 = vmul.f32 %v8572_v62, %v5878_v25 }
 0xf08   : > { %v8576_v21 = vpop.eup %8575  ;;  %v6055_v39 = vpack.c.bf16 %v6036_v44, %v6035_v20  ;;  %v5991_v54 = vadd.f32 1.0, %v8574_v30 }
 0xf09   : > { %v8578_v52 = vpop.eup %8577  ;;  %v6054_v61 = vpack.c.bf16 %v6034_v45, %v6033_v42  ;;  %v5989_v48 = vadd.f32 1.0, %v8576_v21  ;;  %v7388_v33 = vpop.f32.mrb[140].mxu1 }
 0xf0a   : > { %v8580_v9 = vpop.eup %8579  ;;  %8581 = vrcp.f32 %v5991_v54  ;;  %v5992_v35 = vadd.f32 1.0, %v8578_v52  ;;  %v12482_v60 = vadd.f32 %v7388_v33, %v12468_v43  ;;  %v5906_v16 = vpop.f32.mrb[141].mxu1 }
 0xf0b   : > { %8583 = vrcp.f32 %v5989_v48  ;;  %v5990_v37 = vadd.f32 1.0, %v8580_v9  ;;  %v12485_v40 = vadd.f32 %v12468_v43, %v5906_v16  ;;  %v7389_v2 = vpop.f32.mrb[142].mxu1  ;;  %7398 = vmatprep.mubr.msk.bf16.mxu0 %vm681_vm2, %v6054_v61 }
 0xf0c   : > { %8585 = vrcp.f32 %v5992_v35  ;;  %v6802_v1 = vmul.f32 -1.442695, %v12482_v60  ;;  %v5918_v25 = vadd.f32 %v7389_v2, %v12468_v43  ;;  %v5909_v26 = vpop.f32.mrb[143].mxu1  ;;  %7399 = vmatmul.mubr.msk.bf16.vlgmr.msra.gmra.mrb[140].mxu0 %vm681_vm2, %v6055_v39 }
 0xf0d   : > { %8587 = vrcp.f32 %v5990_v37  ;;  %v6800_v18 = vmul.f32 -1.442695, %v12485_v40  ;;  %v5910_v57 = vadd.f32 %v12468_v43, %v5909_v26 }
 0xf0e   : > { %8589 = vpow2.f32 %v6802_v1  ;;  %v6803_v41 = vmul.f32 -1.442695, %v5918_v25 }
 0xf0f   : > { %8591 = vpow2.f32 %v6800_v18  ;;  %v6801_v10 = vmul.f32 -1.442695, %v5910_v57 }
 0xf10   : > { %8593 = vpow2.f32 %v6803_v41 }
 0xf11   : > { %8595 = vpow2.f32 %v6801_v10 }
 0xf14   : > { %v8582_v4 = vpop.eup %8581 }
 0xf15   : > { %v8584_v8 = vpop.eup %8583  ;;  %v6039_v38 = vmul.f32 %v8582_v4, %v12475_v28 }
 0xf16   : > { %v8586_v29 = vpop.eup %8585  ;;  %v6037_v59 = vmul.f32 %v8584_v8, %v5891_v23 }
 0xf17   : > { %v8588_v0 = vpop.eup %8587  ;;  %v6040_v49 = vmul.f32 %v8586_v29, %v5902_v12 }
 0xf18   : > { %v8590_v47 = vpop.eup %8589  ;;  %v6038_v34 = vmul.f32 %v8588_v0, %v5894_v6 }
 0xf19   : > { %v8592_v51 = vpop.eup %8591  ;;  %v6057_v50 = vpack.c.bf16 %v6040_v49, %v6039_v38  ;;  %v5995_v13 = vadd.f32 1.0, %v8590_v47 }
 0xf1a   : > { %v8594_v32 = vpop.eup %8593  ;;  %v6056_v27 = vpack.c.bf16 %v6038_v34, %v6037_v59  ;;  %v5993_v22 = vadd.f32 1.0, %v8592_v51  ;;  %v7392_v7 = vpop.f32.mrb[144].mxu1 }
 0xf1b   : > { %v8596_v62 = vpop.eup %8595  ;;  %8597 = vrcp.f32 %v5995_v13  ;;  %v5996_v20 = vadd.f32 1.0, %v8594_v32  ;;  %v5931_v44 = vadd.f32 %v7392_v7, %v12468_v43  ;;  %v5922_v30 = vpop.f32.mrb[145].mxu1 }
 0xf1c   : > { %8599 = vrcp.f32 %v5993_v22  ;;  %v5994_v42 = vadd.f32 1.0, %v8596_v62  ;;  %v5923_v28 = vadd.f32 %v12468_v43, %v5922_v30  ;;  %v7393_v12 = vpop.f32.mrb[146].mxu1  ;;  %7402 = vmatprep.mubr.msk.bf16.mxu0 %vm681_vm2, %v6056_v27 }
 0xf1d   : > { %8601 = vrcp.f32 %v5996_v20  ;;  %v6806_v23 = vmul.f32 -1.442695, %v5931_v44  ;;  %v5934_v6 = vadd.f32 %v7393_v12, %v12468_v43  ;;  %v5925_v45 = vpop.f32.mrb[147].mxu1  ;;  %7403 = vmatmul.mubr.msk.bf16.gmra.mrb[144].mxu0 %vm681_vm2, %v6057_v50  ;;  %v12509_v50 = vld [vmem:[%s12615_s11 + $0x6] ss:$0 sm:$0xff] }
 0xf1e   : > { %8603 = vrcp.f32 %v5994_v42  ;;  %v6804_v21 = vmul.f32 -1.442695, %v5923_v28  ;;  %v5926_v39 = vadd.f32 %v12468_v43, %v5925_v45 }
 0xf1f   : > { %8605 = vpow2.f32 %v6806_v23  ;;  %v6807_v54 = vmul.f32 -1.442695, %v5934_v6 }
 0xf20   : > { %8607 = vpow2.f32 %v6804_v21  ;;  %v6805_v52 = vmul.f32 -1.442695, %v5926_v39 }
 0xf21   : > { %8609 = vpow2.f32 %v6807_v54 }
 0xf22   : > { %8611 = vpow2.f32 %v6805_v52 }
 0xf25   : > { %v8598_v61 = vpop.eup %8597 }
 0xf26   : > { %v8600_v48 = vpop.eup %8599  ;;  %v6043_v35 = vmul.f32 %v8598_v61, %v12482_v60 }
 0xf27   : > { %v8602_v33 = vpop.eup %8601  ;;  %v6041_v2 = vmul.f32 %v8600_v48, %v12485_v40 }
 0xf28   : > { %v8604_v9 = vpop.eup %8603  ;;  %v6044_v16 = vmul.f32 %v8602_v33, %v5918_v25 }
 0xf29   : > { %v8606_v37 = vpop.eup %8605  ;;  %v6042_v1 = vmul.f32 %v8604_v9, %v5910_v57 }
 0xf2a   : > { %v8608_v26 = vpop.eup %8607  ;;  %v6059_v18 = vpack.c.bf16 %v6044_v16, %v6043_v35  ;;  %v5999_v43 = vadd.f32 1.0, %v8606_v37 }
 0xf2b   : > { %v8610_v41 = vpop.eup %8609  ;;  %v6058_v10 = vpack.c.bf16 %v6042_v1, %v6041_v2  ;;  %v5997_v4 = vadd.f32 1.0, %v8608_v26 }
 0xf2c   : > { %v8612_v8 = vpop.eup %8611  ;;  %8613 = vrcp.f32 %v5999_v43  ;;  %v6000_v29 = vadd.f32 1.0, %v8610_v41 }
 0xf2d   : > { %8615 = vrcp.f32 %v5997_v4  ;;  %v5998_v0 = vadd.f32 1.0, %v8612_v8  ;;  %7406 = vmatprep.mubr.msk.bf16.mxu0 %vm681_vm2, %v6058_v10 }
 0xf2e   : > { %8617 = vrcp.f32 %v6000_v29  ;;  %7407 = vmatmul.mubr.msk.bf16.gmra.mrb[148].mxu0 %vm681_vm2, %v6059_v18 }
 0xf2f   : > { %8619 = vrcp.f32 %v5998_v0 }
 0xf36   : > { %v8614_v60 = vpop.eup %8613 }
 0xf37   : > { %v8616_v40 = vpop.eup %8615  ;;  %v6047_v38 = vmul.f32 %v8614_v60, %v5931_v44 }
 0xf38   : > { %v8618_v25 = vpop.eup %8617  ;;  %v6045_v47 = vmul.f32 %v8616_v40, %v5923_v28 }
 0xf39   : > { %v8620_v57 = vpop.eup %8619  ;;  %v6048_v49 = vmul.f32 %v8618_v25, %v5934_v6 }
 0xf3a   : > { %v6046_v59 = vmul.f32 %v8620_v57, %v5926_v39 }
 0xf3b   : > { %v6061_v34 = vpack.c.bf16 %v6048_v49, %v6047_v38 }
 0xf3c   : > { %v6060_v51 = vpack.c.bf16 %v6046_v59, %v6045_v47 }
 0xf3e   : > { %7410 = vmatprep.mubr.msk.bf16.mxu0 %vm681_vm2, %v6060_v51 }
 0xf3f   : > { %7411 = vmatmul.mubr.msk.bf16.gmra.mrb[152].mxu0 %vm681_vm2, %v6061_v34 }
 0xfdf   : > { %v7400_v13 = vpop.f32.mrb[140].mxu0 }
 0xfe0   : > { %v6139_v32 = vadd.f32 %v7400_v13, %v12509_v50  ;;  %v6130_v27 = vpop.f32.mrb[141].mxu0 }
 0xfe1   : > { %v6131_v22 = vadd.f32 %v12509_v50, %v6130_v27  ;;  %v7401_v7 = vpop.f32.mrb[142].mxu0 }
 0xfe2   : > { %v6824_v62 = vmul.f32 -1.442695, %v6139_v32  ;;  %v6142_v20 = vadd.f32 %v7401_v7, %v12509_v50  ;;  %v6133_v44 = vpop.f32.mrb[143].mxu0 }
 0xfe3   : > { %v6822_v30 = vmul.f32 -1.442695, %v6131_v22  ;;  %v6134_v42 = vadd.f32 %v12509_v50, %v6133_v44 }
 0xfe4   : > { %8621 = vpow2.f32 %v6824_v62  ;;  %v6825_v28 = vmul.f32 -1.442695, %v6142_v20 }
 0xfe5   : > { %8623 = vpow2.f32 %v6822_v30  ;;  %v6823_v12 = vmul.f32 -1.442695, %v6134_v42 }
 0xfe6   : > { %8625 = vpow2.f32 %v6825_v28 }
 0xfe7   : > { %8627 = vpow2.f32 %v6823_v12 }
 0xfee   : > { %v8622_v23 = vpop.eup %8621 }
 0xfef   : > { %v8624_v6 = vpop.eup %8623  ;;  %v6243_v45 = vadd.f32 1.0, %v8622_v23 }
 0xff0   : > { %v8626_v21 = vpop.eup %8625  ;;  %v6241_v39 = vadd.f32 1.0, %v8624_v6  ;;  %v7404_v54 = vpop.f32.mrb[144].mxu0 }
 0xff1   : > { %v8628_v52 = vpop.eup %8627  ;;  %8629 = vrcp.f32 %v6243_v45  ;;  %v6244_v61 = vadd.f32 1.0, %v8626_v21  ;;  %v12516_v48 = vadd.f32 %v7404_v54, %v12509_v50  ;;  %v6146_v33 = vpop.f32.mrb[145].mxu0 }
 0xff2   : > { %8631 = vrcp.f32 %v6241_v39  ;;  %v6242_v9 = vadd.f32 1.0, %v8628_v52  ;;  %v12519_v35 = vadd.f32 %v12509_v50, %v6146_v33  ;;  %v7405_v16 = vpop.f32.mrb[146].mxu0 }
 0xff3   : > { %8633 = vrcp.f32 %v6244_v61  ;;  %v6828_v37 = vmul.f32 -1.442695, %v12516_v48  ;;  %v12523_v2 = vadd.f32 %v7405_v16, %v12509_v50  ;;  %v6149_v1 = vpop.f32.mrb[147].mxu0 }
 0xff4   : > { %8635 = vrcp.f32 %v6242_v9  ;;  %v6826_v26 = vmul.f32 -1.442695, %v12519_v35  ;;  %v6150_v18 = vadd.f32 %v12509_v50, %v6149_v1 }
 0xff5   : > { %8637 = vpow2.f32 %v6828_v37  ;;  %v6829_v43 = vmul.f32 -1.442695, %v12523_v2 }
 0xff6   : > { %8639 = vpow2.f32 %v6826_v26  ;;  %v6827_v41 = vmul.f32 -1.442695, %v6150_v18 }
 0xff7   : > { %8641 = vpow2.f32 %v6829_v43 }
 0xff8   : > { %8643 = vpow2.f32 %v6827_v41 }
 0xffb   : > { %v8630_v10 = vpop.eup %8629 }
 0xffc   : > { %v8632_v4 = vpop.eup %8631  ;;  %v6291_v8 = vmul.f32 %v8630_v10, %v6139_v32 }
 0xffd   : > { %v8634_v29 = vpop.eup %8633  ;;  %v6289_v0 = vmul.f32 %v8632_v4, %v6131_v22 }
 0xffe   : > { %v8636_v60 = vpop.eup %8635  ;;  %v6307_v40 = vadd.f32 %v6291_v8, %v12370_v63  ;;  %v6292_v25 = vmul.f32 %v8634_v29, %v6142_v20 }
 0xfff   : > { %v8638_v57 = vpop.eup %8637  ;;  %v6305_v38 = vadd.f32 %v6289_v0, %v12364_v11  ;;  %v6290_v49 = vmul.f32 %v8636_v60, %v6134_v42 }
0x1000   : > { %v8640_v47 = vpop.eup %8639  ;;  %6323 = vst.msk [vmem:[%s12532_s27 + $0x10] sm:$0xff] %vm681_vm2, %v6307_v40  ;;  %v6308_v59 = vadd.f32 %v6292_v25, %v12361_v31  ;;  %v6247_v34 = vadd.f32 1.0, %v8638_v57 }
0x1001   : > { %v8642_v51 = vpop.eup %8641  ;;  %6321 = vst.msk [vmem:[%s12532_s27] sm:$0xff] %vm681_vm2, %v6305_v38  ;;  %v6306_v13 = vadd.f32 %v6290_v49, %v12367_v17  ;;  %v6245_v32 = vadd.f32 1.0, %v8640_v47  ;;  %v7408_v27 = vpop.f32.mrb[148].mxu0 }
0x1002   : > { %v8644_v63 = vpop.eup %8643  ;;  %6324 = vst.msk [vmem:[%s12532_s27 + $0x18] sm:$0xff] %vm681_vm2, %v6308_v59  ;;  %8645 = vrcp.f32 %v6247_v34  ;;  %v6248_v11 = vadd.f32 1.0, %v8642_v51  ;;  %v12545_v22 = vadd.f32 %v7408_v27, %v12509_v50  ;;  %v6162_v7 = vpop.f32.mrb[149].mxu0 }
0x1003   : > { %6322 = vst.msk [vmem:[%s12532_s27 + $0x8] sm:$0xff] %vm681_vm2, %v6306_v13  ;;  %8647 = vrcp.f32 %v6245_v32  ;;  %v6246_v31 = vadd.f32 1.0, %v8644_v63  ;;  %v12550_v62 = vadd.f32 %v12509_v50, %v6162_v7  ;;  %v7409_v20 = vpop.f32.mrb[150].mxu0 }
0x1004   : > { %8649 = vrcp.f32 %v6248_v11  ;;  %v6832_v17 = vmul.f32 -1.442695, %v12545_v22  ;;  %v6174_v44 = vadd.f32 %v7409_v20, %v12509_v50  ;;  %v6165_v30 = vpop.f32.mrb[151].mxu0 }
0x1005   : > { %8651 = vrcp.f32 %v6246_v31  ;;  %v6830_v42 = vmul.f32 -1.442695, %v12550_v62  ;;  %v6166_v28 = vadd.f32 %v12509_v50, %v6165_v30 }
0x1006   : > { %8653 = vpow2.f32 %v6832_v17  ;;  %v6833_v12 = vmul.f32 -1.442695, %v6174_v44 }
0x1007   : > { %8655 = vpow2.f32 %v6830_v42  ;;  %v6831_v23 = vmul.f32 -1.442695, %v6166_v28 }
0x1008   : > { %8657 = vpow2.f32 %v6833_v12 }
0x1009   : > { %8659 = vpow2.f32 %v6831_v23 }
0x100c   : > { %v8646_v6 = vpop.eup %8645 }
0x100d   : > { %v8648_v45 = vpop.eup %8647  ;;  %v6295_v21 = vmul.f32 %v8646_v6, %v12516_v48 }
0x100e   : > { %v8650_v39 = vpop.eup %8649  ;;  %v6293_v54 = vmul.f32 %v8648_v45, %v12519_v35 }
0x100f   : > { %v8652_v52 = vpop.eup %8651  ;;  %v6311_v61 = vadd.f32 %v6295_v21, %v12402_v56  ;;  %v6296_v33 = vmul.f32 %v8650_v39, %v12523_v2 }
0x1010   : > { %v8654_v9 = vpop.eup %8653  ;;  %v6309_v16 = vadd.f32 %v6293_v54, %v12396_v5  ;;  %v6294_v37 = vmul.f32 %v8652_v52, %v6150_v18 }
0x1011   : > { %v8656_v1 = vpop.eup %8655  ;;  %6327 = vst.msk [vmem:[%s12532_s27 + $0x30] sm:$0xff] %vm681_vm2, %v6311_v61  ;;  %v6312_v26 = vadd.f32 %v6296_v33, %v12393_v55  ;;  %v6251_v48 = vadd.f32 1.0, %v8654_v9 }
0x1012   : > { %v8658_v43 = vpop.eup %8657  ;;  %6325 = vst.msk [vmem:[%s12532_s27 + $0x20] sm:$0xff] %vm681_vm2, %v6309_v16  ;;  %v6310_v35 = vadd.f32 %v6294_v37, %v12399_v3  ;;  %v6249_v41 = vadd.f32 1.0, %v8656_v1  ;;  %v7412_v56 = vpop.f32.mrb[152].mxu0 }
0x1013   : > { %v8660_v10 = vpop.eup %8659  ;;  %6328 = vst.msk [vmem:[%s12532_s27 + $0x38] sm:$0xff] %vm681_vm2, %v6312_v26  ;;  %8661 = vrcp.f32 %v6251_v48  ;;  %v6252_v5 = vadd.f32 1.0, %v8658_v43  ;;  %v6187_v2 = vadd.f32 %v7412_v56, %v12509_v50  ;;  %v6178_v18 = vpop.f32.mrb[153].mxu0 }
0x1014   : > { %6326 = vst.msk [vmem:[%s12532_s27 + $0x28] sm:$0xff] %vm681_vm2, %v6310_v35  ;;  %8663 = vrcp.f32 %v6249_v41  ;;  %v6250_v55 = vadd.f32 1.0, %v8660_v10  ;;  %v6179_v4 = vadd.f32 %v12509_v50, %v6178_v18  ;;  %v7413_v8 = vpop.f32.mrb[154].mxu0 }
0x1015   : > { %8665 = vrcp.f32 %v6252_v5  ;;  %v6836_v29 = vmul.f32 -1.442695, %v6187_v2  ;;  %v6190_v3 = vadd.f32 %v7413_v8, %v12509_v50  ;;  %v6181_v0 = vpop.f32.mrb[155].mxu0 }
0x1016   : > { %8667 = vrcp.f32 %v6250_v55  ;;  %v6834_v60 = vmul.f32 -1.442695, %v6179_v4  ;;  %v6182_v40 = vadd.f32 %v12509_v50, %v6181_v0 }
0x1017   : > { %8669 = vpow2.f32 %v6836_v29  ;;  %v6837_v25 = vmul.f32 -1.442695, %v6190_v3 }
0x1018   : > { %8671 = vpow2.f32 %v6834_v60  ;;  %v6835_v57 = vmul.f32 -1.442695, %v6182_v40 }
0x1019   : > { %8673 = vpow2.f32 %v6837_v25 }
0x101a   : > { %8675 = vpow2.f32 %v6835_v57 }
0x101d   : > { %v8662_v38 = vpop.eup %8661 }
0x101e   : > { %v8664_v49 = vpop.eup %8663  ;;  %v6299_v47 = vmul.f32 %v8662_v38, %v12545_v22 }
0x101f   : > { %v8666_v59 = vpop.eup %8665  ;;  %v6297_v34 = vmul.f32 %v8664_v49, %v12550_v62 }
0x1020   : > { %v8668_v51 = vpop.eup %8667  ;;  %v6315_v13 = vadd.f32 %v6299_v47, %v12427_v53  ;;  %v6300_v50 = vmul.f32 %v8666_v59, %v6174_v44 }
0x1021   : > { %v8670_v32 = vpop.eup %8669  ;;  %v6313_v27 = vadd.f32 %v6297_v34, %v12421_v24  ;;  %v6298_v63 = vmul.f32 %v8668_v51, %v6166_v28 }
0x1022   : > { %v8672_v11 = vpop.eup %8671  ;;  %6331 = vst.msk [vmem:[%s12532_s27 + $0x50] sm:$0xff] %vm681_vm2, %v6315_v13  ;;  %v6316_v7 = vadd.f32 %v6300_v50, %v12418_v58  ;;  %v6255_v31 = vadd.f32 1.0, %v8670_v32 }
0x1023   : > { %v8674_v22 = vpop.eup %8673  ;;  %6329 = vst.msk [vmem:[%s12532_s27 + $0x40] sm:$0xff] %vm681_vm2, %v6313_v27  ;;  %v6314_v62 = vadd.f32 %v6298_v63, %v12424_v14  ;;  %v6253_v20 = vadd.f32 1.0, %v8672_v11 }
0x1024   : > { %v8676_v17 = vpop.eup %8675  ;;  %6332 = vst.msk [vmem:[%s12532_s27 + $0x58] sm:$0xff] %vm681_vm2, %v6316_v7  ;;  %8677 = vrcp.f32 %v6255_v31  ;;  %v6256_v53 = vadd.f32 1.0, %v8674_v22 }
0x1025   : > { %6330 = vst.msk [vmem:[%s12532_s27 + $0x48] sm:$0xff] %vm681_vm2, %v6314_v62  ;;  %8679 = vrcp.f32 %v6253_v20  ;;  %v6254_v24 = vadd.f32 1.0, %v8676_v17 }
0x1026   : > { %8681 = vrcp.f32 %v6256_v53 }
0x1027   : > { %8683 = vrcp.f32 %v6254_v24 }
0x102e   : > { %v8678_v58 = vpop.eup %8677 }
0x102f   : > { %v8680_v44 = vpop.eup %8679  ;;  %v6303_v30 = vmul.f32 %v8678_v58, %v6187_v2 }
0x1030   : > { %v8682_v14 = vpop.eup %8681  ;;  %v6301_v42 = vmul.f32 %v8680_v44, %v6179_v4 }
0x1031   : > { %v8684_v28 = vpop.eup %8683  ;;  %v6319_v12 = vadd.f32 %v6303_v30, %v12445_v36  ;;  %v6304_v23 = vmul.f32 %v8682_v14, %v6190_v3 }
0x1032   : > { %v6317_v6 = vadd.f32 %v6301_v42, %v12439_v19  ;;  %v6302_v45 = vmul.f32 %v8684_v28, %v6182_v40 }
0x1033   : > { %6335 = vst.msk [vmem:[%s12532_s27 + $0x70] sm:$0xff] %vm681_vm2, %v6319_v12  ;;  %v6320_v21 = vadd.f32 %v6304_v23, %v12436_v15 }
0x1034   : > { %6333 = vst.msk [vmem:[%s12532_s27 + $0x60] sm:$0xff] %vm681_vm2, %v6317_v6  ;;  %v6318_v39 = vadd.f32 %v6302_v45, %v12442_v46 }
0x1035   : > { %6336 = vst.msk [vmem:[%s12532_s27 + $0x78] sm:$0xff] %vm681_vm2, %v6320_v21 }
0x1036   : > { %6334 = vst.msk [vmem:[%s12532_s27 + $0x68] sm:$0xff] %vm681_vm2, %v6318_v39 }
0x1037 PF: > { %s22_s21 = sadd.s32 1, %s8707_s21  }
0x1038   : > { %p19_p4 = scmp.ge.s32.totalorder %s22_s21, 4  }
0x103a   :  { %21 = sbr.rel (!%p19_p4) target bundleno = 1 (0x1), region = 122 }

</bundles_post_ra>
